<compile_context>
chip_gen: v7x
topology: tpu7x:2x2x1
jax: 0.10.0
libtpu: 0.0.40
codegen_flags: <defaults>
</compile_context>

<pallas_src>
import math
import functools

import numpy as np
import jax
import jax.numpy as jnp
from jax.experimental import pallas as pl
from jax.experimental.pallas import tpu as pltpu


# ----------------------------------------------------------------------------
# Scaled-down configuration (original values in comments).
# ----------------------------------------------------------------------------
class cfg:
    N_POSE_BIN = 12          # orig 300
    CELL_SIZE = 4            # orig grid cell count per side
    USE_6D = False
    INPUT_IMG_SIZE = 256     # required by TaskHead's n_features*8 flatten constraint
    Tz_BINS_NUM = 24


BACKBONE_CH = (16, 16, 32, 64, 128)   # orig resnet34: (64, 64, 128, 256, 512)
OUT_FEAT = 16                         # orig 64
DEC_CH = 32                           # orig 128
REG1 = 32                             # orig 128
REG2 = 64                             # orig 256
PATCH = 5                             # orig 11  (correlation patch size)
CORR_FEAT_X4 = 16                     # orig 64
CORR_FEAT = 32                        # orig 128
HIDDEN = 64                           # orig 256 (TaskHead hidden size)
N_DEPTH_BIN = 24                      # orig 1000
ASPP_RATES = (2, 3, 4, 6, 8, 12)
NORM_GROUPS = 32

_VMEM_LIMIT = 32 * 1024 * 1024        # right-sized for v7x (64 MiB physical VMEM)
_GEMM_VMEM_BUDGET = 12 * 1024 * 1024  # double-buffered tile footprint target
_IMPLICIT_A_BUDGET = 16 * 1024 * 1024


def _round_up(x, m):
    return ((x + m - 1) // m) * m


def _cdiv(a, b):
    return -(-a // b)


def _pad_to(x, target_shape):
    pads = tuple((0, t - s) for s, t in zip(x.shape, target_shape))
    if any(p[1] for p in pads):
        x = jnp.pad(x, pads)
    return x


# ----------------------------------------------------------------------------
# Pallas kernel 1: batched single-K-step matmul, bf16 MXU operands, f32
# accumulation, fused bias + activation.  No scratch accumulator, K un-padded
# (only to a multiple of 8), N un-padded when <= 512.
# ----------------------------------------------------------------------------
def _make_gemm_kernel(act):
    def kernel(a_ref, b_ref, bias_ref, o_ref):
        r = jnp.dot(a_ref[0], b_ref[0], preferred_element_type=jnp.float32)
        r = r + bias_ref[0]
        if act == "silu":
            r = r * jax.nn.sigmoid(r)
        elif act == "relu":
            r = jnp.maximum(r, 0.0)
        o_ref[0] = r.astype(o_ref.dtype)
    return kernel


_GEMM_KERNELS = {a: _make_gemm_kernel(a) for a in ("none", "silu", "relu")}


@functools.partial(jax.jit, static_argnames=("act", "out_dtype"))
def _pallas_gemm(a, b, bias, act="none", out_dtype=jnp.float32):
    """a: (B, M, K), b: (Wb, K, N) with Wb in {1, B}, bias: (Wb, 1, N)."""
    B, M, K = a.shape
    Wb, _, N = b.shape
    K8 = _round_up(K, 8)                       # contraction dim 8-aligned (zero-padded)
    if N <= 512:
        tn, Np = N, N                          # single, un-padded N block
    else:
        tn = 256
        Np = _round_up(N, tn)
    out_bytes = jnp.dtype(out_dtype).itemsize
    # pick tm from a (lane-padding aware) VMEM budget instead of a fixed 512 cap
    tmc = 4096
    while tmc > 256 and (2 * tmc * max(K8, 128) * 2
                         + 2 * max(K8, 128) * max(tn, 128) * 2
                         + 2 * tmc * max(tn, 128) * out_bytes) > _GEMM_VMEM_BUDGET:
        tmc //= 2
    nsteps = max(1, _cdiv(M, tmc))
    tm = _round_up(_cdiv(M, nsteps), 8)
    Mp = tm * nsteps

    a_p = _pad_to(a.astype(jnp.bfloat16), (B, Mp, K8))
    b_p = _pad_to(b.astype(jnp.bfloat16), (Wb, K8, Np))
    bias_p = _pad_to(bias.astype(jnp.float32), (Wb, 1, Np))

    if Wb == B and B > 1:
        bmap = lambda n, i, j: (n, 0, j)
    else:
        bmap = lambda n, i, j: (0, 0, j)

    out = pl.pallas_call(
        _GEMM_KERNELS[act],
        out_shape=jax.ShapeDtypeStruct((B, Mp, Np), out_dtype),
        grid_spec=pltpu.PrefetchScalarGridSpec(
            num_scalar_prefetch=0,
            grid=(B, nsteps, Np // tn),
            in_specs=[pl.BlockSpec((1, tm, K8), lambda n, i, j: (n, i, 0)),
                      pl.BlockSpec((1, K8, tn), bmap),
                      pl.BlockSpec((1, 1, tn), bmap)],
            out_specs=pl.BlockSpec((1, tm, tn), lambda n, i, j: (n, i, j))),
        compiler_params=pltpu.CompilerParams(
            dimension_semantics=("parallel", "parallel", "parallel"),
            vmem_limit_bytes=_VMEM_LIMIT),
    )(a_p, b_p, bias_p)
    if Mp != M or Np != N:
        out = out[:, :M, :N]
    return out


# ----------------------------------------------------------------------------
# Pallas kernel 2: implicit-GEMM "same" convolution (stride 1, padding = d*k//2).
# The padded NHWC image is flattened to (rows, C) in HBM once (~1.05x traffic,
# no 9x im2col) and stays VMEM-resident across output-row tiles; the k*k taps
# are row-offset matmuls accumulated in-kernel.
# ----------------------------------------------------------------------------
def _make_implicit_conv_kernel(offsets, tm, act):
    def kernel(a_ref, w_ref, b_ref, o_ref):
        base = pl.program_id(1) * tm
        cout = o_ref.shape[2]
        acc = jnp.zeros((tm, cout), jnp.float32)
        for t, off in enumerate(offsets):
            av = a_ref[0, pl.ds(base + off, tm), :]
            acc = acc + jnp.dot(av, w_ref[0, t], preferred_element_type=jnp.float32)
        r = acc + b_ref[0]
        if act == "silu":
            r = r * jax.nn.sigmoid(r)
        elif act == "relu":
            r = jnp.maximum(r, 0.0)
        o_ref[0] = r.astype(o_ref.dtype)
    return kernel


@functools.partial(jax.jit, static_argnames=("k", "dilation", "act", "out_dtype"))
def _conv_same_impl(x, w_taps, bias, k, dilation, act, out_dtype):
    """x: NHWC; w_taps: (Wb, k*k, C, Cout); bias: (Wb, 1, Cout)."""
    N, H, W, C = x.shape
    Wb, KK, _, Cout = w_taps.shape
    d = dilation
    p = d * (k // 2)
    Wp = W + d * (k - 1)
    m_out = H * Wp
    nsteps = max(1, _cdiv(m_out, 2048))
    tm = _round_up(_cdiv(m_out, nsteps), 8)
    m_pad = tm * nsteps
    max_off = d * (k - 1) * Wp + d * (k - 1)
    rows_needed = m_pad + max_off
    Hp = _cdiv(rows_needed, Wp)
    pad_bottom = Hp - H - p
    C8 = _round_up(C, 8)

    xp = jnp.pad(x, ((0, 0), (p, pad_bottom), (p, d * (k - 1) - p), (0, C8 - C)))
    A = xp.astype(jnp.bfloat16).reshape(N, Hp * Wp, C8)
    w_p = jnp.pad(w_taps, ((0, 0), (0, 0), (0, C8 - C), (0, 0))).astype(jnp.bfloat16)
    bias_p = bias.astype(jnp.float32)

    offsets = tuple(i * d * Wp + j * d for i in range(k) for j in range(k))
    kern = _make_implicit_conv_kernel(offsets, tm, act)
    if Wb == N and N > 1:
        wmap = lambda n, i: (n, 0, 0, 0)
        bmap = lambda n, i: (n, 0, 0)
    else:
        wmap = lambda n, i: (0, 0, 0, 0)
        bmap = lambda n, i: (0, 0, 0)

    out = pl.pallas_call(
        kern,
        out_shape=jax.ShapeDtypeStruct((N, m_pad, Cout), out_dtype),
        grid_spec=pltpu.PrefetchScalarGridSpec(
            num_scalar_prefetch=0,
            grid=(N, nsteps),
            in_specs=[pl.BlockSpec((1, Hp * Wp, C8), lambda n, i: (n, 0, 0)),
                      pl.BlockSpec((1, KK, C8, Cout), wmap),
                      pl.BlockSpec((1, 1, Cout), bmap)],
            out_specs=pl.BlockSpec((1, tm, Cout), lambda n, i: (n, i, 0))),
        compiler_params=pltpu.CompilerParams(
            dimension_semantics=("parallel", "arbitrary"),
            vmem_limit_bytes=_VMEM_LIMIT),
    )(A, w_p, bias_p)
    out = out[:, :m_out, :].reshape(N, H, Wp, Cout)[:, :, :W, :]
    return out


# ----------------------------------------------------------------------------
# Conv dispatch: 1x1 -> plain matmul, stride-1 "same" -> implicit GEMM,
# otherwise im2col + matmul.  NHWC everywhere, zero transposes.
# ----------------------------------------------------------------------------
def _im2col_nhwc(x, kh, kw, stride, padding, dilation):
    N, H, W, C = x.shape
    Ho = (H + 2 * padding - dilation * (kh - 1) - 1) // stride + 1
    Wo = (W + 2 * padding - dilation * (kw - 1) - 1) // stride + 1
    xp = jnp.pad(x, ((0, 0), (padding, padding), (padding, padding), (0, 0)))
    cols = []
    for i in range(kh):
        for j in range(kw):
            di, dj = i * dilation, j * dilation
            cols.append(xp[:, di:di + (Ho - 1) * stride + 1:stride,
                           dj:dj + (Wo - 1) * stride + 1:stride, :])
    patches = jnp.concatenate(cols, axis=-1)            # (N, Ho, Wo, kh*kw*C)
    return patches, Ho, Wo


@functools.partial(jax.jit, static_argnames=("stride", "padding", "dilation", "act", "out_dtype"))
def _conv_im2col_impl(x, w, bias, stride, padding, dilation, act, out_dtype):
    N = x.shape[0]
    cout, cin, kh, kw = w.shape
    patches, Ho, Wo = _im2col_nhwc(x, kh, kw, stride, padding, dilation)
    a = patches.reshape(1, N * Ho * Wo, kh * kw * cin)
    bm = jnp.transpose(w, (2, 3, 1, 0)).reshape(1, kh * kw * cin, cout)
    y = _pallas_gemm(a, bm, bias.reshape(1, 1, cout), act=act, out_dtype=out_dtype)
    return y[0].reshape(N, Ho, Wo, cout)


@functools.partial(jax.jit, static_argnames=("stride", "act", "out_dtype"))
def _conv1x1_impl(x, w, bias, stride, act, out_dtype):
    cout = w.shape[0]
    if stride != 1:
        x = x[:, ::stride, ::stride, :]
    N, H, W, C = x.shape
    a = x.reshape(1, N * H * W, C)
    bm = w.reshape(cout, C).T.reshape(1, C, cout)
    y = _pallas_gemm(a, bm, bias.reshape(1, 1, cout), act=act, out_dtype=out_dtype)
    return y[0].reshape(N, H, W, cout)


def conv2d(x, w, bias=None, stride=1, padding=0, dilation=1, act="none",
           out_dtype=jnp.float32):
    """x: NHWC; w: (cout, cin, kh, kw) (PyTorch layout)."""
    cout, cin, kh, kw = w.shape
    if bias is None:
        bias = jnp.zeros((cout,), jnp.float32)
    if kh == 1 and kw == 1:
        return _conv1x1_impl(x, w, bias, stride=stride, act=act, out_dtype=out_dtype)
    if stride == 1 and kh == kw and padding == dilation * (kh // 2):
        # implicit-GEMM path; guard the resident-A VMEM footprint
        Hp = x.shape[1] + dilation * (kh - 1) + 1
        Wp = x.shape[2] + dilation * (kh - 1)
        a_vmem = Hp * Wp * _round_up(max(cin, 1), 128) * 2 * 2
        if a_vmem <= _IMPLICIT_A_BUDGET:
            w_taps = jnp.transpose(w, (2, 3, 1, 0)).reshape(1, kh * kw, cin, cout)
            return _conv_same_impl(x, w_taps, bias.reshape(1, 1, cout),
                                   k=kh, dilation=dilation, act=act, out_dtype=out_dtype)
    return _conv_im2col_impl(x, w, bias, stride=stride, padding=padding,
                             dilation=dilation, act=act, out_dtype=out_dtype)


# ----------------------------------------------------------------------------
# Pallas kernel 3: GroupNorm (channel-last, per-sample grid, resident gamma/beta,
# centered two-pass statistics; group pooling via a block-diagonal matmul).
# ----------------------------------------------------------------------------
def _make_gn_kernel(act, groups, eps=1e-5):
    def kernel(x_ref, g_ref, b_ref, o_ref):
        x = x_ref[0].astype(jnp.float32)                   # (L, C)
        L, C = x.shape
        cg = C // groups
        cnt = float(L * cg)
        c1 = jax.lax.broadcasted_iota(jnp.int32, (C, C), 0) // cg
        c2 = jax.lax.broadcasted_iota(jnp.int32, (C, C), 1) // cg
        pool = (c1 == c2).astype(jnp.float32)              # block-diagonal group pooling
        s = jnp.sum(x, axis=0, keepdims=True)              # (1, C)
        mean = jnp.dot(s, pool, preferred_element_type=jnp.float32) / cnt
        xc = x - mean
        ssq = jnp.sum(xc * xc, axis=0, keepdims=True)
        var = jnp.dot(ssq, pool, preferred_element_type=jnp.float32) / cnt
        inv = jax.lax.rsqrt(var + eps)
        y = xc * (inv * g_ref[...]) + b_ref[...]
        if act == "silu":
            y = y * jax.nn.sigmoid(y)
        elif act == "relu":
            y = jnp.maximum(y, 0.0)
        o_ref[0] = y.astype(o_ref.dtype)
    return kernel


@functools.partial(jax.jit, static_argnames=("groups", "act"))
def group_norm(x, gamma, beta, groups, act="none"):
    N, H, W, C = x.shape
    L = H * W
    xr = x.reshape(N, L, C)
    g2 = gamma.reshape(1, C).astype(jnp.float32)
    b2 = beta.reshape(1, C).astype(jnp.float32)
    y = pl.pallas_call(
        _make_gn_kernel(act, groups),
        out_shape=jax.ShapeDtypeStruct((N, L, C), jnp.float32),
        grid_spec=pltpu.PrefetchScalarGridSpec(
            num_scalar_prefetch=0, grid=(N,),
            in_specs=[pl.BlockSpec((1, L, C), lambda n: (n, 0, 0)),
                      pl.BlockSpec((1, C), lambda n: (0, 0)),
                      pl.BlockSpec((1, C), lambda n: (0, 0))],
            out_specs=pl.BlockSpec((1, L, C), lambda n: (n, 0, 0))),
        compiler_params=pltpu.CompilerParams(dimension_semantics=("parallel",)),
    )(xr, g2, b2)
    return y.reshape(N, H, W, C)


# ----------------------------------------------------------------------------
# Pallas kernels 4a/4b: BatchNorm (batch statistics), channel-last, two tiled
# pipelined passes (partial sum/sum^2 reduction then normalize+act).
# ----------------------------------------------------------------------------
def _bn_stats_kernel(x_ref, o_ref):
    @pl.when(pl.program_id(0) == 0)
    def _():
        o_ref[...] = jnp.zeros_like(o_ref)
    x = x_ref[...].astype(jnp.float32)
    o_ref[...] += jnp.concatenate(
        [jnp.sum(x, axis=0, keepdims=True),
         jnp.sum(x * x, axis=0, keepdims=True)], axis=0)


def _make_bn_norm_kernel(act):
    def kernel(x_ref, sc_ref, sh_ref, o_ref):
        y = x_ref[...].astype(jnp.float32) * sc_ref[...] + sh_ref[...]
        if act == "silu":
            y = y * jax.nn.sigmoid(y)
        elif act == "relu":
            y = jnp.maximum(y, 0.0)
        o_ref[...] = y.astype(o_ref.dtype)
    return kernel


_BN_NORM_KERNELS = {a: _make_bn_norm_kernel(a) for a in ("none", "silu", "relu")}


def _pick_row_tile(M, cap=4096):
    if M <= cap:
        return M
    t = 1
    while t * 2 <= cap and M % (t * 2) == 0:
        t *= 2
    return t if t >= 8 else M


@functools.partial(jax.jit, static_argnames=("act",))
def batch_norm(x, gamma, beta, act="none", eps=1e-5):
    # track_running_stats=False => always use batch statistics.
    N, H, W, C = x.shape
    M = N * H * W
    xr = x.reshape(M, C)
    tr = _pick_row_tile(M)
    stats = pl.pallas_call(
        _bn_stats_kernel,
        out_shape=jax.ShapeDtypeStruct((2, C), jnp.float32),
        grid_spec=pltpu.PrefetchScalarGridSpec(
            num_scalar_prefetch=0, grid=(M // tr,),
            in_specs=[pl.BlockSpec((tr, C), lambda i: (i, 0))],
            out_specs=pl.BlockSpec((2, C), lambda i: (0, 0))),
        compiler_params=pltpu.CompilerParams(dimension_semantics=("arbitrary",)),
    )(xr)
    mean = stats[0] / M
    var = jnp.maximum(stats[1] / M - mean * mean, 0.0)
    inv = jax.lax.rsqrt(var + eps)
    scale = (gamma * inv).reshape(1, C).astype(jnp.float32)
    shift = (beta - mean * gamma * inv).reshape(1, C).astype(jnp.float32)
    y = pl.pallas_call(
        _BN_NORM_KERNELS[act],
        out_shape=jax.ShapeDtypeStruct((M, C), jnp.float32),
        grid_spec=pltpu.PrefetchScalarGridSpec(
            num_scalar_prefetch=0, grid=(M // tr,),
            in_specs=[pl.BlockSpec((tr, C), lambda i: (i, 0)),
                      pl.BlockSpec((1, C), lambda i: (0, 0)),
                      pl.BlockSpec((1, C), lambda i: (0, 0))],
            out_specs=pl.BlockSpec((tr, C), lambda i: (i, 0))),
        compiler_params=pltpu.CompilerParams(dimension_semantics=("parallel",)),
    )(xr, scale, shift)
    return y.reshape(N, H, W, C)


# ----------------------------------------------------------------------------
# Pallas kernel 5: spatial correlation volume (channel-last).  x2 stays padded
# & VMEM resident per sample; di row-slices hoisted, 25 channel dot-reductions
# in-kernel, 1/sqrt(fd) fused.
# ----------------------------------------------------------------------------
def _make_corr_kernel(patch, inv_scale):
    def kernel(x1_ref, x2p_ref, o_ref):
        x1 = x1_ref[0].astype(jnp.float32)                 # (H, W, C)
        H, W = x1.shape[0], x1.shape[1]
        for di in range(patch):
            slab = x2p_ref[0, di:di + H].astype(jnp.float32)   # (H, Wp, C)
            for dj in range(patch):
                win = slab[:, dj:dj + W, :]
                o_ref[0, di * patch + dj] = jnp.sum(x1 * win, axis=-1) * inv_scale
    return kernel


@functools.partial(jax.jit, static_argnames=("patch", "feature_dim"))
def _pallas_corr(x1, x2, patch, feature_dim):
    B, H, W, C = x1.shape
    pad = patch // 2
    x2p = jnp.pad(x2, ((0, 0), (pad, pad), (pad, pad), (0, 0)))
    Hp, Wp = H + 2 * pad, W + 2 * pad
    out = pl.pallas_call(
        _make_corr_kernel(patch, 1.0 / math.sqrt(feature_dim)),
        out_shape=jax.ShapeDtypeStruct((B, patch * patch, H, W), jnp.float32),
        grid_spec=pltpu.PrefetchScalarGridSpec(
            num_scalar_prefetch=0, grid=(B,),
            in_specs=[pl.BlockSpec((1, H, W, C), lambda b: (b, 0, 0, 0)),
                      pl.BlockSpec((1, Hp, Wp, C), lambda b: (b, 0, 0, 0))],
            out_specs=pl.BlockSpec((1, patch * patch, H, W), lambda b: (b, 0, 0, 0))),
        compiler_params=pltpu.CompilerParams(dimension_semantics=("parallel",)),
    )(x1, x2p)
    return jnp.transpose(out, (0, 2, 3, 1))                # NHWC for channel concat


def upsample2x(x):
    # nn.Upsample(scale_factor=2, mode='bilinear', align_corners=False)
    N, H, W, C = x.shape
    return jax.image.resize(x, (N, 2 * H, 2 * W, C), method="bilinear")


# ----------------------------------------------------------------------------
# Deterministic parameter initialization.
# ----------------------------------------------------------------------------
class ParamInit:
    def __init__(self, seed=0):
        self._key = jax.random.PRNGKey(seed)
        self._n = 0

    def __call__(self, shape, scale=None):
        self._n += 1
        k = jax.random.fold_in(self._key, self._n)
        if scale is None:
            fan_in = int(np.prod(shape[1:])) if len(shape) > 1 else int(shape[0])
            scale = 1.0 / math.sqrt(max(fan_in, 1))
        return scale * jax.random.normal(k, shape, dtype=jnp.float32)


# ----------------------------------------------------------------------------
# Module builders / apply functions (all activations NHWC).
# ----------------------------------------------------------------------------
def make_conv_gn(init, cin, cout, k, norm_groups=NORM_GROUPS):
    return dict(w=init((cout, cin, k, k)),
                gamma=jnp.ones((cout,), jnp.float32),
                beta=jnp.zeros((cout,), jnp.float32),
                groups=norm_groups)


def conv_gn_silu(p, x, stride=1, padding=0, dilation=1):
    # ConvGnReLU: Conv2d(bias=False) -> GroupNorm -> SiLU  (bf16 conv output)
    y = conv2d(x, p["w"], stride=stride, padding=padding, dilation=dilation,
               out_dtype=jnp.bfloat16)
    return group_norm(y, p["gamma"], p["beta"], p["groups"], act="silu")


def make_conv_bn(init, cin, cout, k):
    return dict(w=init((cout, cin, k, k)),
                gamma=jnp.ones((cout,), jnp.float32),
                beta=jnp.zeros((cout,), jnp.float32))


def conv_bn(p, x, stride, padding, act):
    y = conv2d(x, p["w"], stride=stride, padding=padding, out_dtype=jnp.bfloat16)
    return batch_norm(y, p["gamma"], p["beta"], act=act)


def make_basic_block(init, cin, cout, stride):
    blk = dict(c1=make_conv_bn(init, cin, cout, 3),
               c2=make_conv_bn(init, cout, cout, 3),
               stride=stride)
    if stride != 1 or cin != cout:
        blk["ds"] = make_conv_bn(init, cin, cout, 1)
    return blk


def basic_block(p, x):
    s = p["stride"]
    out = conv_bn(p["c1"], x, stride=s, padding=1, act="relu")
    out = conv_bn(p["c2"], out, stride=1, padding=1, act="none")
    idt = conv_bn(p["ds"], x, stride=s, padding=0, act="none") if "ds" in p else x
    return jnp.maximum(out + idt, 0.0)


def make_aspp(init, n_features, rates):
    return dict(convs=[make_conv_gn(init, n_features, n_features, 3) for _ in rates],
                rates=tuple(rates))


def aspp(p, x):
    # TODO(synk): AdaptiveAvgPool2d((1,1)) global pool kept in JAX glue.
    x_pool = jnp.mean(x, axis=(1, 2), keepdims=True)
    x_pool = jnp.broadcast_to(x_pool, x.shape)
    outs = [x, x_pool] + [conv_gn_silu(c, x, stride=1, padding=r, dilation=r)
                          for c, r in zip(p["convs"], p["rates"])]
    return jnp.concatenate(outs, axis=-1)


def make_correlation(init, patch, input_dim, feature_dim):
    return dict(w=init((feature_dim, input_dim, 1, 1)),
                b=jnp.zeros((feature_dim,), jnp.float32),
                patch=patch, fd=feature_dim)


def correlation(p, in1, in2):
    x1 = conv2d(in1, p["w"], bias=p["b"])      # shared proj_in (1x1)
    x2 = conv2d(in2, p["w"], bias=p["b"])
    return _pallas_corr(x1, x2, p["patch"], p["fd"])       # (B, H, W, P*P), scaled


def make_cond_conv(init, n_channels, n_filters, k, n_class=1, activation="swish",
                   padding=None):
    act = "silu" if activation == "swish" else ("relu" if activation == "relu" else "none")
    return dict(w=init((n_class, n_filters, n_channels, k, k)),
                b=init((n_class, n_filters), scale=0.01),
                pad=(k // 2 if padding is None else padding),
                act=act)


@functools.partial(jax.jit, static_argnames=("act", "out_dtype"))
def _cond_conv1x1_impl(x, w_all, b_all, act, out_dtype):
    N, H, W, C = x.shape
    cout = w_all.shape[1]
    a = x.reshape(N, H * W, C)
    bm = jnp.transpose(w_all.reshape(N, cout, C), (0, 2, 1))
    y = _pallas_gemm(a, bm, b_all.reshape(N, 1, cout), act=act, out_dtype=out_dtype)
    return y.reshape(N, H, W, cout)


def cond_conv(p, x, decoder_idx, stride=1):
    # CondConv == per-sample grouped conv; the batch grid axis selects the
    # per-sample weight block (1x1 -> batched matmul, 3x3 -> implicit GEMM).
    w_all = p["w"][decoder_idx]     # (N, Cout, Cin, k, k)
    b_all = p["b"][decoder_idx]     # (N, Cout)
    k = p["w"].shape[-1]
    act = p["act"]
    if k == 1:
        if stride != 1:
            x = x[:, ::stride, ::stride, :]
        return _cond_conv1x1_impl(x, w_all, b_all, act=act, out_dtype=jnp.float32)
    N = x.shape[0]
    cout, cin = w_all.shape[1], w_all.shape[2]
    w_taps = jnp.transpose(w_all, (0, 3, 4, 2, 1)).reshape(N, k * k, cin, cout)
    return _conv_same_impl(x, w_taps, b_all.reshape(N, 1, cout),
                           k=k, dilation=1, act=act, out_dtype=jnp.float32)


def make_task_head(init, n_features, n_class, hidden=HIDDEN):
    return dict(conv=make_conv_gn(init, n_features, n_features // 8, 3),
                w1=init((hidden, n_features * 8 + 3)),
                b1=jnp.zeros((hidden,), jnp.float32),
                w2=init((n_class, hidden)),
                b2=jnp.zeros((n_class,), jnp.float32))


def task_head(p, x, aux_feats):
    h = conv_gn_silu(p["conv"], x, stride=2, padding=1)             # NHWC
    # PyTorch nn.Flatten(1) is channel-major -> transpose the tiny map to NCHW.
    h = jnp.transpose(h, (0, 3, 1, 2)).reshape(h.shape[0], -1)
    h = jnp.concatenate([h, aux_feats], axis=1)
    # TODO(synk): tiny (M=batch) GEMMs kept in plain jnp.dot per perf review.
    h = jax.nn.silu(h @ p["w1"].T + p["b1"])
    h = h @ p["w2"].T + p["b2"]
    return h


# ----------------------------- backbone --------------------------------------
def make_backbone(init, rgb_input_dim=4, out_feat_dim=OUT_FEAT, n_decoders=1):
    ch = BACKBONE_CH
    return dict(
        layer0=make_conv_bn(init, rgb_input_dim, ch[0], 7),
        layer1=[make_basic_block(init, ch[0], ch[1], 1),
                make_basic_block(init, ch[1], ch[1], 1)],
        layer2=[make_basic_block(init, ch[1], ch[2], 2),
                make_basic_block(init, ch[2], ch[2], 1)],
        layer3=[make_basic_block(init, ch[2], ch[3], 2),
                make_basic_block(init, ch[3], ch[3], 1)],
        layer4=[make_basic_block(init, ch[3], ch[4], 2),
                make_basic_block(init, ch[4], ch[4], 1)],
        pool_aspp=make_aspp(init, ch[4], ASPP_RATES),
        pool_proj=dict(w=init((ch[4], ch[4] * 8, 1, 1)),
                       b=jnp.zeros((ch[4],), jnp.float32),
                       gamma=jnp.ones((ch[4],), jnp.float32),
                       beta=jnp.zeros((ch[4],), jnp.float32)),
        dec=dict(
            layer2_1x1=make_cond_conv(init, ch[2], ch[2], 1, n_class=n_decoders),
            layer3_1x1=make_cond_conv(init, ch[3], ch[3], 1, n_class=n_decoders),
            layer4_1x1=make_cond_conv(init, ch[4], ch[4], 1, n_class=n_decoders),
            conv_up3=make_cond_conv(init, ch[3] + ch[4], ch[4], 3, n_class=n_decoders, padding=1),
            conv_up2=make_cond_conv(init, ch[2] + ch[4], ch[3], 3, n_class=n_decoders, padding=1),
            conv_last=make_cond_conv(init, ch[3], out_feat_dim + 1, 1, n_class=n_decoders,
                                     activation=None)))


def backbone_forward(p, x, decoder_idx):
    # x: NHWC
    l0 = conv_bn(p["layer0"], x, stride=2, padding=3, act="silu")
    l1 = l0
    for blk in p["layer1"]:
        l1 = basic_block(blk, l1)
    l2 = l1
    for blk in p["layer2"]:
        l2 = basic_block(blk, l2)
    l3 = l2
    for blk in p["layer3"]:
        l3 = basic_block(blk, l3)
    l4 = l3
    for blk in p["layer4"]:
        l4 = basic_block(blk, l4)

    stem = aspp(p["pool_aspp"], l4)
    pr = p["pool_proj"]
    stem = conv2d(stem, pr["w"], bias=pr["b"], out_dtype=jnp.bfloat16)
    stem = group_norm(stem, pr["gamma"], pr["beta"], NORM_GROUPS, act="silu")

    stem = cond_conv(p["dec"]["layer4_1x1"], stem, decoder_idx)
    stem = upsample2x(stem)
    proj = cond_conv(p["dec"]["layer3_1x1"], l3, decoder_idx)
    stem = jnp.concatenate([stem, proj], axis=-1)
    stem = cond_conv(p["dec"]["conv_up3"], stem, decoder_idx)
    stem = upsample2x(stem)
    proj = cond_conv(p["dec"]["layer2_1x1"], l2, decoder_idx)
    stem = jnp.concatenate([stem, proj], axis=-1)
    stem = cond_conv(p["dec"]["conv_up2"], stem, decoder_idx)
    x_out = cond_conv(p["dec"]["conv_last"], stem, decoder_idx)
    return x_out[..., :-1], x_out[..., -1:]


# ----------------------------- PoseDecoder -----------------------------------
def make_pose_decoder(init):
    return dict(
        conv_down_x8=make_conv_gn(init, OUT_FEAT + 1, DEC_CH, 3),
        conv_down_x16=make_conv_gn(init, DEC_CH, DEC_CH, 3),
        clf_pool=make_aspp(init, DEC_CH, ASPP_RATES),
        corr_x4=make_correlation(init, PATCH, OUT_FEAT + 1, CORR_FEAT_X4),
        reg_conv_x8=make_conv_gn(init, OUT_FEAT + 1 + PATCH * PATCH, REG1, 3),
        corr_x8=make_correlation(init, PATCH, DEC_CH, CORR_FEAT),
        reg_conv_x16=make_conv_gn(init, DEC_CH + PATCH * PATCH + REG1, REG2, 3),
        corr_x16=make_correlation(init, PATCH, DEC_CH, CORR_FEAT),
        reg_conv_add=make_conv_gn(init, DEC_CH + PATCH * PATCH + REG2, REG2, 3),
        reg_pool=make_aspp(init, REG2, ASPP_RATES))


def pose_decoder_forward(p, x_real, x_synt=None):
    if x_synt is None:
        x4 = x_real
        x8 = conv_gn_silu(p["conv_down_x8"], x4, stride=2, padding=1)
        x16 = conv_gn_silu(p["conv_down_x16"], x8, stride=2, padding=1)
        clf = aspp(p["clf_pool"], x16)
        return {"real_x4": x4, "real_x8": x8, "real_x16": x16, "clf_pool": clf}
    x_real_x4, x_real_x8, x_real_x16 = x_real["real_x4"], x_real["real_x8"], x_real["real_x16"]
    x_synt_x4 = x_synt
    c4 = correlation(p["corr_x4"], x_synt_x4, x_real_x4)
    reg_x8 = conv_gn_silu(p["reg_conv_x8"], jnp.concatenate([x_real_x4, c4], -1),
                          stride=2, padding=1)
    x_synt_x8 = conv_gn_silu(p["conv_down_x8"], x_synt_x4, stride=2, padding=1)
    c8 = correlation(p["corr_x8"], x_synt_x8, x_real_x8)
    reg_x16 = conv_gn_silu(p["reg_conv_x16"],
                           jnp.concatenate([x_real_x8, c8, reg_x8], -1),
                           stride=2, padding=1)
    x_synt_x16 = conv_gn_silu(p["conv_down_x16"], x_synt_x8, stride=2, padding=1)
    c16 = correlation(p["corr_x16"], x_synt_x16, x_real_x16)
    reg_add = conv_gn_silu(p["reg_conv_add"],
                           jnp.concatenate([x_real_x16, c16, reg_x16], -1),
                           stride=1, padding=1)
    reg_pool = aspp(p["reg_pool"], reg_add)
    return {"synt_x4": x_synt_x4, "synt_x8": x_synt_x8, "reg_x8": reg_x8,
            "synt_x16": x_synt_x16, "reg_x16": reg_x16, "reg_pool": reg_pool}


# ----------------------------- heads ------------------------------------------
def make_classification_head(init, n_pose_bins, n_depth_bins):
    nf = DEC_CH * 8
    return dict(pose=make_task_head(init, nf, n_pose_bins),
                depth=make_task_head(init, nf, n_depth_bins),
                trans=make_task_head(init, nf, cfg.CELL_SIZE ** 2))


def classification_head(p, feats):
    return (task_head(p["pose"], feats["clf_pool"], feats["fov"]),
            task_head(p["depth"], feats["clf_pool"], feats["fov"]),
            task_head(p["trans"], feats["clf_pool"], feats["fov"]))


def make_regression_head(init, dim_pose=4):
    nf = REG2 * 8
    reg = dict(pose=make_task_head(init, nf, dim_pose),
               depth=make_task_head(init, nf, 1),
               trans=make_task_head(init, nf, 2))
    # mimic xavier_uniform_(gain=1/Tz_BINS_NUM) / (gain=1/CELL_SIZE), zero biases
    reg["depth"]["w2"] = reg["depth"]["w2"] / cfg.Tz_BINS_NUM
    reg["trans"]["w2"] = reg["trans"]["w2"] / cfg.CELL_SIZE
    return reg


def regression_head(p, feats):
    return (task_head(p["pose"], feats["reg_pool"], feats["fov"]),
            task_head(p["depth"], feats["reg_pool"], feats["fov"]),
            task_head(p["trans"], feats["reg_pool"], feats["fov"]))


# ----------------------------- utils stand-ins --------------------------------
def _quat_normalize(q):
    return q / (jnp.linalg.norm(q, axis=-1, keepdims=True) + 1e-8)


def quaternion_to_rotation(q):
    q = _quat_normalize(q)
    w, x, y, z = q[..., 0], q[..., 1], q[..., 2], q[..., 3]
    R = jnp.stack([1 - 2 * (y * y + z * z), 2 * (x * y - z * w), 2 * (x * z + y * w),
                   2 * (x * y + z * w), 1 - 2 * (x * x + z * z), 2 * (y * z - x * w),
                   2 * (x * z - y * w), 2 * (y * z + x * w), 1 - 2 * (x * x + y * y)],
                  axis=-1)
    return R.reshape(q.shape[:-1] + (3, 3))


def trans_from_bins(logits, res):
    idx = jnp.argmax(logits, axis=-1)
    cx = (idx % cfg.CELL_SIZE).astype(jnp.float32)
    cy = (idx // cfg.CELL_SIZE).astype(jnp.float32)
    xy = jnp.stack([(cx + 0.5) / cfg.CELL_SIZE - 0.5,
                    (cy + 0.5) / cfg.CELL_SIZE - 0.5], axis=-1)
    return xy + res


def depth_from_bin_logits(logits, res, dmin, dmax, nb):
    bins = jnp.linspace(dmin, dmax, nb)
    return bins[jnp.argmax(logits, axis=-1)][:, None] + res


def quaternion_from_prototypes(logits, res, proto):
    return _quat_normalize(proto[jnp.argmax(logits, axis=-1)] + res)


def quaternion_from_bin_logits(one_hot, proto):
    return _quat_normalize(one_hot @ proto)


def perspective_to_trans_3d(tp, image_size, K):
    H, W = image_size
    px = (tp[..., 0] + 0.5) * W
    py = (tp[..., 1] + 0.5) * H
    z = tp[..., 2]
    fx, fy = K[..., 0, 0], K[..., 1, 1]
    cx, cy = K[..., 0, 2], K[..., 1, 2]
    return jnp.stack([(px - cx) * z / fx, (py - cy) * z / fy, z], axis=-1)


def synthetic_renderer(obj_cls, rot, trans, K, size):
    # TODO(synk): procedural deterministic stand-in for utils.SyntheticRenderer.
    del obj_cls, K
    yy, xx = jnp.meshgrid(jnp.linspace(-1, 1, size), jnp.linspace(-1, 1, size),
                          indexing="ij")
    grid = jnp.stack([xx, yy, jnp.ones_like(xx)], 0)            # (3, S, S)
    proj = jnp.einsum("nij,jhw->nihw", rot, grid)               # (N, 3, S, S)
    phase = trans[:, :, None, None]
    render = jnp.sin(3.0 * proj + phase)                        # (N, 3, S, S)
    render_mask = (jnp.sum(proj ** 2, axis=1, keepdims=True) < 2.0).astype(jnp.float32)
    render_map = render_mask * jnp.cos(2.0 * proj[:, :1])       # (N, 1, S, S)
    return render, render_mask, render_map


# ----------------------------- MRCNet -----------------------------------------
def make_mrcnet(init, n_decoders=1, depth_min=0.05, depth_max=2.0,
                n_depth_bin=N_DEPTH_BIN):
    proto = _quat_normalize(
        jax.random.normal(jax.random.PRNGKey(1234), (cfg.N_POSE_BIN, 4), jnp.float32))
    return dict(backbone=make_backbone(init, rgb_input_dim=4, n_decoders=n_decoders),
                decoder=make_pose_decoder(init),
                classifier=make_classification_head(init, cfg.N_POSE_BIN, n_depth_bin),
                regressor=make_regression_head(init, dim_pose=(6 if cfg.USE_6D else 4)),
                proto=proto, depth_min=depth_min, depth_max=depth_max,
                n_depth_bin=n_depth_bin)


def _make_predictions(p, mask_real, mask_synt, pose_logits, depth_logits, trans_logits,
                      pose_res, depth_res, trans_res):
    depth = depth_from_bin_logits(depth_logits, depth_res, p["depth_min"],
                                  p["depth_max"], p["n_depth_bin"])
    trans_xy = trans_from_bins(trans_logits, trans_res)
    trans_persp = jnp.concatenate([trans_xy, depth], axis=-1)
    quats = quaternion_from_prototypes(pose_logits, pose_res, p["proto"])
    rot_ego = quaternion_to_rotation(quats)
    return {"roi_mask": mask_real, "roi_mask_synt": mask_synt, "roi_obj_R": rot_ego,
            "quat_bin": pose_logits, "quat_res": pose_res, "depth_bin": depth_logits,
            "depth_res": depth_res, "trans_xy": trans_xy, "trans_logits": trans_logits,
            "trans_res": trans_res, "translation": trans_persp}


def mrcnet_forward(p, inputs, aux):
    # inputs: NCHW (PyTorch convention); one transpose into the NHWC fast path.
    x_nhwc = jnp.transpose(inputs, (0, 2, 3, 1))
    x1, mask_real = backbone_forward(p["backbone"], x_nhwc, aux["obj_cls"])
    x_real_in = jnp.concatenate(
        [x1, jax.nn.sigmoid(jax.lax.stop_gradient(mask_real))], axis=-1)
    x_clf = pose_decoder_forward(p["decoder"], x_real_in)
    x_clf["fov"] = aux["fov"]
    pose_logits, depth_logits, trans_logits = classification_head(p["classifier"], x_clf)

    # ---- torch.no_grad() pose initialization (forward-only here) ----
    depth_id = jnp.argmax(depth_logits, axis=-1)
    depth_bins = jnp.linspace(p["depth_min"], p["depth_max"], p["n_depth_bin"])
    depth = depth_bins[depth_id][:, None]
    zero_res = jnp.zeros((trans_logits.shape[0], 2), trans_logits.dtype)
    trans_xy0 = trans_from_bins(trans_logits, zero_res)
    trans_persp = jnp.concatenate([trans_xy0, depth], axis=-1)
    image_size = (cfg.INPUT_IMG_SIZE, cfg.INPUT_IMG_SIZE)
    trans_3d = perspective_to_trans_3d(trans_persp, image_size, aux["intrinsics"])
    pose_id = jnp.argmax(pose_logits, axis=-1)
    quat_init = quaternion_from_bin_logits(
        jax.nn.one_hot(pose_id, cfg.N_POSE_BIN), p["proto"])
    rot_init = quaternion_to_rotation(quat_init)
    render, render_mask, render_map = synthetic_renderer(
        aux["obj_cls"], rot_init, trans_3d, aux["intrinsics"], cfg.INPUT_IMG_SIZE)
    trans_3d = jax.lax.stop_gradient(trans_3d)
    # -----------------------------------------------------------------

    sync_inputs = jnp.transpose(
        jnp.concatenate([render, render_map], axis=1), (0, 2, 3, 1))
    x2, mask_synt = backbone_forward(p["backbone"], sync_inputs, aux["obj_cls"])
    x_synt_in = jnp.concatenate(
        [x2, jax.nn.sigmoid(jax.lax.stop_gradient(mask_synt))], axis=-1)
    x_reg = pose_decoder_forward(p["decoder"], x_clf, x_synt_in)

    mask_real_nchw = jnp.transpose(mask_real, (0, 3, 1, 2))
    mask_synt_nchw = jnp.transpose(mask_synt, (0, 3, 1, 2))
    predictions = {"render": render, "mask_synt": mask_synt_nchw}
    x_reg["fov"] = jnp.concatenate(
        [trans_3d[..., :2] / trans_3d[..., -1:], aux["fov"][..., 2:]], axis=1)
    pose_res, depth_res, trans_res = regression_head(p["regressor"], x_reg)
    predictions.update(_make_predictions(p, mask_real_nchw, mask_synt_nchw, pose_logits,
                                         depth_logits, trans_logits, pose_res,
                                         depth_res, trans_res))
    # TODO(synk): loss branch (targets provided) not implemented.
    return predictions


# ----------------------------------------------------------------------------
if __name__ == "__main__":
    init = ParamInit(0)
    params = make_mrcnet(init)

    key = jax.random.PRNGKey(0)
    k1, k2 = jax.random.split(key)
    N = 2
    S = cfg.INPUT_IMG_SIZE
    inputs = jax.random.normal(k1, (N, 4, S, S), jnp.float32)     # RGB + extra channel
    fx = 280.0
    intr = jnp.broadcast_to(
        jnp.array([[fx, 0.0, S / 2], [0.0, fx, S / 2], [0.0, 0.0, 1.0]], jnp.float32),
        (N, 3, 3))
    aux = {"obj_cls": jnp.zeros((N,), jnp.int32),
           "fov": 0.1 * jax.random.normal(k2, (N, 3), jnp.float32),
           "intrinsics": intr}

    preds = mrcnet_forward(params, inputs, aux)
    preds = jax.block_until_ready(preds)

    assert preds["roi_obj_R"].shape == (N, 3, 3)
    assert preds["quat_bin"].shape == (N, cfg.N_POSE_BIN)
    assert preds["depth_bin"].shape == (N, N_DEPTH_BIN)
    assert preds["trans_logits"].shape == (N, cfg.CELL_SIZE ** 2)
    assert preds["translation"].shape == (N, 3)
    assert preds["roi_mask"].shape == (N, 1, S // 4, S // 4)
    assert preds["render"].shape == (N, 3, S, S)
    print("KERNEL_OK")
</pallas_src>

<mosaic_0001>
module attributes {stable_mosaic.version = 11 : i64} {
  func.func @kernel(%arg0: i32, %arg1: i32, %arg2: i32, %arg3: memref<1x4096x200xbf16, #tpu.memory_space<vmem>>, %arg4: memref<1x200x16xbf16, #tpu.memory_space<vmem>>, %arg5: memref<1x1x16xf32, #tpu.memory_space<vmem>>, %arg6: memref<1x4096x16xbf16, #tpu.memory_space<vmem>>) attributes {dimension_semantics = [#tpu.dimension_semantics<parallel>, #tpu.dimension_semantics<parallel>, #tpu.dimension_semantics<parallel>], iteration_bounds = array<i64: 1, 8, 1>, scalar_prefetch = 0 : i64, scratch_operands = 0 : i64, tpu.core_type = #tpu.core_type<tc>, window_params = [{transform_indices = @transform_0, window_bounds = array<i64: 1, 4096, 200>}, {transform_indices = @transform_1, window_bounds = array<i64: 1, 200, 16>}, {transform_indices = @transform_2, window_bounds = array<i64: 1, 1, 16>}, {transform_indices = @transform_3, window_bounds = array<i64: 1, 4096, 16>}]} {
    %c0 = arith.constant 0 : index
    %c0_0 = arith.constant 0 : index
    %c0_1 = arith.constant 0 : index
    %0 = vector.load %arg3[%c0, %c0_0, %c0_1] : memref<1x4096x200xbf16, #tpu.memory_space<vmem>>, vector<1x4096x200xbf16>
    %1 = vector.shape_cast %0 : vector<1x4096x200xbf16> to vector<4096x200xbf16>
    %c0_2 = arith.constant 0 : index
    %c0_3 = arith.constant 0 : index
    %c0_4 = arith.constant 0 : index
    %2 = vector.load %arg4[%c0_2, %c0_3, %c0_4] : memref<1x200x16xbf16, #tpu.memory_space<vmem>>, vector<1x200x16xbf16>
    %3 = vector.shape_cast %2 : vector<1x200x16xbf16> to vector<200x16xbf16>
    %cst = arith.constant dense<0.000000e+00> : vector<4096x16xf32>
    %4 = tpu.matmul %1, %3, %cst {dimension_numbers = #tpu.dot_dimension_numbers<[1], [0], [0], [1], [0, 0, 1, 1], [], []>} : vector<4096x200xbf16>, vector<200x16xbf16>, vector<4096x16xf32> -> vector<4096x16xf32>
    %c0_5 = arith.constant 0 : index
    %c0_6 = arith.constant 0 : index
    %c0_7 = arith.constant 0 : index
    %5 = vector.load %arg5[%c0_5, %c0_6, %c0_7] : memref<1x1x16xf32, #tpu.memory_space<vmem>>, vector<1x1x16xf32>
    %6 = vector.shape_cast %5 : vector<1x1x16xf32> to vector<1x16xf32>
    %7 = vector.broadcast %6 : vector<1x16xf32> to vector<4096x16xf32>
    %8 = arith.addf %4, %7 : vector<4096x16xf32>
    %9 = arith.truncf %8 : vector<4096x16xf32> to vector<4096x16xbf16>
    %c0_8 = arith.constant 0 : index
    %c0_9 = arith.constant 0 : index
    %c0_10 = arith.constant 0 : index
    %10 = vector.load %arg6[%c0_8, %c0_9, %c0_10] : memref<1x4096x16xbf16, #tpu.memory_space<vmem>>, vector<1x4096x16xbf16>
    %11 = vector.shape_cast %10 : vector<1x4096x16xbf16> to vector<4096x16xbf16>
    %12 = vector.shape_cast %9 : vector<4096x16xbf16> to vector<1x4096x16xbf16>
    tpu.vector_store %arg6[%c0_8, %c0_9, %c0_10], %12 {strides = array<i32>} : memref<1x4096x16xbf16, #tpu.memory_space<vmem>>, vector<1x4096x16xbf16>,
    return
  }
  func.func @transform_0(%arg0: i32, %arg1: i32, %arg2: i32) -> (i32, i32, i32) {
    %c0_i32 = arith.constant 0 : i32
    %c0_i32_0 = arith.constant 0 : i32
    return %arg0, %arg1, %c0_i32 : i32, i32, i32
  }
  func.func @transform_1(%arg0: i32, %arg1: i32, %arg2: i32) -> (i32, i32, i32) {
    %c0_i32 = arith.constant 0 : i32
    %c0_i32_0 = arith.constant 0 : i32
    %c0_i32_1 = arith.constant 0 : i32
    return %c0_i32, %c0_i32_0, %arg2 : i32, i32, i32
  }
  func.func @transform_2(%arg0: i32, %arg1: i32, %arg2: i32) -> (i32, i32, i32) {
    %c0_i32 = arith.constant 0 : i32
    %c0_i32_0 = arith.constant 0 : i32
    %c0_i32_1 = arith.constant 0 : i32
    return %c0_i32, %c0_i32_0, %arg2 : i32, i32, i32
  }
  func.func @transform_3(%arg0: i32, %arg1: i32, %arg2: i32) -> (i32, i32, i32) {
    %c0_i32 = arith.constant 0 : i32
    return %arg0, %arg1, %arg2 : i32, i32, i32
  }
}

</mosaic_0001>

<bundles_post_ra>
// kernel: _pallas_gemm.1
= control target key start
LH: loop header
LB: loop body
LE: loop exit
PB: predicated region body
PF: predicated region fallthrough
CT: control target
= control target key end

     0   :  { %8 = vsyncpa [#allocation3], 0  ;;  %s11485_s12 = smov 0   ;;  %s11487_s13 = smov 0   ;;  %s13951_s0 = inlined_call_operand.vmem [shape: bf16[1,32768,200], index: 0, kind: input, shape index: {}]   ;;  %s13952_s1 = inlined_call_operand.vmem [shape: bf16[1,200,16], index: 1, kind: input, shape index: {}]   ;;  %s13953_s2 = inlined_call_operand.hbm [shape: f32[1,1,16], index: 2, kind: input, shape index: {}]   ;;  %s13954_s3 = inlined_call_operand.vmem [shape: bf16[1,32768,16], index: 3, kind: output, shape index: {}]  }
   0x1   :  { %s11489_s14 = smov 0  }
   0x2 LB: > { %s8736_s15 = sadd.s32 4294967295, %s11461_s14   ;;  %s29_s16 = sadd.s32 1, %s11457_s13  ;;  %s11461_s14 = sphi %s11489_s14, %s14_s14   ;;  %s11457_s13 = sphi %s11487_s13, %s13964_s13   ;;  %s11453_s12 = sphi %s11485_s12, %s13963_s12  }
   0x3   : > { %p31_p0 = scmp.ge.s32.totalorder %s29_s16, 8  ;;  %p8738_p1 = scmp.ge.s32.totalorder %s11461_s14, 1 }
   0x4   : > { %p148_p2 = scmp.lt.s32.totalorder %s11461_s14, 9  ;;  %p11510_p4 = scmp.eq.s32.totalorder %s8736_s15, 0 }
   0x5   : > { %s13966_s16 = smov (%p31_p0, %s29_s16), 0  ;;  %s11463_s19 = smov [#allocation2]  }
   0x6   : > { %p11506_p3 = pnand %p8738_p1, %p148_p2  ;;  %s170_s20 = sshll.u32 %s11463_s19, 4  ;;  %s171_s20 = int_to_ptr.vmem [resolvable:$true] %s170_s20 }
   0x7   : > { %s13959_s18 = scalar_select %p11510_p4, 1, 0 }
   0x8   : > { %s13958_s17 = scalar_select %p11506_p3, 1, 0 }
   0x9   : > { %p10588_p5 = pneg %p11506_p3  ;;  %s11407_s24 = scalar_lea.hbm %s13953_s2, 16 }
   0xa   : > { %p11408_p7 = scmp.ne.s32.totalorder %s13953_s2, %s11407_s24  ;;  %p11414_p11 = scmp.lt.u32.totalorder %s11407_s24, %s13953_s2 }
   0xb   : > { %p11518_p6 = pnand %p11510_p4, %p10588_p5 }
   0xd   : > { %p11409_p8 = pneg %p11518_p6 }
   0xf   : > { %p11410_p9 = pnand %p11409_p8, %p11408_p7 }
  0x11   : > { %p11411_p10 = pneg %p11410_p9 }
  0x13   : > { %p11416_p12 = pnand %p11414_p11, %p11411_p10 }
  0x15   : > { %11419 = shalt.err (!%p11416_p12)
}
  0x16   : > { %s11420_s29 = scalar_lea.vmem %s171_s20, 16  ;;  %s11427_s30 = scalar_lea.vmem %s171_s20, 32 }
  0x17   : > { %p11421_p13 = scmp.ne.s32.totalorder %s171_s20, %s11420_s29  ;;  %p11428_p2 = scmp.lt.s32.totalorder %s171_s20, %s171_s20 }
  0x18   : > { %p11429_p5 = scmp.lt.s32.totalorder %s11427_s30, %s11420_s29 }
  0x19   : > { %p11423_p0 = pnand %p11421_p13, %p11409_p8 }
  0x1a   : > { %p11430_p4 = por %p11429_p5, %p11428_p2 }
  0x1b   : > { %p11424_p1 = pneg %p11423_p0 }
  0x1d   : > { %p11431_p3 = pnand %p11430_p4, %p11424_p1 }
  0x1f   : > { %11434 = shalt.err (!%p11431_p3)
}
  0x20   : > { %10591 = dma.hbm_to_vmem [thread:$0]  (!%p11518_p6), %s13953_s2, 16, %s171_s20, [#allocation3]  }
  0x21   : > { %p13961_p7 = scmp.ne.s32.totalorder %s13958_s17, 0 }
  0x22   : > { %p13962_p9 = scmp.ne.s32.totalorder (!%p13961_p7), %s13959_s18, 0 }
  0x23   : > { %197 = sbr.rel (%p13961_p7) target bundleno = 1331 (0x533), region = 32 }
  0x2a   : > { %11448 = dma.done.wait (%p13962_p9), [#allocation3], 16  }
  0x2b   : > { %11450 = vsyncadd (%p13962_p9), [#allocation3], 4294967280  ;;  %v11464_v0 = vmov 0   ;;  %s8744_s6 = sshll.u32 %s11453_s12, 9  ;;  %v10620_v1 = vld [vmem:[%s13952_s1] sm:$0xff]   ;;  %v10621_v2 = vld [vmem:[%s13952_s1 + $0x8] sm:$0xff]  }
  0x2c   : > { %3962 = vmatprep.subr.bf16.mxu0 %v11464_v0  ;;  %10558 = vmatprep.subr.bf16.mxu1 %v11464_v0  ;;  %p240_p3 = scmp.lt.s32.totalorder %s8744_s6, 4095  ;;  %v10622_v3 = vld [vmem:[%s13952_s1 + $0x10] sm:$0xff]   ;;  %v10623_v4 = vld [vmem:[%s13952_s1 + $0x18] sm:$0xff]   ;;  %vm3189_vm0 = vcmask 588800   ;;  %v10624_v6 = vld [vmem:[%s13952_s1 + $0x20] sm:$0xff]   ;;  %vm3958_vm1 = vcmask 1043456  }
  0x2d   : > { %3963 = vmatpush1.bf16.msra.mxu0 %v10620_v1  ;;  %10571 = vmatpush1.bf16.msra.mxu1 %v10620_v1  ;;  %v10625_v8 = vld [vmem:[%s13952_s1 + $0x28] sm:$0xff]   ;;  %v10626_v9 = vld [vmem:[%s13952_s1 + $0x30] sm:$0xff]   ;;  %v10627_v10 = vld [vmem:[%s13952_s1 + $0x38] sm:$0xff]   ;;  %vm8091_vm2 = vcmask 125952  }
  0x2e   : > { %3964 = vmatprep.subr.bf16.mxu0 %v11464_v0  ;;  %10559 = vmatprep.subr.bf16.mxu1 %v11464_v0  ;;  %s13968_s6 = smov (!%p240_p3, %s8744_s6), 4095  ;;  %v10628_v11 = vld [vmem:[%s13952_s1 + $0x40] sm:$0xff]   ;;  %v10629_v12 = vld [vmem:[%s13952_s1 + $0x48] sm:$0xff]   ;;  %v10630_v13 = vld [vmem:[%s13952_s1 + $0x50] sm:$0xff]  }
  0x2f   : > { %s10045_s15 = sshll.u32 %s13968_s6, 3  ;;  %v10631_v14 = vld [vmem:[%s13952_s1 + $0x58] sm:$0xff]   ;;  %v10632_v15 = vld [vmem:[%s13952_s1 + $0x60] ss:$0 sps:$4 sm:$0xff]   ;;  %s8748_s17 = sshll.u32 %s13968_s6, 2 }
  0x30   : > { %s11569_s21 = scalar_lea.vmem %s13951_s0, %s10045_s15  ;;  %v3960_v16 = vsel %vm3958_vm1, %v10632_v15, 0  ;;  %s11794_s20 = scalar_lea.vmem %s13954_s3, %s8748_s17 }
  0x31   : > { %3965 = vmatpush1.bf16.msra.mxu0 %v10621_v2  ;;  %10572 = vmatpush1.bf16.msra.mxu1 %v10621_v2  ;;  %v10635_v5 = vld [vmem:[%s11569_s21 + $0x4] ss:$8 sps:$4 sm:$0xff]   ;;  %v10633_v17 = vld [vmem:[%s11569_s21] ss:$8 sps:$4 sm:$0xff]   ;;  %v10639_v19 = vld [vmem:[%s11569_s21 + $0x14] ss:$8 sps:$4 sm:$0xff]  }
  0x32   : > { %3966 = vmatprep.subr.bf16.mxu0 %v11464_v0  ;;  %10560 = vmatprep.subr.bf16.mxu1 %v11464_v0  ;;  %v10638_v7 = vld [vmem:[%s11569_s21 + $0x804] ss:$8 sps:$4 sm:$0xff]   ;;  %v10636_v18 = vld [vmem:[%s11569_s21 + $0x800] ss:$8 sps:$4 sm:$0xff]   ;;  %v10641_v20 = vld [vmem:[%s11569_s21 + $0x814] ss:$8 sps:$4 sm:$0xff]  }
  0x33   : > { %9275 = vmatprep.mubr.msk.bf16.mxu0 %vm3189_vm0, %v10635_v5  ;;  %9403 = vmatprep.mubr.msk.bf16.mxu1 %vm3189_vm0, %v10638_v7  ;;  %v10643_v21 = vld [vmem:[%s11569_s21 + $0x10] ss:$8 sps:$4 sm:$0xff]   ;;  %v10645_v23 = vld [vmem:[%s11569_s21 + $0x24] ss:$8 sps:$4 sm:$0xff]   ;;  %v10649_v25 = vld [vmem:[%s11569_s21 + $0x20] ss:$8 sps:$4 sm:$0xff]  }
  0x34   : > { %v10644_v22 = vld [vmem:[%s11569_s21 + $0x810] ss:$8 sps:$4 sm:$0xff]   ;;  %v10647_v24 = vld [vmem:[%s11569_s21 + $0x824] ss:$8 sps:$4 sm:$0xff]   ;;  %v10650_v26 = vld [vmem:[%s11569_s21 + $0x820] ss:$8 sps:$4 sm:$0xff]  }
  0x35   : > { %3967 = vmatpush1.bf16.msra.mxu0 %v10622_v3  ;;  %10573 = vmatpush1.bf16.msra.mxu1 %v10622_v3  ;;  %v10651_v27 = vld [vmem:[%s11569_s21 + $0x34] ss:$8 sps:$4 sm:$0xff]   ;;  %v10655_v29 = vld [vmem:[%s11569_s21 + $0x30] ss:$8 sps:$4 sm:$0xff]   ;;  %v10657_v31 = vld [vmem:[%s11569_s21 + $0x44] ss:$8 sps:$4 sm:$0xff]  }
  0x36   : > { %3968 = vmatprep.subr.bf16.mxu0 %v11464_v0  ;;  %10561 = vmatprep.subr.bf16.mxu1 %v11464_v0  ;;  %v10653_v28 = vld [vmem:[%s11569_s21 + $0x834] ss:$8 sps:$4 sm:$0xff]   ;;  %v10656_v30 = vld [vmem:[%s11569_s21 + $0x830] ss:$8 sps:$4 sm:$0xff]   ;;  %v10659_v32 = vld [vmem:[%s11569_s21 + $0x844] ss:$8 sps:$4 sm:$0xff]  }
  0x37   : > { %v10661_v33 = vld [vmem:[%s11569_s21 + $0x40] ss:$8 sps:$4 sm:$0xff]   ;;  %v10663_v35 = vld [vmem:[%s11569_s21 + $0x54] ss:$8 sps:$4 sm:$0xff]   ;;  %v10667_v37 = vld [vmem:[%s11569_s21 + $0x50] ss:$8 sps:$4 sm:$0xff]  }
  0x38   : > { %v10662_v34 = vld [vmem:[%s11569_s21 + $0x840] ss:$8 sps:$4 sm:$0xff]   ;;  %v10665_v36 = vld [vmem:[%s11569_s21 + $0x854] ss:$8 sps:$4 sm:$0xff]   ;;  %v10668_v38 = vld [vmem:[%s11569_s21 + $0x850] ss:$8 sps:$4 sm:$0xff]  }
  0x39   : > { %3969 = vmatpush1.bf16.msra.mxu0 %v10623_v4  ;;  %10574 = vmatpush1.bf16.msra.mxu1 %v10623_v4  ;;  %v10669_v39 = vld [vmem:[%s11569_s21 + $0x64] ss:$8 sps:$4 sm:$0xff]   ;;  %v10673_v41 = vld [vmem:[%s11569_s21 + $0x60] ss:$8 sps:$4 sm:$0xff]   ;;  %v10675_v43 = vld [vmem:[%s11569_s21 + $0x74] ss:$8 sps:$4 sm:$0xff]  }
  0x3a   : > { %3970 = vmatprep.subr.bf16.mxu0 %v11464_v0  ;;  %10562 = vmatprep.subr.bf16.mxu1 %v11464_v0  ;;  %v10671_v40 = vld [vmem:[%s11569_s21 + $0x864] ss:$8 sps:$4 sm:$0xff]   ;;  %v10674_v42 = vld [vmem:[%s11569_s21 + $0x860] ss:$8 sps:$4 sm:$0xff]   ;;  %v10677_v44 = vld [vmem:[%s11569_s21 + $0x874] ss:$8 sps:$4 sm:$0xff]  }
  0x3b   : > { %v10679_v45 = vld [vmem:[%s11569_s21 + $0x70] ss:$8 sps:$4 sm:$0xff]   ;;  %v10681_v47 = vld [vmem:[%s11569_s21 + $0x84] ss:$8 sps:$4 sm:$0xff]   ;;  %v10685_v49 = vld [vmem:[%s11569_s21 + $0x80] ss:$8 sps:$4 sm:$0xff]  }
  0x3c   : > { %v10680_v46 = vld [vmem:[%s11569_s21 + $0x870] ss:$8 sps:$4 sm:$0xff]   ;;  %v10683_v48 = vld [vmem:[%s11569_s21 + $0x884] ss:$8 sps:$4 sm:$0xff]   ;;  %v10686_v50 = vld [vmem:[%s11569_s21 + $0x880] ss:$8 sps:$4 sm:$0xff]  }
  0x3d   : > { %3971 = vmatpush1.bf16.msra.mxu0 %v10624_v6  ;;  %10575 = vmatpush1.bf16.msra.mxu1 %v10624_v6  ;;  %v10687_v51 = vld [vmem:[%s11569_s21 + $0x94] ss:$8 sps:$4 sm:$0xff]   ;;  %v10691_v53 = vld [vmem:[%s11569_s21 + $0x90] ss:$8 sps:$4 sm:$0xff]   ;;  %v10693_v55 = vld [vmem:[%s11569_s21 + $0xa4] ss:$8 sps:$4 sm:$0xff]  }
  0x3e   : > { %3972 = vmatprep.subr.bf16.mxu0 %v11464_v0  ;;  %10563 = vmatprep.subr.bf16.mxu1 %v11464_v0  ;;  %v10689_v52 = vld [vmem:[%s11569_s21 + $0x894] ss:$8 sps:$4 sm:$0xff]   ;;  %v10692_v54 = vld [vmem:[%s11569_s21 + $0x890] ss:$8 sps:$4 sm:$0xff]   ;;  %v10695_v56 = vld [vmem:[%s11569_s21 + $0x8a4] ss:$8 sps:$4 sm:$0xff]  }
  0x3f   : > { %v10697_v57 = vld [vmem:[%s11569_s21 + $0xa0] ss:$8 sps:$4 sm:$0xff]   ;;  %v10699_v59 = vld [vmem:[%s11569_s21 + $0xb4] ss:$8 sps:$4 sm:$0xff]   ;;  %v10703_v61 = vld [vmem:[%s11569_s21 + $0xb0] ss:$8 sps:$4 sm:$0xff]  }
  0x40   : > { %v10698_v58 = vld [vmem:[%s11569_s21 + $0x8a0] ss:$8 sps:$4 sm:$0xff]   ;;  %v10701_v60 = vld [vmem:[%s11569_s21 + $0x8b4] ss:$8 sps:$4 sm:$0xff]   ;;  %v10704_v62 = vld [vmem:[%s11569_s21 + $0x8b0] ss:$8 sps:$4 sm:$0xff]  }
  0x41   : > { %3973 = vmatpush1.bf16.msra.mxu0 %v10625_v8  ;;  %10576 = vmatpush1.bf16.msra.mxu1 %v10625_v8  ;;  %v10705_v63 = vld [vmem:[%s11569_s21 + $0xc4] ss:$8 sps:$4 sm:$0xff]   ;;  %v10709_v1 = vld [vmem:[%s11569_s21 + $0xc0] ss:$8 sps:$4 sm:$0xff]   ;;  %v10711_v3 = vld [vmem:[%s11569_s21 + $0xd4] ss:$8 sps:$4 sm:$0xff]  }
  0x42   : > { %3974 = vmatprep.subr.bf16.mxu0 %v11464_v0  ;;  %10564 = vmatprep.subr.bf16.mxu1 %v11464_v0  ;;  %v10710_v2 = vld [vmem:[%s11569_s21 + $0x8c0] ss:$8 sps:$4 sm:$0xff]   ;;  %v10713_v4 = vld [vmem:[%s11569_s21 + $0x8d4] ss:$8 sps:$4 sm:$0xff]   ;;  %v10715_v5 = vld [vmem:[%s11569_s21 + $0xd0] ss:$8 sps:$4 sm:$0xff]  }
  0x43   : > { %v10716_v6 = vld [vmem:[%s11569_s21 + $0x8d0] ss:$8 sps:$4 sm:$0xff]   ;;  %v10717_v7 = vld [vmem:[%s11569_s21 + $0xe4] ss:$8 sps:$4 sm:$0xff]  }
  0x44   : > { %v10719_v8 = vld [vmem:[%s11569_s21 + $0x8e4] ss:$8 sps:$4 sm:$0xff]  }
  0x45   : > { %3975 = vmatpush1.bf16.msra.mxu0 %v10626_v9  ;;  %10577 = vmatpush1.bf16.msra.mxu1 %v10626_v9  ;;  %v10721_v9 = vld [vmem:[%s11569_s21 + $0xe0] ss:$8 sps:$4 sm:$0xff]   ;;  %v10729_v15 = vld [vmem:[%s11569_s21 + $0x104] ss:$8 sps:$4 sm:$0xff]  }
  0x46   : > { %3976 = vmatprep.subr.bf16.mxu0 %v11464_v0  ;;  %10565 = vmatprep.subr.bf16.mxu1 %v11464_v0 }
  0x49   : > { %3977 = vmatpush1.bf16.msra.mxu0 %v10627_v10  ;;  %10578 = vmatpush1.bf16.msra.mxu1 %v10627_v10  ;;  %v10722_v10 = vld [vmem:[%s11569_s21 + $0x8e0] ss:$8 sps:$4 sm:$0xff]  }
  0x4a   : > { %3978 = vmatprep.subr.bf16.mxu0 %v11464_v0  ;;  %10566 = vmatprep.subr.bf16.mxu1 %v11464_v0 }
  0x4d   : > { %3979 = vmatpush1.bf16.msra.mxu0 %v10628_v11  ;;  %10579 = vmatpush1.bf16.msra.mxu1 %v10628_v11  ;;  %v10723_v11 = vld [vmem:[%s11569_s21 + $0xf4] ss:$8 sps:$4 sm:$0xff]  }
  0x4e   : > { %3980 = vmatprep.subr.bf16.mxu0 %v11464_v0  ;;  %10567 = vmatprep.subr.bf16.mxu1 %v11464_v0 }
  0x51   : > { %3981 = vmatpush1.bf16.msra.mxu0 %v10629_v12  ;;  %10580 = vmatpush1.bf16.msra.mxu1 %v10629_v12  ;;  %v10725_v12 = vld [vmem:[%s11569_s21 + $0x8f4] ss:$8 sps:$4 sm:$0xff]  }
  0x52   : > { %3982 = vmatprep.subr.bf16.mxu0 %v11464_v0  ;;  %10568 = vmatprep.subr.bf16.mxu1 %v11464_v0 }
  0x55   : > { %3983 = vmatpush1.bf16.msra.mxu0 %v10630_v13  ;;  %10581 = vmatpush1.bf16.msra.mxu1 %v10630_v13  ;;  %v10727_v13 = vld [vmem:[%s11569_s21 + $0xf0] ss:$8 sps:$4 sm:$0xff]  }
  0x56   : > { %3984 = vmatprep.subr.bf16.mxu0 %v11464_v0  ;;  %10569 = vmatprep.subr.bf16.mxu1 %v11464_v0 }
  0x59   : > { %3985 = vmatpush1.bf16.msra.mxu0 %v10631_v14  ;;  %10582 = vmatpush1.bf16.msra.mxu1 %v10631_v14  ;;  %v10728_v14 = vld [vmem:[%s11569_s21 + $0x8f0] ss:$8 sps:$4 sm:$0xff]  }
  0x5a   : > { %3986 = vmatprep.subr.bf16.mxu0 %v11464_v0  ;;  %10570 = vmatprep.subr.bf16.mxu1 %v11464_v0  ;;  %v10707_v0 = vld [vmem:[%s11569_s21 + $0x8c4] ss:$8 sps:$4 sm:$0xff]  }
  0x5d   : > { %3987 = vmatpush1.bf16.msra.mxu0 %v3960_v16  ;;  %10583 = vmatpush1.bf16.msra.mxu1 %v3960_v16  ;;  %v10731_v16 = vld [vmem:[%s11569_s21 + $0x904] ss:$8 sps:$4 sm:$0xff]  }
  0x60   : > { %3995 = vmatmul.mubr.bf16.vlgmr.msra.gmra.mrb[0].mxu0 %v10633_v17  ;;  %5019 = vmatmul.mubr.bf16.vlgmr.msra.gmra.mrb[0].mxu1 %v10636_v18  ;;  %v10733_v17 = vld [vmem:[%s11569_s21 + $0x100] ss:$8 sps:$4 sm:$0xff]  }
  0x61   : > { %9276 = vmatprep.mubr.msk.bf16.mxu0 %vm3189_vm0, %v10639_v19  ;;  %9404 = vmatprep.mubr.msk.bf16.mxu1 %vm3189_vm0, %v10641_v20  ;;  %v10734_v18 = vld [vmem:[%s11569_s21 + $0x900] ss:$8 sps:$4 sm:$0xff]   ;;  %v10735_v19 = vld [vmem:[%s11569_s21 + $0x114] ss:$8 sps:$4 sm:$0xff]  }
  0x62   : > { %v10737_v20 = vld [vmem:[%s11569_s21 + $0x914] ss:$8 sps:$4 sm:$0xff]  }
  0x68   : > { %4003 = vmatmul.mubr.bf16.gmra.mrb[4].mxu0 %v10643_v21  ;;  %5027 = vmatmul.mubr.bf16.gmra.mrb[4].mxu1 %v10644_v22  ;;  %v10739_v21 = vld [vmem:[%s11569_s21 + $0x110] ss:$8 sps:$4 sm:$0xff]  }
  0x69   : > { %9277 = vmatprep.mubr.msk.bf16.mxu0 %vm3189_vm0, %v10645_v23  ;;  %9405 = vmatprep.mubr.msk.bf16.mxu1 %vm3189_vm0, %v10647_v24  ;;  %v10740_v22 = vld [vmem:[%s11569_s21 + $0x910] ss:$8 sps:$4 sm:$0xff]   ;;  %v10741_v23 = vld [vmem:[%s11569_s21 + $0x124] ss:$8 sps:$4 sm:$0xff]  }
  0x6a   : > { %v10743_v24 = vld [vmem:[%s11569_s21 + $0x924] ss:$8 sps:$4 sm:$0xff]  }
  0x70   : > { %4011 = vmatmul.mubr.bf16.gmra.mrb[8].mxu0 %v10649_v25  ;;  %5035 = vmatmul.mubr.bf16.gmra.mrb[8].mxu1 %v10650_v26  ;;  %v10745_v25 = vld [vmem:[%s11569_s21 + $0x120] ss:$8 sps:$4 sm:$0xff]  }
  0x71   : > { %9278 = vmatprep.mubr.msk.bf16.mxu0 %vm3189_vm0, %v10651_v27  ;;  %9406 = vmatprep.mubr.msk.bf16.mxu1 %vm3189_vm0, %v10653_v28  ;;  %v10746_v26 = vld [vmem:[%s11569_s21 + $0x920] ss:$8 sps:$4 sm:$0xff]   ;;  %v10747_v27 = vld [vmem:[%s11569_s21 + $0x134] ss:$8 sps:$4 sm:$0xff]  }
  0x72   : > { %v10749_v28 = vld [vmem:[%s11569_s21 + $0x934] ss:$8 sps:$4 sm:$0xff]  }
  0x78   : > { %4019 = vmatmul.mubr.bf16.gmra.mrb[12].mxu0 %v10655_v29  ;;  %5043 = vmatmul.mubr.bf16.gmra.mrb[12].mxu1 %v10656_v30  ;;  %v10751_v29 = vld [vmem:[%s11569_s21 + $0x130] ss:$8 sps:$4 sm:$0xff]  }
  0x79   : > { %9279 = vmatprep.mubr.msk.bf16.mxu0 %vm3189_vm0, %v10657_v31  ;;  %9407 = vmatprep.mubr.msk.bf16.mxu1 %vm3189_vm0, %v10659_v32  ;;  %v10752_v30 = vld [vmem:[%s11569_s21 + $0x930] ss:$8 sps:$4 sm:$0xff]   ;;  %v10753_v31 = vld [vmem:[%s11569_s21 + $0x144] ss:$8 sps:$4 sm:$0xff]  }
  0x7a   : > { %v10755_v32 = vld [vmem:[%s11569_s21 + $0x944] ss:$8 sps:$4 sm:$0xff]  }
  0x80   : > { %4027 = vmatmul.mubr.bf16.gmra.mrb[16].mxu0 %v10661_v33  ;;  %5051 = vmatmul.mubr.bf16.gmra.mrb[16].mxu1 %v10662_v34  ;;  %v10757_v33 = vld [vmem:[%s11569_s21 + $0x140] ss:$8 sps:$4 sm:$0xff]  }
  0x81   : > { %9280 = vmatprep.mubr.msk.bf16.mxu0 %vm3189_vm0, %v10663_v35  ;;  %9408 = vmatprep.mubr.msk.bf16.mxu1 %vm3189_vm0, %v10665_v36  ;;  %v10758_v34 = vld [vmem:[%s11569_s21 + $0x940] ss:$8 sps:$4 sm:$0xff]   ;;  %v10759_v35 = vld [vmem:[%s11569_s21 + $0x154] ss:$8 sps:$4 sm:$0xff]  }
  0x82   : > { %v10761_v36 = vld [vmem:[%s11569_s21 + $0x954] ss:$8 sps:$4 sm:$0xff]  }
  0x88   : > { %4035 = vmatmul.mubr.bf16.gmra.mrb[20].mxu0 %v10667_v37  ;;  %5059 = vmatmul.mubr.bf16.gmra.mrb[20].mxu1 %v10668_v38  ;;  %v10763_v37 = vld [vmem:[%s11569_s21 + $0x150] ss:$8 sps:$4 sm:$0xff]  }
  0x89   : > { %9281 = vmatprep.mubr.msk.bf16.mxu0 %vm3189_vm0, %v10669_v39  ;;  %9409 = vmatprep.mubr.msk.bf16.mxu1 %vm3189_vm0, %v10671_v40  ;;  %v10764_v38 = vld [vmem:[%s11569_s21 + $0x950] ss:$8 sps:$4 sm:$0xff]   ;;  %v10765_v39 = vld [vmem:[%s11569_s21 + $0x164] ss:$8 sps:$4 sm:$0xff]  }
  0x8a   : > { %v10767_v40 = vld [vmem:[%s11569_s21 + $0x964] ss:$8 sps:$4 sm:$0xff]  }
  0x90   : > { %4043 = vmatmul.mubr.bf16.gmra.mrb[24].mxu0 %v10673_v41  ;;  %5067 = vmatmul.mubr.bf16.gmra.mrb[24].mxu1 %v10674_v42  ;;  %v10769_v41 = vld [vmem:[%s11569_s21 + $0x160] ss:$8 sps:$4 sm:$0xff]  }
  0x91   : > { %9282 = vmatprep.mubr.msk.bf16.mxu0 %vm3189_vm0, %v10675_v43  ;;  %9410 = vmatprep.mubr.msk.bf16.mxu1 %vm3189_vm0, %v10677_v44  ;;  %v10770_v42 = vld [vmem:[%s11569_s21 + $0x960] ss:$8 sps:$4 sm:$0xff]   ;;  %v10771_v43 = vld [vmem:[%s11569_s21 + $0x174] ss:$8 sps:$4 sm:$0xff]  }
  0x92   : > { %v10773_v44 = vld [vmem:[%s11569_s21 + $0x974] ss:$8 sps:$4 sm:$0xff]  }
  0x98   : > { %4051 = vmatmul.mubr.bf16.gmra.mrb[28].mxu0 %v10679_v45  ;;  %5075 = vmatmul.mubr.bf16.gmra.mrb[28].mxu1 %v10680_v46  ;;  %v10775_v45 = vld [vmem:[%s11569_s21 + $0x170] ss:$8 sps:$4 sm:$0xff]  }
  0x99   : > { %9283 = vmatprep.mubr.msk.bf16.mxu0 %vm3189_vm0, %v10681_v47  ;;  %9411 = vmatprep.mubr.msk.bf16.mxu1 %vm3189_vm0, %v10683_v48  ;;  %v10776_v46 = vld [vmem:[%s11569_s21 + $0x970] ss:$8 sps:$4 sm:$0xff]   ;;  %v10777_v47 = vld [vmem:[%s11569_s21 + $0x184] ss:$8 sps:$4 sm:$0xff]  }
  0x9a   : > { %v10779_v48 = vld [vmem:[%s11569_s21 + $0x984] ss:$8 sps:$4 sm:$0xff]  }
  0xa0   : > { %4059 = vmatmul.mubr.bf16.gmra.mrb[32].mxu0 %v10685_v49  ;;  %5083 = vmatmul.mubr.bf16.gmra.mrb[32].mxu1 %v10686_v50  ;;  %v10781_v49 = vld [vmem:[%s11569_s21 + $0x180] ss:$8 sps:$4 sm:$0xff]  }
  0xa1   : > { %9284 = vmatprep.mubr.msk.bf16.mxu0 %vm3189_vm0, %v10687_v51  ;;  %9412 = vmatprep.mubr.msk.bf16.mxu1 %vm3189_vm0, %v10689_v52  ;;  %v10782_v50 = vld [vmem:[%s11569_s21 + $0x980] ss:$8 sps:$4 sm:$0xff]   ;;  %v10783_v51 = vld [vmem:[%s11569_s21 + $0x194] ss:$8 sps:$4 sm:$0xff]  }
  0xa2   : > { %v10785_v52 = vld [vmem:[%s11569_s21 + $0x994] ss:$8 sps:$4 sm:$0xff]  }
  0xa8   : > { %4067 = vmatmul.mubr.bf16.gmra.mrb[36].mxu0 %v10691_v53  ;;  %5091 = vmatmul.mubr.bf16.gmra.mrb[36].mxu1 %v10692_v54  ;;  %v10787_v53 = vld [vmem:[%s11569_s21 + $0x190] ss:$8 sps:$4 sm:$0xff]  }
  0xa9   : > { %9285 = vmatprep.mubr.msk.bf16.mxu0 %vm3189_vm0, %v10693_v55  ;;  %9413 = vmatprep.mubr.msk.bf16.mxu1 %vm3189_vm0, %v10695_v56  ;;  %v10788_v54 = vld [vmem:[%s11569_s21 + $0x990] ss:$8 sps:$4 sm:$0xff]   ;;  %v10789_v55 = vld [vmem:[%s11569_s21 + $0x1a4] ss:$8 sps:$4 sm:$0xff]  }
  0xaa   : > { %v10791_v56 = vld [vmem:[%s11569_s21 + $0x9a4] ss:$8 sps:$4 sm:$0xff]  }
  0xb0   : > { %4075 = vmatmul.mubr.bf16.gmra.mrb[40].mxu0 %v10697_v57  ;;  %5099 = vmatmul.mubr.bf16.gmra.mrb[40].mxu1 %v10698_v58  ;;  %v10793_v57 = vld [vmem:[%s11569_s21 + $0x1a0] ss:$8 sps:$4 sm:$0xff]  }
  0xb1   : > { %9286 = vmatprep.mubr.msk.bf16.mxu0 %vm3189_vm0, %v10699_v59  ;;  %9414 = vmatprep.mubr.msk.bf16.mxu1 %vm3189_vm0, %v10701_v60  ;;  %v10794_v58 = vld [vmem:[%s11569_s21 + $0x9a0] ss:$8 sps:$4 sm:$0xff]   ;;  %v10795_v59 = vld [vmem:[%s11569_s21 + $0x1b4] ss:$8 sps:$4 sm:$0xff]  }
  0xb2   : > { %v10797_v60 = vld [vmem:[%s11569_s21 + $0x9b4] ss:$8 sps:$4 sm:$0xff]  }
  0xb8   : > { %4083 = vmatmul.mubr.bf16.gmra.mrb[44].mxu0 %v10703_v61  ;;  %5107 = vmatmul.mubr.bf16.gmra.mrb[44].mxu1 %v10704_v62  ;;  %v11782_v61 = vld [vmem:[#allocation2] ss:$0 sm:$0xff] }
  0xb9   : > { %9287 = vmatprep.mubr.msk.bf16.mxu0 %vm3189_vm0, %v10705_v63  ;;  %9415 = vmatprep.mubr.msk.bf16.mxu1 %vm3189_vm0, %v10707_v0 }
  0xc0   : > { %4091 = vmatmul.mubr.bf16.gmra.mrb[48].mxu0 %v10709_v1  ;;  %5115 = vmatmul.mubr.bf16.gmra.mrb[48].mxu1 %v10710_v2 }
  0xc1   : > { %9288 = vmatprep.mubr.msk.bf16.mxu0 %vm3189_vm0, %v10711_v3  ;;  %9416 = vmatprep.mubr.msk.bf16.mxu1 %vm3189_vm0, %v10713_v4  ;;  %v10799_v4 = vld [vmem:[%s11569_s21 + $0x1b0] ss:$8 sps:$4 sm:$0xff]  }
  0xc8   : > { %4099 = vmatmul.mubr.bf16.gmra.mrb[52].mxu0 %v10715_v5  ;;  %5123 = vmatmul.mubr.bf16.gmra.mrb[52].mxu1 %v10716_v6  ;;  %v10800_v5 = vld [vmem:[%s11569_s21 + $0x9b0] ss:$8 sps:$4 sm:$0xff]  }
  0xc9   : > { %9289 = vmatprep.mubr.msk.bf16.mxu0 %vm3189_vm0, %v10717_v7  ;;  %9417 = vmatprep.mubr.msk.bf16.mxu1 %vm3189_vm0, %v10719_v8  ;;  %v10801_v8 = vld [vmem:[%s11569_s21 + $0x1c4] ss:$8 sps:$4 sm:$0xff]  }
  0xd0   : > { %4107 = vmatmul.mubr.bf16.gmra.mrb[56].mxu0 %v10721_v9  ;;  %5131 = vmatmul.mubr.bf16.gmra.mrb[56].mxu1 %v10722_v10  ;;  %v10803_v9 = vld [vmem:[%s11569_s21 + $0x9c4] ss:$8 sps:$4 sm:$0xff]  }
  0xd1   : > { %9290 = vmatprep.mubr.msk.bf16.mxu0 %vm3189_vm0, %v10723_v11  ;;  %9418 = vmatprep.mubr.msk.bf16.mxu1 %vm3189_vm0, %v10725_v12 }
  0xd8   : > { %4115 = vmatmul.mubr.bf16.gmra.mrb[60].mxu0 %v10727_v13  ;;  %5139 = vmatmul.mubr.bf16.gmra.mrb[60].mxu1 %v10728_v14 }
  0xd9   : > { %9291 = vmatprep.mubr.msk.bf16.mxu0 %vm3189_vm0, %v10729_v15  ;;  %9419 = vmatprep.mubr.msk.bf16.mxu1 %vm3189_vm0, %v10731_v16 }
  0xe0   : > { %4123 = vmatmul.mubr.bf16.gmra.mrb[64].mxu0 %v10733_v17  ;;  %5147 = vmatmul.mubr.bf16.gmra.mrb[64].mxu1 %v10734_v18 }
  0xe1   : > { %9292 = vmatprep.mubr.msk.bf16.mxu0 %vm3189_vm0, %v10735_v19  ;;  %9420 = vmatprep.mubr.msk.bf16.mxu1 %vm3189_vm0, %v10737_v20 }
  0xe8   : > { %4131 = vmatmul.mubr.bf16.gmra.mrb[68].mxu0 %v10739_v21  ;;  %5155 = vmatmul.mubr.bf16.gmra.mrb[68].mxu1 %v10740_v22 }
  0xe9   : > { %9293 = vmatprep.mubr.msk.bf16.mxu0 %vm3189_vm0, %v10741_v23  ;;  %9421 = vmatprep.mubr.msk.bf16.mxu1 %vm3189_vm0, %v10743_v24  ;;  %v10805_v24 = vld [vmem:[%s11569_s21 + $0x1c0] ss:$8 sps:$4 sm:$0xff]  }
  0xf0   : > { %4139 = vmatmul.mubr.bf16.gmra.mrb[72].mxu0 %v10745_v25  ;;  %5163 = vmatmul.mubr.bf16.gmra.mrb[72].mxu1 %v10746_v26  ;;  %v10806_v25 = vld [vmem:[%s11569_s21 + $0x9c0] ss:$8 sps:$4 sm:$0xff]  }
  0xf1   : > { %9294 = vmatprep.mubr.msk.bf16.mxu0 %vm3189_vm0, %v10747_v27  ;;  %9422 = vmatprep.mubr.msk.bf16.mxu1 %vm3189_vm0, %v10749_v28  ;;  %v10807_v28 = vld [vmem:[%s11569_s21 + $0x1d4] ss:$8 sps:$4 sm:$0xff]  }
  0xf8   : > { %4147 = vmatmul.mubr.bf16.gmra.mrb[76].mxu0 %v10751_v29  ;;  %5171 = vmatmul.mubr.bf16.gmra.mrb[76].mxu1 %v10752_v30  ;;  %v10809_v29 = vld [vmem:[%s11569_s21 + $0x9d4] ss:$8 sps:$4 sm:$0xff]  }
  0xf9   : > { %9295 = vmatprep.mubr.msk.bf16.mxu0 %vm3189_vm0, %v10753_v31  ;;  %9423 = vmatprep.mubr.msk.bf16.mxu1 %vm3189_vm0, %v10755_v32 }
 0x100   : > { %4155 = vmatmul.mubr.bf16.gmra.mrb[80].mxu0 %v10757_v33  ;;  %5179 = vmatmul.mubr.bf16.gmra.mrb[80].mxu1 %v10758_v34 }
 0x101   : > { %9296 = vmatprep.mubr.msk.bf16.mxu0 %vm3189_vm0, %v10759_v35  ;;  %9424 = vmatprep.mubr.msk.bf16.mxu1 %vm3189_vm0, %v10761_v36 }
 0x108   : > { %4163 = vmatmul.mubr.bf16.gmra.mrb[84].mxu0 %v10763_v37  ;;  %5187 = vmatmul.mubr.bf16.gmra.mrb[84].mxu1 %v10764_v38 }
 0x109   : > { %9297 = vmatprep.mubr.msk.bf16.mxu0 %vm3189_vm0, %v10765_v39  ;;  %9425 = vmatprep.mubr.msk.bf16.mxu1 %vm3189_vm0, %v10767_v40 }
 0x110   : > { %4171 = vmatmul.mubr.bf16.gmra.mrb[88].mxu0 %v10769_v41  ;;  %5195 = vmatmul.mubr.bf16.gmra.mrb[88].mxu1 %v10770_v42 }
 0x111   : > { %9298 = vmatprep.mubr.msk.bf16.mxu0 %vm3189_vm0, %v10771_v43  ;;  %9426 = vmatprep.mubr.msk.bf16.mxu1 %vm3189_vm0, %v10773_v44  ;;  %v10811_v44 = vld [vmem:[%s11569_s21 + $0x1d0] ss:$8 sps:$4 sm:$0xff]  }
 0x118   : > { %4179 = vmatmul.mubr.bf16.gmra.mrb[92].mxu0 %v10775_v45  ;;  %5203 = vmatmul.mubr.bf16.gmra.mrb[92].mxu1 %v10776_v46  ;;  %v10812_v45 = vld [vmem:[%s11569_s21 + $0x9d0] ss:$8 sps:$4 sm:$0xff]  }
 0x119   : > { %9299 = vmatprep.mubr.msk.bf16.mxu0 %vm3189_vm0, %v10777_v47  ;;  %9427 = vmatprep.mubr.msk.bf16.mxu1 %vm3189_vm0, %v10779_v48  ;;  %v10813_v48 = vld [vmem:[%s11569_s21 + $0x1e4] ss:$8 sps:$4 sm:$0xff]  }
 0x120   : > { %4187 = vmatmul.mubr.bf16.gmra.mrb[96].mxu0 %v10781_v49  ;;  %5211 = vmatmul.mubr.bf16.gmra.mrb[96].mxu1 %v10782_v50  ;;  %v10815_v49 = vld [vmem:[%s11569_s21 + $0x9e4] ss:$8 sps:$4 sm:$0xff]  }
 0x121   : > { %9300 = vmatprep.mubr.msk.bf16.mxu0 %vm3189_vm0, %v10783_v51  ;;  %9428 = vmatprep.mubr.msk.bf16.mxu1 %vm3189_vm0, %v10785_v52 }
 0x128   : > { %4195 = vmatmul.mubr.bf16.gmra.mrb[100].mxu0 %v10787_v53  ;;  %5219 = vmatmul.mubr.bf16.gmra.mrb[100].mxu1 %v10788_v54 }
 0x129   : > { %9301 = vmatprep.mubr.msk.bf16.mxu0 %vm3189_vm0, %v10789_v55  ;;  %9429 = vmatprep.mubr.msk.bf16.mxu1 %vm3189_vm0, %v10791_v56 }
 0x130   : > { %4203 = vmatmul.mubr.bf16.gmra.mrb[104].mxu0 %v10793_v57  ;;  %5227 = vmatmul.mubr.bf16.gmra.mrb[104].mxu1 %v10794_v58 }
 0x131   : > { %9302 = vmatprep.mubr.msk.bf16.mxu0 %vm3189_vm0, %v10795_v59  ;;  %9430 = vmatprep.mubr.msk.bf16.mxu1 %vm3189_vm0, %v10797_v60 }
 0x133   : > { %v3996_v62 = vpop.f32.mrb[0].mxu0  ;;  %v5020_v63 = vpop.f32.mrb[0].mxu1 }
 0x134   : > { %v3997_v0 = vadd.f32 %v11782_v61, %v3996_v62  ;;  %v5021_v1 = vadd.f32 %v11782_v61, %v5020_v63  ;;  %v3998_v2 = vpop.f32.mrb[1].mxu0  ;;  %v5022_v3 = vpop.f32.mrb[1].mxu1 }
 0x135   : > { %v3999_v6 = vpop.f32.mrb[2].mxu0  ;;  %v5023_v7 = vpop.f32.mrb[2].mxu1  ;;  %v10818_v2 = vld [vmem:[%s11569_s21 + $0x9e0] ss:$8 sps:$4 sm:$0xff]  }
 0x136   : > { %v10046_v10 = vpack.c.bf16 %v3997_v0, %v3997_v0  ;;  %v10302_v11 = vpack.c.bf16 %v5021_v1, %v5021_v1  ;;  %v4000_v12 = vadd.f32 %v11782_v61, %v3999_v6  ;;  %v5024_v13 = vadd.f32 %v11782_v61, %v5023_v7  ;;  %v4001_v14 = vpop.f32.mrb[3].mxu0  ;;  %v5025_v15 = vpop.f32.mrb[3].mxu1  ;;  %v10817_v1 = vld [vmem:[%s11569_s21 + $0x1e0] ss:$8 sps:$4 sm:$0xff]   ;;  %v10821_v6 = vld [vmem:[%s11569_s21 + $0x9f4] ss:$8 sps:$4 sm:$0xff]  }
 0x138   : > { %8092 = vst.msk [vmem:[%s11794_s20] sm:$0xf] %vm8091_vm2, %v10046_v10  ;;  %8348 = vst.msk [vmem:[%s11794_s20 + $0x400] sm:$0xf] %vm8091_vm2, %v10302_v11  ;;  %v10047_v16 = vpack.c.bf16 %v4000_v12, %v4000_v12  ;;  %v10303_v17 = vpack.c.bf16 %v5024_v13, %v5024_v13  ;;  %4211 = vmatmul.mubr.bf16.gmra.mrb[108].mxu0 %v10799_v4  ;;  %5235 = vmatmul.mubr.bf16.gmra.mrb[108].mxu1 %v10800_v5  ;;  %v10819_v5 = vld [vmem:[%s11569_s21 + $0x1f4] ss:$8 sps:$4 sm:$0xff]  }
 0x139   : > { %9303 = vmatprep.mubr.msk.bf16.mxu0 %vm3189_vm0, %v10801_v8  ;;  %9431 = vmatprep.mubr.msk.bf16.mxu1 %vm3189_vm0, %v10803_v9 }
 0x13a   : > { %8093 = vst.msk [vmem:[%s11794_s20 + $0x4] sm:$0xf] %vm8091_vm2, %v10047_v16  ;;  %8349 = vst.msk [vmem:[%s11794_s20 + $0x404] sm:$0xf] %vm8091_vm2, %v10303_v17 }
 0x13b   : > { %v4004_v18 = vpop.f32.mrb[4].mxu0  ;;  %v5028_v19 = vpop.f32.mrb[4].mxu1 }
 0x13c   : > { %v4005_v20 = vadd.f32 %v11782_v61, %v4004_v18  ;;  %v5029_v21 = vadd.f32 %v11782_v61, %v5028_v19  ;;  %v4006_v22 = vpop.f32.mrb[5].mxu0  ;;  %v5030_v23 = vpop.f32.mrb[5].mxu1 }
 0x13d   : > { %v4007_v26 = vpop.f32.mrb[6].mxu0  ;;  %v5031_v27 = vpop.f32.mrb[6].mxu1  ;;  %v10824_v22 = vld [vmem:[%s11569_s21 + $0x9f0] ss:$8 sps:$4 sm:$0xff]  }
 0x13e   : > { %v10048_v30 = vpack.c.bf16 %v4005_v20, %v4005_v20  ;;  %v10304_v31 = vpack.c.bf16 %v5029_v21, %v5029_v21  ;;  %v4008_v32 = vadd.f32 %v11782_v61, %v4007_v26  ;;  %v5032_v33 = vadd.f32 %v11782_v61, %v5031_v27  ;;  %v4009_v34 = vpop.f32.mrb[7].mxu0  ;;  %v5033_v35 = vpop.f32.mrb[7].mxu1  ;;  %v10823_v21 = vld [vmem:[%s11569_s21 + $0x1f0] ss:$8 sps:$4 sm:$0xff]   ;;  %v10827_v26 = vld [vmem:[%s11569_s21 + $0xa04] ss:$8 sps:$4 sm:$0xff]  }
 0x140   : > { %8094 = vst.msk [vmem:[%s11794_s20 + $0x8] sm:$0xf] %vm8091_vm2, %v10048_v30  ;;  %8350 = vst.msk [vmem:[%s11794_s20 + $0x408] sm:$0xf] %vm8091_vm2, %v10304_v31  ;;  %v10049_v36 = vpack.c.bf16 %v4008_v32, %v4008_v32  ;;  %v10305_v37 = vpack.c.bf16 %v5032_v33, %v5032_v33  ;;  %4219 = vmatmul.mubr.bf16.gmra.mrb[112].mxu0 %v10805_v24  ;;  %5243 = vmatmul.mubr.bf16.gmra.mrb[112].mxu1 %v10806_v25  ;;  %v10825_v25 = vld [vmem:[%s11569_s21 + $0x204] ss:$8 sps:$4 sm:$0xff]  }
 0x141   : > { %9304 = vmatprep.mubr.msk.bf16.mxu0 %vm3189_vm0, %v10807_v28  ;;  %9432 = vmatprep.mubr.msk.bf16.mxu1 %vm3189_vm0, %v10809_v29 }
 0x142   : > { %8095 = vst.msk [vmem:[%s11794_s20 + $0xc] sm:$0xf] %vm8091_vm2, %v10049_v36  ;;  %8351 = vst.msk [vmem:[%s11794_s20 + $0x40c] sm:$0xf] %vm8091_vm2, %v10305_v37 }
 0x143   : > { %v4012_v38 = vpop.f32.mrb[8].mxu0  ;;  %v5036_v39 = vpop.f32.mrb[8].mxu1 }
 0x144   : > { %v4013_v40 = vadd.f32 %v11782_v61, %v4012_v38  ;;  %v5037_v41 = vadd.f32 %v11782_v61, %v5036_v39  ;;  %v4014_v42 = vpop.f32.mrb[9].mxu0  ;;  %v5038_v43 = vpop.f32.mrb[9].mxu1 }
 0x145   : > { %v4015_v46 = vpop.f32.mrb[10].mxu0  ;;  %v5039_v47 = vpop.f32.mrb[10].mxu1  ;;  %v10830_v42 = vld [vmem:[%s11569_s21 + $0xa00] ss:$8 sps:$4 sm:$0xff]  }
 0x146   : > { %v10050_v50 = vpack.c.bf16 %v4013_v40, %v4013_v40  ;;  %v10306_v51 = vpack.c.bf16 %v5037_v41, %v5037_v41  ;;  %v4016_v52 = vadd.f32 %v11782_v61, %v4015_v46  ;;  %v5040_v53 = vadd.f32 %v11782_v61, %v5039_v47  ;;  %v4017_v54 = vpop.f32.mrb[11].mxu0  ;;  %v5041_v55 = vpop.f32.mrb[11].mxu1  ;;  %v10829_v41 = vld [vmem:[%s11569_s21 + $0x200] ss:$8 sps:$4 sm:$0xff]   ;;  %v10833_v46 = vld [vmem:[%s11569_s21 + $0xa14] ss:$8 sps:$4 sm:$0xff]  }
 0x148   : > { %8096 = vst.msk [vmem:[%s11794_s20 + $0x10] sm:$0xf] %vm8091_vm2, %v10050_v50  ;;  %8352 = vst.msk [vmem:[%s11794_s20 + $0x410] sm:$0xf] %vm8091_vm2, %v10306_v51  ;;  %v10051_v56 = vpack.c.bf16 %v4016_v52, %v4016_v52  ;;  %v10307_v57 = vpack.c.bf16 %v5040_v53, %v5040_v53  ;;  %4227 = vmatmul.mubr.bf16.gmra.mrb[116].mxu0 %v10811_v44  ;;  %5251 = vmatmul.mubr.bf16.gmra.mrb[116].mxu1 %v10812_v45  ;;  %v10831_v45 = vld [vmem:[%s11569_s21 + $0x214] ss:$8 sps:$4 sm:$0xff]  }
 0x149   : > { %9305 = vmatprep.mubr.msk.bf16.mxu0 %vm3189_vm0, %v10813_v48  ;;  %9433 = vmatprep.mubr.msk.bf16.mxu1 %vm3189_vm0, %v10815_v49 }
 0x14a   : > { %8097 = vst.msk [vmem:[%s11794_s20 + $0x14] sm:$0xf] %vm8091_vm2, %v10051_v56  ;;  %8353 = vst.msk [vmem:[%s11794_s20 + $0x414] sm:$0xf] %vm8091_vm2, %v10307_v57 }
 0x14b   : > { %v4020_v58 = vpop.f32.mrb[12].mxu0  ;;  %v5044_v59 = vpop.f32.mrb[12].mxu1 }
 0x14c   : > { %v4021_v60 = vadd.f32 %v11782_v61, %v4020_v58  ;;  %v5045_v62 = vadd.f32 %v11782_v61, %v5044_v59  ;;  %v4022_v63 = vpop.f32.mrb[13].mxu0  ;;  %v5046_v0 = vpop.f32.mrb[13].mxu1 }
 0x14d   : > { %v4023_v3 = vpop.f32.mrb[14].mxu0  ;;  %v5047_v4 = vpop.f32.mrb[14].mxu1  ;;  %v10836_v63 = vld [vmem:[%s11569_s21 + $0xa10] ss:$8 sps:$4 sm:$0xff]  }
 0x14e   : > { %v10052_v7 = vpack.c.bf16 %v4021_v60, %v4021_v60  ;;  %v10308_v8 = vpack.c.bf16 %v5045_v62, %v5045_v62  ;;  %v4024_v9 = vadd.f32 %v11782_v61, %v4023_v3  ;;  %v5048_v10 = vadd.f32 %v11782_v61, %v5047_v4  ;;  %v4025_v11 = vpop.f32.mrb[15].mxu0  ;;  %v5049_v12 = vpop.f32.mrb[15].mxu1  ;;  %v10835_v62 = vld [vmem:[%s11569_s21 + $0x210] ss:$8 sps:$4 sm:$0xff]   ;;  %v10839_v3 = vld [vmem:[%s11569_s21 + $0xa24] ss:$8 sps:$4 sm:$0xff]  }
 0x150   : > { %8098 = vst.msk [vmem:[%s11794_s20 + $0x18] sm:$0xf] %vm8091_vm2, %v10052_v7  ;;  %8354 = vst.msk [vmem:[%s11794_s20 + $0x418] sm:$0xf] %vm8091_vm2, %v10308_v8  ;;  %v10053_v13 = vpack.c.bf16 %v4024_v9, %v4024_v9  ;;  %v10309_v14 = vpack.c.bf16 %v5048_v10, %v5048_v10  ;;  %4235 = vmatmul.mubr.bf16.gmra.mrb[120].mxu0 %v10817_v1  ;;  %5259 = vmatmul.mubr.bf16.gmra.mrb[120].mxu1 %v10818_v2  ;;  %v10837_v2 = vld [vmem:[%s11569_s21 + $0x224] ss:$8 sps:$4 sm:$0xff]  }
 0x151   : > { %9306 = vmatprep.mubr.msk.bf16.mxu0 %vm3189_vm0, %v10819_v5  ;;  %9434 = vmatprep.mubr.msk.bf16.mxu1 %vm3189_vm0, %v10821_v6 }
 0x152   : > { %8099 = vst.msk [vmem:[%s11794_s20 + $0x1c] sm:$0xf] %vm8091_vm2, %v10053_v13  ;;  %8355 = vst.msk [vmem:[%s11794_s20 + $0x41c] sm:$0xf] %vm8091_vm2, %v10309_v14 }
 0x153   : > { %v4028_v15 = vpop.f32.mrb[16].mxu0  ;;  %v5052_v16 = vpop.f32.mrb[16].mxu1 }
 0x154   : > { %v4029_v17 = vadd.f32 %v11782_v61, %v4028_v15  ;;  %v5053_v18 = vadd.f32 %v11782_v61, %v5052_v16  ;;  %v4030_v19 = vpop.f32.mrb[17].mxu0  ;;  %v5054_v20 = vpop.f32.mrb[17].mxu1 }
 0x155   : > { %v4031_v23 = vpop.f32.mrb[18].mxu0  ;;  %v5055_v24 = vpop.f32.mrb[18].mxu1  ;;  %v10842_v19 = vld [vmem:[%s11569_s21 + $0xa20] ss:$8 sps:$4 sm:$0xff]  }
 0x156   : > { %v10054_v27 = vpack.c.bf16 %v4029_v17, %v4029_v17  ;;  %v10310_v28 = vpack.c.bf16 %v5053_v18, %v5053_v18  ;;  %v4032_v29 = vadd.f32 %v11782_v61, %v4031_v23  ;;  %v5056_v30 = vadd.f32 %v11782_v61, %v5055_v24  ;;  %v4033_v31 = vpop.f32.mrb[19].mxu0  ;;  %v5057_v32 = vpop.f32.mrb[19].mxu1  ;;  %v10841_v18 = vld [vmem:[%s11569_s21 + $0x220] ss:$8 sps:$4 sm:$0xff]   ;;  %v10845_v23 = vld [vmem:[%s11569_s21 + $0xa34] ss:$8 sps:$4 sm:$0xff]  }
 0x158   : > { %8100 = vst.msk [vmem:[%s11794_s20 + $0x20] sm:$0xf] %vm8091_vm2, %v10054_v27  ;;  %8356 = vst.msk [vmem:[%s11794_s20 + $0x420] sm:$0xf] %vm8091_vm2, %v10310_v28  ;;  %v10055_v33 = vpack.c.bf16 %v4032_v29, %v4032_v29  ;;  %v10311_v34 = vpack.c.bf16 %v5056_v30, %v5056_v30  ;;  %4243 = vmatmul.mubr.bf16.gmra.mrb[124].mxu0 %v10823_v21  ;;  %5267 = vmatmul.mubr.bf16.gmra.mrb[124].mxu1 %v10824_v22  ;;  %v10843_v22 = vld [vmem:[%s11569_s21 + $0x234] ss:$8 sps:$4 sm:$0xff]  }
 0x159   : > { %9307 = vmatprep.mubr.msk.bf16.mxu0 %vm3189_vm0, %v10825_v25  ;;  %9435 = vmatprep.mubr.msk.bf16.mxu1 %vm3189_vm0, %v10827_v26 }
 0x15a   : > { %8101 = vst.msk [vmem:[%s11794_s20 + $0x24] sm:$0xf] %vm8091_vm2, %v10055_v33  ;;  %8357 = vst.msk [vmem:[%s11794_s20 + $0x424] sm:$0xf] %vm8091_vm2, %v10311_v34 }
 0x15b   : > { %v4036_v35 = vpop.f32.mrb[20].mxu0  ;;  %v5060_v36 = vpop.f32.mrb[20].mxu1 }
 0x15c   : > { %v4037_v37 = vadd.f32 %v11782_v61, %v4036_v35  ;;  %v5061_v38 = vadd.f32 %v11782_v61, %v5060_v36  ;;  %v4038_v39 = vpop.f32.mrb[21].mxu0  ;;  %v5062_v40 = vpop.f32.mrb[21].mxu1 }
 0x15d   : > { %v4039_v43 = vpop.f32.mrb[22].mxu0  ;;  %v5063_v44 = vpop.f32.mrb[22].mxu1  ;;  %v10848_v39 = vld [vmem:[%s11569_s21 + $0xa30] ss:$8 sps:$4 sm:$0xff]  }
 0x15e   : > { %v10056_v47 = vpack.c.bf16 %v4037_v37, %v4037_v37  ;;  %v10312_v48 = vpack.c.bf16 %v5061_v38, %v5061_v38  ;;  %v4040_v49 = vadd.f32 %v11782_v61, %v4039_v43  ;;  %v5064_v50 = vadd.f32 %v11782_v61, %v5063_v44  ;;  %v4041_v51 = vpop.f32.mrb[23].mxu0  ;;  %v5065_v52 = vpop.f32.mrb[23].mxu1  ;;  %v10847_v38 = vld [vmem:[%s11569_s21 + $0x230] ss:$8 sps:$4 sm:$0xff]   ;;  %v10851_v43 = vld [vmem:[%s11569_s21 + $0xa44] ss:$8 sps:$4 sm:$0xff]  }
 0x160   : > { %8102 = vst.msk [vmem:[%s11794_s20 + $0x28] sm:$0xf] %vm8091_vm2, %v10056_v47  ;;  %8358 = vst.msk [vmem:[%s11794_s20 + $0x428] sm:$0xf] %vm8091_vm2, %v10312_v48  ;;  %v10057_v53 = vpack.c.bf16 %v4040_v49, %v4040_v49  ;;  %v10313_v54 = vpack.c.bf16 %v5064_v50, %v5064_v50  ;;  %4251 = vmatmul.mubr.bf16.gmra.mrb[128].mxu0 %v10829_v41  ;;  %5275 = vmatmul.mubr.bf16.gmra.mrb[128].mxu1 %v10830_v42  ;;  %v10849_v42 = vld [vmem:[%s11569_s21 + $0x244] ss:$8 sps:$4 sm:$0xff]  }
 0x161   : > { %9308 = vmatprep.mubr.msk.bf16.mxu0 %vm3189_vm0, %v10831_v45  ;;  %9436 = vmatprep.mubr.msk.bf16.mxu1 %vm3189_vm0, %v10833_v46 }
 0x162   : > { %8103 = vst.msk [vmem:[%s11794_s20 + $0x2c] sm:$0xf] %vm8091_vm2, %v10057_v53  ;;  %8359 = vst.msk [vmem:[%s11794_s20 + $0x42c] sm:$0xf] %vm8091_vm2, %v10313_v54 }
 0x163   : > { %v4044_v55 = vpop.f32.mrb[24].mxu0  ;;  %v5068_v56 = vpop.f32.mrb[24].mxu1 }
 0x164   : > { %v4045_v57 = vadd.f32 %v11782_v61, %v4044_v55  ;;  %v5069_v58 = vadd.f32 %v11782_v61, %v5068_v56  ;;  %v4046_v59 = vpop.f32.mrb[25].mxu0  ;;  %v5070_v60 = vpop.f32.mrb[25].mxu1 }
 0x165   : > { %v4047_v0 = vpop.f32.mrb[26].mxu0  ;;  %v5071_v1 = vpop.f32.mrb[26].mxu1  ;;  %v10854_v59 = vld [vmem:[%s11569_s21 + $0xa40] ss:$8 sps:$4 sm:$0xff]  }
 0x166   : > { %v10058_v4 = vpack.c.bf16 %v4045_v57, %v4045_v57  ;;  %v10314_v5 = vpack.c.bf16 %v5069_v58, %v5069_v58  ;;  %v4048_v6 = vadd.f32 %v11782_v61, %v4047_v0  ;;  %v5072_v7 = vadd.f32 %v11782_v61, %v5071_v1  ;;  %v4049_v8 = vpop.f32.mrb[27].mxu0  ;;  %v5073_v9 = vpop.f32.mrb[27].mxu1  ;;  %v10853_v58 = vld [vmem:[%s11569_s21 + $0x240] ss:$8 sps:$4 sm:$0xff]   ;;  %v10857_v0 = vld [vmem:[%s11569_s21 + $0xa54] ss:$8 sps:$4 sm:$0xff]  }
 0x168   : > { %8104 = vst.msk [vmem:[%s11794_s20 + $0x30] sm:$0xf] %vm8091_vm2, %v10058_v4  ;;  %8360 = vst.msk [vmem:[%s11794_s20 + $0x430] sm:$0xf] %vm8091_vm2, %v10314_v5  ;;  %v10059_v10 = vpack.c.bf16 %v4048_v6, %v4048_v6  ;;  %v10315_v11 = vpack.c.bf16 %v5072_v7, %v5072_v7  ;;  %4259 = vmatmul.mubr.bf16.gmra.mrb[132].mxu0 %v10835_v62  ;;  %5283 = vmatmul.mubr.bf16.gmra.mrb[132].mxu1 %v10836_v63  ;;  %v10855_v63 = vld [vmem:[%s11569_s21 + $0x254] ss:$8 sps:$4 sm:$0xff]  }
 0x169   : > { %9309 = vmatprep.mubr.msk.bf16.mxu0 %vm3189_vm0, %v10837_v2  ;;  %9437 = vmatprep.mubr.msk.bf16.mxu1 %vm3189_vm0, %v10839_v3 }
 0x16a   : > { %8105 = vst.msk [vmem:[%s11794_s20 + $0x34] sm:$0xf] %vm8091_vm2, %v10059_v10  ;;  %8361 = vst.msk [vmem:[%s11794_s20 + $0x434] sm:$0xf] %vm8091_vm2, %v10315_v11 }
 0x16b   : > { %v4052_v12 = vpop.f32.mrb[28].mxu0  ;;  %v5076_v13 = vpop.f32.mrb[28].mxu1 }
 0x16c   : > { %v4053_v14 = vadd.f32 %v11782_v61, %v4052_v12  ;;  %v5077_v15 = vadd.f32 %v11782_v61, %v5076_v13  ;;  %v4054_v16 = vpop.f32.mrb[29].mxu0  ;;  %v5078_v17 = vpop.f32.mrb[29].mxu1 }
 0x16d   : > { %v4055_v20 = vpop.f32.mrb[30].mxu0  ;;  %v5079_v21 = vpop.f32.mrb[30].mxu1  ;;  %v10860_v16 = vld [vmem:[%s11569_s21 + $0xa50] ss:$8 sps:$4 sm:$0xff]  }
 0x16e   : > { %v10060_v24 = vpack.c.bf16 %v4053_v14, %v4053_v14  ;;  %v10316_v25 = vpack.c.bf16 %v5077_v15, %v5077_v15  ;;  %v4056_v26 = vadd.f32 %v11782_v61, %v4055_v20  ;;  %v5080_v27 = vadd.f32 %v11782_v61, %v5079_v21  ;;  %v4057_v28 = vpop.f32.mrb[31].mxu0  ;;  %v5081_v29 = vpop.f32.mrb[31].mxu1  ;;  %v10859_v15 = vld [vmem:[%s11569_s21 + $0x250] ss:$8 sps:$4 sm:$0xff]   ;;  %v10863_v20 = vld [vmem:[%s11569_s21 + $0xa64] ss:$8 sps:$4 sm:$0xff]  }
 0x170   : > { %8106 = vst.msk [vmem:[%s11794_s20 + $0x38] sm:$0xf] %vm8091_vm2, %v10060_v24  ;;  %8362 = vst.msk [vmem:[%s11794_s20 + $0x438] sm:$0xf] %vm8091_vm2, %v10316_v25  ;;  %v10061_v30 = vpack.c.bf16 %v4056_v26, %v4056_v26  ;;  %v10317_v31 = vpack.c.bf16 %v5080_v27, %v5080_v27  ;;  %4267 = vmatmul.mubr.bf16.gmra.mrb[136].mxu0 %v10841_v18  ;;  %5291 = vmatmul.mubr.bf16.gmra.mrb[136].mxu1 %v10842_v19  ;;  %v10861_v19 = vld [vmem:[%s11569_s21 + $0x264] ss:$8 sps:$4 sm:$0xff]  }
 0x171   : > { %9310 = vmatprep.mubr.msk.bf16.mxu0 %vm3189_vm0, %v10843_v22  ;;  %9438 = vmatprep.mubr.msk.bf16.mxu1 %vm3189_vm0, %v10845_v23 }
 0x172   : > { %8107 = vst.msk [vmem:[%s11794_s20 + $0x3c] sm:$0xf] %vm8091_vm2, %v10061_v30  ;;  %8363 = vst.msk [vmem:[%s11794_s20 + $0x43c] sm:$0xf] %vm8091_vm2, %v10317_v31 }
 0x173   : > { %v4060_v32 = vpop.f32.mrb[32].mxu0  ;;  %v5084_v33 = vpop.f32.mrb[32].mxu1 }
 0x174   : > { %v4061_v34 = vadd.f32 %v11782_v61, %v4060_v32  ;;  %v5085_v35 = vadd.f32 %v11782_v61, %v5084_v33  ;;  %v4062_v36 = vpop.f32.mrb[33].mxu0  ;;  %v5086_v37 = vpop.f32.mrb[33].mxu1 }
 0x175   : > { %v4063_v40 = vpop.f32.mrb[34].mxu0  ;;  %v5087_v41 = vpop.f32.mrb[34].mxu1  ;;  %v10866_v36 = vld [vmem:[%s11569_s21 + $0xa60] ss:$8 sps:$4 sm:$0xff]  }
 0x176   : > { %v10062_v44 = vpack.c.bf16 %v4061_v34, %v4061_v34  ;;  %v10318_v45 = vpack.c.bf16 %v5085_v35, %v5085_v35  ;;  %v4064_v46 = vadd.f32 %v11782_v61, %v4063_v40  ;;  %v5088_v47 = vadd.f32 %v11782_v61, %v5087_v41  ;;  %v4065_v48 = vpop.f32.mrb[35].mxu0  ;;  %v5089_v49 = vpop.f32.mrb[35].mxu1  ;;  %v10865_v35 = vld [vmem:[%s11569_s21 + $0x260] ss:$8 sps:$4 sm:$0xff]   ;;  %v10869_v40 = vld [vmem:[%s11569_s21 + $0xa74] ss:$8 sps:$4 sm:$0xff]  }
 0x178   : > { %8108 = vst.msk [vmem:[%s11794_s20 + $0x40] sm:$0xf] %vm8091_vm2, %v10062_v44  ;;  %8364 = vst.msk [vmem:[%s11794_s20 + $0x440] sm:$0xf] %vm8091_vm2, %v10318_v45  ;;  %v10063_v50 = vpack.c.bf16 %v4064_v46, %v4064_v46  ;;  %v10319_v51 = vpack.c.bf16 %v5088_v47, %v5088_v47  ;;  %4275 = vmatmul.mubr.bf16.gmra.mrb[140].mxu0 %v10847_v38  ;;  %5299 = vmatmul.mubr.bf16.gmra.mrb[140].mxu1 %v10848_v39  ;;  %v10867_v39 = vld [vmem:[%s11569_s21 + $0x274] ss:$8 sps:$4 sm:$0xff]  }
 0x179   : > { %9311 = vmatprep.mubr.msk.bf16.mxu0 %vm3189_vm0, %v10849_v42  ;;  %9439 = vmatprep.mubr.msk.bf16.mxu1 %vm3189_vm0, %v10851_v43 }
 0x17a   : > { %8109 = vst.msk [vmem:[%s11794_s20 + $0x44] sm:$0xf] %vm8091_vm2, %v10063_v50  ;;  %8365 = vst.msk [vmem:[%s11794_s20 + $0x444] sm:$0xf] %vm8091_vm2, %v10319_v51 }
 0x17b   : > { %v4068_v52 = vpop.f32.mrb[36].mxu0  ;;  %v5092_v53 = vpop.f32.mrb[36].mxu1 }
 0x17c   : > { %v4069_v54 = vadd.f32 %v11782_v61, %v4068_v52  ;;  %v5093_v55 = vadd.f32 %v11782_v61, %v5092_v53  ;;  %v4070_v56 = vpop.f32.mrb[37].mxu0  ;;  %v5094_v57 = vpop.f32.mrb[37].mxu1 }
 0x17d   : > { %v4071_v60 = vpop.f32.mrb[38].mxu0  ;;  %v5095_v62 = vpop.f32.mrb[38].mxu1  ;;  %v10872_v56 = vld [vmem:[%s11569_s21 + $0xa70] ss:$8 sps:$4 sm:$0xff]  }
 0x17e   : > { %v10064_v1 = vpack.c.bf16 %v4069_v54, %v4069_v54  ;;  %v10320_v2 = vpack.c.bf16 %v5093_v55, %v5093_v55  ;;  %v4072_v3 = vadd.f32 %v11782_v61, %v4071_v60  ;;  %v5096_v4 = vadd.f32 %v11782_v61, %v5095_v62  ;;  %v4073_v5 = vpop.f32.mrb[39].mxu0  ;;  %v5097_v6 = vpop.f32.mrb[39].mxu1  ;;  %v10871_v55 = vld [vmem:[%s11569_s21 + $0x270] ss:$8 sps:$4 sm:$0xff]   ;;  %v10875_v60 = vld [vmem:[%s11569_s21 + $0xa84] ss:$8 sps:$4 sm:$0xff]  }
 0x180   : > { %8110 = vst.msk [vmem:[%s11794_s20 + $0x48] sm:$0xf] %vm8091_vm2, %v10064_v1  ;;  %8366 = vst.msk [vmem:[%s11794_s20 + $0x448] sm:$0xf] %vm8091_vm2, %v10320_v2  ;;  %v10065_v7 = vpack.c.bf16 %v4072_v3, %v4072_v3  ;;  %v10321_v8 = vpack.c.bf16 %v5096_v4, %v5096_v4  ;;  %4283 = vmatmul.mubr.bf16.gmra.mrb[144].mxu0 %v10853_v58  ;;  %5307 = vmatmul.mubr.bf16.gmra.mrb[144].mxu1 %v10854_v59  ;;  %v10873_v59 = vld [vmem:[%s11569_s21 + $0x284] ss:$8 sps:$4 sm:$0xff]  }
 0x181   : > { %9312 = vmatprep.mubr.msk.bf16.mxu0 %vm3189_vm0, %v10855_v63  ;;  %9440 = vmatprep.mubr.msk.bf16.mxu1 %vm3189_vm0, %v10857_v0 }
 0x182   : > { %8111 = vst.msk [vmem:[%s11794_s20 + $0x4c] sm:$0xf] %vm8091_vm2, %v10065_v7  ;;  %8367 = vst.msk [vmem:[%s11794_s20 + $0x44c] sm:$0xf] %vm8091_vm2, %v10321_v8 }
 0x183   : > { %v4076_v9 = vpop.f32.mrb[40].mxu0  ;;  %v5100_v10 = vpop.f32.mrb[40].mxu1 }
 0x184   : > { %v4077_v11 = vadd.f32 %v11782_v61, %v4076_v9  ;;  %v5101_v12 = vadd.f32 %v11782_v61, %v5100_v10  ;;  %v4078_v13 = vpop.f32.mrb[41].mxu0  ;;  %v5102_v14 = vpop.f32.mrb[41].mxu1 }
 0x185   : > { %v4079_v17 = vpop.f32.mrb[42].mxu0  ;;  %v5103_v18 = vpop.f32.mrb[42].mxu1  ;;  %v10878_v13 = vld [vmem:[%s11569_s21 + $0xa80] ss:$8 sps:$4 sm:$0xff]  }
 0x186   : > { %v10066_v21 = vpack.c.bf16 %v4077_v11, %v4077_v11  ;;  %v10322_v22 = vpack.c.bf16 %v5101_v12, %v5101_v12  ;;  %v4080_v23 = vadd.f32 %v11782_v61, %v4079_v17  ;;  %v5104_v24 = vadd.f32 %v11782_v61, %v5103_v18  ;;  %v4081_v25 = vpop.f32.mrb[43].mxu0  ;;  %v5105_v26 = vpop.f32.mrb[43].mxu1  ;;  %v10877_v12 = vld [vmem:[%s11569_s21 + $0x280] ss:$8 sps:$4 sm:$0xff]   ;;  %v10881_v17 = vld [vmem:[%s11569_s21 + $0xa94] ss:$8 sps:$4 sm:$0xff]  }
 0x188   : > { %8112 = vst.msk [vmem:[%s11794_s20 + $0x50] sm:$0xf] %vm8091_vm2, %v10066_v21  ;;  %8368 = vst.msk [vmem:[%s11794_s20 + $0x450] sm:$0xf] %vm8091_vm2, %v10322_v22  ;;  %v10067_v27 = vpack.c.bf16 %v4080_v23, %v4080_v23  ;;  %v10323_v28 = vpack.c.bf16 %v5104_v24, %v5104_v24  ;;  %4291 = vmatmul.mubr.bf16.gmra.mrb[148].mxu0 %v10859_v15  ;;  %5315 = vmatmul.mubr.bf16.gmra.mrb[148].mxu1 %v10860_v16  ;;  %v10879_v16 = vld [vmem:[%s11569_s21 + $0x294] ss:$8 sps:$4 sm:$0xff]  }
 0x189   : > { %9313 = vmatprep.mubr.msk.bf16.mxu0 %vm3189_vm0, %v10861_v19  ;;  %9441 = vmatprep.mubr.msk.bf16.mxu1 %vm3189_vm0, %v10863_v20 }
 0x18a   : > { %8113 = vst.msk [vmem:[%s11794_s20 + $0x54] sm:$0xf] %vm8091_vm2, %v10067_v27  ;;  %8369 = vst.msk [vmem:[%s11794_s20 + $0x454] sm:$0xf] %vm8091_vm2, %v10323_v28 }
 0x18b   : > { %v4084_v29 = vpop.f32.mrb[44].mxu0  ;;  %v5108_v30 = vpop.f32.mrb[44].mxu1 }
 0x18c   : > { %v4085_v31 = vadd.f32 %v11782_v61, %v4084_v29  ;;  %v5109_v32 = vadd.f32 %v11782_v61, %v5108_v30  ;;  %v4086_v33 = vpop.f32.mrb[45].mxu0  ;;  %v5110_v34 = vpop.f32.mrb[45].mxu1 }
 0x18d   : > { %v4087_v37 = vpop.f32.mrb[46].mxu0  ;;  %v5111_v38 = vpop.f32.mrb[46].mxu1  ;;  %v10884_v33 = vld [vmem:[%s11569_s21 + $0xa90] ss:$8 sps:$4 sm:$0xff]  }
 0x18e   : > { %v10068_v41 = vpack.c.bf16 %v4085_v31, %v4085_v31  ;;  %v10324_v42 = vpack.c.bf16 %v5109_v32, %v5109_v32  ;;  %v4088_v43 = vadd.f32 %v11782_v61, %v4087_v37  ;;  %v5112_v44 = vadd.f32 %v11782_v61, %v5111_v38  ;;  %v4089_v45 = vpop.f32.mrb[47].mxu0  ;;  %v5113_v46 = vpop.f32.mrb[47].mxu1  ;;  %v10883_v32 = vld [vmem:[%s11569_s21 + $0x290] ss:$8 sps:$4 sm:$0xff]   ;;  %v10887_v37 = vld [vmem:[%s11569_s21 + $0xaa4] ss:$8 sps:$4 sm:$0xff]  }
 0x190   : > { %8114 = vst.msk [vmem:[%s11794_s20 + $0x58] sm:$0xf] %vm8091_vm2, %v10068_v41  ;;  %8370 = vst.msk [vmem:[%s11794_s20 + $0x458] sm:$0xf] %vm8091_vm2, %v10324_v42  ;;  %v10069_v47 = vpack.c.bf16 %v4088_v43, %v4088_v43  ;;  %v10325_v48 = vpack.c.bf16 %v5112_v44, %v5112_v44  ;;  %4299 = vmatmul.mubr.bf16.gmra.mrb[152].mxu0 %v10865_v35  ;;  %5323 = vmatmul.mubr.bf16.gmra.mrb[152].mxu1 %v10866_v36  ;;  %v10885_v36 = vld [vmem:[%s11569_s21 + $0x2a4] ss:$8 sps:$4 sm:$0xff]  }
 0x191   : > { %9314 = vmatprep.mubr.msk.bf16.mxu0 %vm3189_vm0, %v10867_v39  ;;  %9442 = vmatprep.mubr.msk.bf16.mxu1 %vm3189_vm0, %v10869_v40 }
 0x192   : > { %8115 = vst.msk [vmem:[%s11794_s20 + $0x5c] sm:$0xf] %vm8091_vm2, %v10069_v47  ;;  %8371 = vst.msk [vmem:[%s11794_s20 + $0x45c] sm:$0xf] %vm8091_vm2, %v10325_v48 }
 0x193   : > { %v4092_v49 = vpop.f32.mrb[48].mxu0  ;;  %v5116_v50 = vpop.f32.mrb[48].mxu1 }
 0x194   : > { %v4093_v51 = vadd.f32 %v11782_v61, %v4092_v49  ;;  %v5117_v52 = vadd.f32 %v11782_v61, %v5116_v50  ;;  %v4094_v53 = vpop.f32.mrb[49].mxu0  ;;  %v5118_v54 = vpop.f32.mrb[49].mxu1 }
 0x195   : > { %v4095_v57 = vpop.f32.mrb[50].mxu0  ;;  %v5119_v58 = vpop.f32.mrb[50].mxu1  ;;  %v10890_v53 = vld [vmem:[%s11569_s21 + $0xaa0] ss:$8 sps:$4 sm:$0xff]  }
 0x196   : > { %v10070_v62 = vpack.c.bf16 %v4093_v51, %v4093_v51  ;;  %v10326_v63 = vpack.c.bf16 %v5117_v52, %v5117_v52  ;;  %v4096_v0 = vadd.f32 %v11782_v61, %v4095_v57  ;;  %v5120_v1 = vadd.f32 %v11782_v61, %v5119_v58  ;;  %v4097_v2 = vpop.f32.mrb[51].mxu0  ;;  %v5121_v3 = vpop.f32.mrb[51].mxu1  ;;  %v10889_v52 = vld [vmem:[%s11569_s21 + $0x2a0] ss:$8 sps:$4 sm:$0xff]   ;;  %v10893_v57 = vld [vmem:[%s11569_s21 + $0xab4] ss:$8 sps:$4 sm:$0xff]  }
 0x198   : > { %8116 = vst.msk [vmem:[%s11794_s20 + $0x60] sm:$0xf] %vm8091_vm2, %v10070_v62  ;;  %8372 = vst.msk [vmem:[%s11794_s20 + $0x460] sm:$0xf] %vm8091_vm2, %v10326_v63  ;;  %v10071_v4 = vpack.c.bf16 %v4096_v0, %v4096_v0  ;;  %v10327_v5 = vpack.c.bf16 %v5120_v1, %v5120_v1  ;;  %4307 = vmatmul.mubr.bf16.gmra.mrb[156].mxu0 %v10871_v55  ;;  %5331 = vmatmul.mubr.bf16.gmra.mrb[156].mxu1 %v10872_v56  ;;  %v10891_v56 = vld [vmem:[%s11569_s21 + $0x2b4] ss:$8 sps:$4 sm:$0xff]  }
 0x199   : > { %9315 = vmatprep.mubr.msk.bf16.mxu0 %vm3189_vm0, %v10873_v59  ;;  %9443 = vmatprep.mubr.msk.bf16.mxu1 %vm3189_vm0, %v10875_v60 }
 0x19a   : > { %8117 = vst.msk [vmem:[%s11794_s20 + $0x64] sm:$0xf] %vm8091_vm2, %v10071_v4  ;;  %8373 = vst.msk [vmem:[%s11794_s20 + $0x464] sm:$0xf] %vm8091_vm2, %v10327_v5 }
 0x19b   : > { %v4100_v6 = vpop.f32.mrb[52].mxu0  ;;  %v5124_v7 = vpop.f32.mrb[52].mxu1 }
 0x19c   : > { %v4101_v8 = vadd.f32 %v11782_v61, %v4100_v6  ;;  %v5125_v9 = vadd.f32 %v11782_v61, %v5124_v7  ;;  %v4102_v10 = vpop.f32.mrb[53].mxu0  ;;  %v5126_v11 = vpop.f32.mrb[53].mxu1 }
 0x19d   : > { %v4103_v14 = vpop.f32.mrb[54].mxu0  ;;  %v5127_v15 = vpop.f32.mrb[54].mxu1  ;;  %v10896_v10 = vld [vmem:[%s11569_s21 + $0xab0] ss:$8 sps:$4 sm:$0xff]  }
 0x19e   : > { %v10072_v18 = vpack.c.bf16 %v4101_v8, %v4101_v8  ;;  %v10328_v19 = vpack.c.bf16 %v5125_v9, %v5125_v9  ;;  %v4104_v20 = vadd.f32 %v11782_v61, %v4103_v14  ;;  %v5128_v21 = vadd.f32 %v11782_v61, %v5127_v15  ;;  %v4105_v22 = vpop.f32.mrb[55].mxu0  ;;  %v5129_v23 = vpop.f32.mrb[55].mxu1  ;;  %v10895_v9 = vld [vmem:[%s11569_s21 + $0x2b0] ss:$8 sps:$4 sm:$0xff]   ;;  %v10899_v14 = vld [vmem:[%s11569_s21 + $0xac4] ss:$8 sps:$4 sm:$0xff]  }
 0x1a0   : > { %8118 = vst.msk [vmem:[%s11794_s20 + $0x68] sm:$0xf] %vm8091_vm2, %v10072_v18  ;;  %8374 = vst.msk [vmem:[%s11794_s20 + $0x468] sm:$0xf] %vm8091_vm2, %v10328_v19  ;;  %v10073_v24 = vpack.c.bf16 %v4104_v20, %v4104_v20  ;;  %v10329_v25 = vpack.c.bf16 %v5128_v21, %v5128_v21  ;;  %4315 = vmatmul.mubr.bf16.gmra.mrb[160].mxu0 %v10877_v12  ;;  %5339 = vmatmul.mubr.bf16.gmra.mrb[160].mxu1 %v10878_v13  ;;  %v10897_v13 = vld [vmem:[%s11569_s21 + $0x2c4] ss:$8 sps:$4 sm:$0xff]  }
 0x1a1   : > { %9316 = vmatprep.mubr.msk.bf16.mxu0 %vm3189_vm0, %v10879_v16  ;;  %9444 = vmatprep.mubr.msk.bf16.mxu1 %vm3189_vm0, %v10881_v17 }
 0x1a2   : > { %8119 = vst.msk [vmem:[%s11794_s20 + $0x6c] sm:$0xf] %vm8091_vm2, %v10073_v24  ;;  %8375 = vst.msk [vmem:[%s11794_s20 + $0x46c] sm:$0xf] %vm8091_vm2, %v10329_v25 }
 0x1a3   : > { %v4108_v26 = vpop.f32.mrb[56].mxu0  ;;  %v5132_v27 = vpop.f32.mrb[56].mxu1 }
 0x1a4   : > { %v4109_v28 = vadd.f32 %v11782_v61, %v4108_v26  ;;  %v5133_v29 = vadd.f32 %v11782_v61, %v5132_v27  ;;  %v4110_v30 = vpop.f32.mrb[57].mxu0  ;;  %v5134_v31 = vpop.f32.mrb[57].mxu1 }
 0x1a5   : > { %v4111_v34 = vpop.f32.mrb[58].mxu0  ;;  %v5135_v35 = vpop.f32.mrb[58].mxu1  ;;  %v10902_v30 = vld [vmem:[%s11569_s21 + $0xac0] ss:$8 sps:$4 sm:$0xff]  }
 0x1a6   : > { %v10074_v38 = vpack.c.bf16 %v4109_v28, %v4109_v28  ;;  %v10330_v39 = vpack.c.bf16 %v5133_v29, %v5133_v29  ;;  %v4112_v40 = vadd.f32 %v11782_v61, %v4111_v34  ;;  %v5136_v41 = vadd.f32 %v11782_v61, %v5135_v35  ;;  %v4113_v42 = vpop.f32.mrb[59].mxu0  ;;  %v5137_v43 = vpop.f32.mrb[59].mxu1  ;;  %v10901_v29 = vld [vmem:[%s11569_s21 + $0x2c0] ss:$8 sps:$4 sm:$0xff]   ;;  %v10905_v34 = vld [vmem:[%s11569_s21 + $0xad4] ss:$8 sps:$4 sm:$0xff]  }
 0x1a8   : > { %8120 = vst.msk [vmem:[%s11794_s20 + $0x70] sm:$0xf] %vm8091_vm2, %v10074_v38  ;;  %8376 = vst.msk [vmem:[%s11794_s20 + $0x470] sm:$0xf] %vm8091_vm2, %v10330_v39  ;;  %v10075_v44 = vpack.c.bf16 %v4112_v40, %v4112_v40  ;;  %v10331_v45 = vpack.c.bf16 %v5136_v41, %v5136_v41  ;;  %4323 = vmatmul.mubr.bf16.gmra.mrb[164].mxu0 %v10883_v32  ;;  %5347 = vmatmul.mubr.bf16.gmra.mrb[164].mxu1 %v10884_v33  ;;  %v10903_v33 = vld [vmem:[%s11569_s21 + $0x2d4] ss:$8 sps:$4 sm:$0xff]  }
 0x1a9   : > { %9317 = vmatprep.mubr.msk.bf16.mxu0 %vm3189_vm0, %v10885_v36  ;;  %9445 = vmatprep.mubr.msk.bf16.mxu1 %vm3189_vm0, %v10887_v37 }
 0x1aa   : > { %8121 = vst.msk [vmem:[%s11794_s20 + $0x74] sm:$0xf] %vm8091_vm2, %v10075_v44  ;;  %8377 = vst.msk [vmem:[%s11794_s20 + $0x474] sm:$0xf] %vm8091_vm2, %v10331_v45  ;;  %v12116_v44 = vld [vmem:[#allocation2] ss:$0 sm:$0xff] }
 0x1ab   : > { %v4116_v46 = vpop.f32.mrb[60].mxu0  ;;  %v5140_v47 = vpop.f32.mrb[60].mxu1 }
 0x1ac   : > { %v4117_v48 = vadd.f32 %v11782_v61, %v4116_v46  ;;  %v5141_v49 = vadd.f32 %v11782_v61, %v5140_v47  ;;  %v4118_v50 = vpop.f32.mrb[61].mxu0  ;;  %v5142_v51 = vpop.f32.mrb[61].mxu1 }
 0x1ad   : > { %v4119_v54 = vpop.f32.mrb[62].mxu0  ;;  %v5143_v55 = vpop.f32.mrb[62].mxu1  ;;  %v10908_v50 = vld [vmem:[%s11569_s21 + $0xad0] ss:$8 sps:$4 sm:$0xff]  }
 0x1ae   : > { %v10076_v58 = vpack.c.bf16 %v4117_v48, %v4117_v48  ;;  %v10332_v59 = vpack.c.bf16 %v5141_v49, %v5141_v49  ;;  %v4120_v60 = vadd.f32 %v11782_v61, %v4119_v54  ;;  %v5144_v62 = vadd.f32 %v11782_v61, %v5143_v55  ;;  %v4121_v63 = vpop.f32.mrb[63].mxu0  ;;  %v5145_v0 = vpop.f32.mrb[63].mxu1  ;;  %v10907_v49 = vld [vmem:[%s11569_s21 + $0x2d0] ss:$8 sps:$4 sm:$0xff]   ;;  %v10911_v54 = vld [vmem:[%s11569_s21 + $0xae4] ss:$8 sps:$4 sm:$0xff]  }
 0x1b0   : > { %8122 = vst.msk [vmem:[%s11794_s20 + $0x78] sm:$0xf] %vm8091_vm2, %v10076_v58  ;;  %8378 = vst.msk [vmem:[%s11794_s20 + $0x478] sm:$0xf] %vm8091_vm2, %v10332_v59  ;;  %v10077_v1 = vpack.c.bf16 %v4120_v60, %v4120_v60  ;;  %v10333_v2 = vpack.c.bf16 %v5144_v62, %v5144_v62  ;;  %4331 = vmatmul.mubr.bf16.gmra.mrb[168].mxu0 %v10889_v52  ;;  %5355 = vmatmul.mubr.bf16.gmra.mrb[168].mxu1 %v10890_v53  ;;  %v10909_v53 = vld [vmem:[%s11569_s21 + $0x2e4] ss:$8 sps:$4 sm:$0xff]  }
 0x1b1   : > { %9318 = vmatprep.mubr.msk.bf16.mxu0 %vm3189_vm0, %v10891_v56  ;;  %9446 = vmatprep.mubr.msk.bf16.mxu1 %vm3189_vm0, %v10893_v57 }
 0x1b2   : > { %8123 = vst.msk [vmem:[%s11794_s20 + $0x7c] sm:$0xf] %vm8091_vm2, %v10077_v1  ;;  %8379 = vst.msk [vmem:[%s11794_s20 + $0x47c] sm:$0xf] %vm8091_vm2, %v10333_v2 }
 0x1b3   : > { %v4124_v3 = vpop.f32.mrb[64].mxu0  ;;  %v5148_v4 = vpop.f32.mrb[64].mxu1 }
 0x1b4   : > { %v4125_v5 = vadd.f32 %v11782_v61, %v4124_v3  ;;  %v5149_v6 = vadd.f32 %v11782_v61, %v5148_v4  ;;  %v4126_v7 = vpop.f32.mrb[65].mxu0  ;;  %v5150_v8 = vpop.f32.mrb[65].mxu1 }
 0x1b5   : > { %v4127_v11 = vpop.f32.mrb[66].mxu0  ;;  %v5151_v12 = vpop.f32.mrb[66].mxu1  ;;  %v10914_v7 = vld [vmem:[%s11569_s21 + $0xae0] ss:$8 sps:$4 sm:$0xff]  }
 0x1b6   : > { %v10078_v15 = vpack.c.bf16 %v4125_v5, %v4125_v5  ;;  %v10334_v16 = vpack.c.bf16 %v5149_v6, %v5149_v6  ;;  %v4128_v17 = vadd.f32 %v11782_v61, %v4127_v11  ;;  %v5152_v18 = vadd.f32 %v11782_v61, %v5151_v12  ;;  %v4129_v19 = vpop.f32.mrb[67].mxu0  ;;  %v5153_v20 = vpop.f32.mrb[67].mxu1  ;;  %v10913_v6 = vld [vmem:[%s11569_s21 + $0x2e0] ss:$8 sps:$4 sm:$0xff]   ;;  %v10917_v11 = vld [vmem:[%s11569_s21 + $0xaf4] ss:$8 sps:$4 sm:$0xff]  }
 0x1b8   : > { %8124 = vst.msk [vmem:[%s11794_s20 + $0x80] sm:$0xf] %vm8091_vm2, %v10078_v15  ;;  %8380 = vst.msk [vmem:[%s11794_s20 + $0x480] sm:$0xf] %vm8091_vm2, %v10334_v16  ;;  %v10079_v21 = vpack.c.bf16 %v4128_v17, %v4128_v17  ;;  %v10335_v22 = vpack.c.bf16 %v5152_v18, %v5152_v18  ;;  %4339 = vmatmul.mubr.bf16.gmra.mrb[172].mxu0 %v10895_v9  ;;  %5363 = vmatmul.mubr.bf16.gmra.mrb[172].mxu1 %v10896_v10  ;;  %v10915_v10 = vld [vmem:[%s11569_s21 + $0x2f4] ss:$8 sps:$4 sm:$0xff]  }
 0x1b9   : > { %9319 = vmatprep.mubr.msk.bf16.mxu0 %vm3189_vm0, %v10897_v13  ;;  %9447 = vmatprep.mubr.msk.bf16.mxu1 %vm3189_vm0, %v10899_v14 }
 0x1ba   : > { %8125 = vst.msk [vmem:[%s11794_s20 + $0x84] sm:$0xf] %vm8091_vm2, %v10079_v21  ;;  %8381 = vst.msk [vmem:[%s11794_s20 + $0x484] sm:$0xf] %vm8091_vm2, %v10335_v22 }
 0x1bb   : > { %v4132_v23 = vpop.f32.mrb[68].mxu0  ;;  %v5156_v24 = vpop.f32.mrb[68].mxu1 }
 0x1bc   : > { %v4133_v25 = vadd.f32 %v11782_v61, %v4132_v23  ;;  %v5157_v26 = vadd.f32 %v11782_v61, %v5156_v24  ;;  %v4134_v27 = vpop.f32.mrb[69].mxu0  ;;  %v5158_v28 = vpop.f32.mrb[69].mxu1 }
 0x1bd   : > { %v4135_v31 = vpop.f32.mrb[70].mxu0  ;;  %v5159_v32 = vpop.f32.mrb[70].mxu1  ;;  %v10920_v27 = vld [vmem:[%s11569_s21 + $0xaf0] ss:$8 sps:$4 sm:$0xff]  }
 0x1be   : > { %v10080_v35 = vpack.c.bf16 %v4133_v25, %v4133_v25  ;;  %v10336_v36 = vpack.c.bf16 %v5157_v26, %v5157_v26  ;;  %v4136_v37 = vadd.f32 %v11782_v61, %v4135_v31  ;;  %v5160_v38 = vadd.f32 %v11782_v61, %v5159_v32  ;;  %v4137_v39 = vpop.f32.mrb[71].mxu0  ;;  %v5161_v40 = vpop.f32.mrb[71].mxu1  ;;  %v10919_v26 = vld [vmem:[%s11569_s21 + $0x2f0] ss:$8 sps:$4 sm:$0xff]   ;;  %v10923_v31 = vld [vmem:[%s11569_s21 + $0xb04] ss:$8 sps:$4 sm:$0xff]  }
 0x1c0   : > { %8126 = vst.msk [vmem:[%s11794_s20 + $0x88] sm:$0xf] %vm8091_vm2, %v10080_v35  ;;  %8382 = vst.msk [vmem:[%s11794_s20 + $0x488] sm:$0xf] %vm8091_vm2, %v10336_v36  ;;  %v10081_v41 = vpack.c.bf16 %v4136_v37, %v4136_v37  ;;  %v10337_v42 = vpack.c.bf16 %v5160_v38, %v5160_v38  ;;  %4347 = vmatmul.mubr.bf16.gmra.mrb[176].mxu0 %v10901_v29  ;;  %5371 = vmatmul.mubr.bf16.gmra.mrb[176].mxu1 %v10902_v30  ;;  %v10921_v30 = vld [vmem:[%s11569_s21 + $0x304] ss:$8 sps:$4 sm:$0xff]  }
 0x1c1   : > { %9320 = vmatprep.mubr.msk.bf16.mxu0 %vm3189_vm0, %v10903_v33  ;;  %9448 = vmatprep.mubr.msk.bf16.mxu1 %vm3189_vm0, %v10905_v34 }
 0x1c2   : > { %8127 = vst.msk [vmem:[%s11794_s20 + $0x8c] sm:$0xf] %vm8091_vm2, %v10081_v41  ;;  %8383 = vst.msk [vmem:[%s11794_s20 + $0x48c] sm:$0xf] %vm8091_vm2, %v10337_v42 }
 0x1c3   : > { %v4140_v61 = vpop.f32.mrb[72].mxu0  ;;  %v5164_v43 = vpop.f32.mrb[72].mxu1 }
 0x1c4   : > { %v4141_v45 = vadd.f32 %v12116_v44, %v4140_v61  ;;  %v5165_v46 = vadd.f32 %v12116_v44, %v5164_v43  ;;  %v4142_v47 = vpop.f32.mrb[73].mxu0  ;;  %v5166_v48 = vpop.f32.mrb[73].mxu1 }
 0x1c5   : > { %v4143_v51 = vpop.f32.mrb[74].mxu0  ;;  %v5167_v52 = vpop.f32.mrb[74].mxu1  ;;  %v10926_v47 = vld [vmem:[%s11569_s21 + $0xb00] ss:$8 sps:$4 sm:$0xff]  }
 0x1c6   : > { %v10082_v55 = vpack.c.bf16 %v4141_v45, %v4141_v45  ;;  %v10338_v56 = vpack.c.bf16 %v5165_v46, %v5165_v46  ;;  %v4144_v57 = vadd.f32 %v12116_v44, %v4143_v51  ;;  %v5168_v58 = vadd.f32 %v12116_v44, %v5167_v52  ;;  %v4145_v59 = vpop.f32.mrb[75].mxu0  ;;  %v5169_v60 = vpop.f32.mrb[75].mxu1  ;;  %v10925_v46 = vld [vmem:[%s11569_s21 + $0x300] ss:$8 sps:$4 sm:$0xff]   ;;  %v10929_v51 = vld [vmem:[%s11569_s21 + $0xb14] ss:$8 sps:$4 sm:$0xff]  }
 0x1c8   : > { %8128 = vst.msk [vmem:[%s11794_s20 + $0x90] sm:$0xf] %vm8091_vm2, %v10082_v55  ;;  %8384 = vst.msk [vmem:[%s11794_s20 + $0x490] sm:$0xf] %vm8091_vm2, %v10338_v56  ;;  %v10083_v62 = vpack.c.bf16 %v4144_v57, %v4144_v57  ;;  %v10339_v63 = vpack.c.bf16 %v5168_v58, %v5168_v58  ;;  %4355 = vmatmul.mubr.bf16.gmra.mrb[180].mxu0 %v10907_v49  ;;  %5379 = vmatmul.mubr.bf16.gmra.mrb[180].mxu1 %v10908_v50  ;;  %v10927_v50 = vld [vmem:[%s11569_s21 + $0x314] ss:$8 sps:$4 sm:$0xff]  }
 0x1c9   : > { %9321 = vmatprep.mubr.msk.bf16.mxu0 %vm3189_vm0, %v10909_v53  ;;  %9449 = vmatprep.mubr.msk.bf16.mxu1 %vm3189_vm0, %v10911_v54 }
 0x1ca   : > { %8129 = vst.msk [vmem:[%s11794_s20 + $0x94] sm:$0xf] %vm8091_vm2, %v10083_v62  ;;  %8385 = vst.msk [vmem:[%s11794_s20 + $0x494] sm:$0xf] %vm8091_vm2, %v10339_v63 }
 0x1cb   : > { %v4148_v0 = vpop.f32.mrb[76].mxu0  ;;  %v5172_v1 = vpop.f32.mrb[76].mxu1 }
 0x1cc   : > { %v4149_v2 = vadd.f32 %v12116_v44, %v4148_v0  ;;  %v5173_v3 = vadd.f32 %v12116_v44, %v5172_v1  ;;  %v4150_v4 = vpop.f32.mrb[77].mxu0  ;;  %v5174_v5 = vpop.f32.mrb[77].mxu1 }
 0x1cd   : > { %v4151_v8 = vpop.f32.mrb[78].mxu0  ;;  %v5175_v9 = vpop.f32.mrb[78].mxu1  ;;  %v10932_v4 = vld [vmem:[%s11569_s21 + $0xb10] ss:$8 sps:$4 sm:$0xff]  }
 0x1ce   : > { %v10084_v12 = vpack.c.bf16 %v4149_v2, %v4149_v2  ;;  %v10340_v13 = vpack.c.bf16 %v5173_v3, %v5173_v3  ;;  %v4152_v14 = vadd.f32 %v12116_v44, %v4151_v8  ;;  %v5176_v15 = vadd.f32 %v12116_v44, %v5175_v9  ;;  %v4153_v16 = vpop.f32.mrb[79].mxu0  ;;  %v5177_v17 = vpop.f32.mrb[79].mxu1  ;;  %v10931_v3 = vld [vmem:[%s11569_s21 + $0x310] ss:$8 sps:$4 sm:$0xff]   ;;  %v10935_v8 = vld [vmem:[%s11569_s21 + $0xb24] ss:$8 sps:$4 sm:$0xff]  }
 0x1d0   : > { %8130 = vst.msk [vmem:[%s11794_s20 + $0x98] sm:$0xf] %vm8091_vm2, %v10084_v12  ;;  %8386 = vst.msk [vmem:[%s11794_s20 + $0x498] sm:$0xf] %vm8091_vm2, %v10340_v13  ;;  %v10085_v18 = vpack.c.bf16 %v4152_v14, %v4152_v14  ;;  %v10341_v19 = vpack.c.bf16 %v5176_v15, %v5176_v15  ;;  %4363 = vmatmul.mubr.bf16.gmra.mrb[184].mxu0 %v10913_v6  ;;  %5387 = vmatmul.mubr.bf16.gmra.mrb[184].mxu1 %v10914_v7  ;;  %v10933_v7 = vld [vmem:[%s11569_s21 + $0x324] ss:$8 sps:$4 sm:$0xff]  }
 0x1d1   : > { %9322 = vmatprep.mubr.msk.bf16.mxu0 %vm3189_vm0, %v10915_v10  ;;  %9450 = vmatprep.mubr.msk.bf16.mxu1 %vm3189_vm0, %v10917_v11 }
 0x1d2   : > { %8131 = vst.msk [vmem:[%s11794_s20 + $0x9c] sm:$0xf] %vm8091_vm2, %v10085_v18  ;;  %8387 = vst.msk [vmem:[%s11794_s20 + $0x49c] sm:$0xf] %vm8091_vm2, %v10341_v19 }
 0x1d3   : > { %v4156_v20 = vpop.f32.mrb[80].mxu0  ;;  %v5180_v21 = vpop.f32.mrb[80].mxu1 }
 0x1d4   : > { %v4157_v22 = vadd.f32 %v12116_v44, %v4156_v20  ;;  %v5181_v23 = vadd.f32 %v12116_v44, %v5180_v21  ;;  %v4158_v24 = vpop.f32.mrb[81].mxu0  ;;  %v5182_v25 = vpop.f32.mrb[81].mxu1 }
 0x1d5   : > { %v4159_v28 = vpop.f32.mrb[82].mxu0  ;;  %v5183_v29 = vpop.f32.mrb[82].mxu1  ;;  %v10938_v24 = vld [vmem:[%s11569_s21 + $0xb20] ss:$8 sps:$4 sm:$0xff]  }
 0x1d6   : > { %v10086_v32 = vpack.c.bf16 %v4157_v22, %v4157_v22  ;;  %v10342_v33 = vpack.c.bf16 %v5181_v23, %v5181_v23  ;;  %v4160_v34 = vadd.f32 %v12116_v44, %v4159_v28  ;;  %v5184_v35 = vadd.f32 %v12116_v44, %v5183_v29  ;;  %v4161_v36 = vpop.f32.mrb[83].mxu0  ;;  %v5185_v37 = vpop.f32.mrb[83].mxu1  ;;  %v10937_v23 = vld [vmem:[%s11569_s21 + $0x320] ss:$8 sps:$4 sm:$0xff]   ;;  %v10941_v28 = vld [vmem:[%s11569_s21 + $0xb34] ss:$8 sps:$4 sm:$0xff]  }
 0x1d8   : > { %8132 = vst.msk [vmem:[%s11794_s20 + $0xa0] sm:$0xf] %vm8091_vm2, %v10086_v32  ;;  %8388 = vst.msk [vmem:[%s11794_s20 + $0x4a0] sm:$0xf] %vm8091_vm2, %v10342_v33  ;;  %v10087_v38 = vpack.c.bf16 %v4160_v34, %v4160_v34  ;;  %v10343_v39 = vpack.c.bf16 %v5184_v35, %v5184_v35  ;;  %4371 = vmatmul.mubr.bf16.gmra.mrb[188].mxu0 %v10919_v26  ;;  %5395 = vmatmul.mubr.bf16.gmra.mrb[188].mxu1 %v10920_v27  ;;  %v10939_v27 = vld [vmem:[%s11569_s21 + $0x334] ss:$8 sps:$4 sm:$0xff]  }
 0x1d9   : > { %9323 = vmatprep.mubr.msk.bf16.mxu0 %vm3189_vm0, %v10921_v30  ;;  %9451 = vmatprep.mubr.msk.bf16.mxu1 %vm3189_vm0, %v10923_v31 }
 0x1da   : > { %8133 = vst.msk [vmem:[%s11794_s20 + $0xa4] sm:$0xf] %vm8091_vm2, %v10087_v38  ;;  %8389 = vst.msk [vmem:[%s11794_s20 + $0x4a4] sm:$0xf] %vm8091_vm2, %v10343_v39 }
 0x1db   : > { %v4164_v40 = vpop.f32.mrb[84].mxu0  ;;  %v5188_v41 = vpop.f32.mrb[84].mxu1 }
 0x1dc   : > { %v4165_v42 = vadd.f32 %v12116_v44, %v4164_v40  ;;  %v5189_v61 = vadd.f32 %v12116_v44, %v5188_v41  ;;  %v4166_v43 = vpop.f32.mrb[85].mxu0  ;;  %v5190_v45 = vpop.f32.mrb[85].mxu1 }
 0x1dd   : > { %v4167_v48 = vpop.f32.mrb[86].mxu0  ;;  %v5191_v49 = vpop.f32.mrb[86].mxu1  ;;  %v10944_v43 = vld [vmem:[%s11569_s21 + $0xb30] ss:$8 sps:$4 sm:$0xff]  }
 0x1de   : > { %v10088_v52 = vpack.c.bf16 %v4165_v42, %v4165_v42  ;;  %v10344_v53 = vpack.c.bf16 %v5189_v61, %v5189_v61  ;;  %v4168_v54 = vadd.f32 %v12116_v44, %v4167_v48  ;;  %v5192_v55 = vadd.f32 %v12116_v44, %v5191_v49  ;;  %v4169_v56 = vpop.f32.mrb[87].mxu0  ;;  %v5193_v57 = vpop.f32.mrb[87].mxu1  ;;  %v10943_v61 = vld [vmem:[%s11569_s21 + $0x330] ss:$8 sps:$4 sm:$0xff]   ;;  %v10947_v48 = vld [vmem:[%s11569_s21 + $0xb44] ss:$8 sps:$4 sm:$0xff]  }
 0x1e0   : > { %8134 = vst.msk [vmem:[%s11794_s20 + $0xa8] sm:$0xf] %vm8091_vm2, %v10088_v52  ;;  %8390 = vst.msk [vmem:[%s11794_s20 + $0x4a8] sm:$0xf] %vm8091_vm2, %v10344_v53  ;;  %v10089_v58 = vpack.c.bf16 %v4168_v54, %v4168_v54  ;;  %v10345_v59 = vpack.c.bf16 %v5192_v55, %v5192_v55  ;;  %4379 = vmatmul.mubr.bf16.gmra.mrb[192].mxu0 %v10925_v46  ;;  %5403 = vmatmul.mubr.bf16.gmra.mrb[192].mxu1 %v10926_v47  ;;  %v10945_v47 = vld [vmem:[%s11569_s21 + $0x344] ss:$8 sps:$4 sm:$0xff]  }
 0x1e1   : > { %9324 = vmatprep.mubr.msk.bf16.mxu0 %vm3189_vm0, %v10927_v50  ;;  %9452 = vmatprep.mubr.msk.bf16.mxu1 %vm3189_vm0, %v10929_v51 }
 0x1e2   : > { %8135 = vst.msk [vmem:[%s11794_s20 + $0xac] sm:$0xf] %vm8091_vm2, %v10089_v58  ;;  %8391 = vst.msk [vmem:[%s11794_s20 + $0x4ac] sm:$0xf] %vm8091_vm2, %v10345_v59 }
 0x1e3   : > { %v4172_v60 = vpop.f32.mrb[88].mxu0  ;;  %v5196_v62 = vpop.f32.mrb[88].mxu1 }
 0x1e4   : > { %v4173_v63 = vadd.f32 %v12116_v44, %v4172_v60  ;;  %v5197_v0 = vadd.f32 %v12116_v44, %v5196_v62  ;;  %v4174_v1 = vpop.f32.mrb[89].mxu0  ;;  %v5198_v2 = vpop.f32.mrb[89].mxu1 }
 0x1e5   : > { %v4175_v5 = vpop.f32.mrb[90].mxu0  ;;  %v5199_v6 = vpop.f32.mrb[90].mxu1  ;;  %v10950_v1 = vld [vmem:[%s11569_s21 + $0xb40] ss:$8 sps:$4 sm:$0xff]  }
 0x1e6   : > { %v10090_v9 = vpack.c.bf16 %v4173_v63, %v4173_v63  ;;  %v10346_v10 = vpack.c.bf16 %v5197_v0, %v5197_v0  ;;  %v4176_v11 = vadd.f32 %v12116_v44, %v4175_v5  ;;  %v5200_v12 = vadd.f32 %v12116_v44, %v5199_v6  ;;  %v4177_v13 = vpop.f32.mrb[91].mxu0  ;;  %v5201_v14 = vpop.f32.mrb[91].mxu1  ;;  %v10949_v0 = vld [vmem:[%s11569_s21 + $0x340] ss:$8 sps:$4 sm:$0xff]   ;;  %v10953_v5 = vld [vmem:[%s11569_s21 + $0xb54] ss:$8 sps:$4 sm:$0xff]  }
 0x1e8   : > { %8136 = vst.msk [vmem:[%s11794_s20 + $0xb0] sm:$0xf] %vm8091_vm2, %v10090_v9  ;;  %8392 = vst.msk [vmem:[%s11794_s20 + $0x4b0] sm:$0xf] %vm8091_vm2, %v10346_v10  ;;  %v10091_v15 = vpack.c.bf16 %v4176_v11, %v4176_v11  ;;  %v10347_v16 = vpack.c.bf16 %v5200_v12, %v5200_v12  ;;  %4387 = vmatmul.mubr.bf16.gmra.mrb[196].mxu0 %v10931_v3  ;;  %5411 = vmatmul.mubr.bf16.gmra.mrb[196].mxu1 %v10932_v4  ;;  %v10951_v4 = vld [vmem:[%s11569_s21 + $0x354] ss:$8 sps:$4 sm:$0xff]  }
 0x1e9   : > { %9325 = vmatprep.mubr.msk.bf16.mxu0 %vm3189_vm0, %v10933_v7  ;;  %9453 = vmatprep.mubr.msk.bf16.mxu1 %vm3189_vm0, %v10935_v8 }
 0x1ea   : > { %8137 = vst.msk [vmem:[%s11794_s20 + $0xb4] sm:$0xf] %vm8091_vm2, %v10091_v15  ;;  %8393 = vst.msk [vmem:[%s11794_s20 + $0x4b4] sm:$0xf] %vm8091_vm2, %v10347_v16 }
 0x1eb   : > { %v4180_v17 = vpop.f32.mrb[92].mxu0  ;;  %v5204_v18 = vpop.f32.mrb[92].mxu1 }
 0x1ec   : > { %v4181_v19 = vadd.f32 %v12116_v44, %v4180_v17  ;;  %v5205_v20 = vadd.f32 %v12116_v44, %v5204_v18  ;;  %v4182_v21 = vpop.f32.mrb[93].mxu0  ;;  %v5206_v22 = vpop.f32.mrb[93].mxu1 }
 0x1ed   : > { %v4183_v25 = vpop.f32.mrb[94].mxu0  ;;  %v5207_v26 = vpop.f32.mrb[94].mxu1  ;;  %v10956_v21 = vld [vmem:[%s11569_s21 + $0xb50] ss:$8 sps:$4 sm:$0xff]  }
 0x1ee   : > { %v10092_v29 = vpack.c.bf16 %v4181_v19, %v4181_v19  ;;  %v10348_v30 = vpack.c.bf16 %v5205_v20, %v5205_v20  ;;  %v4184_v31 = vadd.f32 %v12116_v44, %v4183_v25  ;;  %v5208_v32 = vadd.f32 %v12116_v44, %v5207_v26  ;;  %v4185_v33 = vpop.f32.mrb[95].mxu0  ;;  %v5209_v34 = vpop.f32.mrb[95].mxu1  ;;  %v10955_v20 = vld [vmem:[%s11569_s21 + $0x350] ss:$8 sps:$4 sm:$0xff]   ;;  %v10959_v25 = vld [vmem:[%s11569_s21 + $0xb64] ss:$8 sps:$4 sm:$0xff]  }
 0x1f0   : > { %8138 = vst.msk [vmem:[%s11794_s20 + $0xb8] sm:$0xf] %vm8091_vm2, %v10092_v29  ;;  %8394 = vst.msk [vmem:[%s11794_s20 + $0x4b8] sm:$0xf] %vm8091_vm2, %v10348_v30  ;;  %v10093_v35 = vpack.c.bf16 %v4184_v31, %v4184_v31  ;;  %v10349_v36 = vpack.c.bf16 %v5208_v32, %v5208_v32  ;;  %4395 = vmatmul.mubr.bf16.gmra.mrb[200].mxu0 %v10937_v23  ;;  %5419 = vmatmul.mubr.bf16.gmra.mrb[200].mxu1 %v10938_v24  ;;  %v10957_v24 = vld [vmem:[%s11569_s21 + $0x364] ss:$8 sps:$4 sm:$0xff]  }
 0x1f1   : > { %9326 = vmatprep.mubr.msk.bf16.mxu0 %vm3189_vm0, %v10939_v27  ;;  %9454 = vmatprep.mubr.msk.bf16.mxu1 %vm3189_vm0, %v10941_v28 }
 0x1f2   : > { %8139 = vst.msk [vmem:[%s11794_s20 + $0xbc] sm:$0xf] %vm8091_vm2, %v10093_v35  ;;  %8395 = vst.msk [vmem:[%s11794_s20 + $0x4bc] sm:$0xf] %vm8091_vm2, %v10349_v36 }
 0x1f3   : > { %v4188_v37 = vpop.f32.mrb[96].mxu0  ;;  %v5212_v38 = vpop.f32.mrb[96].mxu1 }
 0x1f4   : > { %v4189_v39 = vadd.f32 %v12116_v44, %v4188_v37  ;;  %v5213_v40 = vadd.f32 %v12116_v44, %v5212_v38  ;;  %v4190_v41 = vpop.f32.mrb[97].mxu0  ;;  %v5214_v42 = vpop.f32.mrb[97].mxu1 }
 0x1f5   : > { %v4191_v45 = vpop.f32.mrb[98].mxu0  ;;  %v5215_v46 = vpop.f32.mrb[98].mxu1  ;;  %v10962_v41 = vld [vmem:[%s11569_s21 + $0xb60] ss:$8 sps:$4 sm:$0xff]  }
 0x1f6   : > { %v10094_v49 = vpack.c.bf16 %v4189_v39, %v4189_v39  ;;  %v10350_v50 = vpack.c.bf16 %v5213_v40, %v5213_v40  ;;  %v4192_v51 = vadd.f32 %v12116_v44, %v4191_v45  ;;  %v5216_v52 = vadd.f32 %v12116_v44, %v5215_v46  ;;  %v4193_v53 = vpop.f32.mrb[99].mxu0  ;;  %v5217_v54 = vpop.f32.mrb[99].mxu1  ;;  %v10961_v40 = vld [vmem:[%s11569_s21 + $0x360] ss:$8 sps:$4 sm:$0xff]   ;;  %v10965_v45 = vld [vmem:[%s11569_s21 + $0xb74] ss:$8 sps:$4 sm:$0xff]  }
 0x1f8   : > { %8140 = vst.msk [vmem:[%s11794_s20 + $0xc0] sm:$0xf] %vm8091_vm2, %v10094_v49  ;;  %8396 = vst.msk [vmem:[%s11794_s20 + $0x4c0] sm:$0xf] %vm8091_vm2, %v10350_v50  ;;  %v10095_v55 = vpack.c.bf16 %v4192_v51, %v4192_v51  ;;  %v10351_v56 = vpack.c.bf16 %v5216_v52, %v5216_v52  ;;  %4403 = vmatmul.mubr.bf16.gmra.mrb[204].mxu0 %v10943_v61  ;;  %5427 = vmatmul.mubr.bf16.gmra.mrb[204].mxu1 %v10944_v43  ;;  %v10963_v43 = vld [vmem:[%s11569_s21 + $0x374] ss:$8 sps:$4 sm:$0xff]  }
 0x1f9   : > { %9327 = vmatprep.mubr.msk.bf16.mxu0 %vm3189_vm0, %v10945_v47  ;;  %9455 = vmatprep.mubr.msk.bf16.mxu1 %vm3189_vm0, %v10947_v48 }
 0x1fa   : > { %8141 = vst.msk [vmem:[%s11794_s20 + $0xc4] sm:$0xf] %vm8091_vm2, %v10095_v55  ;;  %8397 = vst.msk [vmem:[%s11794_s20 + $0x4c4] sm:$0xf] %vm8091_vm2, %v10351_v56 }
 0x1fb   : > { %v4196_v57 = vpop.f32.mrb[100].mxu0  ;;  %v5220_v58 = vpop.f32.mrb[100].mxu1 }
 0x1fc   : > { %v4197_v59 = vadd.f32 %v12116_v44, %v4196_v57  ;;  %v5221_v60 = vadd.f32 %v12116_v44, %v5220_v58  ;;  %v4198_v62 = vpop.f32.mrb[101].mxu0  ;;  %v5222_v63 = vpop.f32.mrb[101].mxu1 }
 0x1fd   : > { %v4199_v2 = vpop.f32.mrb[102].mxu0  ;;  %v5223_v3 = vpop.f32.mrb[102].mxu1  ;;  %v10968_v62 = vld [vmem:[%s11569_s21 + $0xb70] ss:$8 sps:$4 sm:$0xff]  }
 0x1fe   : > { %v10096_v6 = vpack.c.bf16 %v4197_v59, %v4197_v59  ;;  %v10352_v7 = vpack.c.bf16 %v5221_v60, %v5221_v60  ;;  %v4200_v8 = vadd.f32 %v12116_v44, %v4199_v2  ;;  %v5224_v9 = vadd.f32 %v12116_v44, %v5223_v3  ;;  %v4201_v10 = vpop.f32.mrb[103].mxu0  ;;  %v5225_v11 = vpop.f32.mrb[103].mxu1  ;;  %v10967_v60 = vld [vmem:[%s11569_s21 + $0x370] ss:$8 sps:$4 sm:$0xff]   ;;  %v10971_v2 = vld [vmem:[%s11569_s21 + $0xb84] ss:$8 sps:$4 sm:$0xff]  }
 0x200   : > { %8142 = vst.msk [vmem:[%s11794_s20 + $0xc8] sm:$0xf] %vm8091_vm2, %v10096_v6  ;;  %8398 = vst.msk [vmem:[%s11794_s20 + $0x4c8] sm:$0xf] %vm8091_vm2, %v10352_v7  ;;  %v10097_v12 = vpack.c.bf16 %v4200_v8, %v4200_v8  ;;  %v10353_v13 = vpack.c.bf16 %v5224_v9, %v5224_v9  ;;  %4411 = vmatmul.mubr.bf16.gmra.mrb[208].mxu0 %v10949_v0  ;;  %5435 = vmatmul.mubr.bf16.gmra.mrb[208].mxu1 %v10950_v1  ;;  %v10969_v1 = vld [vmem:[%s11569_s21 + $0x384] ss:$8 sps:$4 sm:$0xff]  }
 0x201   : > { %9328 = vmatprep.mubr.msk.bf16.mxu0 %vm3189_vm0, %v10951_v4  ;;  %9456 = vmatprep.mubr.msk.bf16.mxu1 %vm3189_vm0, %v10953_v5 }
 0x202   : > { %8143 = vst.msk [vmem:[%s11794_s20 + $0xcc] sm:$0xf] %vm8091_vm2, %v10097_v12  ;;  %8399 = vst.msk [vmem:[%s11794_s20 + $0x4cc] sm:$0xf] %vm8091_vm2, %v10353_v13 }
 0x203   : > { %v4204_v14 = vpop.f32.mrb[104].mxu0  ;;  %v5228_v15 = vpop.f32.mrb[104].mxu1 }
 0x204   : > { %v4205_v16 = vadd.f32 %v12116_v44, %v4204_v14  ;;  %v5229_v17 = vadd.f32 %v12116_v44, %v5228_v15  ;;  %v4206_v18 = vpop.f32.mrb[105].mxu0  ;;  %v5230_v19 = vpop.f32.mrb[105].mxu1 }
 0x205   : > { %v4207_v22 = vpop.f32.mrb[106].mxu0  ;;  %v5231_v23 = vpop.f32.mrb[106].mxu1  ;;  %v10974_v18 = vld [vmem:[%s11569_s21 + $0xb80] ss:$8 sps:$4 sm:$0xff]  }
 0x206   : > { %v10098_v26 = vpack.c.bf16 %v4205_v16, %v4205_v16  ;;  %v10354_v27 = vpack.c.bf16 %v5229_v17, %v5229_v17  ;;  %v4208_v28 = vadd.f32 %v12116_v44, %v4207_v22  ;;  %v5232_v29 = vadd.f32 %v12116_v44, %v5231_v23  ;;  %v4209_v30 = vpop.f32.mrb[107].mxu0  ;;  %v5233_v31 = vpop.f32.mrb[107].mxu1  ;;  %v10973_v17 = vld [vmem:[%s11569_s21 + $0x380] ss:$8 sps:$4 sm:$0xff]   ;;  %v10977_v22 = vld [vmem:[%s11569_s21 + $0xb94] ss:$8 sps:$4 sm:$0xff]  }
 0x208   : > { %8144 = vst.msk [vmem:[%s11794_s20 + $0xd0] sm:$0xf] %vm8091_vm2, %v10098_v26  ;;  %8400 = vst.msk [vmem:[%s11794_s20 + $0x4d0] sm:$0xf] %vm8091_vm2, %v10354_v27  ;;  %v10099_v32 = vpack.c.bf16 %v4208_v28, %v4208_v28  ;;  %v10355_v33 = vpack.c.bf16 %v5232_v29, %v5232_v29  ;;  %4419 = vmatmul.mubr.bf16.gmra.mrb[212].mxu0 %v10955_v20  ;;  %5443 = vmatmul.mubr.bf16.gmra.mrb[212].mxu1 %v10956_v21  ;;  %v10975_v21 = vld [vmem:[%s11569_s21 + $0x394] ss:$8 sps:$4 sm:$0xff]  }
 0x209   : > { %9329 = vmatprep.mubr.msk.bf16.mxu0 %vm3189_vm0, %v10957_v24  ;;  %9457 = vmatprep.mubr.msk.bf16.mxu1 %vm3189_vm0, %v10959_v25 }
 0x20a   : > { %8145 = vst.msk [vmem:[%s11794_s20 + $0xd4] sm:$0xf] %vm8091_vm2, %v10099_v32  ;;  %8401 = vst.msk [vmem:[%s11794_s20 + $0x4d4] sm:$0xf] %vm8091_vm2, %v10355_v33 }
 0x20b   : > { %v4212_v34 = vpop.f32.mrb[108].mxu0  ;;  %v5236_v35 = vpop.f32.mrb[108].mxu1 }
 0x20c   : > { %v4213_v36 = vadd.f32 %v12116_v44, %v4212_v34  ;;  %v5237_v37 = vadd.f32 %v12116_v44, %v5236_v35  ;;  %v4214_v38 = vpop.f32.mrb[109].mxu0  ;;  %v5238_v39 = vpop.f32.mrb[109].mxu1 }
 0x20d   : > { %v4215_v42 = vpop.f32.mrb[110].mxu0  ;;  %v5239_v61 = vpop.f32.mrb[110].mxu1  ;;  %v10980_v38 = vld [vmem:[%s11569_s21 + $0xb90] ss:$8 sps:$4 sm:$0xff]  }
 0x20e   : > { %v10100_v46 = vpack.c.bf16 %v4213_v36, %v4213_v36  ;;  %v10356_v47 = vpack.c.bf16 %v5237_v37, %v5237_v37  ;;  %v4216_v48 = vadd.f32 %v12116_v44, %v4215_v42  ;;  %v5240_v49 = vadd.f32 %v12116_v44, %v5239_v61  ;;  %v4217_v50 = vpop.f32.mrb[111].mxu0  ;;  %v5241_v51 = vpop.f32.mrb[111].mxu1  ;;  %v10979_v37 = vld [vmem:[%s11569_s21 + $0x390] ss:$8 sps:$4 sm:$0xff]   ;;  %v10983_v42 = vld [vmem:[%s11569_s21 + $0xba4] ss:$8 sps:$4 sm:$0xff]  }
 0x210   : > { %8146 = vst.msk [vmem:[%s11794_s20 + $0xd8] sm:$0xf] %vm8091_vm2, %v10100_v46  ;;  %8402 = vst.msk [vmem:[%s11794_s20 + $0x4d8] sm:$0xf] %vm8091_vm2, %v10356_v47  ;;  %v10101_v52 = vpack.c.bf16 %v4216_v48, %v4216_v48  ;;  %v10357_v53 = vpack.c.bf16 %v5240_v49, %v5240_v49  ;;  %4427 = vmatmul.mubr.bf16.gmra.mrb[216].mxu0 %v10961_v40  ;;  %5451 = vmatmul.mubr.bf16.gmra.mrb[216].mxu1 %v10962_v41  ;;  %v10981_v41 = vld [vmem:[%s11569_s21 + $0x3a4] ss:$8 sps:$4 sm:$0xff]  }
 0x211   : > { %9330 = vmatprep.mubr.msk.bf16.mxu0 %vm3189_vm0, %v10963_v43  ;;  %9458 = vmatprep.mubr.msk.bf16.mxu1 %vm3189_vm0, %v10965_v45 }
 0x212   : > { %8147 = vst.msk [vmem:[%s11794_s20 + $0xdc] sm:$0xf] %vm8091_vm2, %v10101_v52  ;;  %8403 = vst.msk [vmem:[%s11794_s20 + $0x4dc] sm:$0xf] %vm8091_vm2, %v10357_v53 }
 0x213   : > { %v4220_v54 = vpop.f32.mrb[112].mxu0  ;;  %v5244_v55 = vpop.f32.mrb[112].mxu1 }
 0x214   : > { %v4221_v56 = vadd.f32 %v12116_v44, %v4220_v54  ;;  %v5245_v57 = vadd.f32 %v12116_v44, %v5244_v55  ;;  %v4222_v58 = vpop.f32.mrb[113].mxu0  ;;  %v5246_v59 = vpop.f32.mrb[113].mxu1 }
 0x215   : > { %v4223_v63 = vpop.f32.mrb[114].mxu0  ;;  %v5247_v0 = vpop.f32.mrb[114].mxu1  ;;  %v10986_v58 = vld [vmem:[%s11569_s21 + $0xba0] ss:$8 sps:$4 sm:$0xff]  }
 0x216   : > { %v10102_v3 = vpack.c.bf16 %v4221_v56, %v4221_v56  ;;  %v10358_v4 = vpack.c.bf16 %v5245_v57, %v5245_v57  ;;  %v4224_v5 = vadd.f32 %v12116_v44, %v4223_v63  ;;  %v5248_v6 = vadd.f32 %v12116_v44, %v5247_v0  ;;  %v4225_v7 = vpop.f32.mrb[115].mxu0  ;;  %v5249_v8 = vpop.f32.mrb[115].mxu1  ;;  %v10985_v57 = vld [vmem:[%s11569_s21 + $0x3a0] ss:$8 sps:$4 sm:$0xff]   ;;  %v10989_v63 = vld [vmem:[%s11569_s21 + $0xbb4] ss:$8 sps:$4 sm:$0xff]  }
 0x218   : > { %8148 = vst.msk [vmem:[%s11794_s20 + $0xe0] sm:$0xf] %vm8091_vm2, %v10102_v3  ;;  %8404 = vst.msk [vmem:[%s11794_s20 + $0x4e0] sm:$0xf] %vm8091_vm2, %v10358_v4  ;;  %v10103_v9 = vpack.c.bf16 %v4224_v5, %v4224_v5  ;;  %v10359_v10 = vpack.c.bf16 %v5248_v6, %v5248_v6  ;;  %4435 = vmatmul.mubr.bf16.gmra.mrb[220].mxu0 %v10967_v60  ;;  %5459 = vmatmul.mubr.bf16.gmra.mrb[220].mxu1 %v10968_v62  ;;  %v10987_v62 = vld [vmem:[%s11569_s21 + $0x3b4] ss:$8 sps:$4 sm:$0xff]  }
 0x219   : > { %9331 = vmatprep.mubr.msk.bf16.mxu0 %vm3189_vm0, %v10969_v1  ;;  %9459 = vmatprep.mubr.msk.bf16.mxu1 %vm3189_vm0, %v10971_v2 }
 0x21a   : > { %8149 = vst.msk [vmem:[%s11794_s20 + $0xe4] sm:$0xf] %vm8091_vm2, %v10103_v9  ;;  %8405 = vst.msk [vmem:[%s11794_s20 + $0x4e4] sm:$0xf] %vm8091_vm2, %v10359_v10 }
 0x21b   : > { %v4228_v11 = vpop.f32.mrb[116].mxu0  ;;  %v5252_v12 = vpop.f32.mrb[116].mxu1 }
 0x21c   : > { %v4229_v13 = vadd.f32 %v12116_v44, %v4228_v11  ;;  %v5253_v14 = vadd.f32 %v12116_v44, %v5252_v12  ;;  %v4230_v15 = vpop.f32.mrb[117].mxu0  ;;  %v5254_v16 = vpop.f32.mrb[117].mxu1 }
 0x21d   : > { %v4231_v19 = vpop.f32.mrb[118].mxu0  ;;  %v5255_v20 = vpop.f32.mrb[118].mxu1  ;;  %v10992_v15 = vld [vmem:[%s11569_s21 + $0xbb0] ss:$8 sps:$4 sm:$0xff]  }
 0x21e   : > { %v10104_v23 = vpack.c.bf16 %v4229_v13, %v4229_v13  ;;  %v10360_v24 = vpack.c.bf16 %v5253_v14, %v5253_v14  ;;  %v4232_v25 = vadd.f32 %v12116_v44, %v4231_v19  ;;  %v5256_v26 = vadd.f32 %v12116_v44, %v5255_v20  ;;  %v4233_v27 = vpop.f32.mrb[119].mxu0  ;;  %v5257_v28 = vpop.f32.mrb[119].mxu1  ;;  %v10991_v14 = vld [vmem:[%s11569_s21 + $0x3b0] ss:$8 sps:$4 sm:$0xff]   ;;  %v10995_v19 = vld [vmem:[%s11569_s21 + $0xbc4] ss:$8 sps:$4 sm:$0xff]  }
 0x220   : > { %8150 = vst.msk [vmem:[%s11794_s20 + $0xe8] sm:$0xf] %vm8091_vm2, %v10104_v23  ;;  %8406 = vst.msk [vmem:[%s11794_s20 + $0x4e8] sm:$0xf] %vm8091_vm2, %v10360_v24  ;;  %v10105_v29 = vpack.c.bf16 %v4232_v25, %v4232_v25  ;;  %v10361_v30 = vpack.c.bf16 %v5256_v26, %v5256_v26  ;;  %4443 = vmatmul.mubr.bf16.gmra.mrb[224].mxu0 %v10973_v17  ;;  %5467 = vmatmul.mubr.bf16.gmra.mrb[224].mxu1 %v10974_v18  ;;  %v10993_v18 = vld [vmem:[%s11569_s21 + $0x3c4] ss:$8 sps:$4 sm:$0xff]  }
 0x221   : > { %9332 = vmatprep.mubr.msk.bf16.mxu0 %vm3189_vm0, %v10975_v21  ;;  %9460 = vmatprep.mubr.msk.bf16.mxu1 %vm3189_vm0, %v10977_v22 }
 0x222   : > { %8151 = vst.msk [vmem:[%s11794_s20 + $0xec] sm:$0xf] %vm8091_vm2, %v10105_v29  ;;  %8407 = vst.msk [vmem:[%s11794_s20 + $0x4ec] sm:$0xf] %vm8091_vm2, %v10361_v30 }
 0x223   : > { %v4236_v31 = vpop.f32.mrb[120].mxu0  ;;  %v5260_v32 = vpop.f32.mrb[120].mxu1 }
 0x224   : > { %v4237_v33 = vadd.f32 %v12116_v44, %v4236_v31  ;;  %v5261_v34 = vadd.f32 %v12116_v44, %v5260_v32  ;;  %v4238_v35 = vpop.f32.mrb[121].mxu0  ;;  %v5262_v36 = vpop.f32.mrb[121].mxu1 }
 0x225   : > { %v4239_v39 = vpop.f32.mrb[122].mxu0  ;;  %v5263_v40 = vpop.f32.mrb[122].mxu1  ;;  %v10998_v35 = vld [vmem:[%s11569_s21 + $0xbc0] ss:$8 sps:$4 sm:$0xff]  }
 0x226   : > { %v10106_v61 = vpack.c.bf16 %v4237_v33, %v4237_v33  ;;  %v10362_v43 = vpack.c.bf16 %v5261_v34, %v5261_v34  ;;  %v4240_v45 = vadd.f32 %v12116_v44, %v4239_v39  ;;  %v5264_v46 = vadd.f32 %v12116_v44, %v5263_v40  ;;  %v4241_v47 = vpop.f32.mrb[123].mxu0  ;;  %v5265_v48 = vpop.f32.mrb[123].mxu1  ;;  %v10997_v34 = vld [vmem:[%s11569_s21 + $0x3c0] ss:$8 sps:$4 sm:$0xff]   ;;  %v11001_v39 = vld [vmem:[%s11569_s21 + $0xbd4] ss:$8 sps:$4 sm:$0xff]  }
 0x228   : > { %8152 = vst.msk [vmem:[%s11794_s20 + $0xf0] sm:$0xf] %vm8091_vm2, %v10106_v61  ;;  %8408 = vst.msk [vmem:[%s11794_s20 + $0x4f0] sm:$0xf] %vm8091_vm2, %v10362_v43  ;;  %v10107_v49 = vpack.c.bf16 %v4240_v45, %v4240_v45  ;;  %v10363_v50 = vpack.c.bf16 %v5264_v46, %v5264_v46  ;;  %4451 = vmatmul.mubr.bf16.gmra.mrb[228].mxu0 %v10979_v37  ;;  %5475 = vmatmul.mubr.bf16.gmra.mrb[228].mxu1 %v10980_v38  ;;  %v10999_v38 = vld [vmem:[%s11569_s21 + $0x3d4] ss:$8 sps:$4 sm:$0xff]  }
 0x229   : > { %9333 = vmatprep.mubr.msk.bf16.mxu0 %vm3189_vm0, %v10981_v41  ;;  %9461 = vmatprep.mubr.msk.bf16.mxu1 %vm3189_vm0, %v10983_v42 }
 0x22a   : > { %8153 = vst.msk [vmem:[%s11794_s20 + $0xf4] sm:$0xf] %vm8091_vm2, %v10107_v49  ;;  %8409 = vst.msk [vmem:[%s11794_s20 + $0x4f4] sm:$0xf] %vm8091_vm2, %v10363_v50 }
 0x22b   : > { %v4244_v51 = vpop.f32.mrb[124].mxu0  ;;  %v5268_v52 = vpop.f32.mrb[124].mxu1 }
 0x22c   : > { %v4245_v53 = vadd.f32 %v12116_v44, %v4244_v51  ;;  %v5269_v54 = vadd.f32 %v12116_v44, %v5268_v52  ;;  %v4246_v55 = vpop.f32.mrb[125].mxu0  ;;  %v5270_v56 = vpop.f32.mrb[125].mxu1 }
 0x22d   : > { %v4247_v59 = vpop.f32.mrb[126].mxu0  ;;  %v5271_v60 = vpop.f32.mrb[126].mxu1  ;;  %v11004_v55 = vld [vmem:[%s11569_s21 + $0xbd0] ss:$8 sps:$4 sm:$0xff]  }
 0x22e   : > { %v10108_v0 = vpack.c.bf16 %v4245_v53, %v4245_v53  ;;  %v10364_v1 = vpack.c.bf16 %v5269_v54, %v5269_v54  ;;  %v4248_v2 = vadd.f32 %v12116_v44, %v4247_v59  ;;  %v5272_v3 = vadd.f32 %v12116_v44, %v5271_v60  ;;  %v4249_v4 = vpop.f32.mrb[127].mxu0  ;;  %v5273_v5 = vpop.f32.mrb[127].mxu1  ;;  %v11003_v54 = vld [vmem:[%s11569_s21 + $0x3d0] ss:$8 sps:$4 sm:$0xff]   ;;  %v11007_v59 = vld [vmem:[%s11569_s21 + $0xbe4] ss:$8 sps:$4 sm:$0xff]  }
 0x230   : > { %8154 = vst.msk [vmem:[%s11794_s20 + $0xf8] sm:$0xf] %vm8091_vm2, %v10108_v0  ;;  %8410 = vst.msk [vmem:[%s11794_s20 + $0x4f8] sm:$0xf] %vm8091_vm2, %v10364_v1  ;;  %v10109_v6 = vpack.c.bf16 %v4248_v2, %v4248_v2  ;;  %v10365_v7 = vpack.c.bf16 %v5272_v3, %v5272_v3  ;;  %4459 = vmatmul.mubr.bf16.gmra.mrb[232].mxu0 %v10985_v57  ;;  %5483 = vmatmul.mubr.bf16.gmra.mrb[232].mxu1 %v10986_v58  ;;  %v11005_v58 = vld [vmem:[%s11569_s21 + $0x3e4] ss:$8 sps:$4 sm:$0xff]  }
 0x231   : > { %9334 = vmatprep.mubr.msk.bf16.mxu0 %vm3189_vm0, %v10987_v62  ;;  %9462 = vmatprep.mubr.msk.bf16.mxu1 %vm3189_vm0, %v10989_v63 }
 0x232   : > { %8155 = vst.msk [vmem:[%s11794_s20 + $0xfc] sm:$0xf] %vm8091_vm2, %v10109_v6  ;;  %8411 = vst.msk [vmem:[%s11794_s20 + $0x4fc] sm:$0xf] %vm8091_vm2, %v10365_v7 }
 0x233   : > { %v4252_v8 = vpop.f32.mrb[128].mxu0  ;;  %v5276_v9 = vpop.f32.mrb[128].mxu1 }
 0x234   : > { %v4253_v10 = vadd.f32 %v12116_v44, %v4252_v8  ;;  %v5277_v11 = vadd.f32 %v12116_v44, %v5276_v9  ;;  %v4254_v12 = vpop.f32.mrb[129].mxu0  ;;  %v5278_v13 = vpop.f32.mrb[129].mxu1 }
 0x235   : > { %v4255_v16 = vpop.f32.mrb[130].mxu0  ;;  %v5279_v17 = vpop.f32.mrb[130].mxu1  ;;  %v11010_v12 = vld [vmem:[%s11569_s21 + $0xbe0] ss:$8 sps:$4 sm:$0xff]  }
 0x236   : > { %v10110_v20 = vpack.c.bf16 %v4253_v10, %v4253_v10  ;;  %v10366_v21 = vpack.c.bf16 %v5277_v11, %v5277_v11  ;;  %v4256_v22 = vadd.f32 %v12116_v44, %v4255_v16  ;;  %v5280_v23 = vadd.f32 %v12116_v44, %v5279_v17  ;;  %v4257_v24 = vpop.f32.mrb[131].mxu0  ;;  %v5281_v25 = vpop.f32.mrb[131].mxu1  ;;  %v11009_v11 = vld [vmem:[%s11569_s21 + $0x3e0] ss:$8 sps:$4 sm:$0xff]   ;;  %v11013_v16 = vld [vmem:[%s11569_s21 + $0xbf4] ss:$8 sps:$4 sm:$0xff]  }
 0x238   : > { %8156 = vst.msk [vmem:[%s11794_s20 + $0x100] sm:$0xf] %vm8091_vm2, %v10110_v20  ;;  %8412 = vst.msk [vmem:[%s11794_s20 + $0x500] sm:$0xf] %vm8091_vm2, %v10366_v21  ;;  %v10111_v26 = vpack.c.bf16 %v4256_v22, %v4256_v22  ;;  %v10367_v27 = vpack.c.bf16 %v5280_v23, %v5280_v23  ;;  %4467 = vmatmul.mubr.bf16.gmra.mrb[236].mxu0 %v10991_v14  ;;  %5491 = vmatmul.mubr.bf16.gmra.mrb[236].mxu1 %v10992_v15  ;;  %v11011_v15 = vld [vmem:[%s11569_s21 + $0x3f4] ss:$8 sps:$4 sm:$0xff]  }
 0x239   : > { %9335 = vmatprep.mubr.msk.bf16.mxu0 %vm3189_vm0, %v10993_v18  ;;  %9463 = vmatprep.mubr.msk.bf16.mxu1 %vm3189_vm0, %v10995_v19 }
 0x23a   : > { %8157 = vst.msk [vmem:[%s11794_s20 + $0x104] sm:$0xf] %vm8091_vm2, %v10111_v26  ;;  %8413 = vst.msk [vmem:[%s11794_s20 + $0x504] sm:$0xf] %vm8091_vm2, %v10367_v27 }
 0x23b   : > { %v4260_v28 = vpop.f32.mrb[132].mxu0  ;;  %v5284_v29 = vpop.f32.mrb[132].mxu1 }
 0x23c   : > { %v4261_v30 = vadd.f32 %v12116_v44, %v4260_v28  ;;  %v5285_v31 = vadd.f32 %v12116_v44, %v5284_v29  ;;  %v4262_v32 = vpop.f32.mrb[133].mxu0  ;;  %v5286_v33 = vpop.f32.mrb[133].mxu1 }
 0x23d   : > { %v4263_v36 = vpop.f32.mrb[134].mxu0  ;;  %v5287_v37 = vpop.f32.mrb[134].mxu1  ;;  %v11016_v32 = vld [vmem:[%s11569_s21 + $0xbf0] ss:$8 sps:$4 sm:$0xff]  }
 0x23e   : > { %v10112_v40 = vpack.c.bf16 %v4261_v30, %v4261_v30  ;;  %v10368_v41 = vpack.c.bf16 %v5285_v31, %v5285_v31  ;;  %v4264_v42 = vadd.f32 %v12116_v44, %v4263_v36  ;;  %v5288_v61 = vadd.f32 %v12116_v44, %v5287_v37  ;;  %v4265_v43 = vpop.f32.mrb[135].mxu0  ;;  %v5289_v45 = vpop.f32.mrb[135].mxu1  ;;  %v11015_v31 = vld [vmem:[%s11569_s21 + $0x3f0] ss:$8 sps:$4 sm:$0xff]   ;;  %v11022_v36 = vld [vmem:[%s11569_s21 + $0xc04] ss:$8 sps:$4 sm:$0xff]  }
 0x240   : > { %8158 = vst.msk [vmem:[%s11794_s20 + $0x108] sm:$0xf] %vm8091_vm2, %v10112_v40  ;;  %8414 = vst.msk [vmem:[%s11794_s20 + $0x508] sm:$0xf] %vm8091_vm2, %v10368_v41  ;;  %v10113_v46 = vpack.c.bf16 %v4264_v42, %v4264_v42  ;;  %v10369_v47 = vpack.c.bf16 %v5288_v61, %v5288_v61  ;;  %4475 = vmatmul.mubr.bf16.gmra.mrb[240].mxu0 %v10997_v34  ;;  %5499 = vmatmul.mubr.bf16.gmra.mrb[240].mxu1 %v10998_v35  ;;  %v11019_v35 = vld [vmem:[%s11569_s21 + $0x404] ss:$8 sps:$4 sm:$0xff]  }
 0x241   : > { %9336 = vmatprep.mubr.msk.bf16.mxu0 %vm3189_vm0, %v10999_v38  ;;  %9464 = vmatprep.mubr.msk.bf16.mxu1 %vm3189_vm0, %v11001_v39  ;;  %v12448_v39 = vld [vmem:[#allocation2] ss:$0 sm:$0xff] }
 0x242   : > { %8159 = vst.msk [vmem:[%s11794_s20 + $0x10c] sm:$0xf] %vm8091_vm2, %v10113_v46  ;;  %8415 = vst.msk [vmem:[%s11794_s20 + $0x50c] sm:$0xf] %vm8091_vm2, %v10369_v47 }
 0x243   : > { %v4268_v48 = vpop.f32.mrb[136].mxu0  ;;  %v5292_v49 = vpop.f32.mrb[136].mxu1 }
 0x244   : > { %v4269_v50 = vadd.f32 %v12116_v44, %v4268_v48  ;;  %v5293_v51 = vadd.f32 %v12116_v44, %v5292_v49  ;;  %v4270_v52 = vpop.f32.mrb[137].mxu0  ;;  %v5294_v53 = vpop.f32.mrb[137].mxu1 }
 0x245   : > { %v4271_v56 = vpop.f32.mrb[138].mxu0  ;;  %v5295_v57 = vpop.f32.mrb[138].mxu1  ;;  %v11020_v52 = vld [vmem:[%s11569_s21 + $0xc00] ss:$8 sps:$4 sm:$0xff]  }
 0x246   : > { %v10114_v60 = vpack.c.bf16 %v4269_v50, %v4269_v50  ;;  %v10370_v62 = vpack.c.bf16 %v5293_v51, %v5293_v51  ;;  %v4272_v63 = vadd.f32 %v12116_v44, %v4271_v56  ;;  %v5296_v0 = vadd.f32 %v12116_v44, %v5295_v57  ;;  %v4273_v1 = vpop.f32.mrb[139].mxu0  ;;  %v5297_v2 = vpop.f32.mrb[139].mxu1  ;;  %v11017_v51 = vld [vmem:[%s11569_s21 + $0x400] ss:$8 sps:$4 sm:$0xff]   ;;  %v11028_v56 = vld [vmem:[%s11569_s21 + $0xc14] ss:$8 sps:$4 sm:$0xff]  }
 0x248   : > { %8160 = vst.msk [vmem:[%s11794_s20 + $0x110] sm:$0xf] %vm8091_vm2, %v10114_v60  ;;  %8416 = vst.msk [vmem:[%s11794_s20 + $0x510] sm:$0xf] %vm8091_vm2, %v10370_v62  ;;  %v10115_v3 = vpack.c.bf16 %v4272_v63, %v4272_v63  ;;  %v10371_v4 = vpack.c.bf16 %v5296_v0, %v5296_v0  ;;  %4483 = vmatmul.mubr.bf16.gmra.mrb[244].mxu0 %v11003_v54  ;;  %5507 = vmatmul.mubr.bf16.gmra.mrb[244].mxu1 %v11004_v55  ;;  %v11025_v55 = vld [vmem:[%s11569_s21 + $0x414] ss:$8 sps:$4 sm:$0xff]  }
 0x249   : > { %9337 = vmatprep.mubr.msk.bf16.mxu0 %vm3189_vm0, %v11005_v58  ;;  %9465 = vmatprep.mubr.msk.bf16.mxu1 %vm3189_vm0, %v11007_v59 }
 0x24a   : > { %8161 = vst.msk [vmem:[%s11794_s20 + $0x114] sm:$0xf] %vm8091_vm2, %v10115_v3  ;;  %8417 = vst.msk [vmem:[%s11794_s20 + $0x514] sm:$0xf] %vm8091_vm2, %v10371_v4 }
 0x24b   : > { %v4276_v5 = vpop.f32.mrb[140].mxu0  ;;  %v5300_v6 = vpop.f32.mrb[140].mxu1 }
 0x24c   : > { %v4277_v7 = vadd.f32 %v12116_v44, %v4276_v5  ;;  %v5301_v8 = vadd.f32 %v12116_v44, %v5300_v6  ;;  %v4278_v9 = vpop.f32.mrb[141].mxu0  ;;  %v5302_v10 = vpop.f32.mrb[141].mxu1 }
 0x24d   : > { %v4279_v13 = vpop.f32.mrb[142].mxu0  ;;  %v5303_v14 = vpop.f32.mrb[142].mxu1  ;;  %v11026_v9 = vld [vmem:[%s11569_s21 + $0xc10] ss:$8 sps:$4 sm:$0xff]  }
 0x24e   : > { %v10116_v17 = vpack.c.bf16 %v4277_v7, %v4277_v7  ;;  %v10372_v18 = vpack.c.bf16 %v5301_v8, %v5301_v8  ;;  %v4280_v19 = vadd.f32 %v12116_v44, %v4279_v13  ;;  %v5304_v20 = vadd.f32 %v12116_v44, %v5303_v14  ;;  %v4281_v21 = vpop.f32.mrb[143].mxu0  ;;  %v5305_v22 = vpop.f32.mrb[143].mxu1  ;;  %v11023_v8 = vld [vmem:[%s11569_s21 + $0x410] ss:$8 sps:$4 sm:$0xff]   ;;  %v11034_v13 = vld [vmem:[%s11569_s21 + $0xc24] ss:$8 sps:$4 sm:$0xff]  }
 0x250   : > { %8162 = vst.msk [vmem:[%s11794_s20 + $0x118] sm:$0xf] %vm8091_vm2, %v10116_v17  ;;  %8418 = vst.msk [vmem:[%s11794_s20 + $0x518] sm:$0xf] %vm8091_vm2, %v10372_v18  ;;  %v10117_v23 = vpack.c.bf16 %v4280_v19, %v4280_v19  ;;  %v10373_v24 = vpack.c.bf16 %v5304_v20, %v5304_v20  ;;  %4491 = vmatmul.mubr.bf16.gmra.mrb[248].mxu0 %v11009_v11  ;;  %5515 = vmatmul.mubr.bf16.gmra.mrb[248].mxu1 %v11010_v12  ;;  %v11031_v12 = vld [vmem:[%s11569_s21 + $0x424] ss:$8 sps:$4 sm:$0xff]  }
 0x251   : > { %9338 = vmatprep.mubr.msk.bf16.mxu0 %vm3189_vm0, %v11011_v15  ;;  %9466 = vmatprep.mubr.msk.bf16.mxu1 %vm3189_vm0, %v11013_v16 }
 0x252   : > { %8163 = vst.msk [vmem:[%s11794_s20 + $0x11c] sm:$0xf] %vm8091_vm2, %v10117_v23  ;;  %8419 = vst.msk [vmem:[%s11794_s20 + $0x51c] sm:$0xf] %vm8091_vm2, %v10373_v24 }
 0x253   : > { %v4284_v25 = vpop.f32.mrb[144].mxu0  ;;  %v5308_v26 = vpop.f32.mrb[144].mxu1 }
 0x254   : > { %v4285_v27 = vadd.f32 %v12116_v44, %v4284_v25  ;;  %v5309_v28 = vadd.f32 %v12116_v44, %v5308_v26  ;;  %v4286_v29 = vpop.f32.mrb[145].mxu0  ;;  %v5310_v30 = vpop.f32.mrb[145].mxu1 }
 0x255   : > { %v4287_v33 = vpop.f32.mrb[146].mxu0  ;;  %v5311_v34 = vpop.f32.mrb[146].mxu1  ;;  %v11032_v29 = vld [vmem:[%s11569_s21 + $0xc20] ss:$8 sps:$4 sm:$0xff]  }
 0x256   : > { %v10118_v37 = vpack.c.bf16 %v4285_v27, %v4285_v27  ;;  %v10374_v38 = vpack.c.bf16 %v5309_v28, %v5309_v28  ;;  %v4288_v40 = vadd.f32 %v12448_v39, %v4287_v33  ;;  %v5312_v44 = vadd.f32 %v12448_v39, %v5311_v34  ;;  %v4289_v41 = vpop.f32.mrb[147].mxu0  ;;  %v5313_v42 = vpop.f32.mrb[147].mxu1  ;;  %v11029_v28 = vld [vmem:[%s11569_s21 + $0x420] ss:$8 sps:$4 sm:$0xff]   ;;  %v11040_v33 = vld [vmem:[%s11569_s21 + $0xc34] ss:$8 sps:$4 sm:$0xff]  }
 0x258   : > { %8164 = vst.msk [vmem:[%s11794_s20 + $0x120] sm:$0xf] %vm8091_vm2, %v10118_v37  ;;  %8420 = vst.msk [vmem:[%s11794_s20 + $0x520] sm:$0xf] %vm8091_vm2, %v10374_v38  ;;  %v10119_v61 = vpack.c.bf16 %v4288_v40, %v4288_v40  ;;  %v10375_v43 = vpack.c.bf16 %v5312_v44, %v5312_v44  ;;  %4499 = vmatmul.mubr.bf16.gmra.mrb[252].mxu0 %v11015_v31  ;;  %5523 = vmatmul.mubr.bf16.gmra.mrb[252].mxu1 %v11016_v32  ;;  %v11037_v32 = vld [vmem:[%s11569_s21 + $0x434] ss:$8 sps:$4 sm:$0xff]  }
 0x259   : > { %9339 = vmatprep.mubr.msk.bf16.mxu0 %vm3189_vm0, %v11019_v35  ;;  %9467 = vmatprep.mubr.msk.bf16.mxu1 %vm3189_vm0, %v11022_v36 }
 0x25a   : > { %8165 = vst.msk [vmem:[%s11794_s20 + $0x124] sm:$0xf] %vm8091_vm2, %v10119_v61  ;;  %8421 = vst.msk [vmem:[%s11794_s20 + $0x524] sm:$0xf] %vm8091_vm2, %v10375_v43 }
 0x25b   : > { %v4292_v45 = vpop.f32.mrb[148].mxu0  ;;  %v5316_v46 = vpop.f32.mrb[148].mxu1 }
 0x25c   : > { %v4293_v47 = vadd.f32 %v12448_v39, %v4292_v45  ;;  %v5317_v48 = vadd.f32 %v12448_v39, %v5316_v46  ;;  %v4294_v49 = vpop.f32.mrb[149].mxu0  ;;  %v5318_v50 = vpop.f32.mrb[149].mxu1 }
 0x25d   : > { %v4295_v53 = vpop.f32.mrb[150].mxu0  ;;  %v5319_v54 = vpop.f32.mrb[150].mxu1  ;;  %v11038_v49 = vld [vmem:[%s11569_s21 + $0xc30] ss:$8 sps:$4 sm:$0xff]  }
 0x25e   : > { %v10120_v57 = vpack.c.bf16 %v4293_v47, %v4293_v47  ;;  %v10376_v58 = vpack.c.bf16 %v5317_v48, %v5317_v48  ;;  %v4296_v59 = vadd.f32 %v12448_v39, %v4295_v53  ;;  %v5320_v60 = vadd.f32 %v12448_v39, %v5319_v54  ;;  %v4297_v62 = vpop.f32.mrb[151].mxu0  ;;  %v5321_v63 = vpop.f32.mrb[151].mxu1  ;;  %v11035_v48 = vld [vmem:[%s11569_s21 + $0x430] ss:$8 sps:$4 sm:$0xff]   ;;  %v11046_v53 = vld [vmem:[%s11569_s21 + $0xc44] ss:$8 sps:$4 sm:$0xff]  }
 0x260   : > { %8166 = vst.msk [vmem:[%s11794_s20 + $0x128] sm:$0xf] %vm8091_vm2, %v10120_v57  ;;  %8422 = vst.msk [vmem:[%s11794_s20 + $0x528] sm:$0xf] %vm8091_vm2, %v10376_v58  ;;  %v10121_v0 = vpack.c.bf16 %v4296_v59, %v4296_v59  ;;  %v10377_v1 = vpack.c.bf16 %v5320_v60, %v5320_v60  ;;  %4507 = vmatmul.mubr.bf16.gmra.mrb[0].mxu0 %v11017_v51  ;;  %5531 = vmatmul.mubr.bf16.gmra.mrb[0].mxu1 %v11020_v52  ;;  %v11043_v52 = vld [vmem:[%s11569_s21 + $0x444] ss:$8 sps:$4 sm:$0xff]  }
 0x261   : > { %9340 = vmatprep.mubr.msk.bf16.mxu0 %vm3189_vm0, %v11025_v55  ;;  %9468 = vmatprep.mubr.msk.bf16.mxu1 %vm3189_vm0, %v11028_v56 }
 0x262   : > { %8167 = vst.msk [vmem:[%s11794_s20 + $0x12c] sm:$0xf] %vm8091_vm2, %v10121_v0  ;;  %8423 = vst.msk [vmem:[%s11794_s20 + $0x52c] sm:$0xf] %vm8091_vm2, %v10377_v1 }
 0x263   : > { %v4300_v2 = vpop.f32.mrb[152].mxu0  ;;  %v5324_v3 = vpop.f32.mrb[152].mxu1 }
 0x264   : > { %v4301_v4 = vadd.f32 %v12448_v39, %v4300_v2  ;;  %v5325_v5 = vadd.f32 %v12448_v39, %v5324_v3  ;;  %v4302_v6 = vpop.f32.mrb[153].mxu0  ;;  %v5326_v7 = vpop.f32.mrb[153].mxu1 }
 0x265   : > { %v4303_v10 = vpop.f32.mrb[154].mxu0  ;;  %v5327_v11 = vpop.f32.mrb[154].mxu1  ;;  %v11044_v6 = vld [vmem:[%s11569_s21 + $0xc40] ss:$8 sps:$4 sm:$0xff]  }
 0x266   : > { %v10122_v14 = vpack.c.bf16 %v4301_v4, %v4301_v4  ;;  %v10378_v15 = vpack.c.bf16 %v5325_v5, %v5325_v5  ;;  %v4304_v16 = vadd.f32 %v12448_v39, %v4303_v10  ;;  %v5328_v17 = vadd.f32 %v12448_v39, %v5327_v11  ;;  %v4305_v18 = vpop.f32.mrb[155].mxu0  ;;  %v5329_v19 = vpop.f32.mrb[155].mxu1  ;;  %v11041_v5 = vld [vmem:[%s11569_s21 + $0x440] ss:$8 sps:$4 sm:$0xff]   ;;  %v11052_v10 = vld [vmem:[%s11569_s21 + $0xc54] ss:$8 sps:$4 sm:$0xff]  }
 0x268   : > { %8168 = vst.msk [vmem:[%s11794_s20 + $0x130] sm:$0xf] %vm8091_vm2, %v10122_v14  ;;  %8424 = vst.msk [vmem:[%s11794_s20 + $0x530] sm:$0xf] %vm8091_vm2, %v10378_v15  ;;  %v10123_v20 = vpack.c.bf16 %v4304_v16, %v4304_v16  ;;  %v10379_v21 = vpack.c.bf16 %v5328_v17, %v5328_v17  ;;  %4515 = vmatmul.mubr.bf16.gmra.mrb[4].mxu0 %v11023_v8  ;;  %5539 = vmatmul.mubr.bf16.gmra.mrb[4].mxu1 %v11026_v9  ;;  %v11049_v9 = vld [vmem:[%s11569_s21 + $0x454] ss:$8 sps:$4 sm:$0xff]  }
 0x269   : > { %9341 = vmatprep.mubr.msk.bf16.mxu0 %vm3189_vm0, %v11031_v12  ;;  %9469 = vmatprep.mubr.msk.bf16.mxu1 %vm3189_vm0, %v11034_v13 }
 0x26a   : > { %8169 = vst.msk [vmem:[%s11794_s20 + $0x134] sm:$0xf] %vm8091_vm2, %v10123_v20  ;;  %8425 = vst.msk [vmem:[%s11794_s20 + $0x534] sm:$0xf] %vm8091_vm2, %v10379_v21 }
 0x26b   : > { %v4308_v22 = vpop.f32.mrb[156].mxu0  ;;  %v5332_v23 = vpop.f32.mrb[156].mxu1 }
 0x26c   : > { %v4309_v24 = vadd.f32 %v12448_v39, %v4308_v22  ;;  %v5333_v25 = vadd.f32 %v12448_v39, %v5332_v23  ;;  %v4310_v26 = vpop.f32.mrb[157].mxu0  ;;  %v5334_v27 = vpop.f32.mrb[157].mxu1 }
 0x26d   : > { %v4311_v30 = vpop.f32.mrb[158].mxu0  ;;  %v5335_v31 = vpop.f32.mrb[158].mxu1  ;;  %v11050_v26 = vld [vmem:[%s11569_s21 + $0xc50] ss:$8 sps:$4 sm:$0xff]  }
 0x26e   : > { %v10124_v34 = vpack.c.bf16 %v4309_v24, %v4309_v24  ;;  %v10380_v35 = vpack.c.bf16 %v5333_v25, %v5333_v25  ;;  %v4312_v36 = vadd.f32 %v12448_v39, %v4311_v30  ;;  %v5336_v37 = vadd.f32 %v12448_v39, %v5335_v31  ;;  %v4313_v38 = vpop.f32.mrb[159].mxu0  ;;  %v5337_v40 = vpop.f32.mrb[159].mxu1  ;;  %v11047_v25 = vld [vmem:[%s11569_s21 + $0x450] ss:$8 sps:$4 sm:$0xff]   ;;  %v11058_v30 = vld [vmem:[%s11569_s21 + $0xc64] ss:$8 sps:$4 sm:$0xff]  }
 0x270   : > { %8170 = vst.msk [vmem:[%s11794_s20 + $0x138] sm:$0xf] %vm8091_vm2, %v10124_v34  ;;  %8426 = vst.msk [vmem:[%s11794_s20 + $0x538] sm:$0xf] %vm8091_vm2, %v10380_v35  ;;  %v10125_v44 = vpack.c.bf16 %v4312_v36, %v4312_v36  ;;  %v10381_v41 = vpack.c.bf16 %v5336_v37, %v5336_v37  ;;  %4523 = vmatmul.mubr.bf16.gmra.mrb[8].mxu0 %v11029_v28  ;;  %5547 = vmatmul.mubr.bf16.gmra.mrb[8].mxu1 %v11032_v29  ;;  %v11055_v29 = vld [vmem:[%s11569_s21 + $0x464] ss:$8 sps:$4 sm:$0xff]  }
 0x271   : > { %9342 = vmatprep.mubr.msk.bf16.mxu0 %vm3189_vm0, %v11037_v32  ;;  %9470 = vmatprep.mubr.msk.bf16.mxu1 %vm3189_vm0, %v11040_v33 }
 0x272   : > { %8171 = vst.msk [vmem:[%s11794_s20 + $0x13c] sm:$0xf] %vm8091_vm2, %v10125_v44  ;;  %8427 = vst.msk [vmem:[%s11794_s20 + $0x53c] sm:$0xf] %vm8091_vm2, %v10381_v41 }
 0x273   : > { %v4316_v42 = vpop.f32.mrb[160].mxu0  ;;  %v5340_v61 = vpop.f32.mrb[160].mxu1 }
 0x274   : > { %v4317_v43 = vadd.f32 %v12448_v39, %v4316_v42  ;;  %v5341_v45 = vadd.f32 %v12448_v39, %v5340_v61  ;;  %v4318_v46 = vpop.f32.mrb[161].mxu0  ;;  %v5342_v47 = vpop.f32.mrb[161].mxu1 }
 0x275   : > { %v4319_v50 = vpop.f32.mrb[162].mxu0  ;;  %v5343_v51 = vpop.f32.mrb[162].mxu1  ;;  %v11056_v46 = vld [vmem:[%s11569_s21 + $0xc60] ss:$8 sps:$4 sm:$0xff]  }
 0x276   : > { %v10126_v54 = vpack.c.bf16 %v4317_v43, %v4317_v43  ;;  %v10382_v55 = vpack.c.bf16 %v5341_v45, %v5341_v45  ;;  %v4320_v56 = vadd.f32 %v12448_v39, %v4319_v50  ;;  %v5344_v57 = vadd.f32 %v12448_v39, %v5343_v51  ;;  %v4321_v58 = vpop.f32.mrb[163].mxu0  ;;  %v5345_v59 = vpop.f32.mrb[163].mxu1  ;;  %v11053_v45 = vld [vmem:[%s11569_s21 + $0x460] ss:$8 sps:$4 sm:$0xff]   ;;  %v11064_v50 = vld [vmem:[%s11569_s21 + $0xc74] ss:$8 sps:$4 sm:$0xff]  }
 0x278   : > { %8172 = vst.msk [vmem:[%s11794_s20 + $0x140] sm:$0xf] %vm8091_vm2, %v10126_v54  ;;  %8428 = vst.msk [vmem:[%s11794_s20 + $0x540] sm:$0xf] %vm8091_vm2, %v10382_v55  ;;  %v10127_v60 = vpack.c.bf16 %v4320_v56, %v4320_v56  ;;  %v10383_v62 = vpack.c.bf16 %v5344_v57, %v5344_v57  ;;  %4531 = vmatmul.mubr.bf16.gmra.mrb[12].mxu0 %v11035_v48  ;;  %5555 = vmatmul.mubr.bf16.gmra.mrb[12].mxu1 %v11038_v49  ;;  %v11061_v49 = vld [vmem:[%s11569_s21 + $0x474] ss:$8 sps:$4 sm:$0xff]  }
 0x279   : > { %9343 = vmatprep.mubr.msk.bf16.mxu0 %vm3189_vm0, %v11043_v52  ;;  %9471 = vmatprep.mubr.msk.bf16.mxu1 %vm3189_vm0, %v11046_v53 }
 0x27a   : > { %8173 = vst.msk [vmem:[%s11794_s20 + $0x144] sm:$0xf] %vm8091_vm2, %v10127_v60  ;;  %8429 = vst.msk [vmem:[%s11794_s20 + $0x544] sm:$0xf] %vm8091_vm2, %v10383_v62 }
 0x27b   : > { %v4324_v63 = vpop.f32.mrb[164].mxu0  ;;  %v5348_v0 = vpop.f32.mrb[164].mxu1 }
 0x27c   : > { %v4325_v1 = vadd.f32 %v12448_v39, %v4324_v63  ;;  %v5349_v2 = vadd.f32 %v12448_v39, %v5348_v0  ;;  %v4326_v3 = vpop.f32.mrb[165].mxu0  ;;  %v5350_v4 = vpop.f32.mrb[165].mxu1 }
 0x27d   : > { %v4327_v7 = vpop.f32.mrb[166].mxu0  ;;  %v5351_v8 = vpop.f32.mrb[166].mxu1  ;;  %v11062_v3 = vld [vmem:[%s11569_s21 + $0xc70] ss:$8 sps:$4 sm:$0xff]  }
 0x27e   : > { %v10128_v11 = vpack.c.bf16 %v4325_v1, %v4325_v1  ;;  %v10384_v12 = vpack.c.bf16 %v5349_v2, %v5349_v2  ;;  %v4328_v13 = vadd.f32 %v12448_v39, %v4327_v7  ;;  %v5352_v14 = vadd.f32 %v12448_v39, %v5351_v8  ;;  %v4329_v15 = vpop.f32.mrb[167].mxu0  ;;  %v5353_v16 = vpop.f32.mrb[167].mxu1  ;;  %v11059_v2 = vld [vmem:[%s11569_s21 + $0x470] ss:$8 sps:$4 sm:$0xff]   ;;  %v11070_v7 = vld [vmem:[%s11569_s21 + $0xc84] ss:$8 sps:$4 sm:$0xff]  }
 0x280   : > { %8174 = vst.msk [vmem:[%s11794_s20 + $0x148] sm:$0xf] %vm8091_vm2, %v10128_v11  ;;  %8430 = vst.msk [vmem:[%s11794_s20 + $0x548] sm:$0xf] %vm8091_vm2, %v10384_v12  ;;  %v10129_v17 = vpack.c.bf16 %v4328_v13, %v4328_v13  ;;  %v10385_v18 = vpack.c.bf16 %v5352_v14, %v5352_v14  ;;  %4539 = vmatmul.mubr.bf16.gmra.mrb[16].mxu0 %v11041_v5  ;;  %5563 = vmatmul.mubr.bf16.gmra.mrb[16].mxu1 %v11044_v6  ;;  %v11067_v6 = vld [vmem:[%s11569_s21 + $0x484] ss:$8 sps:$4 sm:$0xff]  }
 0x281   : > { %9344 = vmatprep.mubr.msk.bf16.mxu0 %vm3189_vm0, %v11049_v9  ;;  %9472 = vmatprep.mubr.msk.bf16.mxu1 %vm3189_vm0, %v11052_v10 }
 0x282   : > { %8175 = vst.msk [vmem:[%s11794_s20 + $0x14c] sm:$0xf] %vm8091_vm2, %v10129_v17  ;;  %8431 = vst.msk [vmem:[%s11794_s20 + $0x54c] sm:$0xf] %vm8091_vm2, %v10385_v18 }
 0x283   : > { %v4332_v19 = vpop.f32.mrb[168].mxu0  ;;  %v5356_v20 = vpop.f32.mrb[168].mxu1 }
 0x284   : > { %v4333_v21 = vadd.f32 %v12448_v39, %v4332_v19  ;;  %v5357_v22 = vadd.f32 %v12448_v39, %v5356_v20  ;;  %v4334_v23 = vpop.f32.mrb[169].mxu0  ;;  %v5358_v24 = vpop.f32.mrb[169].mxu1 }
 0x285   : > { %v4335_v27 = vpop.f32.mrb[170].mxu0  ;;  %v5359_v28 = vpop.f32.mrb[170].mxu1  ;;  %v11068_v23 = vld [vmem:[%s11569_s21 + $0xc80] ss:$8 sps:$4 sm:$0xff]  }
 0x286   : > { %v10130_v31 = vpack.c.bf16 %v4333_v21, %v4333_v21  ;;  %v10386_v32 = vpack.c.bf16 %v5357_v22, %v5357_v22  ;;  %v4336_v33 = vadd.f32 %v12448_v39, %v4335_v27  ;;  %v5360_v34 = vadd.f32 %v12448_v39, %v5359_v28  ;;  %v4337_v35 = vpop.f32.mrb[171].mxu0  ;;  %v5361_v36 = vpop.f32.mrb[171].mxu1  ;;  %v11065_v22 = vld [vmem:[%s11569_s21 + $0x480] ss:$8 sps:$4 sm:$0xff]   ;;  %v11076_v27 = vld [vmem:[%s11569_s21 + $0xc94] ss:$8 sps:$4 sm:$0xff]  }
 0x288   : > { %8176 = vst.msk [vmem:[%s11794_s20 + $0x150] sm:$0xf] %vm8091_vm2, %v10130_v31  ;;  %8432 = vst.msk [vmem:[%s11794_s20 + $0x550] sm:$0xf] %vm8091_vm2, %v10386_v32  ;;  %v10131_v37 = vpack.c.bf16 %v4336_v33, %v4336_v33  ;;  %v10387_v38 = vpack.c.bf16 %v5360_v34, %v5360_v34  ;;  %4547 = vmatmul.mubr.bf16.gmra.mrb[20].mxu0 %v11047_v25  ;;  %5571 = vmatmul.mubr.bf16.gmra.mrb[20].mxu1 %v11050_v26  ;;  %v11073_v26 = vld [vmem:[%s11569_s21 + $0x494] ss:$8 sps:$4 sm:$0xff]  }
 0x289   : > { %9345 = vmatprep.mubr.msk.bf16.mxu0 %vm3189_vm0, %v11055_v29  ;;  %9473 = vmatprep.mubr.msk.bf16.mxu1 %vm3189_vm0, %v11058_v30 }
 0x28a   : > { %8177 = vst.msk [vmem:[%s11794_s20 + $0x154] sm:$0xf] %vm8091_vm2, %v10131_v37  ;;  %8433 = vst.msk [vmem:[%s11794_s20 + $0x554] sm:$0xf] %vm8091_vm2, %v10387_v38 }
 0x28b   : > { %v4340_v40 = vpop.f32.mrb[172].mxu0  ;;  %v5364_v44 = vpop.f32.mrb[172].mxu1 }
 0x28c   : > { %v4341_v41 = vadd.f32 %v12448_v39, %v4340_v40  ;;  %v5365_v42 = vadd.f32 %v12448_v39, %v5364_v44  ;;  %v4342_v61 = vpop.f32.mrb[173].mxu0  ;;  %v5366_v43 = vpop.f32.mrb[173].mxu1 }
 0x28d   : > { %v4343_v47 = vpop.f32.mrb[174].mxu0  ;;  %v5367_v48 = vpop.f32.mrb[174].mxu1  ;;  %v11074_v61 = vld [vmem:[%s11569_s21 + $0xc90] ss:$8 sps:$4 sm:$0xff]  }
 0x28e   : > { %v10132_v51 = vpack.c.bf16 %v4341_v41, %v4341_v41  ;;  %v10388_v52 = vpack.c.bf16 %v5365_v42, %v5365_v42  ;;  %v4344_v53 = vadd.f32 %v12448_v39, %v4343_v47  ;;  %v5368_v54 = vadd.f32 %v12448_v39, %v5367_v48  ;;  %v4345_v55 = vpop.f32.mrb[175].mxu0  ;;  %v5369_v56 = vpop.f32.mrb[175].mxu1  ;;  %v11071_v42 = vld [vmem:[%s11569_s21 + $0x490] ss:$8 sps:$4 sm:$0xff]   ;;  %v11082_v47 = vld [vmem:[%s11569_s21 + $0xca4] ss:$8 sps:$4 sm:$0xff]  }
 0x290   : > { %8178 = vst.msk [vmem:[%s11794_s20 + $0x158] sm:$0xf] %vm8091_vm2, %v10132_v51  ;;  %8434 = vst.msk [vmem:[%s11794_s20 + $0x558] sm:$0xf] %vm8091_vm2, %v10388_v52  ;;  %v10133_v57 = vpack.c.bf16 %v4344_v53, %v4344_v53  ;;  %v10389_v58 = vpack.c.bf16 %v5368_v54, %v5368_v54  ;;  %4555 = vmatmul.mubr.bf16.gmra.mrb[24].mxu0 %v11053_v45  ;;  %5579 = vmatmul.mubr.bf16.gmra.mrb[24].mxu1 %v11056_v46  ;;  %v11079_v46 = vld [vmem:[%s11569_s21 + $0x4a4] ss:$8 sps:$4 sm:$0xff]  }
 0x291   : > { %9346 = vmatprep.mubr.msk.bf16.mxu0 %vm3189_vm0, %v11061_v49  ;;  %9474 = vmatprep.mubr.msk.bf16.mxu1 %vm3189_vm0, %v11064_v50 }
 0x292   : > { %8179 = vst.msk [vmem:[%s11794_s20 + $0x15c] sm:$0xf] %vm8091_vm2, %v10133_v57  ;;  %8435 = vst.msk [vmem:[%s11794_s20 + $0x55c] sm:$0xf] %vm8091_vm2, %v10389_v58 }
 0x293   : > { %v4348_v59 = vpop.f32.mrb[176].mxu0  ;;  %v5372_v60 = vpop.f32.mrb[176].mxu1 }
 0x294   : > { %v4349_v62 = vadd.f32 %v12448_v39, %v4348_v59  ;;  %v5373_v63 = vadd.f32 %v12448_v39, %v5372_v60  ;;  %v4350_v0 = vpop.f32.mrb[177].mxu0  ;;  %v5374_v1 = vpop.f32.mrb[177].mxu1 }
 0x295   : > { %v4351_v4 = vpop.f32.mrb[178].mxu0  ;;  %v5375_v5 = vpop.f32.mrb[178].mxu1  ;;  %v11080_v0 = vld [vmem:[%s11569_s21 + $0xca0] ss:$8 sps:$4 sm:$0xff]  }
 0x296   : > { %v10134_v8 = vpack.c.bf16 %v4349_v62, %v4349_v62  ;;  %v10390_v9 = vpack.c.bf16 %v5373_v63, %v5373_v63  ;;  %v4352_v10 = vadd.f32 %v12448_v39, %v4351_v4  ;;  %v5376_v11 = vadd.f32 %v12448_v39, %v5375_v5  ;;  %v4353_v12 = vpop.f32.mrb[179].mxu0  ;;  %v5377_v13 = vpop.f32.mrb[179].mxu1  ;;  %v11077_v63 = vld [vmem:[%s11569_s21 + $0x4a0] ss:$8 sps:$4 sm:$0xff]   ;;  %v11088_v4 = vld [vmem:[%s11569_s21 + $0xcb4] ss:$8 sps:$4 sm:$0xff]  }
 0x298   : > { %8180 = vst.msk [vmem:[%s11794_s20 + $0x160] sm:$0xf] %vm8091_vm2, %v10134_v8  ;;  %8436 = vst.msk [vmem:[%s11794_s20 + $0x560] sm:$0xf] %vm8091_vm2, %v10390_v9  ;;  %v10135_v14 = vpack.c.bf16 %v4352_v10, %v4352_v10  ;;  %v10391_v15 = vpack.c.bf16 %v5376_v11, %v5376_v11  ;;  %4563 = vmatmul.mubr.bf16.gmra.mrb[28].mxu0 %v11059_v2  ;;  %5587 = vmatmul.mubr.bf16.gmra.mrb[28].mxu1 %v11062_v3  ;;  %v11085_v3 = vld [vmem:[%s11569_s21 + $0x4b4] ss:$8 sps:$4 sm:$0xff]  }
 0x299   : > { %9347 = vmatprep.mubr.msk.bf16.mxu0 %vm3189_vm0, %v11067_v6  ;;  %9475 = vmatprep.mubr.msk.bf16.mxu1 %vm3189_vm0, %v11070_v7 }
 0x29a   : > { %8181 = vst.msk [vmem:[%s11794_s20 + $0x164] sm:$0xf] %vm8091_vm2, %v10135_v14  ;;  %8437 = vst.msk [vmem:[%s11794_s20 + $0x564] sm:$0xf] %vm8091_vm2, %v10391_v15 }
 0x29b   : > { %v4356_v16 = vpop.f32.mrb[180].mxu0  ;;  %v5380_v17 = vpop.f32.mrb[180].mxu1 }
 0x29c   : > { %v4357_v18 = vadd.f32 %v12448_v39, %v4356_v16  ;;  %v5381_v19 = vadd.f32 %v12448_v39, %v5380_v17  ;;  %v4358_v20 = vpop.f32.mrb[181].mxu0  ;;  %v5382_v21 = vpop.f32.mrb[181].mxu1 }
 0x29d   : > { %v4359_v24 = vpop.f32.mrb[182].mxu0  ;;  %v5383_v25 = vpop.f32.mrb[182].mxu1  ;;  %v11086_v20 = vld [vmem:[%s11569_s21 + $0xcb0] ss:$8 sps:$4 sm:$0xff]  }
 0x29e   : > { %v10136_v28 = vpack.c.bf16 %v4357_v18, %v4357_v18  ;;  %v10392_v29 = vpack.c.bf16 %v5381_v19, %v5381_v19  ;;  %v4360_v30 = vadd.f32 %v12448_v39, %v4359_v24  ;;  %v5384_v31 = vadd.f32 %v12448_v39, %v5383_v25  ;;  %v4361_v32 = vpop.f32.mrb[183].mxu0  ;;  %v5385_v33 = vpop.f32.mrb[183].mxu1  ;;  %v11083_v19 = vld [vmem:[%s11569_s21 + $0x4b0] ss:$8 sps:$4 sm:$0xff]   ;;  %v11094_v24 = vld [vmem:[%s11569_s21 + $0xcc4] ss:$8 sps:$4 sm:$0xff]  }
 0x2a0   : > { %8182 = vst.msk [vmem:[%s11794_s20 + $0x168] sm:$0xf] %vm8091_vm2, %v10136_v28  ;;  %8438 = vst.msk [vmem:[%s11794_s20 + $0x568] sm:$0xf] %vm8091_vm2, %v10392_v29  ;;  %v10137_v34 = vpack.c.bf16 %v4360_v30, %v4360_v30  ;;  %v10393_v35 = vpack.c.bf16 %v5384_v31, %v5384_v31  ;;  %4571 = vmatmul.mubr.bf16.gmra.mrb[32].mxu0 %v11065_v22  ;;  %5595 = vmatmul.mubr.bf16.gmra.mrb[32].mxu1 %v11068_v23  ;;  %v11091_v23 = vld [vmem:[%s11569_s21 + $0x4c4] ss:$8 sps:$4 sm:$0xff]  }
 0x2a1   : > { %9348 = vmatprep.mubr.msk.bf16.mxu0 %vm3189_vm0, %v11073_v26  ;;  %9476 = vmatprep.mubr.msk.bf16.mxu1 %vm3189_vm0, %v11076_v27 }
 0x2a2   : > { %8183 = vst.msk [vmem:[%s11794_s20 + $0x16c] sm:$0xf] %vm8091_vm2, %v10137_v34  ;;  %8439 = vst.msk [vmem:[%s11794_s20 + $0x56c] sm:$0xf] %vm8091_vm2, %v10393_v35 }
 0x2a3   : > { %v4364_v36 = vpop.f32.mrb[184].mxu0  ;;  %v5388_v37 = vpop.f32.mrb[184].mxu1 }
 0x2a4   : > { %v4365_v38 = vadd.f32 %v12448_v39, %v4364_v36  ;;  %v5389_v40 = vadd.f32 %v12448_v39, %v5388_v37  ;;  %v4366_v44 = vpop.f32.mrb[185].mxu0  ;;  %v5390_v41 = vpop.f32.mrb[185].mxu1 }
 0x2a5   : > { %v4367_v43 = vpop.f32.mrb[186].mxu0  ;;  %v5391_v45 = vpop.f32.mrb[186].mxu1  ;;  %v11092_v44 = vld [vmem:[%s11569_s21 + $0xcc0] ss:$8 sps:$4 sm:$0xff]  }
 0x2a6   : > { %v10138_v48 = vpack.c.bf16 %v4365_v38, %v4365_v38  ;;  %v10394_v49 = vpack.c.bf16 %v5389_v40, %v5389_v40  ;;  %v4368_v50 = vadd.f32 %v12448_v39, %v4367_v43  ;;  %v5392_v51 = vadd.f32 %v12448_v39, %v5391_v45  ;;  %v4369_v52 = vpop.f32.mrb[187].mxu0  ;;  %v5393_v53 = vpop.f32.mrb[187].mxu1  ;;  %v11089_v40 = vld [vmem:[%s11569_s21 + $0x4c0] ss:$8 sps:$4 sm:$0xff]   ;;  %v11100_v43 = vld [vmem:[%s11569_s21 + $0xcd4] ss:$8 sps:$4 sm:$0xff]  }
 0x2a8   : > { %8184 = vst.msk [vmem:[%s11794_s20 + $0x170] sm:$0xf] %vm8091_vm2, %v10138_v48  ;;  %8440 = vst.msk [vmem:[%s11794_s20 + $0x570] sm:$0xf] %vm8091_vm2, %v10394_v49  ;;  %v10139_v54 = vpack.c.bf16 %v4368_v50, %v4368_v50  ;;  %v10395_v55 = vpack.c.bf16 %v5392_v51, %v5392_v51  ;;  %4579 = vmatmul.mubr.bf16.gmra.mrb[36].mxu0 %v11071_v42  ;;  %5603 = vmatmul.mubr.bf16.gmra.mrb[36].mxu1 %v11074_v61  ;;  %v11097_v61 = vld [vmem:[%s11569_s21 + $0x4d4] ss:$8 sps:$4 sm:$0xff]  }
 0x2a9   : > { %9349 = vmatprep.mubr.msk.bf16.mxu0 %vm3189_vm0, %v11079_v46  ;;  %9477 = vmatprep.mubr.msk.bf16.mxu1 %vm3189_vm0, %v11082_v47 }
 0x2aa   : > { %8185 = vst.msk [vmem:[%s11794_s20 + $0x174] sm:$0xf] %vm8091_vm2, %v10139_v54  ;;  %8441 = vst.msk [vmem:[%s11794_s20 + $0x574] sm:$0xf] %vm8091_vm2, %v10395_v55 }
 0x2ab   : > { %v4372_v56 = vpop.f32.mrb[188].mxu0  ;;  %v5396_v57 = vpop.f32.mrb[188].mxu1 }
 0x2ac   : > { %v4373_v58 = vadd.f32 %v12448_v39, %v4372_v56  ;;  %v5397_v59 = vadd.f32 %v12448_v39, %v5396_v57  ;;  %v4374_v60 = vpop.f32.mrb[189].mxu0  ;;  %v5398_v62 = vpop.f32.mrb[189].mxu1 }
 0x2ad   : > { %v4375_v1 = vpop.f32.mrb[190].mxu0  ;;  %v5399_v2 = vpop.f32.mrb[190].mxu1  ;;  %v11098_v60 = vld [vmem:[%s11569_s21 + $0xcd0] ss:$8 sps:$4 sm:$0xff]  }
 0x2ae   : > { %v10140_v5 = vpack.c.bf16 %v4373_v58, %v4373_v58  ;;  %v10396_v6 = vpack.c.bf16 %v5397_v59, %v5397_v59  ;;  %v4376_v7 = vadd.f32 %v12448_v39, %v4375_v1  ;;  %v5400_v8 = vadd.f32 %v12448_v39, %v5399_v2  ;;  %v4377_v9 = vpop.f32.mrb[191].mxu0  ;;  %v5401_v10 = vpop.f32.mrb[191].mxu1  ;;  %v11095_v59 = vld [vmem:[%s11569_s21 + $0x4d0] ss:$8 sps:$4 sm:$0xff]   ;;  %v11106_v1 = vld [vmem:[%s11569_s21 + $0xce4] ss:$8 sps:$4 sm:$0xff]  }
 0x2b0   : > { %8186 = vst.msk [vmem:[%s11794_s20 + $0x178] sm:$0xf] %vm8091_vm2, %v10140_v5  ;;  %8442 = vst.msk [vmem:[%s11794_s20 + $0x578] sm:$0xf] %vm8091_vm2, %v10396_v6  ;;  %v10141_v11 = vpack.c.bf16 %v4376_v7, %v4376_v7  ;;  %v10397_v12 = vpack.c.bf16 %v5400_v8, %v5400_v8  ;;  %4587 = vmatmul.mubr.bf16.gmra.mrb[40].mxu0 %v11077_v63  ;;  %5611 = vmatmul.mubr.bf16.gmra.mrb[40].mxu1 %v11080_v0  ;;  %v11103_v0 = vld [vmem:[%s11569_s21 + $0x4e4] ss:$8 sps:$4 sm:$0xff]  }
 0x2b1   : > { %9350 = vmatprep.mubr.msk.bf16.mxu0 %vm3189_vm0, %v11085_v3  ;;  %9478 = vmatprep.mubr.msk.bf16.mxu1 %vm3189_vm0, %v11088_v4 }
 0x2b2   : > { %8187 = vst.msk [vmem:[%s11794_s20 + $0x17c] sm:$0xf] %vm8091_vm2, %v10141_v11  ;;  %8443 = vst.msk [vmem:[%s11794_s20 + $0x57c] sm:$0xf] %vm8091_vm2, %v10397_v12 }
 0x2b3   : > { %v4380_v13 = vpop.f32.mrb[192].mxu0  ;;  %v5404_v14 = vpop.f32.mrb[192].mxu1 }
 0x2b4   : > { %v4381_v15 = vadd.f32 %v12448_v39, %v4380_v13  ;;  %v5405_v16 = vadd.f32 %v12448_v39, %v5404_v14  ;;  %v4382_v17 = vpop.f32.mrb[193].mxu0  ;;  %v5406_v18 = vpop.f32.mrb[193].mxu1 }
 0x2b5   : > { %v4383_v21 = vpop.f32.mrb[194].mxu0  ;;  %v5407_v22 = vpop.f32.mrb[194].mxu1  ;;  %v11104_v17 = vld [vmem:[%s11569_s21 + $0xce0] ss:$8 sps:$4 sm:$0xff]  }
 0x2b6   : > { %v10142_v25 = vpack.c.bf16 %v4381_v15, %v4381_v15  ;;  %v10398_v26 = vpack.c.bf16 %v5405_v16, %v5405_v16  ;;  %v4384_v27 = vadd.f32 %v12448_v39, %v4383_v21  ;;  %v5408_v28 = vadd.f32 %v12448_v39, %v5407_v22  ;;  %v4385_v29 = vpop.f32.mrb[195].mxu0  ;;  %v5409_v30 = vpop.f32.mrb[195].mxu1  ;;  %v11101_v16 = vld [vmem:[%s11569_s21 + $0x4e0] ss:$8 sps:$4 sm:$0xff]   ;;  %v11112_v21 = vld [vmem:[%s11569_s21 + $0xcf4] ss:$8 sps:$4 sm:$0xff]  }
 0x2b8   : > { %8188 = vst.msk [vmem:[%s11794_s20 + $0x180] sm:$0xf] %vm8091_vm2, %v10142_v25  ;;  %8444 = vst.msk [vmem:[%s11794_s20 + $0x580] sm:$0xf] %vm8091_vm2, %v10398_v26  ;;  %v10143_v31 = vpack.c.bf16 %v4384_v27, %v4384_v27  ;;  %v10399_v32 = vpack.c.bf16 %v5408_v28, %v5408_v28  ;;  %4595 = vmatmul.mubr.bf16.gmra.mrb[44].mxu0 %v11083_v19  ;;  %5619 = vmatmul.mubr.bf16.gmra.mrb[44].mxu1 %v11086_v20  ;;  %v11109_v20 = vld [vmem:[%s11569_s21 + $0x4f4] ss:$8 sps:$4 sm:$0xff]  }
 0x2b9   : > { %9351 = vmatprep.mubr.msk.bf16.mxu0 %vm3189_vm0, %v11091_v23  ;;  %9479 = vmatprep.mubr.msk.bf16.mxu1 %vm3189_vm0, %v11094_v24 }
 0x2ba   : > { %8189 = vst.msk [vmem:[%s11794_s20 + $0x184] sm:$0xf] %vm8091_vm2, %v10143_v31  ;;  %8445 = vst.msk [vmem:[%s11794_s20 + $0x584] sm:$0xf] %vm8091_vm2, %v10399_v32 }
 0x2bb   : > { %v4388_v33 = vpop.f32.mrb[196].mxu0  ;;  %v5412_v34 = vpop.f32.mrb[196].mxu1 }
 0x2bc   : > { %v4389_v35 = vadd.f32 %v12448_v39, %v4388_v33  ;;  %v5413_v36 = vadd.f32 %v12448_v39, %v5412_v34  ;;  %v4390_v37 = vpop.f32.mrb[197].mxu0  ;;  %v5414_v38 = vpop.f32.mrb[197].mxu1 }
 0x2bd   : > { %v4391_v41 = vpop.f32.mrb[198].mxu0  ;;  %v5415_v42 = vpop.f32.mrb[198].mxu1  ;;  %v11110_v37 = vld [vmem:[%s11569_s21 + $0xcf0] ss:$8 sps:$4 sm:$0xff]  }
 0x2be   : > { %v10144_v45 = vpack.c.bf16 %v4389_v35, %v4389_v35  ;;  %v10400_v46 = vpack.c.bf16 %v5413_v36, %v5413_v36  ;;  %v4392_v47 = vadd.f32 %v12448_v39, %v4391_v41  ;;  %v5416_v48 = vadd.f32 %v12448_v39, %v5415_v42  ;;  %v4393_v49 = vpop.f32.mrb[199].mxu0  ;;  %v5417_v50 = vpop.f32.mrb[199].mxu1  ;;  %v11107_v36 = vld [vmem:[%s11569_s21 + $0x4f0] ss:$8 sps:$4 sm:$0xff]   ;;  %v11118_v41 = vld [vmem:[%s11569_s21 + $0xd04] ss:$8 sps:$4 sm:$0xff]  }
 0x2c0   : > { %8190 = vst.msk [vmem:[%s11794_s20 + $0x188] sm:$0xf] %vm8091_vm2, %v10144_v45  ;;  %8446 = vst.msk [vmem:[%s11794_s20 + $0x588] sm:$0xf] %vm8091_vm2, %v10400_v46  ;;  %v10145_v51 = vpack.c.bf16 %v4392_v47, %v4392_v47  ;;  %v10401_v52 = vpack.c.bf16 %v5416_v48, %v5416_v48  ;;  %4603 = vmatmul.mubr.bf16.gmra.mrb[48].mxu0 %v11089_v40  ;;  %5627 = vmatmul.mubr.bf16.gmra.mrb[48].mxu1 %v11092_v44  ;;  %v11115_v44 = vld [vmem:[%s11569_s21 + $0x504] ss:$8 sps:$4 sm:$0xff]  }
 0x2c1   : > { %9352 = vmatprep.mubr.msk.bf16.mxu0 %vm3189_vm0, %v11097_v61  ;;  %9480 = vmatprep.mubr.msk.bf16.mxu1 %vm3189_vm0, %v11100_v43 }
 0x2c2   : > { %8191 = vst.msk [vmem:[%s11794_s20 + $0x18c] sm:$0xf] %vm8091_vm2, %v10145_v51  ;;  %8447 = vst.msk [vmem:[%s11794_s20 + $0x58c] sm:$0xf] %vm8091_vm2, %v10401_v52 }
 0x2c3   : > { %v4396_v53 = vpop.f32.mrb[200].mxu0  ;;  %v5420_v54 = vpop.f32.mrb[200].mxu1 }
 0x2c4   : > { %v4397_v55 = vadd.f32 %v12448_v39, %v4396_v53  ;;  %v5421_v56 = vadd.f32 %v12448_v39, %v5420_v54  ;;  %v4398_v57 = vpop.f32.mrb[201].mxu0  ;;  %v5422_v58 = vpop.f32.mrb[201].mxu1 }
 0x2c5   : > { %v4399_v62 = vpop.f32.mrb[202].mxu0  ;;  %v5423_v63 = vpop.f32.mrb[202].mxu1  ;;  %v11116_v57 = vld [vmem:[%s11569_s21 + $0xd00] ss:$8 sps:$4 sm:$0xff]  }
 0x2c6   : > { %v10146_v2 = vpack.c.bf16 %v4397_v55, %v4397_v55  ;;  %v10402_v3 = vpack.c.bf16 %v5421_v56, %v5421_v56  ;;  %v4400_v4 = vadd.f32 %v12448_v39, %v4399_v62  ;;  %v5424_v5 = vadd.f32 %v12448_v39, %v5423_v63  ;;  %v4401_v6 = vpop.f32.mrb[203].mxu0  ;;  %v5425_v7 = vpop.f32.mrb[203].mxu1  ;;  %v11113_v56 = vld [vmem:[%s11569_s21 + $0x500] ss:$8 sps:$4 sm:$0xff]   ;;  %v11124_v62 = vld [vmem:[%s11569_s21 + $0xd14] ss:$8 sps:$4 sm:$0xff]  }
 0x2c8   : > { %8192 = vst.msk [vmem:[%s11794_s20 + $0x190] sm:$0xf] %vm8091_vm2, %v10146_v2  ;;  %8448 = vst.msk [vmem:[%s11794_s20 + $0x590] sm:$0xf] %vm8091_vm2, %v10402_v3  ;;  %v10147_v8 = vpack.c.bf16 %v4400_v4, %v4400_v4  ;;  %v10403_v9 = vpack.c.bf16 %v5424_v5, %v5424_v5  ;;  %4611 = vmatmul.mubr.bf16.gmra.mrb[52].mxu0 %v11095_v59  ;;  %5635 = vmatmul.mubr.bf16.gmra.mrb[52].mxu1 %v11098_v60  ;;  %v11121_v60 = vld [vmem:[%s11569_s21 + $0x514] ss:$8 sps:$4 sm:$0xff]  }
 0x2c9   : > { %9353 = vmatprep.mubr.msk.bf16.mxu0 %vm3189_vm0, %v11103_v0  ;;  %9481 = vmatprep.mubr.msk.bf16.mxu1 %vm3189_vm0, %v11106_v1 }
 0x2ca   : > { %8193 = vst.msk [vmem:[%s11794_s20 + $0x194] sm:$0xf] %vm8091_vm2, %v10147_v8  ;;  %8449 = vst.msk [vmem:[%s11794_s20 + $0x594] sm:$0xf] %vm8091_vm2, %v10403_v9 }
 0x2cb   : > { %v4404_v10 = vpop.f32.mrb[204].mxu0  ;;  %v5428_v11 = vpop.f32.mrb[204].mxu1 }
 0x2cc   : > { %v4405_v12 = vadd.f32 %v12448_v39, %v4404_v10  ;;  %v5429_v13 = vadd.f32 %v12448_v39, %v5428_v11  ;;  %v4406_v14 = vpop.f32.mrb[205].mxu0  ;;  %v5430_v15 = vpop.f32.mrb[205].mxu1 }
 0x2cd   : > { %v4407_v18 = vpop.f32.mrb[206].mxu0  ;;  %v5431_v19 = vpop.f32.mrb[206].mxu1  ;;  %v11122_v14 = vld [vmem:[%s11569_s21 + $0xd10] ss:$8 sps:$4 sm:$0xff]  }
 0x2ce   : > { %v10148_v22 = vpack.c.bf16 %v4405_v12, %v4405_v12  ;;  %v10404_v23 = vpack.c.bf16 %v5429_v13, %v5429_v13  ;;  %v4408_v24 = vadd.f32 %v12448_v39, %v4407_v18  ;;  %v5432_v25 = vadd.f32 %v12448_v39, %v5431_v19  ;;  %v4409_v26 = vpop.f32.mrb[207].mxu0  ;;  %v5433_v27 = vpop.f32.mrb[207].mxu1  ;;  %v11119_v13 = vld [vmem:[%s11569_s21 + $0x510] ss:$8 sps:$4 sm:$0xff]   ;;  %v11130_v18 = vld [vmem:[%s11569_s21 + $0xd24] ss:$8 sps:$4 sm:$0xff]  }
 0x2d0   : > { %8194 = vst.msk [vmem:[%s11794_s20 + $0x198] sm:$0xf] %vm8091_vm2, %v10148_v22  ;;  %8450 = vst.msk [vmem:[%s11794_s20 + $0x598] sm:$0xf] %vm8091_vm2, %v10404_v23  ;;  %v10149_v28 = vpack.c.bf16 %v4408_v24, %v4408_v24  ;;  %v10405_v29 = vpack.c.bf16 %v5432_v25, %v5432_v25  ;;  %4619 = vmatmul.mubr.bf16.gmra.mrb[56].mxu0 %v11101_v16  ;;  %5643 = vmatmul.mubr.bf16.gmra.mrb[56].mxu1 %v11104_v17  ;;  %v11127_v17 = vld [vmem:[%s11569_s21 + $0x524] ss:$8 sps:$4 sm:$0xff]  }
 0x2d1   : > { %9354 = vmatprep.mubr.msk.bf16.mxu0 %vm3189_vm0, %v11109_v20  ;;  %9482 = vmatprep.mubr.msk.bf16.mxu1 %vm3189_vm0, %v11112_v21 }
 0x2d2   : > { %8195 = vst.msk [vmem:[%s11794_s20 + $0x19c] sm:$0xf] %vm8091_vm2, %v10149_v28  ;;  %8451 = vst.msk [vmem:[%s11794_s20 + $0x59c] sm:$0xf] %vm8091_vm2, %v10405_v29  ;;  %v12786_v28 = vld [vmem:[#allocation2] ss:$0 sm:$0xff] }
 0x2d3   : > { %v4412_v30 = vpop.f32.mrb[208].mxu0  ;;  %v5436_v31 = vpop.f32.mrb[208].mxu1 }
 0x2d4   : > { %v4413_v32 = vadd.f32 %v12448_v39, %v4412_v30  ;;  %v5437_v33 = vadd.f32 %v12448_v39, %v5436_v31  ;;  %v4414_v34 = vpop.f32.mrb[209].mxu0  ;;  %v5438_v35 = vpop.f32.mrb[209].mxu1 }
 0x2d5   : > { %v4415_v38 = vpop.f32.mrb[210].mxu0  ;;  %v5439_v40 = vpop.f32.mrb[210].mxu1  ;;  %v11128_v34 = vld [vmem:[%s11569_s21 + $0xd20] ss:$8 sps:$4 sm:$0xff]  }
 0x2d6   : > { %v10150_v42 = vpack.c.bf16 %v4413_v32, %v4413_v32  ;;  %v10406_v61 = vpack.c.bf16 %v5437_v33, %v5437_v33  ;;  %v4416_v43 = vadd.f32 %v12448_v39, %v4415_v38  ;;  %v5440_v45 = vadd.f32 %v12448_v39, %v5439_v40  ;;  %v4417_v46 = vpop.f32.mrb[211].mxu0  ;;  %v5441_v47 = vpop.f32.mrb[211].mxu1  ;;  %v11125_v33 = vld [vmem:[%s11569_s21 + $0x520] ss:$8 sps:$4 sm:$0xff]   ;;  %v11136_v38 = vld [vmem:[%s11569_s21 + $0xd34] ss:$8 sps:$4 sm:$0xff]  }
 0x2d8   : > { %8196 = vst.msk [vmem:[%s11794_s20 + $0x1a0] sm:$0xf] %vm8091_vm2, %v10150_v42  ;;  %8452 = vst.msk [vmem:[%s11794_s20 + $0x5a0] sm:$0xf] %vm8091_vm2, %v10406_v61  ;;  %v10151_v48 = vpack.c.bf16 %v4416_v43, %v4416_v43  ;;  %v10407_v49 = vpack.c.bf16 %v5440_v45, %v5440_v45  ;;  %4627 = vmatmul.mubr.bf16.gmra.mrb[60].mxu0 %v11107_v36  ;;  %5651 = vmatmul.mubr.bf16.gmra.mrb[60].mxu1 %v11110_v37  ;;  %v11133_v37 = vld [vmem:[%s11569_s21 + $0x534] ss:$8 sps:$4 sm:$0xff]  }
 0x2d9   : > { %9355 = vmatprep.mubr.msk.bf16.mxu0 %vm3189_vm0, %v11115_v44  ;;  %9483 = vmatprep.mubr.msk.bf16.mxu1 %vm3189_vm0, %v11118_v41 }
 0x2da   : > { %8197 = vst.msk [vmem:[%s11794_s20 + $0x1a4] sm:$0xf] %vm8091_vm2, %v10151_v48  ;;  %8453 = vst.msk [vmem:[%s11794_s20 + $0x5a4] sm:$0xf] %vm8091_vm2, %v10407_v49 }
 0x2db   : > { %v4420_v50 = vpop.f32.mrb[212].mxu0  ;;  %v5444_v51 = vpop.f32.mrb[212].mxu1 }
 0x2dc   : > { %v4421_v52 = vadd.f32 %v12448_v39, %v4420_v50  ;;  %v5445_v53 = vadd.f32 %v12448_v39, %v5444_v51  ;;  %v4422_v54 = vpop.f32.mrb[213].mxu0  ;;  %v5446_v55 = vpop.f32.mrb[213].mxu1 }
 0x2dd   : > { %v4423_v58 = vpop.f32.mrb[214].mxu0  ;;  %v5447_v59 = vpop.f32.mrb[214].mxu1  ;;  %v11134_v54 = vld [vmem:[%s11569_s21 + $0xd30] ss:$8 sps:$4 sm:$0xff]  }
 0x2de   : > { %v10152_v63 = vpack.c.bf16 %v4421_v52, %v4421_v52  ;;  %v10408_v0 = vpack.c.bf16 %v5445_v53, %v5445_v53  ;;  %v4424_v1 = vadd.f32 %v12448_v39, %v4423_v58  ;;  %v5448_v2 = vadd.f32 %v12448_v39, %v5447_v59  ;;  %v4425_v3 = vpop.f32.mrb[215].mxu0  ;;  %v5449_v4 = vpop.f32.mrb[215].mxu1  ;;  %v11131_v53 = vld [vmem:[%s11569_s21 + $0x530] ss:$8 sps:$4 sm:$0xff]   ;;  %v11142_v58 = vld [vmem:[%s11569_s21 + $0xd44] ss:$8 sps:$4 sm:$0xff]  }
 0x2e0   : > { %8198 = vst.msk [vmem:[%s11794_s20 + $0x1a8] sm:$0xf] %vm8091_vm2, %v10152_v63  ;;  %8454 = vst.msk [vmem:[%s11794_s20 + $0x5a8] sm:$0xf] %vm8091_vm2, %v10408_v0  ;;  %v10153_v5 = vpack.c.bf16 %v4424_v1, %v4424_v1  ;;  %v10409_v6 = vpack.c.bf16 %v5448_v2, %v5448_v2  ;;  %4635 = vmatmul.mubr.bf16.gmra.mrb[64].mxu0 %v11113_v56  ;;  %5659 = vmatmul.mubr.bf16.gmra.mrb[64].mxu1 %v11116_v57  ;;  %v11139_v57 = vld [vmem:[%s11569_s21 + $0x544] ss:$8 sps:$4 sm:$0xff]  }
 0x2e1   : > { %9356 = vmatprep.mubr.msk.bf16.mxu0 %vm3189_vm0, %v11121_v60  ;;  %9484 = vmatprep.mubr.msk.bf16.mxu1 %vm3189_vm0, %v11124_v62 }
 0x2e2   : > { %8199 = vst.msk [vmem:[%s11794_s20 + $0x1ac] sm:$0xf] %vm8091_vm2, %v10153_v5  ;;  %8455 = vst.msk [vmem:[%s11794_s20 + $0x5ac] sm:$0xf] %vm8091_vm2, %v10409_v6 }
 0x2e3   : > { %v4428_v7 = vpop.f32.mrb[216].mxu0  ;;  %v5452_v8 = vpop.f32.mrb[216].mxu1 }
 0x2e4   : > { %v4429_v9 = vadd.f32 %v12448_v39, %v4428_v7  ;;  %v5453_v10 = vadd.f32 %v12448_v39, %v5452_v8  ;;  %v4430_v11 = vpop.f32.mrb[217].mxu0  ;;  %v5454_v12 = vpop.f32.mrb[217].mxu1 }
 0x2e5   : > { %v4431_v15 = vpop.f32.mrb[218].mxu0  ;;  %v5455_v16 = vpop.f32.mrb[218].mxu1  ;;  %v11140_v11 = vld [vmem:[%s11569_s21 + $0xd40] ss:$8 sps:$4 sm:$0xff]  }
 0x2e6   : > { %v10154_v19 = vpack.c.bf16 %v4429_v9, %v4429_v9  ;;  %v10410_v20 = vpack.c.bf16 %v5453_v10, %v5453_v10  ;;  %v4432_v21 = vadd.f32 %v12448_v39, %v4431_v15  ;;  %v5456_v22 = vadd.f32 %v12448_v39, %v5455_v16  ;;  %v4433_v23 = vpop.f32.mrb[219].mxu0  ;;  %v5457_v24 = vpop.f32.mrb[219].mxu1  ;;  %v11137_v10 = vld [vmem:[%s11569_s21 + $0x540] ss:$8 sps:$4 sm:$0xff]   ;;  %v11148_v15 = vld [vmem:[%s11569_s21 + $0xd54] ss:$8 sps:$4 sm:$0xff]  }
 0x2e8   : > { %8200 = vst.msk [vmem:[%s11794_s20 + $0x1b0] sm:$0xf] %vm8091_vm2, %v10154_v19  ;;  %8456 = vst.msk [vmem:[%s11794_s20 + $0x5b0] sm:$0xf] %vm8091_vm2, %v10410_v20  ;;  %v10155_v25 = vpack.c.bf16 %v4432_v21, %v4432_v21  ;;  %v10411_v26 = vpack.c.bf16 %v5456_v22, %v5456_v22  ;;  %4643 = vmatmul.mubr.bf16.gmra.mrb[68].mxu0 %v11119_v13  ;;  %5667 = vmatmul.mubr.bf16.gmra.mrb[68].mxu1 %v11122_v14  ;;  %v11145_v14 = vld [vmem:[%s11569_s21 + $0x554] ss:$8 sps:$4 sm:$0xff]  }
 0x2e9   : > { %9357 = vmatprep.mubr.msk.bf16.mxu0 %vm3189_vm0, %v11127_v17  ;;  %9485 = vmatprep.mubr.msk.bf16.mxu1 %vm3189_vm0, %v11130_v18 }
 0x2ea   : > { %8201 = vst.msk [vmem:[%s11794_s20 + $0x1b4] sm:$0xf] %vm8091_vm2, %v10155_v25  ;;  %8457 = vst.msk [vmem:[%s11794_s20 + $0x5b4] sm:$0xf] %vm8091_vm2, %v10411_v26 }
 0x2eb   : > { %v4436_v39 = vpop.f32.mrb[220].mxu0  ;;  %v5460_v27 = vpop.f32.mrb[220].mxu1 }
 0x2ec   : > { %v4437_v29 = vadd.f32 %v12786_v28, %v4436_v39  ;;  %v5461_v30 = vadd.f32 %v12786_v28, %v5460_v27  ;;  %v4438_v31 = vpop.f32.mrb[221].mxu0  ;;  %v5462_v32 = vpop.f32.mrb[221].mxu1 }
 0x2ed   : > { %v4439_v35 = vpop.f32.mrb[222].mxu0  ;;  %v5463_v36 = vpop.f32.mrb[222].mxu1  ;;  %v11146_v31 = vld [vmem:[%s11569_s21 + $0xd50] ss:$8 sps:$4 sm:$0xff]  }
 0x2ee   : > { %v10156_v40 = vpack.c.bf16 %v4437_v29, %v4437_v29  ;;  %v10412_v44 = vpack.c.bf16 %v5461_v30, %v5461_v30  ;;  %v4440_v41 = vadd.f32 %v12786_v28, %v4439_v35  ;;  %v5464_v42 = vadd.f32 %v12786_v28, %v5463_v36  ;;  %v4441_v61 = vpop.f32.mrb[223].mxu0  ;;  %v5465_v43 = vpop.f32.mrb[223].mxu1  ;;  %v11143_v30 = vld [vmem:[%s11569_s21 + $0x550] ss:$8 sps:$4 sm:$0xff]   ;;  %v11154_v35 = vld [vmem:[%s11569_s21 + $0xd64] ss:$8 sps:$4 sm:$0xff]  }
 0x2f0   : > { %8202 = vst.msk [vmem:[%s11794_s20 + $0x1b8] sm:$0xf] %vm8091_vm2, %v10156_v40  ;;  %8458 = vst.msk [vmem:[%s11794_s20 + $0x5b8] sm:$0xf] %vm8091_vm2, %v10412_v44  ;;  %v10157_v45 = vpack.c.bf16 %v4440_v41, %v4440_v41  ;;  %v10413_v46 = vpack.c.bf16 %v5464_v42, %v5464_v42  ;;  %4651 = vmatmul.mubr.bf16.gmra.mrb[72].mxu0 %v11125_v33  ;;  %5675 = vmatmul.mubr.bf16.gmra.mrb[72].mxu1 %v11128_v34  ;;  %v11151_v34 = vld [vmem:[%s11569_s21 + $0x564] ss:$8 sps:$4 sm:$0xff]  }
 0x2f1   : > { %9358 = vmatprep.mubr.msk.bf16.mxu0 %vm3189_vm0, %v11133_v37  ;;  %9486 = vmatprep.mubr.msk.bf16.mxu1 %vm3189_vm0, %v11136_v38 }
 0x2f2   : > { %8203 = vst.msk [vmem:[%s11794_s20 + $0x1bc] sm:$0xf] %vm8091_vm2, %v10157_v45  ;;  %8459 = vst.msk [vmem:[%s11794_s20 + $0x5bc] sm:$0xf] %vm8091_vm2, %v10413_v46 }
 0x2f3   : > { %v4444_v47 = vpop.f32.mrb[224].mxu0  ;;  %v5468_v48 = vpop.f32.mrb[224].mxu1 }
 0x2f4   : > { %v4445_v49 = vadd.f32 %v12786_v28, %v4444_v47  ;;  %v5469_v50 = vadd.f32 %v12786_v28, %v5468_v48  ;;  %v4446_v51 = vpop.f32.mrb[225].mxu0  ;;  %v5470_v52 = vpop.f32.mrb[225].mxu1 }
 0x2f5   : > { %v4447_v55 = vpop.f32.mrb[226].mxu0  ;;  %v5471_v56 = vpop.f32.mrb[226].mxu1  ;;  %v11152_v51 = vld [vmem:[%s11569_s21 + $0xd60] ss:$8 sps:$4 sm:$0xff]  }
 0x2f6   : > { %v10158_v59 = vpack.c.bf16 %v4445_v49, %v4445_v49  ;;  %v10414_v60 = vpack.c.bf16 %v5469_v50, %v5469_v50  ;;  %v4448_v62 = vadd.f32 %v12786_v28, %v4447_v55  ;;  %v5472_v63 = vadd.f32 %v12786_v28, %v5471_v56  ;;  %v4449_v0 = vpop.f32.mrb[227].mxu0  ;;  %v5473_v1 = vpop.f32.mrb[227].mxu1  ;;  %v11149_v50 = vld [vmem:[%s11569_s21 + $0x560] ss:$8 sps:$4 sm:$0xff]   ;;  %v11160_v55 = vld [vmem:[%s11569_s21 + $0xd74] ss:$8 sps:$4 sm:$0xff]  }
 0x2f8   : > { %8204 = vst.msk [vmem:[%s11794_s20 + $0x1c0] sm:$0xf] %vm8091_vm2, %v10158_v59  ;;  %8460 = vst.msk [vmem:[%s11794_s20 + $0x5c0] sm:$0xf] %vm8091_vm2, %v10414_v60  ;;  %v10159_v2 = vpack.c.bf16 %v4448_v62, %v4448_v62  ;;  %v10415_v3 = vpack.c.bf16 %v5472_v63, %v5472_v63  ;;  %4659 = vmatmul.mubr.bf16.gmra.mrb[76].mxu0 %v11131_v53  ;;  %5683 = vmatmul.mubr.bf16.gmra.mrb[76].mxu1 %v11134_v54  ;;  %v11157_v54 = vld [vmem:[%s11569_s21 + $0x574] ss:$8 sps:$4 sm:$0xff]  }
 0x2f9   : > { %9359 = vmatprep.mubr.msk.bf16.mxu0 %vm3189_vm0, %v11139_v57  ;;  %9487 = vmatprep.mubr.msk.bf16.mxu1 %vm3189_vm0, %v11142_v58 }
 0x2fa   : > { %8205 = vst.msk [vmem:[%s11794_s20 + $0x1c4] sm:$0xf] %vm8091_vm2, %v10159_v2  ;;  %8461 = vst.msk [vmem:[%s11794_s20 + $0x5c4] sm:$0xf] %vm8091_vm2, %v10415_v3 }
 0x2fb   : > { %v4452_v4 = vpop.f32.mrb[228].mxu0  ;;  %v5476_v5 = vpop.f32.mrb[228].mxu1 }
 0x2fc   : > { %v4453_v6 = vadd.f32 %v12786_v28, %v4452_v4  ;;  %v5477_v7 = vadd.f32 %v12786_v28, %v5476_v5  ;;  %v4454_v8 = vpop.f32.mrb[229].mxu0  ;;  %v5478_v9 = vpop.f32.mrb[229].mxu1 }
 0x2fd   : > { %v4455_v12 = vpop.f32.mrb[230].mxu0  ;;  %v5479_v13 = vpop.f32.mrb[230].mxu1  ;;  %v11158_v8 = vld [vmem:[%s11569_s21 + $0xd70] ss:$8 sps:$4 sm:$0xff]  }
 0x2fe   : > { %v10160_v16 = vpack.c.bf16 %v4453_v6, %v4453_v6  ;;  %v10416_v17 = vpack.c.bf16 %v5477_v7, %v5477_v7  ;;  %v4456_v18 = vadd.f32 %v12786_v28, %v4455_v12  ;;  %v5480_v19 = vadd.f32 %v12786_v28, %v5479_v13  ;;  %v4457_v20 = vpop.f32.mrb[231].mxu0  ;;  %v5481_v21 = vpop.f32.mrb[231].mxu1  ;;  %v11155_v7 = vld [vmem:[%s11569_s21 + $0x570] ss:$8 sps:$4 sm:$0xff]   ;;  %v11166_v12 = vld [vmem:[%s11569_s21 + $0xd84] ss:$8 sps:$4 sm:$0xff]  }
 0x300   : > { %8206 = vst.msk [vmem:[%s11794_s20 + $0x1c8] sm:$0xf] %vm8091_vm2, %v10160_v16  ;;  %8462 = vst.msk [vmem:[%s11794_s20 + $0x5c8] sm:$0xf] %vm8091_vm2, %v10416_v17  ;;  %v10161_v22 = vpack.c.bf16 %v4456_v18, %v4456_v18  ;;  %v10417_v23 = vpack.c.bf16 %v5480_v19, %v5480_v19  ;;  %4667 = vmatmul.mubr.bf16.gmra.mrb[80].mxu0 %v11137_v10  ;;  %5691 = vmatmul.mubr.bf16.gmra.mrb[80].mxu1 %v11140_v11  ;;  %v11163_v11 = vld [vmem:[%s11569_s21 + $0x584] ss:$8 sps:$4 sm:$0xff]  }
 0x301   : > { %9360 = vmatprep.mubr.msk.bf16.mxu0 %vm3189_vm0, %v11145_v14  ;;  %9488 = vmatprep.mubr.msk.bf16.mxu1 %vm3189_vm0, %v11148_v15 }
 0x302   : > { %8207 = vst.msk [vmem:[%s11794_s20 + $0x1cc] sm:$0xf] %vm8091_vm2, %v10161_v22  ;;  %8463 = vst.msk [vmem:[%s11794_s20 + $0x5cc] sm:$0xf] %vm8091_vm2, %v10417_v23 }
 0x303   : > { %v4460_v24 = vpop.f32.mrb[232].mxu0  ;;  %v5484_v25 = vpop.f32.mrb[232].mxu1 }
 0x304   : > { %v4461_v26 = vadd.f32 %v12786_v28, %v4460_v24  ;;  %v5485_v39 = vadd.f32 %v12786_v28, %v5484_v25  ;;  %v4462_v27 = vpop.f32.mrb[233].mxu0  ;;  %v5486_v29 = vpop.f32.mrb[233].mxu1 }
 0x305   : > { %v4463_v32 = vpop.f32.mrb[234].mxu0  ;;  %v5487_v33 = vpop.f32.mrb[234].mxu1  ;;  %v11164_v27 = vld [vmem:[%s11569_s21 + $0xd80] ss:$8 sps:$4 sm:$0xff]  }
 0x306   : > { %v10162_v36 = vpack.c.bf16 %v4461_v26, %v4461_v26  ;;  %v10418_v37 = vpack.c.bf16 %v5485_v39, %v5485_v39  ;;  %v4464_v38 = vadd.f32 %v12786_v28, %v4463_v32  ;;  %v5488_v40 = vadd.f32 %v12786_v28, %v5487_v33  ;;  %v4465_v44 = vpop.f32.mrb[235].mxu0  ;;  %v5489_v41 = vpop.f32.mrb[235].mxu1  ;;  %v11161_v39 = vld [vmem:[%s11569_s21 + $0x580] ss:$8 sps:$4 sm:$0xff]   ;;  %v11172_v32 = vld [vmem:[%s11569_s21 + $0xd94] ss:$8 sps:$4 sm:$0xff]  }
 0x308   : > { %8208 = vst.msk [vmem:[%s11794_s20 + $0x1d0] sm:$0xf] %vm8091_vm2, %v10162_v36  ;;  %8464 = vst.msk [vmem:[%s11794_s20 + $0x5d0] sm:$0xf] %vm8091_vm2, %v10418_v37  ;;  %v10163_v42 = vpack.c.bf16 %v4464_v38, %v4464_v38  ;;  %v10419_v61 = vpack.c.bf16 %v5488_v40, %v5488_v40  ;;  %4675 = vmatmul.mubr.bf16.gmra.mrb[84].mxu0 %v11143_v30  ;;  %5699 = vmatmul.mubr.bf16.gmra.mrb[84].mxu1 %v11146_v31  ;;  %v11169_v31 = vld [vmem:[%s11569_s21 + $0x594] ss:$8 sps:$4 sm:$0xff]  }
 0x309   : > { %9361 = vmatprep.mubr.msk.bf16.mxu0 %vm3189_vm0, %v11151_v34  ;;  %9489 = vmatprep.mubr.msk.bf16.mxu1 %vm3189_vm0, %v11154_v35 }
 0x30a   : > { %8209 = vst.msk [vmem:[%s11794_s20 + $0x1d4] sm:$0xf] %vm8091_vm2, %v10163_v42  ;;  %8465 = vst.msk [vmem:[%s11794_s20 + $0x5d4] sm:$0xf] %vm8091_vm2, %v10419_v61 }
 0x30b   : > { %v4468_v43 = vpop.f32.mrb[236].mxu0  ;;  %v5492_v45 = vpop.f32.mrb[236].mxu1 }
 0x30c   : > { %v4469_v46 = vadd.f32 %v12786_v28, %v4468_v43  ;;  %v5493_v47 = vadd.f32 %v12786_v28, %v5492_v45  ;;  %v4470_v48 = vpop.f32.mrb[237].mxu0  ;;  %v5494_v49 = vpop.f32.mrb[237].mxu1 }
 0x30d   : > { %v4471_v52 = vpop.f32.mrb[238].mxu0  ;;  %v5495_v53 = vpop.f32.mrb[238].mxu1  ;;  %v11170_v48 = vld [vmem:[%s11569_s21 + $0xd90] ss:$8 sps:$4 sm:$0xff]  }
 0x30e   : > { %v10164_v56 = vpack.c.bf16 %v4469_v46, %v4469_v46  ;;  %v10420_v57 = vpack.c.bf16 %v5493_v47, %v5493_v47  ;;  %v4472_v58 = vadd.f32 %v12786_v28, %v4471_v52  ;;  %v5496_v59 = vadd.f32 %v12786_v28, %v5495_v53  ;;  %v4473_v60 = vpop.f32.mrb[239].mxu0  ;;  %v5497_v62 = vpop.f32.mrb[239].mxu1  ;;  %v11167_v47 = vld [vmem:[%s11569_s21 + $0x590] ss:$8 sps:$4 sm:$0xff]   ;;  %v11178_v52 = vld [vmem:[%s11569_s21 + $0xda4] ss:$8 sps:$4 sm:$0xff]  }
 0x310   : > { %8210 = vst.msk [vmem:[%s11794_s20 + $0x1d8] sm:$0xf] %vm8091_vm2, %v10164_v56  ;;  %8466 = vst.msk [vmem:[%s11794_s20 + $0x5d8] sm:$0xf] %vm8091_vm2, %v10420_v57  ;;  %v10165_v63 = vpack.c.bf16 %v4472_v58, %v4472_v58  ;;  %v10421_v0 = vpack.c.bf16 %v5496_v59, %v5496_v59  ;;  %4683 = vmatmul.mubr.bf16.gmra.mrb[88].mxu0 %v11149_v50  ;;  %5707 = vmatmul.mubr.bf16.gmra.mrb[88].mxu1 %v11152_v51  ;;  %v11175_v51 = vld [vmem:[%s11569_s21 + $0x5a4] ss:$8 sps:$4 sm:$0xff]  }
 0x311   : > { %9362 = vmatprep.mubr.msk.bf16.mxu0 %vm3189_vm0, %v11157_v54  ;;  %9490 = vmatprep.mubr.msk.bf16.mxu1 %vm3189_vm0, %v11160_v55 }
 0x312   : > { %8211 = vst.msk [vmem:[%s11794_s20 + $0x1dc] sm:$0xf] %vm8091_vm2, %v10165_v63  ;;  %8467 = vst.msk [vmem:[%s11794_s20 + $0x5dc] sm:$0xf] %vm8091_vm2, %v10421_v0 }
 0x313   : > { %v4476_v1 = vpop.f32.mrb[240].mxu0  ;;  %v5500_v2 = vpop.f32.mrb[240].mxu1 }
 0x314   : > { %v4477_v3 = vadd.f32 %v12786_v28, %v4476_v1  ;;  %v5501_v4 = vadd.f32 %v12786_v28, %v5500_v2  ;;  %v4478_v5 = vpop.f32.mrb[241].mxu0  ;;  %v5502_v6 = vpop.f32.mrb[241].mxu1 }
 0x315   : > { %v4479_v9 = vpop.f32.mrb[242].mxu0  ;;  %v5503_v10 = vpop.f32.mrb[242].mxu1  ;;  %v11176_v5 = vld [vmem:[%s11569_s21 + $0xda0] ss:$8 sps:$4 sm:$0xff]  }
 0x316   : > { %v10166_v13 = vpack.c.bf16 %v4477_v3, %v4477_v3  ;;  %v10422_v14 = vpack.c.bf16 %v5501_v4, %v5501_v4  ;;  %v4480_v15 = vadd.f32 %v12786_v28, %v4479_v9  ;;  %v5504_v16 = vadd.f32 %v12786_v28, %v5503_v10  ;;  %v4481_v17 = vpop.f32.mrb[243].mxu0  ;;  %v5505_v18 = vpop.f32.mrb[243].mxu1  ;;  %v11173_v4 = vld [vmem:[%s11569_s21 + $0x5a0] ss:$8 sps:$4 sm:$0xff]   ;;  %v11184_v9 = vld [vmem:[%s11569_s21 + $0xdb4] ss:$8 sps:$4 sm:$0xff]  }
 0x318   : > { %8212 = vst.msk [vmem:[%s11794_s20 + $0x1e0] sm:$0xf] %vm8091_vm2, %v10166_v13  ;;  %8468 = vst.msk [vmem:[%s11794_s20 + $0x5e0] sm:$0xf] %vm8091_vm2, %v10422_v14  ;;  %v10167_v19 = vpack.c.bf16 %v4480_v15, %v4480_v15  ;;  %v10423_v20 = vpack.c.bf16 %v5504_v16, %v5504_v16  ;;  %4691 = vmatmul.mubr.bf16.gmra.mrb[92].mxu0 %v11155_v7  ;;  %5715 = vmatmul.mubr.bf16.gmra.mrb[92].mxu1 %v11158_v8  ;;  %v11181_v8 = vld [vmem:[%s11569_s21 + $0x5b4] ss:$8 sps:$4 sm:$0xff]  }
 0x319   : > { %9363 = vmatprep.mubr.msk.bf16.mxu0 %vm3189_vm0, %v11163_v11  ;;  %9491 = vmatprep.mubr.msk.bf16.mxu1 %vm3189_vm0, %v11166_v12 }
 0x31a   : > { %8213 = vst.msk [vmem:[%s11794_s20 + $0x1e4] sm:$0xf] %vm8091_vm2, %v10167_v19  ;;  %8469 = vst.msk [vmem:[%s11794_s20 + $0x5e4] sm:$0xf] %vm8091_vm2, %v10423_v20 }
 0x31b   : > { %v4484_v21 = vpop.f32.mrb[244].mxu0  ;;  %v5508_v22 = vpop.f32.mrb[244].mxu1 }
 0x31c   : > { %v4485_v23 = vadd.f32 %v12786_v28, %v4484_v21  ;;  %v5509_v24 = vadd.f32 %v12786_v28, %v5508_v22  ;;  %v4486_v25 = vpop.f32.mrb[245].mxu0  ;;  %v5510_v26 = vpop.f32.mrb[245].mxu1 }
 0x31d   : > { %v4487_v29 = vpop.f32.mrb[246].mxu0  ;;  %v5511_v30 = vpop.f32.mrb[246].mxu1  ;;  %v11182_v25 = vld [vmem:[%s11569_s21 + $0xdb0] ss:$8 sps:$4 sm:$0xff]  }
 0x31e   : > { %v10168_v33 = vpack.c.bf16 %v4485_v23, %v4485_v23  ;;  %v10424_v34 = vpack.c.bf16 %v5509_v24, %v5509_v24  ;;  %v4488_v35 = vadd.f32 %v12786_v28, %v4487_v29  ;;  %v5512_v36 = vadd.f32 %v12786_v28, %v5511_v30  ;;  %v4489_v37 = vpop.f32.mrb[247].mxu0  ;;  %v5513_v38 = vpop.f32.mrb[247].mxu1  ;;  %v11179_v24 = vld [vmem:[%s11569_s21 + $0x5b0] ss:$8 sps:$4 sm:$0xff]   ;;  %v11190_v29 = vld [vmem:[%s11569_s21 + $0xdc4] ss:$8 sps:$4 sm:$0xff]  }
 0x320   : > { %8214 = vst.msk [vmem:[%s11794_s20 + $0x1e8] sm:$0xf] %vm8091_vm2, %v10168_v33  ;;  %8470 = vst.msk [vmem:[%s11794_s20 + $0x5e8] sm:$0xf] %vm8091_vm2, %v10424_v34  ;;  %v10169_v40 = vpack.c.bf16 %v4488_v35, %v4488_v35  ;;  %v10425_v44 = vpack.c.bf16 %v5512_v36, %v5512_v36  ;;  %4699 = vmatmul.mubr.bf16.gmra.mrb[96].mxu0 %v11161_v39  ;;  %5723 = vmatmul.mubr.bf16.gmra.mrb[96].mxu1 %v11164_v27  ;;  %v11187_v27 = vld [vmem:[%s11569_s21 + $0x5c4] ss:$8 sps:$4 sm:$0xff]  }
 0x321   : > { %9364 = vmatprep.mubr.msk.bf16.mxu0 %vm3189_vm0, %v11169_v31  ;;  %9492 = vmatprep.mubr.msk.bf16.mxu1 %vm3189_vm0, %v11172_v32 }
 0x322   : > { %8215 = vst.msk [vmem:[%s11794_s20 + $0x1ec] sm:$0xf] %vm8091_vm2, %v10169_v40  ;;  %8471 = vst.msk [vmem:[%s11794_s20 + $0x5ec] sm:$0xf] %vm8091_vm2, %v10425_v44 }
 0x323   : > { %v4492_v41 = vpop.f32.mrb[248].mxu0  ;;  %v5516_v42 = vpop.f32.mrb[248].mxu1 }
 0x324   : > { %v4493_v61 = vadd.f32 %v12786_v28, %v4492_v41  ;;  %v5517_v43 = vadd.f32 %v12786_v28, %v5516_v42  ;;  %v4494_v45 = vpop.f32.mrb[249].mxu0  ;;  %v5518_v46 = vpop.f32.mrb[249].mxu1 }
 0x325   : > { %v4495_v49 = vpop.f32.mrb[250].mxu0  ;;  %v5519_v50 = vpop.f32.mrb[250].mxu1  ;;  %v11188_v45 = vld [vmem:[%s11569_s21 + $0xdc0] ss:$8 sps:$4 sm:$0xff]  }
 0x326   : > { %v10170_v53 = vpack.c.bf16 %v4493_v61, %v4493_v61  ;;  %v10426_v54 = vpack.c.bf16 %v5517_v43, %v5517_v43  ;;  %v4496_v55 = vadd.f32 %v12786_v28, %v4495_v49  ;;  %v5520_v56 = vadd.f32 %v12786_v28, %v5519_v50  ;;  %v4497_v57 = vpop.f32.mrb[251].mxu0  ;;  %v5521_v58 = vpop.f32.mrb[251].mxu1  ;;  %v11185_v43 = vld [vmem:[%s11569_s21 + $0x5c0] ss:$8 sps:$4 sm:$0xff]   ;;  %v11196_v49 = vld [vmem:[%s11569_s21 + $0xdd4] ss:$8 sps:$4 sm:$0xff]  }
 0x328   : > { %8216 = vst.msk [vmem:[%s11794_s20 + $0x1f0] sm:$0xf] %vm8091_vm2, %v10170_v53  ;;  %8472 = vst.msk [vmem:[%s11794_s20 + $0x5f0] sm:$0xf] %vm8091_vm2, %v10426_v54  ;;  %v10171_v59 = vpack.c.bf16 %v4496_v55, %v4496_v55  ;;  %v10427_v60 = vpack.c.bf16 %v5520_v56, %v5520_v56  ;;  %4707 = vmatmul.mubr.bf16.gmra.mrb[100].mxu0 %v11167_v47  ;;  %5731 = vmatmul.mubr.bf16.gmra.mrb[100].mxu1 %v11170_v48  ;;  %v11193_v48 = vld [vmem:[%s11569_s21 + $0x5d4] ss:$8 sps:$4 sm:$0xff]  }
 0x329   : > { %9365 = vmatprep.mubr.msk.bf16.mxu0 %vm3189_vm0, %v11175_v51  ;;  %9493 = vmatprep.mubr.msk.bf16.mxu1 %vm3189_vm0, %v11178_v52 }
 0x32a   : > { %8217 = vst.msk [vmem:[%s11794_s20 + $0x1f4] sm:$0xf] %vm8091_vm2, %v10171_v59  ;;  %8473 = vst.msk [vmem:[%s11794_s20 + $0x5f4] sm:$0xf] %vm8091_vm2, %v10427_v60 }
 0x32b   : > { %v4500_v62 = vpop.f32.mrb[252].mxu0  ;;  %v5524_v63 = vpop.f32.mrb[252].mxu1 }
 0x32c   : > { %v4501_v0 = vadd.f32 %v12786_v28, %v4500_v62  ;;  %v5525_v1 = vadd.f32 %v12786_v28, %v5524_v63  ;;  %v4502_v2 = vpop.f32.mrb[253].mxu0  ;;  %v5526_v3 = vpop.f32.mrb[253].mxu1 }
 0x32d   : > { %v4503_v6 = vpop.f32.mrb[254].mxu0  ;;  %v5527_v7 = vpop.f32.mrb[254].mxu1  ;;  %v11194_v2 = vld [vmem:[%s11569_s21 + $0xdd0] ss:$8 sps:$4 sm:$0xff]  }
 0x32e   : > { %v10172_v10 = vpack.c.bf16 %v4501_v0, %v4501_v0  ;;  %v10428_v11 = vpack.c.bf16 %v5525_v1, %v5525_v1  ;;  %v4504_v12 = vadd.f32 %v12786_v28, %v4503_v6  ;;  %v5528_v13 = vadd.f32 %v12786_v28, %v5527_v7  ;;  %v4505_v14 = vpop.f32.mrb[255].mxu0  ;;  %v5529_v15 = vpop.f32.mrb[255].mxu1  ;;  %v11191_v1 = vld [vmem:[%s11569_s21 + $0x5d0] ss:$8 sps:$4 sm:$0xff]   ;;  %v11202_v6 = vld [vmem:[%s11569_s21 + $0xde4] ss:$8 sps:$4 sm:$0xff]  }
 0x330   : > { %8218 = vst.msk [vmem:[%s11794_s20 + $0x1f8] sm:$0xf] %vm8091_vm2, %v10172_v10  ;;  %8474 = vst.msk [vmem:[%s11794_s20 + $0x5f8] sm:$0xf] %vm8091_vm2, %v10428_v11  ;;  %v10173_v16 = vpack.c.bf16 %v4504_v12, %v4504_v12  ;;  %v10429_v17 = vpack.c.bf16 %v5528_v13, %v5528_v13  ;;  %4715 = vmatmul.mubr.bf16.gmra.mrb[104].mxu0 %v11173_v4  ;;  %5739 = vmatmul.mubr.bf16.gmra.mrb[104].mxu1 %v11176_v5  ;;  %v11199_v5 = vld [vmem:[%s11569_s21 + $0x5e4] ss:$8 sps:$4 sm:$0xff]  }
 0x331   : > { %9366 = vmatprep.mubr.msk.bf16.mxu0 %vm3189_vm0, %v11181_v8  ;;  %9494 = vmatprep.mubr.msk.bf16.mxu1 %vm3189_vm0, %v11184_v9 }
 0x332   : > { %8219 = vst.msk [vmem:[%s11794_s20 + $0x1fc] sm:$0xf] %vm8091_vm2, %v10173_v16  ;;  %8475 = vst.msk [vmem:[%s11794_s20 + $0x5fc] sm:$0xf] %vm8091_vm2, %v10429_v17 }
 0x333   : > { %v4508_v18 = vpop.f32.mrb[0].mxu0  ;;  %v5532_v19 = vpop.f32.mrb[0].mxu1 }
 0x334   : > { %v4509_v20 = vadd.f32 %v12786_v28, %v4508_v18  ;;  %v5533_v21 = vadd.f32 %v12786_v28, %v5532_v19  ;;  %v4510_v22 = vpop.f32.mrb[1].mxu0  ;;  %v5534_v23 = vpop.f32.mrb[1].mxu1 }
 0x335   : > { %v4511_v26 = vpop.f32.mrb[2].mxu0  ;;  %v5535_v39 = vpop.f32.mrb[2].mxu1  ;;  %v11200_v22 = vld [vmem:[%s11569_s21 + $0xde0] ss:$8 sps:$4 sm:$0xff]  }
 0x336   : > { %v10174_v30 = vpack.c.bf16 %v4509_v20, %v4509_v20  ;;  %v10430_v31 = vpack.c.bf16 %v5533_v21, %v5533_v21  ;;  %v4512_v32 = vadd.f32 %v12786_v28, %v4511_v26  ;;  %v5536_v33 = vadd.f32 %v12786_v28, %v5535_v39  ;;  %v4513_v34 = vpop.f32.mrb[3].mxu0  ;;  %v5537_v35 = vpop.f32.mrb[3].mxu1  ;;  %v11197_v21 = vld [vmem:[%s11569_s21 + $0x5e0] ss:$8 sps:$4 sm:$0xff]   ;;  %v11208_v26 = vld [vmem:[%s11569_s21 + $0xdf4] ss:$8 sps:$4 sm:$0xff]  }
 0x338   : > { %8220 = vst.msk [vmem:[%s11794_s20 + $0x200] sm:$0xf] %vm8091_vm2, %v10174_v30  ;;  %8476 = vst.msk [vmem:[%s11794_s20 + $0x600] sm:$0xf] %vm8091_vm2, %v10430_v31  ;;  %v10175_v36 = vpack.c.bf16 %v4512_v32, %v4512_v32  ;;  %v10431_v37 = vpack.c.bf16 %v5536_v33, %v5536_v33  ;;  %4723 = vmatmul.mubr.bf16.gmra.mrb[108].mxu0 %v11179_v24  ;;  %5747 = vmatmul.mubr.bf16.gmra.mrb[108].mxu1 %v11182_v25  ;;  %v11205_v25 = vld [vmem:[%s11569_s21 + $0x5f4] ss:$8 sps:$4 sm:$0xff]  }
 0x339   : > { %9367 = vmatprep.mubr.msk.bf16.mxu0 %vm3189_vm0, %v11187_v27  ;;  %9495 = vmatprep.mubr.msk.bf16.mxu1 %vm3189_vm0, %v11190_v29 }
 0x33a   : > { %8221 = vst.msk [vmem:[%s11794_s20 + $0x204] sm:$0xf] %vm8091_vm2, %v10175_v36  ;;  %8477 = vst.msk [vmem:[%s11794_s20 + $0x604] sm:$0xf] %vm8091_vm2, %v10431_v37 }
 0x33b   : > { %v4516_v38 = vpop.f32.mrb[4].mxu0  ;;  %v5540_v40 = vpop.f32.mrb[4].mxu1 }
 0x33c   : > { %v4517_v44 = vadd.f32 %v12786_v28, %v4516_v38  ;;  %v5541_v41 = vadd.f32 %v12786_v28, %v5540_v40  ;;  %v4518_v42 = vpop.f32.mrb[5].mxu0  ;;  %v5542_v61 = vpop.f32.mrb[5].mxu1 }
 0x33d   : > { %v4519_v46 = vpop.f32.mrb[6].mxu0  ;;  %v5543_v47 = vpop.f32.mrb[6].mxu1  ;;  %v11206_v42 = vld [vmem:[%s11569_s21 + $0xdf0] ss:$8 sps:$4 sm:$0xff]  }
 0x33e   : > { %v10176_v50 = vpack.c.bf16 %v4517_v44, %v4517_v44  ;;  %v10432_v51 = vpack.c.bf16 %v5541_v41, %v5541_v41  ;;  %v4520_v52 = vadd.f32 %v12786_v28, %v4519_v46  ;;  %v5544_v53 = vadd.f32 %v12786_v28, %v5543_v47  ;;  %v4521_v54 = vpop.f32.mrb[7].mxu0  ;;  %v5545_v55 = vpop.f32.mrb[7].mxu1  ;;  %v11203_v41 = vld [vmem:[%s11569_s21 + $0x5f0] ss:$8 sps:$4 sm:$0xff]   ;;  %v11214_v46 = vld [vmem:[%s11569_s21 + $0xe04] ss:$8 sps:$4 sm:$0xff]  }
 0x340   : > { %8222 = vst.msk [vmem:[%s11794_s20 + $0x208] sm:$0xf] %vm8091_vm2, %v10176_v50  ;;  %8478 = vst.msk [vmem:[%s11794_s20 + $0x608] sm:$0xf] %vm8091_vm2, %v10432_v51  ;;  %v10177_v56 = vpack.c.bf16 %v4520_v52, %v4520_v52  ;;  %v10433_v57 = vpack.c.bf16 %v5544_v53, %v5544_v53  ;;  %4731 = vmatmul.mubr.bf16.gmra.mrb[112].mxu0 %v11185_v43  ;;  %5755 = vmatmul.mubr.bf16.gmra.mrb[112].mxu1 %v11188_v45  ;;  %v11211_v45 = vld [vmem:[%s11569_s21 + $0x604] ss:$8 sps:$4 sm:$0xff]  }
 0x341   : > { %9368 = vmatprep.mubr.msk.bf16.mxu0 %vm3189_vm0, %v11193_v48  ;;  %9496 = vmatprep.mubr.msk.bf16.mxu1 %vm3189_vm0, %v11196_v49 }
 0x342   : > { %8223 = vst.msk [vmem:[%s11794_s20 + $0x20c] sm:$0xf] %vm8091_vm2, %v10177_v56  ;;  %8479 = vst.msk [vmem:[%s11794_s20 + $0x60c] sm:$0xf] %vm8091_vm2, %v10433_v57 }
 0x343   : > { %v4524_v58 = vpop.f32.mrb[8].mxu0  ;;  %v5548_v59 = vpop.f32.mrb[8].mxu1 }
 0x344   : > { %v4525_v60 = vadd.f32 %v12786_v28, %v4524_v58  ;;  %v5549_v62 = vadd.f32 %v12786_v28, %v5548_v59  ;;  %v4526_v63 = vpop.f32.mrb[9].mxu0  ;;  %v5550_v0 = vpop.f32.mrb[9].mxu1 }
 0x345   : > { %v4527_v3 = vpop.f32.mrb[10].mxu0  ;;  %v5551_v4 = vpop.f32.mrb[10].mxu1  ;;  %v11212_v63 = vld [vmem:[%s11569_s21 + $0xe00] ss:$8 sps:$4 sm:$0xff]  }
 0x346   : > { %v10178_v7 = vpack.c.bf16 %v4525_v60, %v4525_v60  ;;  %v10434_v8 = vpack.c.bf16 %v5549_v62, %v5549_v62  ;;  %v4528_v9 = vadd.f32 %v12786_v28, %v4527_v3  ;;  %v5552_v10 = vadd.f32 %v12786_v28, %v5551_v4  ;;  %v4529_v11 = vpop.f32.mrb[11].mxu0  ;;  %v5553_v12 = vpop.f32.mrb[11].mxu1  ;;  %v11209_v62 = vld [vmem:[%s11569_s21 + $0x600] ss:$8 sps:$4 sm:$0xff]   ;;  %v11220_v3 = vld [vmem:[%s11569_s21 + $0xe14] ss:$8 sps:$4 sm:$0xff]  }
 0x348   : > { %8224 = vst.msk [vmem:[%s11794_s20 + $0x210] sm:$0xf] %vm8091_vm2, %v10178_v7  ;;  %8480 = vst.msk [vmem:[%s11794_s20 + $0x610] sm:$0xf] %vm8091_vm2, %v10434_v8  ;;  %v10179_v13 = vpack.c.bf16 %v4528_v9, %v4528_v9  ;;  %v10435_v14 = vpack.c.bf16 %v5552_v10, %v5552_v10  ;;  %4739 = vmatmul.mubr.bf16.gmra.mrb[116].mxu0 %v11191_v1  ;;  %5763 = vmatmul.mubr.bf16.gmra.mrb[116].mxu1 %v11194_v2  ;;  %v11217_v2 = vld [vmem:[%s11569_s21 + $0x614] ss:$8 sps:$4 sm:$0xff]  }
 0x349   : > { %9369 = vmatprep.mubr.msk.bf16.mxu0 %vm3189_vm0, %v11199_v5  ;;  %9497 = vmatprep.mubr.msk.bf16.mxu1 %vm3189_vm0, %v11202_v6 }
 0x34a   : > { %8225 = vst.msk [vmem:[%s11794_s20 + $0x214] sm:$0xf] %vm8091_vm2, %v10179_v13  ;;  %8481 = vst.msk [vmem:[%s11794_s20 + $0x614] sm:$0xf] %vm8091_vm2, %v10435_v14 }
 0x34b   : > { %v4532_v15 = vpop.f32.mrb[12].mxu0  ;;  %v5556_v16 = vpop.f32.mrb[12].mxu1 }
 0x34c   : > { %v4533_v17 = vadd.f32 %v12786_v28, %v4532_v15  ;;  %v5557_v18 = vadd.f32 %v12786_v28, %v5556_v16  ;;  %v4534_v19 = vpop.f32.mrb[13].mxu0  ;;  %v5558_v20 = vpop.f32.mrb[13].mxu1 }
 0x34d   : > { %v4535_v23 = vpop.f32.mrb[14].mxu0  ;;  %v5559_v24 = vpop.f32.mrb[14].mxu1  ;;  %v11218_v19 = vld [vmem:[%s11569_s21 + $0xe10] ss:$8 sps:$4 sm:$0xff]  }
 0x34e   : > { %v10180_v39 = vpack.c.bf16 %v4533_v17, %v4533_v17  ;;  %v10436_v27 = vpack.c.bf16 %v5557_v18, %v5557_v18  ;;  %v4536_v29 = vadd.f32 %v12786_v28, %v4535_v23  ;;  %v5560_v30 = vadd.f32 %v12786_v28, %v5559_v24  ;;  %v4537_v31 = vpop.f32.mrb[15].mxu0  ;;  %v5561_v32 = vpop.f32.mrb[15].mxu1  ;;  %v11215_v18 = vld [vmem:[%s11569_s21 + $0x610] ss:$8 sps:$4 sm:$0xff]   ;;  %v11226_v23 = vld [vmem:[%s11569_s21 + $0xe24] ss:$8 sps:$4 sm:$0xff]  }
 0x350   : > { %8226 = vst.msk [vmem:[%s11794_s20 + $0x218] sm:$0xf] %vm8091_vm2, %v10180_v39  ;;  %8482 = vst.msk [vmem:[%s11794_s20 + $0x618] sm:$0xf] %vm8091_vm2, %v10436_v27  ;;  %v10181_v33 = vpack.c.bf16 %v4536_v29, %v4536_v29  ;;  %v10437_v34 = vpack.c.bf16 %v5560_v30, %v5560_v30  ;;  %4747 = vmatmul.mubr.bf16.gmra.mrb[120].mxu0 %v11197_v21  ;;  %5771 = vmatmul.mubr.bf16.gmra.mrb[120].mxu1 %v11200_v22  ;;  %v11223_v22 = vld [vmem:[%s11569_s21 + $0x624] ss:$8 sps:$4 sm:$0xff]  }
 0x351   : > { %9370 = vmatprep.mubr.msk.bf16.mxu0 %vm3189_vm0, %v11205_v25  ;;  %9498 = vmatprep.mubr.msk.bf16.mxu1 %vm3189_vm0, %v11208_v26 }
 0x352   : > { %8227 = vst.msk [vmem:[%s11794_s20 + $0x21c] sm:$0xf] %vm8091_vm2, %v10181_v33  ;;  %8483 = vst.msk [vmem:[%s11794_s20 + $0x61c] sm:$0xf] %vm8091_vm2, %v10437_v34 }
 0x353   : > { %v4540_v35 = vpop.f32.mrb[16].mxu0  ;;  %v5564_v36 = vpop.f32.mrb[16].mxu1 }
 0x354   : > { %v4541_v37 = vadd.f32 %v12786_v28, %v4540_v35  ;;  %v5565_v38 = vadd.f32 %v12786_v28, %v5564_v36  ;;  %v4542_v40 = vpop.f32.mrb[17].mxu0  ;;  %v5566_v44 = vpop.f32.mrb[17].mxu1 }
 0x355   : > { %v4543_v61 = vpop.f32.mrb[18].mxu0  ;;  %v5567_v43 = vpop.f32.mrb[18].mxu1  ;;  %v11224_v40 = vld [vmem:[%s11569_s21 + $0xe20] ss:$8 sps:$4 sm:$0xff]  }
 0x356   : > { %v10182_v47 = vpack.c.bf16 %v4541_v37, %v4541_v37  ;;  %v10438_v48 = vpack.c.bf16 %v5565_v38, %v5565_v38  ;;  %v4544_v49 = vadd.f32 %v12786_v28, %v4543_v61  ;;  %v5568_v50 = vadd.f32 %v12786_v28, %v5567_v43  ;;  %v4545_v51 = vpop.f32.mrb[19].mxu0  ;;  %v5569_v52 = vpop.f32.mrb[19].mxu1  ;;  %v11221_v38 = vld [vmem:[%s11569_s21 + $0x620] ss:$8 sps:$4 sm:$0xff]   ;;  %v11232_v61 = vld [vmem:[%s11569_s21 + $0xe34] ss:$8 sps:$4 sm:$0xff]  }
 0x358   : > { %8228 = vst.msk [vmem:[%s11794_s20 + $0x220] sm:$0xf] %vm8091_vm2, %v10182_v47  ;;  %8484 = vst.msk [vmem:[%s11794_s20 + $0x620] sm:$0xf] %vm8091_vm2, %v10438_v48  ;;  %v10183_v53 = vpack.c.bf16 %v4544_v49, %v4544_v49  ;;  %v10439_v54 = vpack.c.bf16 %v5568_v50, %v5568_v50  ;;  %4755 = vmatmul.mubr.bf16.gmra.mrb[124].mxu0 %v11203_v41  ;;  %5779 = vmatmul.mubr.bf16.gmra.mrb[124].mxu1 %v11206_v42  ;;  %v11229_v42 = vld [vmem:[%s11569_s21 + $0x634] ss:$8 sps:$4 sm:$0xff]  }
 0x359   : > { %9371 = vmatprep.mubr.msk.bf16.mxu0 %vm3189_vm0, %v11211_v45  ;;  %9499 = vmatprep.mubr.msk.bf16.mxu1 %vm3189_vm0, %v11214_v46 }
 0x35a   : > { %8229 = vst.msk [vmem:[%s11794_s20 + $0x224] sm:$0xf] %vm8091_vm2, %v10183_v53  ;;  %8485 = vst.msk [vmem:[%s11794_s20 + $0x624] sm:$0xf] %vm8091_vm2, %v10439_v54 }
 0x35b   : > { %v4548_v55 = vpop.f32.mrb[20].mxu0  ;;  %v5572_v56 = vpop.f32.mrb[20].mxu1 }
 0x35c   : > { %v4549_v57 = vadd.f32 %v12786_v28, %v4548_v55  ;;  %v5573_v58 = vadd.f32 %v12786_v28, %v5572_v56  ;;  %v4550_v59 = vpop.f32.mrb[21].mxu0  ;;  %v5574_v60 = vpop.f32.mrb[21].mxu1 }
 0x35d   : > { %v4551_v0 = vpop.f32.mrb[22].mxu0  ;;  %v5575_v1 = vpop.f32.mrb[22].mxu1  ;;  %v11230_v59 = vld [vmem:[%s11569_s21 + $0xe30] ss:$8 sps:$4 sm:$0xff]  }
 0x35e   : > { %v10184_v4 = vpack.c.bf16 %v4549_v57, %v4549_v57  ;;  %v10440_v5 = vpack.c.bf16 %v5573_v58, %v5573_v58  ;;  %v4552_v6 = vadd.f32 %v12786_v28, %v4551_v0  ;;  %v5576_v7 = vadd.f32 %v12786_v28, %v5575_v1  ;;  %v4553_v8 = vpop.f32.mrb[23].mxu0  ;;  %v5577_v9 = vpop.f32.mrb[23].mxu1  ;;  %v11227_v58 = vld [vmem:[%s11569_s21 + $0x630] ss:$8 sps:$4 sm:$0xff]   ;;  %v11238_v0 = vld [vmem:[%s11569_s21 + $0xe44] ss:$8 sps:$4 sm:$0xff]  }
 0x360   : > { %8230 = vst.msk [vmem:[%s11794_s20 + $0x228] sm:$0xf] %vm8091_vm2, %v10184_v4  ;;  %8486 = vst.msk [vmem:[%s11794_s20 + $0x628] sm:$0xf] %vm8091_vm2, %v10440_v5  ;;  %v10185_v10 = vpack.c.bf16 %v4552_v6, %v4552_v6  ;;  %v10441_v11 = vpack.c.bf16 %v5576_v7, %v5576_v7  ;;  %4763 = vmatmul.mubr.bf16.gmra.mrb[128].mxu0 %v11209_v62  ;;  %5787 = vmatmul.mubr.bf16.gmra.mrb[128].mxu1 %v11212_v63  ;;  %v11235_v63 = vld [vmem:[%s11569_s21 + $0x644] ss:$8 sps:$4 sm:$0xff]  }
 0x361   : > { %9372 = vmatprep.mubr.msk.bf16.mxu0 %vm3189_vm0, %v11217_v2  ;;  %9500 = vmatprep.mubr.msk.bf16.mxu1 %vm3189_vm0, %v11220_v3 }
 0x362   : > { %8231 = vst.msk [vmem:[%s11794_s20 + $0x22c] sm:$0xf] %vm8091_vm2, %v10185_v10  ;;  %8487 = vst.msk [vmem:[%s11794_s20 + $0x62c] sm:$0xf] %vm8091_vm2, %v10441_v11 }
 0x363   : > { %v4556_v12 = vpop.f32.mrb[24].mxu0  ;;  %v5580_v13 = vpop.f32.mrb[24].mxu1 }
 0x364   : > { %v4557_v14 = vadd.f32 %v12786_v28, %v4556_v12  ;;  %v5581_v15 = vadd.f32 %v12786_v28, %v5580_v13  ;;  %v4558_v16 = vpop.f32.mrb[25].mxu0  ;;  %v5582_v17 = vpop.f32.mrb[25].mxu1 }
 0x365   : > { %v4559_v20 = vpop.f32.mrb[26].mxu0  ;;  %v5583_v21 = vpop.f32.mrb[26].mxu1  ;;  %v11236_v16 = vld [vmem:[%s11569_s21 + $0xe40] ss:$8 sps:$4 sm:$0xff]  }
 0x366   : > { %v10186_v24 = vpack.c.bf16 %v4557_v14, %v4557_v14  ;;  %v10442_v25 = vpack.c.bf16 %v5581_v15, %v5581_v15  ;;  %v4560_v26 = vadd.f32 %v12786_v28, %v4559_v20  ;;  %v5584_v39 = vadd.f32 %v12786_v28, %v5583_v21  ;;  %v4561_v27 = vpop.f32.mrb[27].mxu0  ;;  %v5585_v29 = vpop.f32.mrb[27].mxu1  ;;  %v11233_v15 = vld [vmem:[%s11569_s21 + $0x640] ss:$8 sps:$4 sm:$0xff]   ;;  %v11244_v20 = vld [vmem:[%s11569_s21 + $0xe54] ss:$8 sps:$4 sm:$0xff]  }
 0x368   : > { %8232 = vst.msk [vmem:[%s11794_s20 + $0x230] sm:$0xf] %vm8091_vm2, %v10186_v24  ;;  %8488 = vst.msk [vmem:[%s11794_s20 + $0x630] sm:$0xf] %vm8091_vm2, %v10442_v25  ;;  %v10187_v30 = vpack.c.bf16 %v4560_v26, %v4560_v26  ;;  %v10443_v31 = vpack.c.bf16 %v5584_v39, %v5584_v39  ;;  %4771 = vmatmul.mubr.bf16.gmra.mrb[132].mxu0 %v11215_v18  ;;  %5795 = vmatmul.mubr.bf16.gmra.mrb[132].mxu1 %v11218_v19  ;;  %v11241_v19 = vld [vmem:[%s11569_s21 + $0x654] ss:$8 sps:$4 sm:$0xff]  }
 0x369   : > { %9373 = vmatprep.mubr.msk.bf16.mxu0 %vm3189_vm0, %v11223_v22  ;;  %9501 = vmatprep.mubr.msk.bf16.mxu1 %vm3189_vm0, %v11226_v23  ;;  %v13118_v23 = vld [vmem:[#allocation2] ss:$0 sm:$0xff] }
 0x36a   : > { %8233 = vst.msk [vmem:[%s11794_s20 + $0x234] sm:$0xf] %vm8091_vm2, %v10187_v30  ;;  %8489 = vst.msk [vmem:[%s11794_s20 + $0x634] sm:$0xf] %vm8091_vm2, %v10443_v31 }
 0x36b   : > { %v4564_v32 = vpop.f32.mrb[28].mxu0  ;;  %v5588_v33 = vpop.f32.mrb[28].mxu1 }
 0x36c   : > { %v4565_v34 = vadd.f32 %v12786_v28, %v4564_v32  ;;  %v5589_v35 = vadd.f32 %v12786_v28, %v5588_v33  ;;  %v4566_v36 = vpop.f32.mrb[29].mxu0  ;;  %v5590_v37 = vpop.f32.mrb[29].mxu1 }
 0x36d   : > { %v4567_v44 = vpop.f32.mrb[30].mxu0  ;;  %v5591_v41 = vpop.f32.mrb[30].mxu1  ;;  %v11242_v36 = vld [vmem:[%s11569_s21 + $0xe50] ss:$8 sps:$4 sm:$0xff]  }
 0x36e   : > { %v10188_v43 = vpack.c.bf16 %v4565_v34, %v4565_v34  ;;  %v10444_v45 = vpack.c.bf16 %v5589_v35, %v5589_v35  ;;  %v4568_v46 = vadd.f32 %v12786_v28, %v4567_v44  ;;  %v5592_v47 = vadd.f32 %v12786_v28, %v5591_v41  ;;  %v4569_v48 = vpop.f32.mrb[31].mxu0  ;;  %v5593_v49 = vpop.f32.mrb[31].mxu1  ;;  %v11239_v35 = vld [vmem:[%s11569_s21 + $0x650] ss:$8 sps:$4 sm:$0xff]   ;;  %v11250_v44 = vld [vmem:[%s11569_s21 + $0xe64] ss:$8 sps:$4 sm:$0xff]  }
 0x370   : > { %8234 = vst.msk [vmem:[%s11794_s20 + $0x238] sm:$0xf] %vm8091_vm2, %v10188_v43  ;;  %8490 = vst.msk [vmem:[%s11794_s20 + $0x638] sm:$0xf] %vm8091_vm2, %v10444_v45  ;;  %v10189_v50 = vpack.c.bf16 %v4568_v46, %v4568_v46  ;;  %v10445_v51 = vpack.c.bf16 %v5592_v47, %v5592_v47  ;;  %4779 = vmatmul.mubr.bf16.gmra.mrb[136].mxu0 %v11221_v38  ;;  %5803 = vmatmul.mubr.bf16.gmra.mrb[136].mxu1 %v11224_v40  ;;  %v11247_v40 = vld [vmem:[%s11569_s21 + $0x664] ss:$8 sps:$4 sm:$0xff]  }
 0x371   : > { %9374 = vmatprep.mubr.msk.bf16.mxu0 %vm3189_vm0, %v11229_v42  ;;  %9502 = vmatprep.mubr.msk.bf16.mxu1 %vm3189_vm0, %v11232_v61 }
 0x372   : > { %8235 = vst.msk [vmem:[%s11794_s20 + $0x23c] sm:$0xf] %vm8091_vm2, %v10189_v50  ;;  %8491 = vst.msk [vmem:[%s11794_s20 + $0x63c] sm:$0xf] %vm8091_vm2, %v10445_v51 }
 0x373   : > { %v4572_v52 = vpop.f32.mrb[32].mxu0  ;;  %v5596_v53 = vpop.f32.mrb[32].mxu1 }
 0x374   : > { %v4573_v54 = vadd.f32 %v12786_v28, %v4572_v52  ;;  %v5597_v55 = vadd.f32 %v12786_v28, %v5596_v53  ;;  %v4574_v56 = vpop.f32.mrb[33].mxu0  ;;  %v5598_v57 = vpop.f32.mrb[33].mxu1 }
 0x375   : > { %v4575_v60 = vpop.f32.mrb[34].mxu0  ;;  %v5599_v62 = vpop.f32.mrb[34].mxu1  ;;  %v11248_v56 = vld [vmem:[%s11569_s21 + $0xe60] ss:$8 sps:$4 sm:$0xff]  }
 0x376   : > { %v10190_v1 = vpack.c.bf16 %v4573_v54, %v4573_v54  ;;  %v10446_v2 = vpack.c.bf16 %v5597_v55, %v5597_v55  ;;  %v4576_v3 = vadd.f32 %v12786_v28, %v4575_v60  ;;  %v5600_v4 = vadd.f32 %v12786_v28, %v5599_v62  ;;  %v4577_v5 = vpop.f32.mrb[35].mxu0  ;;  %v5601_v6 = vpop.f32.mrb[35].mxu1  ;;  %v11245_v55 = vld [vmem:[%s11569_s21 + $0x660] ss:$8 sps:$4 sm:$0xff]   ;;  %v11256_v60 = vld [vmem:[%s11569_s21 + $0xe74] ss:$8 sps:$4 sm:$0xff]  }
 0x378   : > { %8236 = vst.msk [vmem:[%s11794_s20 + $0x240] sm:$0xf] %vm8091_vm2, %v10190_v1  ;;  %8492 = vst.msk [vmem:[%s11794_s20 + $0x640] sm:$0xf] %vm8091_vm2, %v10446_v2  ;;  %v10191_v7 = vpack.c.bf16 %v4576_v3, %v4576_v3  ;;  %v10447_v8 = vpack.c.bf16 %v5600_v4, %v5600_v4  ;;  %4787 = vmatmul.mubr.bf16.gmra.mrb[140].mxu0 %v11227_v58  ;;  %5811 = vmatmul.mubr.bf16.gmra.mrb[140].mxu1 %v11230_v59  ;;  %v11253_v59 = vld [vmem:[%s11569_s21 + $0x674] ss:$8 sps:$4 sm:$0xff]  }
 0x379   : > { %9375 = vmatprep.mubr.msk.bf16.mxu0 %vm3189_vm0, %v11235_v63  ;;  %9503 = vmatprep.mubr.msk.bf16.mxu1 %vm3189_vm0, %v11238_v0 }
 0x37a   : > { %8237 = vst.msk [vmem:[%s11794_s20 + $0x244] sm:$0xf] %vm8091_vm2, %v10191_v7  ;;  %8493 = vst.msk [vmem:[%s11794_s20 + $0x644] sm:$0xf] %vm8091_vm2, %v10447_v8 }
 0x37b   : > { %v4580_v9 = vpop.f32.mrb[36].mxu0  ;;  %v5604_v10 = vpop.f32.mrb[36].mxu1 }
 0x37c   : > { %v4581_v11 = vadd.f32 %v12786_v28, %v4580_v9  ;;  %v5605_v12 = vadd.f32 %v12786_v28, %v5604_v10  ;;  %v4582_v13 = vpop.f32.mrb[37].mxu0  ;;  %v5606_v14 = vpop.f32.mrb[37].mxu1 }
 0x37d   : > { %v4583_v17 = vpop.f32.mrb[38].mxu0  ;;  %v5607_v18 = vpop.f32.mrb[38].mxu1  ;;  %v11254_v13 = vld [vmem:[%s11569_s21 + $0xe70] ss:$8 sps:$4 sm:$0xff]  }
 0x37e   : > { %v10192_v21 = vpack.c.bf16 %v4581_v11, %v4581_v11  ;;  %v10448_v22 = vpack.c.bf16 %v5605_v12, %v5605_v12  ;;  %v4584_v24 = vadd.f32 %v13118_v23, %v4583_v17  ;;  %v5608_v28 = vadd.f32 %v13118_v23, %v5607_v18  ;;  %v4585_v25 = vpop.f32.mrb[39].mxu0  ;;  %v5609_v26 = vpop.f32.mrb[39].mxu1  ;;  %v11251_v12 = vld [vmem:[%s11569_s21 + $0x670] ss:$8 sps:$4 sm:$0xff]   ;;  %v11262_v17 = vld [vmem:[%s11569_s21 + $0xe84] ss:$8 sps:$4 sm:$0xff]  }
 0x380   : > { %8238 = vst.msk [vmem:[%s11794_s20 + $0x248] sm:$0xf] %vm8091_vm2, %v10192_v21  ;;  %8494 = vst.msk [vmem:[%s11794_s20 + $0x648] sm:$0xf] %vm8091_vm2, %v10448_v22  ;;  %v10193_v39 = vpack.c.bf16 %v4584_v24, %v4584_v24  ;;  %v10449_v27 = vpack.c.bf16 %v5608_v28, %v5608_v28  ;;  %4795 = vmatmul.mubr.bf16.gmra.mrb[144].mxu0 %v11233_v15  ;;  %5819 = vmatmul.mubr.bf16.gmra.mrb[144].mxu1 %v11236_v16  ;;  %v11259_v16 = vld [vmem:[%s11569_s21 + $0x684] ss:$8 sps:$4 sm:$0xff]  }
 0x381   : > { %9376 = vmatprep.mubr.msk.bf16.mxu0 %vm3189_vm0, %v11241_v19  ;;  %9504 = vmatprep.mubr.msk.bf16.mxu1 %vm3189_vm0, %v11244_v20 }
 0x382   : > { %8239 = vst.msk [vmem:[%s11794_s20 + $0x24c] sm:$0xf] %vm8091_vm2, %v10193_v39  ;;  %8495 = vst.msk [vmem:[%s11794_s20 + $0x64c] sm:$0xf] %vm8091_vm2, %v10449_v27 }
 0x383   : > { %v4588_v29 = vpop.f32.mrb[40].mxu0  ;;  %v5612_v30 = vpop.f32.mrb[40].mxu1 }
 0x384   : > { %v4589_v31 = vadd.f32 %v13118_v23, %v4588_v29  ;;  %v5613_v32 = vadd.f32 %v13118_v23, %v5612_v30  ;;  %v4590_v33 = vpop.f32.mrb[41].mxu0  ;;  %v5614_v34 = vpop.f32.mrb[41].mxu1 }
 0x385   : > { %v4591_v37 = vpop.f32.mrb[42].mxu0  ;;  %v5615_v38 = vpop.f32.mrb[42].mxu1  ;;  %v11260_v33 = vld [vmem:[%s11569_s21 + $0xe80] ss:$8 sps:$4 sm:$0xff]  }
 0x386   : > { %v10194_v41 = vpack.c.bf16 %v4589_v31, %v4589_v31  ;;  %v10450_v42 = vpack.c.bf16 %v5613_v32, %v5613_v32  ;;  %v4592_v61 = vadd.f32 %v13118_v23, %v4591_v37  ;;  %v5616_v43 = vadd.f32 %v13118_v23, %v5615_v38  ;;  %v4593_v45 = vpop.f32.mrb[43].mxu0  ;;  %v5617_v46 = vpop.f32.mrb[43].mxu1  ;;  %v11257_v32 = vld [vmem:[%s11569_s21 + $0x680] ss:$8 sps:$4 sm:$0xff]   ;;  %v11268_v37 = vld [vmem:[%s11569_s21 + $0xe94] ss:$8 sps:$4 sm:$0xff]  }
 0x388   : > { %8240 = vst.msk [vmem:[%s11794_s20 + $0x250] sm:$0xf] %vm8091_vm2, %v10194_v41  ;;  %8496 = vst.msk [vmem:[%s11794_s20 + $0x650] sm:$0xf] %vm8091_vm2, %v10450_v42  ;;  %v10195_v47 = vpack.c.bf16 %v4592_v61, %v4592_v61  ;;  %v10451_v48 = vpack.c.bf16 %v5616_v43, %v5616_v43  ;;  %4803 = vmatmul.mubr.bf16.gmra.mrb[148].mxu0 %v11239_v35  ;;  %5827 = vmatmul.mubr.bf16.gmra.mrb[148].mxu1 %v11242_v36  ;;  %v11265_v36 = vld [vmem:[%s11569_s21 + $0x694] ss:$8 sps:$4 sm:$0xff]  }
 0x389   : > { %9377 = vmatprep.mubr.msk.bf16.mxu0 %vm3189_vm0, %v11247_v40  ;;  %9505 = vmatprep.mubr.msk.bf16.mxu1 %vm3189_vm0, %v11250_v44 }
 0x38a   : > { %8241 = vst.msk [vmem:[%s11794_s20 + $0x254] sm:$0xf] %vm8091_vm2, %v10195_v47  ;;  %8497 = vst.msk [vmem:[%s11794_s20 + $0x654] sm:$0xf] %vm8091_vm2, %v10451_v48 }
 0x38b   : > { %v4596_v49 = vpop.f32.mrb[44].mxu0  ;;  %v5620_v50 = vpop.f32.mrb[44].mxu1 }
 0x38c   : > { %v4597_v51 = vadd.f32 %v13118_v23, %v4596_v49  ;;  %v5621_v52 = vadd.f32 %v13118_v23, %v5620_v50  ;;  %v4598_v53 = vpop.f32.mrb[45].mxu0  ;;  %v5622_v54 = vpop.f32.mrb[45].mxu1 }
 0x38d   : > { %v4599_v57 = vpop.f32.mrb[46].mxu0  ;;  %v5623_v58 = vpop.f32.mrb[46].mxu1  ;;  %v11266_v53 = vld [vmem:[%s11569_s21 + $0xe90] ss:$8 sps:$4 sm:$0xff]  }
 0x38e   : > { %v10196_v62 = vpack.c.bf16 %v4597_v51, %v4597_v51  ;;  %v10452_v63 = vpack.c.bf16 %v5621_v52, %v5621_v52  ;;  %v4600_v0 = vadd.f32 %v13118_v23, %v4599_v57  ;;  %v5624_v1 = vadd.f32 %v13118_v23, %v5623_v58  ;;  %v4601_v2 = vpop.f32.mrb[47].mxu0  ;;  %v5625_v3 = vpop.f32.mrb[47].mxu1  ;;  %v11263_v52 = vld [vmem:[%s11569_s21 + $0x690] ss:$8 sps:$4 sm:$0xff]   ;;  %v11274_v57 = vld [vmem:[%s11569_s21 + $0xea4] ss:$8 sps:$4 sm:$0xff]  }
 0x390   : > { %8242 = vst.msk [vmem:[%s11794_s20 + $0x258] sm:$0xf] %vm8091_vm2, %v10196_v62  ;;  %8498 = vst.msk [vmem:[%s11794_s20 + $0x658] sm:$0xf] %vm8091_vm2, %v10452_v63  ;;  %v10197_v4 = vpack.c.bf16 %v4600_v0, %v4600_v0  ;;  %v10453_v5 = vpack.c.bf16 %v5624_v1, %v5624_v1  ;;  %4811 = vmatmul.mubr.bf16.gmra.mrb[152].mxu0 %v11245_v55  ;;  %5835 = vmatmul.mubr.bf16.gmra.mrb[152].mxu1 %v11248_v56  ;;  %v11271_v56 = vld [vmem:[%s11569_s21 + $0x6a4] ss:$8 sps:$4 sm:$0xff]  }
 0x391   : > { %9378 = vmatprep.mubr.msk.bf16.mxu0 %vm3189_vm0, %v11253_v59  ;;  %9506 = vmatprep.mubr.msk.bf16.mxu1 %vm3189_vm0, %v11256_v60 }
 0x392   : > { %8243 = vst.msk [vmem:[%s11794_s20 + $0x25c] sm:$0xf] %vm8091_vm2, %v10197_v4  ;;  %8499 = vst.msk [vmem:[%s11794_s20 + $0x65c] sm:$0xf] %vm8091_vm2, %v10453_v5 }
 0x393   : > { %v4604_v6 = vpop.f32.mrb[48].mxu0  ;;  %v5628_v7 = vpop.f32.mrb[48].mxu1 }
 0x394   : > { %v4605_v8 = vadd.f32 %v13118_v23, %v4604_v6  ;;  %v5629_v9 = vadd.f32 %v13118_v23, %v5628_v7  ;;  %v4606_v10 = vpop.f32.mrb[49].mxu0  ;;  %v5630_v11 = vpop.f32.mrb[49].mxu1 }
 0x395   : > { %v4607_v14 = vpop.f32.mrb[50].mxu0  ;;  %v5631_v15 = vpop.f32.mrb[50].mxu1  ;;  %v11272_v10 = vld [vmem:[%s11569_s21 + $0xea0] ss:$8 sps:$4 sm:$0xff]  }
 0x396   : > { %v10198_v18 = vpack.c.bf16 %v4605_v8, %v4605_v8  ;;  %v10454_v19 = vpack.c.bf16 %v5629_v9, %v5629_v9  ;;  %v4608_v20 = vadd.f32 %v13118_v23, %v4607_v14  ;;  %v5632_v21 = vadd.f32 %v13118_v23, %v5631_v15  ;;  %v4609_v22 = vpop.f32.mrb[51].mxu0  ;;  %v5633_v24 = vpop.f32.mrb[51].mxu1  ;;  %v11269_v9 = vld [vmem:[%s11569_s21 + $0x6a0] ss:$8 sps:$4 sm:$0xff]   ;;  %v11280_v14 = vld [vmem:[%s11569_s21 + $0xeb4] ss:$8 sps:$4 sm:$0xff]  }
 0x398   : > { %8244 = vst.msk [vmem:[%s11794_s20 + $0x260] sm:$0xf] %vm8091_vm2, %v10198_v18  ;;  %8500 = vst.msk [vmem:[%s11794_s20 + $0x660] sm:$0xf] %vm8091_vm2, %v10454_v19  ;;  %v10199_v28 = vpack.c.bf16 %v4608_v20, %v4608_v20  ;;  %v10455_v25 = vpack.c.bf16 %v5632_v21, %v5632_v21  ;;  %4819 = vmatmul.mubr.bf16.gmra.mrb[156].mxu0 %v11251_v12  ;;  %5843 = vmatmul.mubr.bf16.gmra.mrb[156].mxu1 %v11254_v13  ;;  %v11277_v13 = vld [vmem:[%s11569_s21 + $0x6b4] ss:$8 sps:$4 sm:$0xff]  }
 0x399   : > { %9379 = vmatprep.mubr.msk.bf16.mxu0 %vm3189_vm0, %v11259_v16  ;;  %9507 = vmatprep.mubr.msk.bf16.mxu1 %vm3189_vm0, %v11262_v17 }
 0x39a   : > { %8245 = vst.msk [vmem:[%s11794_s20 + $0x264] sm:$0xf] %vm8091_vm2, %v10199_v28  ;;  %8501 = vst.msk [vmem:[%s11794_s20 + $0x664] sm:$0xf] %vm8091_vm2, %v10455_v25 }
 0x39b   : > { %v4612_v26 = vpop.f32.mrb[52].mxu0  ;;  %v5636_v39 = vpop.f32.mrb[52].mxu1 }
 0x39c   : > { %v4613_v27 = vadd.f32 %v13118_v23, %v4612_v26  ;;  %v5637_v29 = vadd.f32 %v13118_v23, %v5636_v39  ;;  %v4614_v30 = vpop.f32.mrb[53].mxu0  ;;  %v5638_v31 = vpop.f32.mrb[53].mxu1 }
 0x39d   : > { %v4615_v34 = vpop.f32.mrb[54].mxu0  ;;  %v5639_v35 = vpop.f32.mrb[54].mxu1  ;;  %v11278_v30 = vld [vmem:[%s11569_s21 + $0xeb0] ss:$8 sps:$4 sm:$0xff]  }
 0x39e   : > { %v10200_v38 = vpack.c.bf16 %v4613_v27, %v4613_v27  ;;  %v10456_v40 = vpack.c.bf16 %v5637_v29, %v5637_v29  ;;  %v4616_v44 = vadd.f32 %v13118_v23, %v4615_v34  ;;  %v5640_v41 = vadd.f32 %v13118_v23, %v5639_v35  ;;  %v4617_v42 = vpop.f32.mrb[55].mxu0  ;;  %v5641_v61 = vpop.f32.mrb[55].mxu1  ;;  %v11275_v29 = vld [vmem:[%s11569_s21 + $0x6b0] ss:$8 sps:$4 sm:$0xff]   ;;  %v11286_v34 = vld [vmem:[%s11569_s21 + $0xec4] ss:$8 sps:$4 sm:$0xff]  }
 0x3a0   : > { %8246 = vst.msk [vmem:[%s11794_s20 + $0x268] sm:$0xf] %vm8091_vm2, %v10200_v38  ;;  %8502 = vst.msk [vmem:[%s11794_s20 + $0x668] sm:$0xf] %vm8091_vm2, %v10456_v40  ;;  %v10201_v43 = vpack.c.bf16 %v4616_v44, %v4616_v44  ;;  %v10457_v45 = vpack.c.bf16 %v5640_v41, %v5640_v41  ;;  %4827 = vmatmul.mubr.bf16.gmra.mrb[160].mxu0 %v11257_v32  ;;  %5851 = vmatmul.mubr.bf16.gmra.mrb[160].mxu1 %v11260_v33  ;;  %v11283_v33 = vld [vmem:[%s11569_s21 + $0x6c4] ss:$8 sps:$4 sm:$0xff]  }
 0x3a1   : > { %9380 = vmatprep.mubr.msk.bf16.mxu0 %vm3189_vm0, %v11265_v36  ;;  %9508 = vmatprep.mubr.msk.bf16.mxu1 %vm3189_vm0, %v11268_v37 }
 0x3a2   : > { %8247 = vst.msk [vmem:[%s11794_s20 + $0x26c] sm:$0xf] %vm8091_vm2, %v10201_v43  ;;  %8503 = vst.msk [vmem:[%s11794_s20 + $0x66c] sm:$0xf] %vm8091_vm2, %v10457_v45 }
 0x3a3   : > { %v4620_v46 = vpop.f32.mrb[56].mxu0  ;;  %v5644_v47 = vpop.f32.mrb[56].mxu1 }
 0x3a4   : > { %v4621_v48 = vadd.f32 %v13118_v23, %v4620_v46  ;;  %v5645_v49 = vadd.f32 %v13118_v23, %v5644_v47  ;;  %v4622_v50 = vpop.f32.mrb[57].mxu0  ;;  %v5646_v51 = vpop.f32.mrb[57].mxu1 }
 0x3a5   : > { %v4623_v54 = vpop.f32.mrb[58].mxu0  ;;  %v5647_v55 = vpop.f32.mrb[58].mxu1  ;;  %v11284_v50 = vld [vmem:[%s11569_s21 + $0xec0] ss:$8 sps:$4 sm:$0xff]  }
 0x3a6   : > { %v10202_v58 = vpack.c.bf16 %v4621_v48, %v4621_v48  ;;  %v10458_v59 = vpack.c.bf16 %v5645_v49, %v5645_v49  ;;  %v4624_v60 = vadd.f32 %v13118_v23, %v4623_v54  ;;  %v5648_v62 = vadd.f32 %v13118_v23, %v5647_v55  ;;  %v4625_v63 = vpop.f32.mrb[59].mxu0  ;;  %v5649_v0 = vpop.f32.mrb[59].mxu1  ;;  %v11281_v49 = vld [vmem:[%s11569_s21 + $0x6c0] ss:$8 sps:$4 sm:$0xff]   ;;  %v11292_v54 = vld [vmem:[%s11569_s21 + $0xed4] ss:$8 sps:$4 sm:$0xff]  }
 0x3a8   : > { %8248 = vst.msk [vmem:[%s11794_s20 + $0x270] sm:$0xf] %vm8091_vm2, %v10202_v58  ;;  %8504 = vst.msk [vmem:[%s11794_s20 + $0x670] sm:$0xf] %vm8091_vm2, %v10458_v59  ;;  %v10203_v1 = vpack.c.bf16 %v4624_v60, %v4624_v60  ;;  %v10459_v2 = vpack.c.bf16 %v5648_v62, %v5648_v62  ;;  %4835 = vmatmul.mubr.bf16.gmra.mrb[164].mxu0 %v11263_v52  ;;  %5859 = vmatmul.mubr.bf16.gmra.mrb[164].mxu1 %v11266_v53  ;;  %v11289_v53 = vld [vmem:[%s11569_s21 + $0x6d4] ss:$8 sps:$4 sm:$0xff]  }
 0x3a9   : > { %9381 = vmatprep.mubr.msk.bf16.mxu0 %vm3189_vm0, %v11271_v56  ;;  %9509 = vmatprep.mubr.msk.bf16.mxu1 %vm3189_vm0, %v11274_v57 }
 0x3aa   : > { %8249 = vst.msk [vmem:[%s11794_s20 + $0x274] sm:$0xf] %vm8091_vm2, %v10203_v1  ;;  %8505 = vst.msk [vmem:[%s11794_s20 + $0x674] sm:$0xf] %vm8091_vm2, %v10459_v2 }
 0x3ab   : > { %v4628_v3 = vpop.f32.mrb[60].mxu0  ;;  %v5652_v4 = vpop.f32.mrb[60].mxu1 }
 0x3ac   : > { %v4629_v5 = vadd.f32 %v13118_v23, %v4628_v3  ;;  %v5653_v6 = vadd.f32 %v13118_v23, %v5652_v4  ;;  %v4630_v7 = vpop.f32.mrb[61].mxu0  ;;  %v5654_v8 = vpop.f32.mrb[61].mxu1 }
 0x3ad   : > { %v4631_v11 = vpop.f32.mrb[62].mxu0  ;;  %v5655_v12 = vpop.f32.mrb[62].mxu1  ;;  %v11290_v7 = vld [vmem:[%s11569_s21 + $0xed0] ss:$8 sps:$4 sm:$0xff]  }
 0x3ae   : > { %v10204_v15 = vpack.c.bf16 %v4629_v5, %v4629_v5  ;;  %v10460_v16 = vpack.c.bf16 %v5653_v6, %v5653_v6  ;;  %v4632_v17 = vadd.f32 %v13118_v23, %v4631_v11  ;;  %v5656_v18 = vadd.f32 %v13118_v23, %v5655_v12  ;;  %v4633_v19 = vpop.f32.mrb[63].mxu0  ;;  %v5657_v20 = vpop.f32.mrb[63].mxu1  ;;  %v11287_v6 = vld [vmem:[%s11569_s21 + $0x6d0] ss:$8 sps:$4 sm:$0xff]   ;;  %v11298_v11 = vld [vmem:[%s11569_s21 + $0xee4] ss:$8 sps:$4 sm:$0xff]  }
 0x3b0   : > { %8250 = vst.msk [vmem:[%s11794_s20 + $0x278] sm:$0xf] %vm8091_vm2, %v10204_v15  ;;  %8506 = vst.msk [vmem:[%s11794_s20 + $0x678] sm:$0xf] %vm8091_vm2, %v10460_v16  ;;  %v10205_v21 = vpack.c.bf16 %v4632_v17, %v4632_v17  ;;  %v10461_v22 = vpack.c.bf16 %v5656_v18, %v5656_v18  ;;  %4843 = vmatmul.mubr.bf16.gmra.mrb[168].mxu0 %v11269_v9  ;;  %5867 = vmatmul.mubr.bf16.gmra.mrb[168].mxu1 %v11272_v10  ;;  %v11295_v10 = vld [vmem:[%s11569_s21 + $0x6e4] ss:$8 sps:$4 sm:$0xff]  }
 0x3b1   : > { %9382 = vmatprep.mubr.msk.bf16.mxu0 %vm3189_vm0, %v11277_v13  ;;  %9510 = vmatprep.mubr.msk.bf16.mxu1 %vm3189_vm0, %v11280_v14 }
 0x3b2   : > { %8251 = vst.msk [vmem:[%s11794_s20 + $0x27c] sm:$0xf] %vm8091_vm2, %v10205_v21  ;;  %8507 = vst.msk [vmem:[%s11794_s20 + $0x67c] sm:$0xf] %vm8091_vm2, %v10461_v22 }
 0x3b3   : > { %v4636_v24 = vpop.f32.mrb[64].mxu0  ;;  %v5660_v28 = vpop.f32.mrb[64].mxu1 }
 0x3b4   : > { %v4637_v25 = vadd.f32 %v13118_v23, %v4636_v24  ;;  %v5661_v26 = vadd.f32 %v13118_v23, %v5660_v28  ;;  %v4638_v39 = vpop.f32.mrb[65].mxu0  ;;  %v5662_v27 = vpop.f32.mrb[65].mxu1 }
 0x3b5   : > { %v4639_v31 = vpop.f32.mrb[66].mxu0  ;;  %v5663_v32 = vpop.f32.mrb[66].mxu1  ;;  %v11296_v39 = vld [vmem:[%s11569_s21 + $0xee0] ss:$8 sps:$4 sm:$0xff]  }
 0x3b6   : > { %v10206_v35 = vpack.c.bf16 %v4637_v25, %v4637_v25  ;;  %v10462_v36 = vpack.c.bf16 %v5661_v26, %v5661_v26  ;;  %v4640_v37 = vadd.f32 %v13118_v23, %v4639_v31  ;;  %v5664_v38 = vadd.f32 %v13118_v23, %v5663_v32  ;;  %v4641_v40 = vpop.f32.mrb[67].mxu0  ;;  %v5665_v44 = vpop.f32.mrb[67].mxu1  ;;  %v11293_v26 = vld [vmem:[%s11569_s21 + $0x6e0] ss:$8 sps:$4 sm:$0xff]   ;;  %v11304_v31 = vld [vmem:[%s11569_s21 + $0xef4] ss:$8 sps:$4 sm:$0xff]  }
 0x3b8   : > { %8252 = vst.msk [vmem:[%s11794_s20 + $0x280] sm:$0xf] %vm8091_vm2, %v10206_v35  ;;  %8508 = vst.msk [vmem:[%s11794_s20 + $0x680] sm:$0xf] %vm8091_vm2, %v10462_v36  ;;  %v10207_v41 = vpack.c.bf16 %v4640_v37, %v4640_v37  ;;  %v10463_v42 = vpack.c.bf16 %v5664_v38, %v5664_v38  ;;  %4851 = vmatmul.mubr.bf16.gmra.mrb[172].mxu0 %v11275_v29  ;;  %5875 = vmatmul.mubr.bf16.gmra.mrb[172].mxu1 %v11278_v30  ;;  %v11301_v30 = vld [vmem:[%s11569_s21 + $0x6f4] ss:$8 sps:$4 sm:$0xff]  }
 0x3b9   : > { %9383 = vmatprep.mubr.msk.bf16.mxu0 %vm3189_vm0, %v11283_v33  ;;  %9511 = vmatprep.mubr.msk.bf16.mxu1 %vm3189_vm0, %v11286_v34 }
 0x3ba   : > { %8253 = vst.msk [vmem:[%s11794_s20 + $0x284] sm:$0xf] %vm8091_vm2, %v10207_v41  ;;  %8509 = vst.msk [vmem:[%s11794_s20 + $0x684] sm:$0xf] %vm8091_vm2, %v10463_v42 }
 0x3bb   : > { %v4644_v61 = vpop.f32.mrb[68].mxu0  ;;  %v5668_v43 = vpop.f32.mrb[68].mxu1 }
 0x3bc   : > { %v4645_v45 = vadd.f32 %v13118_v23, %v4644_v61  ;;  %v5669_v46 = vadd.f32 %v13118_v23, %v5668_v43  ;;  %v4646_v47 = vpop.f32.mrb[69].mxu0  ;;  %v5670_v48 = vpop.f32.mrb[69].mxu1 }
 0x3bd   : > { %v4647_v51 = vpop.f32.mrb[70].mxu0  ;;  %v5671_v52 = vpop.f32.mrb[70].mxu1  ;;  %v11302_v47 = vld [vmem:[%s11569_s21 + $0xef0] ss:$8 sps:$4 sm:$0xff]  }
 0x3be   : > { %v10208_v55 = vpack.c.bf16 %v4645_v45, %v4645_v45  ;;  %v10464_v56 = vpack.c.bf16 %v5669_v46, %v5669_v46  ;;  %v4648_v57 = vadd.f32 %v13118_v23, %v4647_v51  ;;  %v5672_v58 = vadd.f32 %v13118_v23, %v5671_v52  ;;  %v4649_v59 = vpop.f32.mrb[71].mxu0  ;;  %v5673_v60 = vpop.f32.mrb[71].mxu1  ;;  %v11299_v46 = vld [vmem:[%s11569_s21 + $0x6f0] ss:$8 sps:$4 sm:$0xff]   ;;  %v11310_v51 = vld [vmem:[%s11569_s21 + $0xf04] ss:$8 sps:$4 sm:$0xff]  }
 0x3c0   : > { %8254 = vst.msk [vmem:[%s11794_s20 + $0x288] sm:$0xf] %vm8091_vm2, %v10208_v55  ;;  %8510 = vst.msk [vmem:[%s11794_s20 + $0x688] sm:$0xf] %vm8091_vm2, %v10464_v56  ;;  %v10209_v62 = vpack.c.bf16 %v4648_v57, %v4648_v57  ;;  %v10465_v63 = vpack.c.bf16 %v5672_v58, %v5672_v58  ;;  %4859 = vmatmul.mubr.bf16.gmra.mrb[176].mxu0 %v11281_v49  ;;  %5883 = vmatmul.mubr.bf16.gmra.mrb[176].mxu1 %v11284_v50  ;;  %v11307_v50 = vld [vmem:[%s11569_s21 + $0x704] ss:$8 sps:$4 sm:$0xff]  }
 0x3c1   : > { %9384 = vmatprep.mubr.msk.bf16.mxu0 %vm3189_vm0, %v11289_v53  ;;  %9512 = vmatprep.mubr.msk.bf16.mxu1 %vm3189_vm0, %v11292_v54 }
 0x3c2   : > { %8255 = vst.msk [vmem:[%s11794_s20 + $0x28c] sm:$0xf] %vm8091_vm2, %v10209_v62  ;;  %8511 = vst.msk [vmem:[%s11794_s20 + $0x68c] sm:$0xf] %vm8091_vm2, %v10465_v63 }
 0x3c3   : > { %v4652_v0 = vpop.f32.mrb[72].mxu0  ;;  %v5676_v1 = vpop.f32.mrb[72].mxu1 }
 0x3c4   : > { %v4653_v2 = vadd.f32 %v13118_v23, %v4652_v0  ;;  %v5677_v3 = vadd.f32 %v13118_v23, %v5676_v1  ;;  %v4654_v4 = vpop.f32.mrb[73].mxu0  ;;  %v5678_v5 = vpop.f32.mrb[73].mxu1 }
 0x3c5   : > { %v4655_v8 = vpop.f32.mrb[74].mxu0  ;;  %v5679_v9 = vpop.f32.mrb[74].mxu1  ;;  %v11308_v4 = vld [vmem:[%s11569_s21 + $0xf00] ss:$8 sps:$4 sm:$0xff]  }
 0x3c6   : > { %v10210_v12 = vpack.c.bf16 %v4653_v2, %v4653_v2  ;;  %v10466_v13 = vpack.c.bf16 %v5677_v3, %v5677_v3  ;;  %v4656_v14 = vadd.f32 %v13118_v23, %v4655_v8  ;;  %v5680_v15 = vadd.f32 %v13118_v23, %v5679_v9  ;;  %v4657_v16 = vpop.f32.mrb[75].mxu0  ;;  %v5681_v17 = vpop.f32.mrb[75].mxu1  ;;  %v11305_v3 = vld [vmem:[%s11569_s21 + $0x700] ss:$8 sps:$4 sm:$0xff]   ;;  %v11316_v8 = vld [vmem:[%s11569_s21 + $0xf14] ss:$8 sps:$4 sm:$0xff]  }
 0x3c8   : > { %8256 = vst.msk [vmem:[%s11794_s20 + $0x290] sm:$0xf] %vm8091_vm2, %v10210_v12  ;;  %8512 = vst.msk [vmem:[%s11794_s20 + $0x690] sm:$0xf] %vm8091_vm2, %v10466_v13  ;;  %v10211_v18 = vpack.c.bf16 %v4656_v14, %v4656_v14  ;;  %v10467_v19 = vpack.c.bf16 %v5680_v15, %v5680_v15  ;;  %4867 = vmatmul.mubr.bf16.gmra.mrb[180].mxu0 %v11287_v6  ;;  %5891 = vmatmul.mubr.bf16.gmra.mrb[180].mxu1 %v11290_v7  ;;  %v11313_v7 = vld [vmem:[%s11569_s21 + $0x714] ss:$8 sps:$4 sm:$0xff]  }
 0x3c9   : > { %9385 = vmatprep.mubr.msk.bf16.mxu0 %vm3189_vm0, %v11295_v10  ;;  %9513 = vmatprep.mubr.msk.bf16.mxu1 %vm3189_vm0, %v11298_v11 }
 0x3ca   : > { %8257 = vst.msk [vmem:[%s11794_s20 + $0x294] sm:$0xf] %vm8091_vm2, %v10211_v18  ;;  %8513 = vst.msk [vmem:[%s11794_s20 + $0x694] sm:$0xf] %vm8091_vm2, %v10467_v19 }
 0x3cb   : > { %v4660_v20 = vpop.f32.mrb[76].mxu0  ;;  %v5684_v21 = vpop.f32.mrb[76].mxu1 }
 0x3cc   : > { %v4661_v22 = vadd.f32 %v13118_v23, %v4660_v20  ;;  %v5685_v24 = vadd.f32 %v13118_v23, %v5684_v21  ;;  %v4662_v28 = vpop.f32.mrb[77].mxu0  ;;  %v5686_v25 = vpop.f32.mrb[77].mxu1 }
 0x3cd   : > { %v4663_v27 = vpop.f32.mrb[78].mxu0  ;;  %v5687_v29 = vpop.f32.mrb[78].mxu1  ;;  %v11314_v28 = vld [vmem:[%s11569_s21 + $0xf10] ss:$8 sps:$4 sm:$0xff]  }
 0x3ce   : > { %v10212_v32 = vpack.c.bf16 %v4661_v22, %v4661_v22  ;;  %v10468_v33 = vpack.c.bf16 %v5685_v24, %v5685_v24  ;;  %v4664_v34 = vadd.f32 %v13118_v23, %v4663_v27  ;;  %v5688_v35 = vadd.f32 %v13118_v23, %v5687_v29  ;;  %v4665_v36 = vpop.f32.mrb[79].mxu0  ;;  %v5689_v37 = vpop.f32.mrb[79].mxu1  ;;  %v11311_v24 = vld [vmem:[%s11569_s21 + $0x710] ss:$8 sps:$4 sm:$0xff]   ;;  %v11322_v27 = vld [vmem:[%s11569_s21 + $0xf24] ss:$8 sps:$4 sm:$0xff]  }
 0x3d0   : > { %8258 = vst.msk [vmem:[%s11794_s20 + $0x298] sm:$0xf] %vm8091_vm2, %v10212_v32  ;;  %8514 = vst.msk [vmem:[%s11794_s20 + $0x698] sm:$0xf] %vm8091_vm2, %v10468_v33  ;;  %v10213_v38 = vpack.c.bf16 %v4664_v34, %v4664_v34  ;;  %v10469_v40 = vpack.c.bf16 %v5688_v35, %v5688_v35  ;;  %4875 = vmatmul.mubr.bf16.gmra.mrb[184].mxu0 %v11293_v26  ;;  %5899 = vmatmul.mubr.bf16.gmra.mrb[184].mxu1 %v11296_v39  ;;  %v11319_v39 = vld [vmem:[%s11569_s21 + $0x724] ss:$8 sps:$4 sm:$0xff]  }
 0x3d1   : > { %9386 = vmatprep.mubr.msk.bf16.mxu0 %vm3189_vm0, %v11301_v30  ;;  %9514 = vmatprep.mubr.msk.bf16.mxu1 %vm3189_vm0, %v11304_v31 }
 0x3d2   : > { %8259 = vst.msk [vmem:[%s11794_s20 + $0x29c] sm:$0xf] %vm8091_vm2, %v10213_v38  ;;  %8515 = vst.msk [vmem:[%s11794_s20 + $0x69c] sm:$0xf] %vm8091_vm2, %v10469_v40 }
 0x3d3   : > { %v4668_v44 = vpop.f32.mrb[80].mxu0  ;;  %v5692_v41 = vpop.f32.mrb[80].mxu1 }
 0x3d4   : > { %v4669_v42 = vadd.f32 %v13118_v23, %v4668_v44  ;;  %v5693_v61 = vadd.f32 %v13118_v23, %v5692_v41  ;;  %v4670_v43 = vpop.f32.mrb[81].mxu0  ;;  %v5694_v45 = vpop.f32.mrb[81].mxu1 }
 0x3d5   : > { %v4671_v48 = vpop.f32.mrb[82].mxu0  ;;  %v5695_v49 = vpop.f32.mrb[82].mxu1  ;;  %v11320_v43 = vld [vmem:[%s11569_s21 + $0xf20] ss:$8 sps:$4 sm:$0xff]  }
 0x3d6   : > { %v10214_v52 = vpack.c.bf16 %v4669_v42, %v4669_v42  ;;  %v10470_v53 = vpack.c.bf16 %v5693_v61, %v5693_v61  ;;  %v4672_v54 = vadd.f32 %v13118_v23, %v4671_v48  ;;  %v5696_v55 = vadd.f32 %v13118_v23, %v5695_v49  ;;  %v4673_v56 = vpop.f32.mrb[83].mxu0  ;;  %v5697_v57 = vpop.f32.mrb[83].mxu1  ;;  %v11317_v61 = vld [vmem:[%s11569_s21 + $0x720] ss:$8 sps:$4 sm:$0xff]   ;;  %v11328_v48 = vld [vmem:[%s11569_s21 + $0xf34] ss:$8 sps:$4 sm:$0xff]  }
 0x3d8   : > { %8260 = vst.msk [vmem:[%s11794_s20 + $0x2a0] sm:$0xf] %vm8091_vm2, %v10214_v52  ;;  %8516 = vst.msk [vmem:[%s11794_s20 + $0x6a0] sm:$0xf] %vm8091_vm2, %v10470_v53  ;;  %v10215_v58 = vpack.c.bf16 %v4672_v54, %v4672_v54  ;;  %v10471_v59 = vpack.c.bf16 %v5696_v55, %v5696_v55  ;;  %4883 = vmatmul.mubr.bf16.gmra.mrb[188].mxu0 %v11299_v46  ;;  %5907 = vmatmul.mubr.bf16.gmra.mrb[188].mxu1 %v11302_v47  ;;  %v11325_v47 = vld [vmem:[%s11569_s21 + $0x734] ss:$8 sps:$4 sm:$0xff]  }
 0x3d9   : > { %9387 = vmatprep.mubr.msk.bf16.mxu0 %vm3189_vm0, %v11307_v50  ;;  %9515 = vmatprep.mubr.msk.bf16.mxu1 %vm3189_vm0, %v11310_v51 }
 0x3da   : > { %8261 = vst.msk [vmem:[%s11794_s20 + $0x2a4] sm:$0xf] %vm8091_vm2, %v10215_v58  ;;  %8517 = vst.msk [vmem:[%s11794_s20 + $0x6a4] sm:$0xf] %vm8091_vm2, %v10471_v59 }
 0x3db   : > { %v4676_v60 = vpop.f32.mrb[84].mxu0  ;;  %v5700_v62 = vpop.f32.mrb[84].mxu1 }
 0x3dc   : > { %v4677_v63 = vadd.f32 %v13118_v23, %v4676_v60  ;;  %v5701_v0 = vadd.f32 %v13118_v23, %v5700_v62  ;;  %v4678_v1 = vpop.f32.mrb[85].mxu0  ;;  %v5702_v2 = vpop.f32.mrb[85].mxu1 }
 0x3dd   : > { %v4679_v5 = vpop.f32.mrb[86].mxu0  ;;  %v5703_v6 = vpop.f32.mrb[86].mxu1  ;;  %v11326_v1 = vld [vmem:[%s11569_s21 + $0xf30] ss:$8 sps:$4 sm:$0xff]  }
 0x3de   : > { %v10216_v9 = vpack.c.bf16 %v4677_v63, %v4677_v63  ;;  %v10472_v10 = vpack.c.bf16 %v5701_v0, %v5701_v0  ;;  %v4680_v11 = vadd.f32 %v13118_v23, %v4679_v5  ;;  %v5704_v12 = vadd.f32 %v13118_v23, %v5703_v6  ;;  %v4681_v13 = vpop.f32.mrb[87].mxu0  ;;  %v5705_v14 = vpop.f32.mrb[87].mxu1  ;;  %v11323_v0 = vld [vmem:[%s11569_s21 + $0x730] ss:$8 sps:$4 sm:$0xff]   ;;  %v11334_v5 = vld [vmem:[%s11569_s21 + $0xf44] ss:$8 sps:$4 sm:$0xff]  }
 0x3e0   : > { %8262 = vst.msk [vmem:[%s11794_s20 + $0x2a8] sm:$0xf] %vm8091_vm2, %v10216_v9  ;;  %8518 = vst.msk [vmem:[%s11794_s20 + $0x6a8] sm:$0xf] %vm8091_vm2, %v10472_v10  ;;  %v10217_v15 = vpack.c.bf16 %v4680_v11, %v4680_v11  ;;  %v10473_v16 = vpack.c.bf16 %v5704_v12, %v5704_v12  ;;  %4891 = vmatmul.mubr.bf16.gmra.mrb[192].mxu0 %v11305_v3  ;;  %5915 = vmatmul.mubr.bf16.gmra.mrb[192].mxu1 %v11308_v4  ;;  %v11331_v4 = vld [vmem:[%s11569_s21 + $0x744] ss:$8 sps:$4 sm:$0xff]  }
 0x3e1   : > { %9388 = vmatprep.mubr.msk.bf16.mxu0 %vm3189_vm0, %v11313_v7  ;;  %9516 = vmatprep.mubr.msk.bf16.mxu1 %vm3189_vm0, %v11316_v8 }
 0x3e2   : > { %8263 = vst.msk [vmem:[%s11794_s20 + $0x2ac] sm:$0xf] %vm8091_vm2, %v10217_v15  ;;  %8519 = vst.msk [vmem:[%s11794_s20 + $0x6ac] sm:$0xf] %vm8091_vm2, %v10473_v16 }
 0x3e3   : > { %v4684_v17 = vpop.f32.mrb[88].mxu0  ;;  %v5708_v18 = vpop.f32.mrb[88].mxu1 }
 0x3e4   : > { %v4685_v19 = vadd.f32 %v13118_v23, %v4684_v17  ;;  %v5709_v20 = vadd.f32 %v13118_v23, %v5708_v18  ;;  %v4686_v21 = vpop.f32.mrb[89].mxu0  ;;  %v5710_v22 = vpop.f32.mrb[89].mxu1 }
 0x3e5   : > { %v4687_v25 = vpop.f32.mrb[90].mxu0  ;;  %v5711_v26 = vpop.f32.mrb[90].mxu1  ;;  %v11332_v21 = vld [vmem:[%s11569_s21 + $0xf40] ss:$8 sps:$4 sm:$0xff]  }
 0x3e6   : > { %v10218_v29 = vpack.c.bf16 %v4685_v19, %v4685_v19  ;;  %v10474_v30 = vpack.c.bf16 %v5709_v20, %v5709_v20  ;;  %v4688_v31 = vadd.f32 %v13118_v23, %v4687_v25  ;;  %v5712_v32 = vadd.f32 %v13118_v23, %v5711_v26  ;;  %v4689_v33 = vpop.f32.mrb[91].mxu0  ;;  %v5713_v34 = vpop.f32.mrb[91].mxu1  ;;  %v11329_v20 = vld [vmem:[%s11569_s21 + $0x740] ss:$8 sps:$4 sm:$0xff]   ;;  %v11340_v25 = vld [vmem:[%s11569_s21 + $0xf54] ss:$8 sps:$4 sm:$0xff]  }
 0x3e8   : > { %8264 = vst.msk [vmem:[%s11794_s20 + $0x2b0] sm:$0xf] %vm8091_vm2, %v10218_v29  ;;  %8520 = vst.msk [vmem:[%s11794_s20 + $0x6b0] sm:$0xf] %vm8091_vm2, %v10474_v30  ;;  %v10219_v35 = vpack.c.bf16 %v4688_v31, %v4688_v31  ;;  %v10475_v36 = vpack.c.bf16 %v5712_v32, %v5712_v32  ;;  %4899 = vmatmul.mubr.bf16.gmra.mrb[196].mxu0 %v11311_v24  ;;  %5923 = vmatmul.mubr.bf16.gmra.mrb[196].mxu1 %v11314_v28  ;;  %v11337_v28 = vld [vmem:[%s11569_s21 + $0x754] ss:$8 sps:$4 sm:$0xff]  }
 0x3e9   : > { %9389 = vmatprep.mubr.msk.bf16.mxu0 %vm3189_vm0, %v11319_v39  ;;  %9517 = vmatprep.mubr.msk.bf16.mxu1 %vm3189_vm0, %v11322_v27 }
 0x3ea   : > { %8265 = vst.msk [vmem:[%s11794_s20 + $0x2b4] sm:$0xf] %vm8091_vm2, %v10219_v35  ;;  %8521 = vst.msk [vmem:[%s11794_s20 + $0x6b4] sm:$0xf] %vm8091_vm2, %v10475_v36 }
 0x3eb   : > { %v4692_v37 = vpop.f32.mrb[92].mxu0  ;;  %v5716_v38 = vpop.f32.mrb[92].mxu1 }
 0x3ec   : > { %v4693_v40 = vadd.f32 %v13118_v23, %v4692_v37  ;;  %v5717_v44 = vadd.f32 %v13118_v23, %v5716_v38  ;;  %v4694_v41 = vpop.f32.mrb[93].mxu0  ;;  %v5718_v42 = vpop.f32.mrb[93].mxu1 }
 0x3ed   : > { %v4695_v45 = vpop.f32.mrb[94].mxu0  ;;  %v5719_v46 = vpop.f32.mrb[94].mxu1  ;;  %v11338_v41 = vld [vmem:[%s11569_s21 + $0xf50] ss:$8 sps:$4 sm:$0xff]  }
 0x3ee   : > { %v10220_v49 = vpack.c.bf16 %v4693_v40, %v4693_v40  ;;  %v10476_v50 = vpack.c.bf16 %v5717_v44, %v5717_v44  ;;  %v4696_v51 = vadd.f32 %v13118_v23, %v4695_v45  ;;  %v5720_v52 = vadd.f32 %v13118_v23, %v5719_v46  ;;  %v4697_v53 = vpop.f32.mrb[95].mxu0  ;;  %v5721_v54 = vpop.f32.mrb[95].mxu1  ;;  %v11335_v44 = vld [vmem:[%s11569_s21 + $0x750] ss:$8 sps:$4 sm:$0xff]   ;;  %v11346_v45 = vld [vmem:[%s11569_s21 + $0xf64] ss:$8 sps:$4 sm:$0xff]  }
 0x3f0   : > { %8266 = vst.msk [vmem:[%s11794_s20 + $0x2b8] sm:$0xf] %vm8091_vm2, %v10220_v49  ;;  %8522 = vst.msk [vmem:[%s11794_s20 + $0x6b8] sm:$0xf] %vm8091_vm2, %v10476_v50  ;;  %v10221_v55 = vpack.c.bf16 %v4696_v51, %v4696_v51  ;;  %v10477_v56 = vpack.c.bf16 %v5720_v52, %v5720_v52  ;;  %4907 = vmatmul.mubr.bf16.gmra.mrb[200].mxu0 %v11317_v61  ;;  %5931 = vmatmul.mubr.bf16.gmra.mrb[200].mxu1 %v11320_v43  ;;  %v11343_v43 = vld [vmem:[%s11569_s21 + $0x764] ss:$8 sps:$4 sm:$0xff]  }
 0x3f1   : > { %9390 = vmatprep.mubr.msk.bf16.mxu0 %vm3189_vm0, %v11325_v47  ;;  %9518 = vmatprep.mubr.msk.bf16.mxu1 %vm3189_vm0, %v11328_v48 }
 0x3f2   : > { %8267 = vst.msk [vmem:[%s11794_s20 + $0x2bc] sm:$0xf] %vm8091_vm2, %v10221_v55  ;;  %8523 = vst.msk [vmem:[%s11794_s20 + $0x6bc] sm:$0xf] %vm8091_vm2, %v10477_v56 }
 0x3f3   : > { %v4700_v57 = vpop.f32.mrb[96].mxu0  ;;  %v5724_v58 = vpop.f32.mrb[96].mxu1 }
 0x3f4   : > { %v4701_v59 = vadd.f32 %v13118_v23, %v4700_v57  ;;  %v5725_v60 = vadd.f32 %v13118_v23, %v5724_v58  ;;  %v4702_v62 = vpop.f32.mrb[97].mxu0  ;;  %v5726_v63 = vpop.f32.mrb[97].mxu1 }
 0x3f5   : > { %v4703_v2 = vpop.f32.mrb[98].mxu0  ;;  %v5727_v3 = vpop.f32.mrb[98].mxu1  ;;  %v11344_v62 = vld [vmem:[%s11569_s21 + $0xf60] ss:$8 sps:$4 sm:$0xff]  }
 0x3f6   : > { %v10222_v6 = vpack.c.bf16 %v4701_v59, %v4701_v59  ;;  %v10478_v7 = vpack.c.bf16 %v5725_v60, %v5725_v60  ;;  %v4704_v8 = vadd.f32 %v13118_v23, %v4703_v2  ;;  %v5728_v9 = vadd.f32 %v13118_v23, %v5727_v3  ;;  %v4705_v10 = vpop.f32.mrb[99].mxu0  ;;  %v5729_v11 = vpop.f32.mrb[99].mxu1  ;;  %v11341_v60 = vld [vmem:[%s11569_s21 + $0x760] ss:$8 sps:$4 sm:$0xff]   ;;  %v11352_v2 = vld [vmem:[%s11569_s21 + $0xf74] ss:$8 sps:$4 sm:$0xff]  }
 0x3f8   : > { %8268 = vst.msk [vmem:[%s11794_s20 + $0x2c0] sm:$0xf] %vm8091_vm2, %v10222_v6  ;;  %8524 = vst.msk [vmem:[%s11794_s20 + $0x6c0] sm:$0xf] %vm8091_vm2, %v10478_v7  ;;  %v10223_v12 = vpack.c.bf16 %v4704_v8, %v4704_v8  ;;  %v10479_v13 = vpack.c.bf16 %v5728_v9, %v5728_v9  ;;  %4915 = vmatmul.mubr.bf16.gmra.mrb[204].mxu0 %v11323_v0  ;;  %5939 = vmatmul.mubr.bf16.gmra.mrb[204].mxu1 %v11326_v1  ;;  %v11349_v1 = vld [vmem:[%s11569_s21 + $0x774] ss:$8 sps:$4 sm:$0xff]  }
 0x3f9   : > { %9391 = vmatprep.mubr.msk.bf16.mxu0 %vm3189_vm0, %v11331_v4  ;;  %9519 = vmatprep.mubr.msk.bf16.mxu1 %vm3189_vm0, %v11334_v5 }
 0x3fa   : > { %8269 = vst.msk [vmem:[%s11794_s20 + $0x2c4] sm:$0xf] %vm8091_vm2, %v10223_v12  ;;  %8525 = vst.msk [vmem:[%s11794_s20 + $0x6c4] sm:$0xf] %vm8091_vm2, %v10479_v13  ;;  %v13456_v12 = vld [vmem:[#allocation2] ss:$0 sm:$0xff] }
 0x3fb   : > { %v4708_v14 = vpop.f32.mrb[100].mxu0  ;;  %v5732_v15 = vpop.f32.mrb[100].mxu1 }
 0x3fc   : > { %v4709_v16 = vadd.f32 %v13118_v23, %v4708_v14  ;;  %v5733_v17 = vadd.f32 %v13118_v23, %v5732_v15  ;;  %v4710_v18 = vpop.f32.mrb[101].mxu0  ;;  %v5734_v19 = vpop.f32.mrb[101].mxu1 }
 0x3fd   : > { %v4711_v22 = vpop.f32.mrb[102].mxu0  ;;  %v5735_v24 = vpop.f32.mrb[102].mxu1  ;;  %v11350_v18 = vld [vmem:[%s11569_s21 + $0xf70] ss:$8 sps:$4 sm:$0xff]  }
 0x3fe   : > { %v10224_v26 = vpack.c.bf16 %v4709_v16, %v4709_v16  ;;  %v10480_v39 = vpack.c.bf16 %v5733_v17, %v5733_v17  ;;  %v4712_v27 = vadd.f32 %v13118_v23, %v4711_v22  ;;  %v5736_v29 = vadd.f32 %v13118_v23, %v5735_v24  ;;  %v4713_v30 = vpop.f32.mrb[103].mxu0  ;;  %v5737_v31 = vpop.f32.mrb[103].mxu1  ;;  %v11347_v17 = vld [vmem:[%s11569_s21 + $0x770] ss:$8 sps:$4 sm:$0xff]   ;;  %v11358_v22 = vld [vmem:[%s11569_s21 + $0xf84] ss:$8 sps:$4 sm:$0xff]  }
 0x400   : > { %8270 = vst.msk [vmem:[%s11794_s20 + $0x2c8] sm:$0xf] %vm8091_vm2, %v10224_v26  ;;  %8526 = vst.msk [vmem:[%s11794_s20 + $0x6c8] sm:$0xf] %vm8091_vm2, %v10480_v39  ;;  %v10225_v32 = vpack.c.bf16 %v4712_v27, %v4712_v27  ;;  %v10481_v33 = vpack.c.bf16 %v5736_v29, %v5736_v29  ;;  %4923 = vmatmul.mubr.bf16.gmra.mrb[208].mxu0 %v11329_v20  ;;  %5947 = vmatmul.mubr.bf16.gmra.mrb[208].mxu1 %v11332_v21  ;;  %v11355_v21 = vld [vmem:[%s11569_s21 + $0x784] ss:$8 sps:$4 sm:$0xff]  }
 0x401   : > { %9392 = vmatprep.mubr.msk.bf16.mxu0 %vm3189_vm0, %v11337_v28  ;;  %9520 = vmatprep.mubr.msk.bf16.mxu1 %vm3189_vm0, %v11340_v25 }
 0x402   : > { %8271 = vst.msk [vmem:[%s11794_s20 + $0x2cc] sm:$0xf] %vm8091_vm2, %v10225_v32  ;;  %8527 = vst.msk [vmem:[%s11794_s20 + $0x6cc] sm:$0xf] %vm8091_vm2, %v10481_v33 }
 0x403   : > { %v4716_v34 = vpop.f32.mrb[104].mxu0  ;;  %v5740_v35 = vpop.f32.mrb[104].mxu1 }
 0x404   : > { %v4717_v36 = vadd.f32 %v13118_v23, %v4716_v34  ;;  %v5741_v37 = vadd.f32 %v13118_v23, %v5740_v35  ;;  %v4718_v38 = vpop.f32.mrb[105].mxu0  ;;  %v5742_v40 = vpop.f32.mrb[105].mxu1 }
 0x405   : > { %v4719_v42 = vpop.f32.mrb[106].mxu0  ;;  %v5743_v61 = vpop.f32.mrb[106].mxu1  ;;  %v11356_v38 = vld [vmem:[%s11569_s21 + $0xf80] ss:$8 sps:$4 sm:$0xff]  }
 0x406   : > { %v10226_v46 = vpack.c.bf16 %v4717_v36, %v4717_v36  ;;  %v10482_v47 = vpack.c.bf16 %v5741_v37, %v5741_v37  ;;  %v4720_v48 = vadd.f32 %v13118_v23, %v4719_v42  ;;  %v5744_v49 = vadd.f32 %v13118_v23, %v5743_v61  ;;  %v4721_v50 = vpop.f32.mrb[107].mxu0  ;;  %v5745_v51 = vpop.f32.mrb[107].mxu1  ;;  %v11353_v37 = vld [vmem:[%s11569_s21 + $0x780] ss:$8 sps:$4 sm:$0xff]   ;;  %v11364_v42 = vld [vmem:[%s11569_s21 + $0xf94] ss:$8 sps:$4 sm:$0xff]  }
 0x408   : > { %8272 = vst.msk [vmem:[%s11794_s20 + $0x2d0] sm:$0xf] %vm8091_vm2, %v10226_v46  ;;  %8528 = vst.msk [vmem:[%s11794_s20 + $0x6d0] sm:$0xf] %vm8091_vm2, %v10482_v47  ;;  %v10227_v52 = vpack.c.bf16 %v4720_v48, %v4720_v48  ;;  %v10483_v53 = vpack.c.bf16 %v5744_v49, %v5744_v49  ;;  %4931 = vmatmul.mubr.bf16.gmra.mrb[212].mxu0 %v11335_v44  ;;  %5955 = vmatmul.mubr.bf16.gmra.mrb[212].mxu1 %v11338_v41  ;;  %v11361_v41 = vld [vmem:[%s11569_s21 + $0x794] ss:$8 sps:$4 sm:$0xff]  }
 0x409   : > { %9393 = vmatprep.mubr.msk.bf16.mxu0 %vm3189_vm0, %v11343_v43  ;;  %9521 = vmatprep.mubr.msk.bf16.mxu1 %vm3189_vm0, %v11346_v45 }
 0x40a   : > { %8273 = vst.msk [vmem:[%s11794_s20 + $0x2d4] sm:$0xf] %vm8091_vm2, %v10227_v52  ;;  %8529 = vst.msk [vmem:[%s11794_s20 + $0x6d4] sm:$0xf] %vm8091_vm2, %v10483_v53 }
 0x40b   : > { %v4724_v54 = vpop.f32.mrb[108].mxu0  ;;  %v5748_v55 = vpop.f32.mrb[108].mxu1 }
 0x40c   : > { %v4725_v56 = vadd.f32 %v13118_v23, %v4724_v54  ;;  %v5749_v57 = vadd.f32 %v13118_v23, %v5748_v55  ;;  %v4726_v58 = vpop.f32.mrb[109].mxu0  ;;  %v5750_v59 = vpop.f32.mrb[109].mxu1 }
 0x40d   : > { %v4727_v63 = vpop.f32.mrb[110].mxu0  ;;  %v5751_v0 = vpop.f32.mrb[110].mxu1  ;;  %v11362_v58 = vld [vmem:[%s11569_s21 + $0xf90] ss:$8 sps:$4 sm:$0xff]  }
 0x40e   : > { %v10228_v3 = vpack.c.bf16 %v4725_v56, %v4725_v56  ;;  %v10484_v4 = vpack.c.bf16 %v5749_v57, %v5749_v57  ;;  %v4728_v5 = vadd.f32 %v13118_v23, %v4727_v63  ;;  %v5752_v6 = vadd.f32 %v13118_v23, %v5751_v0  ;;  %v4729_v7 = vpop.f32.mrb[111].mxu0  ;;  %v5753_v8 = vpop.f32.mrb[111].mxu1  ;;  %v11359_v57 = vld [vmem:[%s11569_s21 + $0x790] ss:$8 sps:$4 sm:$0xff]   ;;  %v11370_v63 = vld [vmem:[%s11569_s21 + $0xfa4] ss:$8 sps:$4 sm:$0xff]  }
 0x410   : > { %8274 = vst.msk [vmem:[%s11794_s20 + $0x2d8] sm:$0xf] %vm8091_vm2, %v10228_v3  ;;  %8530 = vst.msk [vmem:[%s11794_s20 + $0x6d8] sm:$0xf] %vm8091_vm2, %v10484_v4  ;;  %v10229_v9 = vpack.c.bf16 %v4728_v5, %v4728_v5  ;;  %v10485_v10 = vpack.c.bf16 %v5752_v6, %v5752_v6  ;;  %4939 = vmatmul.mubr.bf16.gmra.mrb[216].mxu0 %v11341_v60  ;;  %5963 = vmatmul.mubr.bf16.gmra.mrb[216].mxu1 %v11344_v62  ;;  %v11367_v62 = vld [vmem:[%s11569_s21 + $0x7a4] ss:$8 sps:$4 sm:$0xff]  }
 0x411   : > { %9394 = vmatprep.mubr.msk.bf16.mxu0 %vm3189_vm0, %v11349_v1  ;;  %9522 = vmatprep.mubr.msk.bf16.mxu1 %vm3189_vm0, %v11352_v2 }
 0x412   : > { %8275 = vst.msk [vmem:[%s11794_s20 + $0x2dc] sm:$0xf] %vm8091_vm2, %v10229_v9  ;;  %8531 = vst.msk [vmem:[%s11794_s20 + $0x6dc] sm:$0xf] %vm8091_vm2, %v10485_v10 }
 0x413   : > { %v4732_v23 = vpop.f32.mrb[112].mxu0  ;;  %v5756_v11 = vpop.f32.mrb[112].mxu1 }
 0x414   : > { %v4733_v13 = vadd.f32 %v13456_v12, %v4732_v23  ;;  %v5757_v14 = vadd.f32 %v13456_v12, %v5756_v11  ;;  %v4734_v15 = vpop.f32.mrb[113].mxu0  ;;  %v5758_v16 = vpop.f32.mrb[113].mxu1 }
 0x415   : > { %v4735_v19 = vpop.f32.mrb[114].mxu0  ;;  %v5759_v20 = vpop.f32.mrb[114].mxu1  ;;  %v11368_v15 = vld [vmem:[%s11569_s21 + $0xfa0] ss:$8 sps:$4 sm:$0xff]  }
 0x416   : > { %v10230_v24 = vpack.c.bf16 %v4733_v13, %v4733_v13  ;;  %v10486_v28 = vpack.c.bf16 %v5757_v14, %v5757_v14  ;;  %v4736_v25 = vadd.f32 %v13456_v12, %v4735_v19  ;;  %v5760_v26 = vadd.f32 %v13456_v12, %v5759_v20  ;;  %v4737_v39 = vpop.f32.mrb[115].mxu0  ;;  %v5761_v27 = vpop.f32.mrb[115].mxu1  ;;  %v11365_v14 = vld [vmem:[%s11569_s21 + $0x7a0] ss:$8 sps:$4 sm:$0xff]   ;;  %v11376_v19 = vld [vmem:[%s11569_s21 + $0xfb4] ss:$8 sps:$4 sm:$0xff]  }
 0x418   : > { %8276 = vst.msk [vmem:[%s11794_s20 + $0x2e0] sm:$0xf] %vm8091_vm2, %v10230_v24  ;;  %8532 = vst.msk [vmem:[%s11794_s20 + $0x6e0] sm:$0xf] %vm8091_vm2, %v10486_v28  ;;  %v10231_v29 = vpack.c.bf16 %v4736_v25, %v4736_v25  ;;  %v10487_v30 = vpack.c.bf16 %v5760_v26, %v5760_v26  ;;  %4947 = vmatmul.mubr.bf16.gmra.mrb[220].mxu0 %v11347_v17  ;;  %5971 = vmatmul.mubr.bf16.gmra.mrb[220].mxu1 %v11350_v18  ;;  %v11373_v18 = vld [vmem:[%s11569_s21 + $0x7b4] ss:$8 sps:$4 sm:$0xff]  }
 0x419   : > { %9395 = vmatprep.mubr.msk.bf16.mxu0 %vm3189_vm0, %v11355_v21  ;;  %9523 = vmatprep.mubr.msk.bf16.mxu1 %vm3189_vm0, %v11358_v22 }
 0x41a   : > { %8277 = vst.msk [vmem:[%s11794_s20 + $0x2e4] sm:$0xf] %vm8091_vm2, %v10231_v29  ;;  %8533 = vst.msk [vmem:[%s11794_s20 + $0x6e4] sm:$0xf] %vm8091_vm2, %v10487_v30 }
 0x41b   : > { %v4740_v31 = vpop.f32.mrb[116].mxu0  ;;  %v5764_v32 = vpop.f32.mrb[116].mxu1 }
 0x41c   : > { %v4741_v33 = vadd.f32 %v13456_v12, %v4740_v31  ;;  %v5765_v34 = vadd.f32 %v13456_v12, %v5764_v32  ;;  %v4742_v35 = vpop.f32.mrb[117].mxu0  ;;  %v5766_v36 = vpop.f32.mrb[117].mxu1 }
 0x41d   : > { %v4743_v40 = vpop.f32.mrb[118].mxu0  ;;  %v5767_v44 = vpop.f32.mrb[118].mxu1  ;;  %v11374_v35 = vld [vmem:[%s11569_s21 + $0xfb0] ss:$8 sps:$4 sm:$0xff]  }
 0x41e   : > { %v10232_v61 = vpack.c.bf16 %v4741_v33, %v4741_v33  ;;  %v10488_v43 = vpack.c.bf16 %v5765_v34, %v5765_v34  ;;  %v4744_v45 = vadd.f32 %v13456_v12, %v4743_v40  ;;  %v5768_v46 = vadd.f32 %v13456_v12, %v5767_v44  ;;  %v4745_v47 = vpop.f32.mrb[119].mxu0  ;;  %v5769_v48 = vpop.f32.mrb[119].mxu1  ;;  %v11371_v34 = vld [vmem:[%s11569_s21 + $0x7b0] ss:$8 sps:$4 sm:$0xff]   ;;  %v11382_v40 = vld [vmem:[%s11569_s21 + $0xfc4] ss:$8 sps:$4 sm:$0xff]  }
 0x420   : > { %8278 = vst.msk [vmem:[%s11794_s20 + $0x2e8] sm:$0xf] %vm8091_vm2, %v10232_v61  ;;  %8534 = vst.msk [vmem:[%s11794_s20 + $0x6e8] sm:$0xf] %vm8091_vm2, %v10488_v43  ;;  %v10233_v49 = vpack.c.bf16 %v4744_v45, %v4744_v45  ;;  %v10489_v50 = vpack.c.bf16 %v5768_v46, %v5768_v46  ;;  %4955 = vmatmul.mubr.bf16.gmra.mrb[224].mxu0 %v11353_v37  ;;  %5979 = vmatmul.mubr.bf16.gmra.mrb[224].mxu1 %v11356_v38  ;;  %v11379_v38 = vld [vmem:[%s11569_s21 + $0x7c4] ss:$8 sps:$4 sm:$0xff]  }
 0x421   : > { %9396 = vmatprep.mubr.msk.bf16.mxu0 %vm3189_vm0, %v11361_v41  ;;  %9524 = vmatprep.mubr.msk.bf16.mxu1 %vm3189_vm0, %v11364_v42 }
 0x422   : > { %8279 = vst.msk [vmem:[%s11794_s20 + $0x2ec] sm:$0xf] %vm8091_vm2, %v10233_v49  ;;  %8535 = vst.msk [vmem:[%s11794_s20 + $0x6ec] sm:$0xf] %vm8091_vm2, %v10489_v50 }
 0x423   : > { %v4748_v51 = vpop.f32.mrb[120].mxu0  ;;  %v5772_v52 = vpop.f32.mrb[120].mxu1 }
 0x424   : > { %v4749_v53 = vadd.f32 %v13456_v12, %v4748_v51  ;;  %v5773_v54 = vadd.f32 %v13456_v12, %v5772_v52  ;;  %v4750_v55 = vpop.f32.mrb[121].mxu0  ;;  %v5774_v56 = vpop.f32.mrb[121].mxu1 }
 0x425   : > { %v4751_v59 = vpop.f32.mrb[122].mxu0  ;;  %v5775_v60 = vpop.f32.mrb[122].mxu1  ;;  %v11380_v55 = vld [vmem:[%s11569_s21 + $0xfc0] ss:$8 sps:$4 sm:$0xff]  }
 0x426   : > { %v10234_v0 = vpack.c.bf16 %v4749_v53, %v4749_v53  ;;  %v10490_v1 = vpack.c.bf16 %v5773_v54, %v5773_v54  ;;  %v4752_v2 = vadd.f32 %v13456_v12, %v4751_v59  ;;  %v5776_v3 = vadd.f32 %v13456_v12, %v5775_v60  ;;  %v4753_v4 = vpop.f32.mrb[123].mxu0  ;;  %v5777_v5 = vpop.f32.mrb[123].mxu1  ;;  %v11377_v54 = vld [vmem:[%s11569_s21 + $0x7c0] ss:$8 sps:$4 sm:$0xff]   ;;  %v11388_v59 = vld [vmem:[%s11569_s21 + $0xfd4] ss:$8 sps:$4 sm:$0xff]  }
 0x428   : > { %8280 = vst.msk [vmem:[%s11794_s20 + $0x2f0] sm:$0xf] %vm8091_vm2, %v10234_v0  ;;  %8536 = vst.msk [vmem:[%s11794_s20 + $0x6f0] sm:$0xf] %vm8091_vm2, %v10490_v1  ;;  %v10235_v6 = vpack.c.bf16 %v4752_v2, %v4752_v2  ;;  %v10491_v7 = vpack.c.bf16 %v5776_v3, %v5776_v3  ;;  %4963 = vmatmul.mubr.bf16.gmra.mrb[228].mxu0 %v11359_v57  ;;  %5987 = vmatmul.mubr.bf16.gmra.mrb[228].mxu1 %v11362_v58  ;;  %v11385_v58 = vld [vmem:[%s11569_s21 + $0x7d4] ss:$8 sps:$4 sm:$0xff]  }
 0x429   : > { %9397 = vmatprep.mubr.msk.bf16.mxu0 %vm3189_vm0, %v11367_v62  ;;  %9525 = vmatprep.mubr.msk.bf16.mxu1 %vm3189_vm0, %v11370_v63 }
 0x42a   : > { %8281 = vst.msk [vmem:[%s11794_s20 + $0x2f4] sm:$0xf] %vm8091_vm2, %v10235_v6  ;;  %8537 = vst.msk [vmem:[%s11794_s20 + $0x6f4] sm:$0xf] %vm8091_vm2, %v10491_v7 }
 0x42b   : > { %v4756_v8 = vpop.f32.mrb[124].mxu0  ;;  %v5780_v9 = vpop.f32.mrb[124].mxu1 }
 0x42c   : > { %v4757_v10 = vadd.f32 %v13456_v12, %v4756_v8  ;;  %v5781_v23 = vadd.f32 %v13456_v12, %v5780_v9  ;;  %v4758_v11 = vpop.f32.mrb[125].mxu0  ;;  %v5782_v13 = vpop.f32.mrb[125].mxu1 }
 0x42d   : > { %v4759_v16 = vpop.f32.mrb[126].mxu0  ;;  %v5783_v17 = vpop.f32.mrb[126].mxu1  ;;  %v11386_v11 = vld [vmem:[%s11569_s21 + $0xfd0] ss:$8 sps:$4 sm:$0xff]  }
 0x42e   : > { %v10236_v20 = vpack.c.bf16 %v4757_v10, %v4757_v10  ;;  %v10492_v21 = vpack.c.bf16 %v5781_v23, %v5781_v23  ;;  %v4760_v22 = vadd.f32 %v13456_v12, %v4759_v16  ;;  %v5784_v24 = vadd.f32 %v13456_v12, %v5783_v17  ;;  %v4761_v28 = vpop.f32.mrb[127].mxu0  ;;  %v5785_v25 = vpop.f32.mrb[127].mxu1  ;;  %v11383_v23 = vld [vmem:[%s11569_s21 + $0x7d0] ss:$8 sps:$4 sm:$0xff]   ;;  %v11394_v16 = vld [vmem:[%s11569_s21 + $0xfe4] ss:$8 sps:$4 sm:$0xff]  }
 0x430   : > { %8282 = vst.msk [vmem:[%s11794_s20 + $0x2f8] sm:$0xf] %vm8091_vm2, %v10236_v20  ;;  %8538 = vst.msk [vmem:[%s11794_s20 + $0x6f8] sm:$0xf] %vm8091_vm2, %v10492_v21  ;;  %v10237_v26 = vpack.c.bf16 %v4760_v22, %v4760_v22  ;;  %v10493_v39 = vpack.c.bf16 %v5784_v24, %v5784_v24  ;;  %4971 = vmatmul.mubr.bf16.gmra.mrb[232].mxu0 %v11365_v14  ;;  %5995 = vmatmul.mubr.bf16.gmra.mrb[232].mxu1 %v11368_v15  ;;  %v11391_v15 = vld [vmem:[%s11569_s21 + $0x7e4] ss:$8 sps:$4 sm:$0xff]  }
 0x431   : > { %9398 = vmatprep.mubr.msk.bf16.mxu0 %vm3189_vm0, %v11373_v18  ;;  %9526 = vmatprep.mubr.msk.bf16.mxu1 %vm3189_vm0, %v11376_v19 }
 0x432   : > { %8283 = vst.msk [vmem:[%s11794_s20 + $0x2fc] sm:$0xf] %vm8091_vm2, %v10237_v26  ;;  %8539 = vst.msk [vmem:[%s11794_s20 + $0x6fc] sm:$0xf] %vm8091_vm2, %v10493_v39 }
 0x433   : > { %v4764_v27 = vpop.f32.mrb[128].mxu0  ;;  %v5788_v29 = vpop.f32.mrb[128].mxu1 }
 0x434   : > { %v4765_v30 = vadd.f32 %v13456_v12, %v4764_v27  ;;  %v5789_v31 = vadd.f32 %v13456_v12, %v5788_v29  ;;  %v4766_v32 = vpop.f32.mrb[129].mxu0  ;;  %v5790_v33 = vpop.f32.mrb[129].mxu1 }
 0x435   : > { %v4767_v36 = vpop.f32.mrb[130].mxu0  ;;  %v5791_v37 = vpop.f32.mrb[130].mxu1  ;;  %v11392_v32 = vld [vmem:[%s11569_s21 + $0xfe0] ss:$8 sps:$4 sm:$0xff]  }
 0x436   : > { %v10238_v44 = vpack.c.bf16 %v4765_v30, %v4765_v30  ;;  %v10494_v41 = vpack.c.bf16 %v5789_v31, %v5789_v31  ;;  %v4768_v42 = vadd.f32 %v13456_v12, %v4767_v36  ;;  %v5792_v61 = vadd.f32 %v13456_v12, %v5791_v37  ;;  %v4769_v43 = vpop.f32.mrb[131].mxu0  ;;  %v5793_v45 = vpop.f32.mrb[131].mxu1  ;;  %v11389_v31 = vld [vmem:[%s11569_s21 + $0x7e0] ss:$8 sps:$4 sm:$0xff]   ;;  %v11400_v36 = vld [vmem:[%s11569_s21 + $0xff4] ss:$8 sps:$4 sm:$0xff]  }
 0x438   : > { %8284 = vst.msk [vmem:[%s11794_s20 + $0x300] sm:$0xf] %vm8091_vm2, %v10238_v44  ;;  %8540 = vst.msk [vmem:[%s11794_s20 + $0x700] sm:$0xf] %vm8091_vm2, %v10494_v41  ;;  %v10239_v46 = vpack.c.bf16 %v4768_v42, %v4768_v42  ;;  %v10495_v47 = vpack.c.bf16 %v5792_v61, %v5792_v61  ;;  %4979 = vmatmul.mubr.bf16.gmra.mrb[236].mxu0 %v11371_v34  ;;  %6003 = vmatmul.mubr.bf16.gmra.mrb[236].mxu1 %v11374_v35  ;;  %v11397_v35 = vld [vmem:[%s11569_s21 + $0x7f4] ss:$8 sps:$4 sm:$0xff]  }
 0x439   : > { %9399 = vmatprep.mubr.msk.bf16.mxu0 %vm3189_vm0, %v11379_v38  ;;  %9527 = vmatprep.mubr.msk.bf16.mxu1 %vm3189_vm0, %v11382_v40 }
 0x43a   : > { %8285 = vst.msk [vmem:[%s11794_s20 + $0x304] sm:$0xf] %vm8091_vm2, %v10239_v46  ;;  %8541 = vst.msk [vmem:[%s11794_s20 + $0x704] sm:$0xf] %vm8091_vm2, %v10495_v47 }
 0x43b   : > { %v4772_v48 = vpop.f32.mrb[132].mxu0  ;;  %v5796_v49 = vpop.f32.mrb[132].mxu1 }
 0x43c   : > { %v4773_v50 = vadd.f32 %v13456_v12, %v4772_v48  ;;  %v5797_v51 = vadd.f32 %v13456_v12, %v5796_v49  ;;  %v4774_v52 = vpop.f32.mrb[133].mxu0  ;;  %v5798_v53 = vpop.f32.mrb[133].mxu1 }
 0x43d   : > { %v4775_v56 = vpop.f32.mrb[134].mxu0  ;;  %v5799_v57 = vpop.f32.mrb[134].mxu1  ;;  %v11398_v52 = vld [vmem:[%s11569_s21 + $0xff0] ss:$8 sps:$4 sm:$0xff]  }
 0x43e   : > { %v10240_v60 = vpack.c.bf16 %v4773_v50, %v4773_v50  ;;  %v10496_v62 = vpack.c.bf16 %v5797_v51, %v5797_v51  ;;  %v4776_v63 = vadd.f32 %v13456_v12, %v4775_v56  ;;  %v5800_v0 = vadd.f32 %v13456_v12, %v5799_v57  ;;  %v4777_v1 = vpop.f32.mrb[135].mxu0  ;;  %v5801_v2 = vpop.f32.mrb[135].mxu1  ;;  %v11395_v51 = vld [vmem:[%s11569_s21 + $0x7f0] ss:$8 sps:$4 sm:$0xff]  }
 0x440   : > { %8286 = vst.msk [vmem:[%s11794_s20 + $0x308] sm:$0xf] %vm8091_vm2, %v10240_v60  ;;  %8542 = vst.msk [vmem:[%s11794_s20 + $0x708] sm:$0xf] %vm8091_vm2, %v10496_v62  ;;  %v10241_v3 = vpack.c.bf16 %v4776_v63, %v4776_v63  ;;  %v10497_v4 = vpack.c.bf16 %v5800_v0, %v5800_v0  ;;  %4987 = vmatmul.mubr.bf16.gmra.mrb[240].mxu0 %v11377_v54  ;;  %6011 = vmatmul.mubr.bf16.gmra.mrb[240].mxu1 %v11380_v55 }
 0x441   : > { %9400 = vmatprep.mubr.msk.bf16.mxu0 %vm3189_vm0, %v11385_v58  ;;  %9528 = vmatprep.mubr.msk.bf16.mxu1 %vm3189_vm0, %v11388_v59 }
 0x442   : > { %8287 = vst.msk [vmem:[%s11794_s20 + $0x30c] sm:$0xf] %vm8091_vm2, %v10241_v3  ;;  %8543 = vst.msk [vmem:[%s11794_s20 + $0x70c] sm:$0xf] %vm8091_vm2, %v10497_v4 }
 0x443   : > { %v4780_v5 = vpop.f32.mrb[136].mxu0  ;;  %v5804_v6 = vpop.f32.mrb[136].mxu1 }
 0x444   : > { %v4781_v7 = vadd.f32 %v13456_v12, %v4780_v5  ;;  %v5805_v8 = vadd.f32 %v13456_v12, %v5804_v6  ;;  %v4782_v9 = vpop.f32.mrb[137].mxu0  ;;  %v5806_v10 = vpop.f32.mrb[137].mxu1 }
 0x445   : > { %v4783_v13 = vpop.f32.mrb[138].mxu0  ;;  %v5807_v14 = vpop.f32.mrb[138].mxu1 }
 0x446   : > { %v10242_v17 = vpack.c.bf16 %v4781_v7, %v4781_v7  ;;  %v10498_v18 = vpack.c.bf16 %v5805_v8, %v5805_v8  ;;  %v4784_v19 = vadd.f32 %v13456_v12, %v4783_v13  ;;  %v5808_v20 = vadd.f32 %v13456_v12, %v5807_v14  ;;  %v4785_v21 = vpop.f32.mrb[139].mxu0  ;;  %v5809_v22 = vpop.f32.mrb[139].mxu1 }
 0x448   : > { %8288 = vst.msk [vmem:[%s11794_s20 + $0x310] sm:$0xf] %vm8091_vm2, %v10242_v17  ;;  %8544 = vst.msk [vmem:[%s11794_s20 + $0x710] sm:$0xf] %vm8091_vm2, %v10498_v18  ;;  %v10243_v24 = vpack.c.bf16 %v4784_v19, %v4784_v19  ;;  %v10499_v28 = vpack.c.bf16 %v5808_v20, %v5808_v20  ;;  %4995 = vmatmul.mubr.bf16.gmra.mrb[244].mxu0 %v11383_v23  ;;  %6019 = vmatmul.mubr.bf16.gmra.mrb[244].mxu1 %v11386_v11 }
 0x449   : > { %9401 = vmatprep.mubr.msk.bf16.mxu0 %vm3189_vm0, %v11391_v15  ;;  %9529 = vmatprep.mubr.msk.bf16.mxu1 %vm3189_vm0, %v11394_v16 }
 0x44a   : > { %8289 = vst.msk [vmem:[%s11794_s20 + $0x314] sm:$0xf] %vm8091_vm2, %v10243_v24  ;;  %8545 = vst.msk [vmem:[%s11794_s20 + $0x714] sm:$0xf] %vm8091_vm2, %v10499_v28 }
 0x44b   : > { %v4788_v25 = vpop.f32.mrb[140].mxu0  ;;  %v5812_v26 = vpop.f32.mrb[140].mxu1 }
 0x44c   : > { %v4789_v39 = vadd.f32 %v13456_v12, %v4788_v25  ;;  %v5813_v27 = vadd.f32 %v13456_v12, %v5812_v26  ;;  %v4790_v29 = vpop.f32.mrb[141].mxu0  ;;  %v5814_v30 = vpop.f32.mrb[141].mxu1 }
 0x44d   : > { %v4791_v33 = vpop.f32.mrb[142].mxu0  ;;  %v5815_v34 = vpop.f32.mrb[142].mxu1 }
 0x44e   : > { %v10244_v37 = vpack.c.bf16 %v4789_v39, %v4789_v39  ;;  %v10500_v38 = vpack.c.bf16 %v5813_v27, %v5813_v27  ;;  %v4792_v40 = vadd.f32 %v13456_v12, %v4791_v33  ;;  %v5816_v44 = vadd.f32 %v13456_v12, %v5815_v34  ;;  %v4793_v41 = vpop.f32.mrb[143].mxu0  ;;  %v5817_v42 = vpop.f32.mrb[143].mxu1 }
 0x450   : > { %8290 = vst.msk [vmem:[%s11794_s20 + $0x318] sm:$0xf] %vm8091_vm2, %v10244_v37  ;;  %8546 = vst.msk [vmem:[%s11794_s20 + $0x718] sm:$0xf] %vm8091_vm2, %v10500_v38  ;;  %v10245_v61 = vpack.c.bf16 %v4792_v40, %v4792_v40  ;;  %v10501_v43 = vpack.c.bf16 %v5816_v44, %v5816_v44  ;;  %5003 = vmatmul.mubr.bf16.gmra.mrb[248].mxu0 %v11389_v31  ;;  %6027 = vmatmul.mubr.bf16.gmra.mrb[248].mxu1 %v11392_v32 }
 0x451   : > { %9402 = vmatprep.mubr.msk.bf16.mxu0 %vm3189_vm0, %v11397_v35  ;;  %9530 = vmatprep.mubr.msk.bf16.mxu1 %vm3189_vm0, %v11400_v36 }
 0x452   : > { %8291 = vst.msk [vmem:[%s11794_s20 + $0x31c] sm:$0xf] %vm8091_vm2, %v10245_v61  ;;  %8547 = vst.msk [vmem:[%s11794_s20 + $0x71c] sm:$0xf] %vm8091_vm2, %v10501_v43 }
 0x453   : > { %v4796_v45 = vpop.f32.mrb[144].mxu0  ;;  %v5820_v46 = vpop.f32.mrb[144].mxu1 }
 0x454   : > { %v4797_v47 = vadd.f32 %v13456_v12, %v4796_v45  ;;  %v5821_v48 = vadd.f32 %v13456_v12, %v5820_v46  ;;  %v4798_v49 = vpop.f32.mrb[145].mxu0  ;;  %v5822_v50 = vpop.f32.mrb[145].mxu1 }
 0x455   : > { %v4799_v53 = vpop.f32.mrb[146].mxu0  ;;  %v5823_v54 = vpop.f32.mrb[146].mxu1 }
 0x456   : > { %v10246_v55 = vpack.c.bf16 %v4797_v47, %v4797_v47  ;;  %v10502_v56 = vpack.c.bf16 %v5821_v48, %v5821_v48  ;;  %v4800_v57 = vadd.f32 %v13456_v12, %v4799_v53  ;;  %v5824_v58 = vadd.f32 %v13456_v12, %v5823_v54  ;;  %v4801_v59 = vpop.f32.mrb[147].mxu0  ;;  %v5825_v60 = vpop.f32.mrb[147].mxu1 }
 0x458   : > { %8292 = vst.msk [vmem:[%s11794_s20 + $0x320] sm:$0xf] %vm8091_vm2, %v10246_v55  ;;  %8548 = vst.msk [vmem:[%s11794_s20 + $0x720] sm:$0xf] %vm8091_vm2, %v10502_v56  ;;  %v10247_v62 = vpack.c.bf16 %v4800_v57, %v4800_v57  ;;  %v10503_v63 = vpack.c.bf16 %v5824_v58, %v5824_v58  ;;  %5011 = vmatmul.mubr.bf16.gmra.mrb[252].mxu0 %v11395_v51  ;;  %6035 = vmatmul.mubr.bf16.gmra.mrb[252].mxu1 %v11398_v52 }
 0x45a   : > { %8293 = vst.msk [vmem:[%s11794_s20 + $0x324] sm:$0xf] %vm8091_vm2, %v10247_v62  ;;  %8549 = vst.msk [vmem:[%s11794_s20 + $0x724] sm:$0xf] %vm8091_vm2, %v10503_v63 }
 0x45b   : > { %v4804_v0 = vpop.f32.mrb[148].mxu0  ;;  %v5828_v1 = vpop.f32.mrb[148].mxu1 }
 0x45c   : > { %v4805_v2 = vadd.f32 %v13456_v12, %v4804_v0  ;;  %v5829_v3 = vadd.f32 %v13456_v12, %v5828_v1  ;;  %v4806_v4 = vpop.f32.mrb[149].mxu0  ;;  %v5830_v5 = vpop.f32.mrb[149].mxu1 }
 0x45d   : > { %v4807_v6 = vpop.f32.mrb[150].mxu0  ;;  %v5831_v7 = vpop.f32.mrb[150].mxu1 }
 0x45e   : > { %v10248_v8 = vpack.c.bf16 %v4805_v2, %v4805_v2  ;;  %v10504_v9 = vpack.c.bf16 %v5829_v3, %v5829_v3  ;;  %v4808_v10 = vadd.f32 %v13456_v12, %v4807_v6  ;;  %v5832_v23 = vadd.f32 %v13456_v12, %v5831_v7  ;;  %v4809_v11 = vpop.f32.mrb[151].mxu0  ;;  %v5833_v13 = vpop.f32.mrb[151].mxu1 }
 0x460   : > { %8294 = vst.msk [vmem:[%s11794_s20 + $0x328] sm:$0xf] %vm8091_vm2, %v10248_v8  ;;  %8550 = vst.msk [vmem:[%s11794_s20 + $0x728] sm:$0xf] %vm8091_vm2, %v10504_v9  ;;  %v10249_v14 = vpack.c.bf16 %v4808_v10, %v4808_v10  ;;  %v10505_v15 = vpack.c.bf16 %v5832_v23, %v5832_v23 }
 0x462   : > { %8295 = vst.msk [vmem:[%s11794_s20 + $0x32c] sm:$0xf] %vm8091_vm2, %v10249_v14  ;;  %8551 = vst.msk [vmem:[%s11794_s20 + $0x72c] sm:$0xf] %vm8091_vm2, %v10505_v15 }
 0x463   : > { %v4812_v16 = vpop.f32.mrb[152].mxu0  ;;  %v5836_v17 = vpop.f32.mrb[152].mxu1 }
 0x464   : > { %v4813_v18 = vadd.f32 %v13456_v12, %v4812_v16  ;;  %v5837_v19 = vadd.f32 %v13456_v12, %v5836_v17  ;;  %v4814_v20 = vpop.f32.mrb[153].mxu0  ;;  %v5838_v21 = vpop.f32.mrb[153].mxu1 }
 0x465   : > { %v4815_v22 = vpop.f32.mrb[154].mxu0  ;;  %v5839_v24 = vpop.f32.mrb[154].mxu1 }
 0x466   : > { %v10250_v28 = vpack.c.bf16 %v4813_v18, %v4813_v18  ;;  %v10506_v25 = vpack.c.bf16 %v5837_v19, %v5837_v19  ;;  %v4816_v26 = vadd.f32 %v13456_v12, %v4815_v22  ;;  %v5840_v39 = vadd.f32 %v13456_v12, %v5839_v24  ;;  %v4817_v27 = vpop.f32.mrb[155].mxu0  ;;  %v5841_v29 = vpop.f32.mrb[155].mxu1 }
 0x468   : > { %8296 = vst.msk [vmem:[%s11794_s20 + $0x330] sm:$0xf] %vm8091_vm2, %v10250_v28  ;;  %8552 = vst.msk [vmem:[%s11794_s20 + $0x730] sm:$0xf] %vm8091_vm2, %v10506_v25  ;;  %v10251_v30 = vpack.c.bf16 %v4816_v26, %v4816_v26  ;;  %v10507_v31 = vpack.c.bf16 %v5840_v39, %v5840_v39 }
 0x46a   : > { %8297 = vst.msk [vmem:[%s11794_s20 + $0x334] sm:$0xf] %vm8091_vm2, %v10251_v30  ;;  %8553 = vst.msk [vmem:[%s11794_s20 + $0x734] sm:$0xf] %vm8091_vm2, %v10507_v31 }
 0x46b   : > { %v4820_v32 = vpop.f32.mrb[156].mxu0  ;;  %v5844_v33 = vpop.f32.mrb[156].mxu1 }
 0x46c   : > { %v4821_v34 = vadd.f32 %v13456_v12, %v4820_v32  ;;  %v5845_v35 = vadd.f32 %v13456_v12, %v5844_v33  ;;  %v4822_v36 = vpop.f32.mrb[157].mxu0  ;;  %v5846_v37 = vpop.f32.mrb[157].mxu1 }
 0x46d   : > { %v4823_v38 = vpop.f32.mrb[158].mxu0  ;;  %v5847_v40 = vpop.f32.mrb[158].mxu1 }
 0x46e   : > { %v10252_v44 = vpack.c.bf16 %v4821_v34, %v4821_v34  ;;  %v10508_v41 = vpack.c.bf16 %v5845_v35, %v5845_v35  ;;  %v4824_v42 = vadd.f32 %v13456_v12, %v4823_v38  ;;  %v5848_v61 = vadd.f32 %v13456_v12, %v5847_v40  ;;  %v4825_v43 = vpop.f32.mrb[159].mxu0  ;;  %v5849_v45 = vpop.f32.mrb[159].mxu1 }
 0x470   : > { %8298 = vst.msk [vmem:[%s11794_s20 + $0x338] sm:$0xf] %vm8091_vm2, %v10252_v44  ;;  %8554 = vst.msk [vmem:[%s11794_s20 + $0x738] sm:$0xf] %vm8091_vm2, %v10508_v41  ;;  %v10253_v46 = vpack.c.bf16 %v4824_v42, %v4824_v42  ;;  %v10509_v47 = vpack.c.bf16 %v5848_v61, %v5848_v61 }
 0x472   : > { %8299 = vst.msk [vmem:[%s11794_s20 + $0x33c] sm:$0xf] %vm8091_vm2, %v10253_v46  ;;  %8555 = vst.msk [vmem:[%s11794_s20 + $0x73c] sm:$0xf] %vm8091_vm2, %v10509_v47 }
 0x473   : > { %v4828_v48 = vpop.f32.mrb[160].mxu0  ;;  %v5852_v49 = vpop.f32.mrb[160].mxu1 }
 0x474   : > { %v4829_v50 = vadd.f32 %v13456_v12, %v4828_v48  ;;  %v5853_v51 = vadd.f32 %v13456_v12, %v5852_v49  ;;  %v4830_v52 = vpop.f32.mrb[161].mxu0  ;;  %v5854_v53 = vpop.f32.mrb[161].mxu1 }
 0x475   : > { %v4831_v54 = vpop.f32.mrb[162].mxu0  ;;  %v5855_v55 = vpop.f32.mrb[162].mxu1 }
 0x476   : > { %v10254_v56 = vpack.c.bf16 %v4829_v50, %v4829_v50  ;;  %v10510_v57 = vpack.c.bf16 %v5853_v51, %v5853_v51  ;;  %v4832_v58 = vadd.f32 %v13456_v12, %v4831_v54  ;;  %v5856_v59 = vadd.f32 %v13456_v12, %v5855_v55  ;;  %v4833_v60 = vpop.f32.mrb[163].mxu0  ;;  %v5857_v62 = vpop.f32.mrb[163].mxu1 }
 0x478   : > { %8300 = vst.msk [vmem:[%s11794_s20 + $0x340] sm:$0xf] %vm8091_vm2, %v10254_v56  ;;  %8556 = vst.msk [vmem:[%s11794_s20 + $0x740] sm:$0xf] %vm8091_vm2, %v10510_v57  ;;  %v10255_v63 = vpack.c.bf16 %v4832_v58, %v4832_v58  ;;  %v10511_v0 = vpack.c.bf16 %v5856_v59, %v5856_v59 }
 0x47a   : > { %8301 = vst.msk [vmem:[%s11794_s20 + $0x344] sm:$0xf] %vm8091_vm2, %v10255_v63  ;;  %8557 = vst.msk [vmem:[%s11794_s20 + $0x744] sm:$0xf] %vm8091_vm2, %v10511_v0 }
 0x47b   : > { %v4836_v1 = vpop.f32.mrb[164].mxu0  ;;  %v5860_v2 = vpop.f32.mrb[164].mxu1 }
 0x47c   : > { %v4837_v3 = vadd.f32 %v13456_v12, %v4836_v1  ;;  %v5861_v4 = vadd.f32 %v13456_v12, %v5860_v2  ;;  %v4838_v5 = vpop.f32.mrb[165].mxu0  ;;  %v5862_v6 = vpop.f32.mrb[165].mxu1 }
 0x47d   : > { %v4839_v7 = vpop.f32.mrb[166].mxu0  ;;  %v5863_v8 = vpop.f32.mrb[166].mxu1 }
 0x47e   : > { %v10256_v9 = vpack.c.bf16 %v4837_v3, %v4837_v3  ;;  %v10512_v10 = vpack.c.bf16 %v5861_v4, %v5861_v4  ;;  %v4840_v23 = vadd.f32 %v13456_v12, %v4839_v7  ;;  %v5864_v11 = vadd.f32 %v13456_v12, %v5863_v8  ;;  %v4841_v13 = vpop.f32.mrb[167].mxu0  ;;  %v5865_v14 = vpop.f32.mrb[167].mxu1 }
 0x480   : > { %8302 = vst.msk [vmem:[%s11794_s20 + $0x348] sm:$0xf] %vm8091_vm2, %v10256_v9  ;;  %8558 = vst.msk [vmem:[%s11794_s20 + $0x748] sm:$0xf] %vm8091_vm2, %v10512_v10  ;;  %v10257_v15 = vpack.c.bf16 %v4840_v23, %v4840_v23  ;;  %v10513_v16 = vpack.c.bf16 %v5864_v11, %v5864_v11 }
 0x482   : > { %8303 = vst.msk [vmem:[%s11794_s20 + $0x34c] sm:$0xf] %vm8091_vm2, %v10257_v15  ;;  %8559 = vst.msk [vmem:[%s11794_s20 + $0x74c] sm:$0xf] %vm8091_vm2, %v10513_v16 }
 0x483   : > { %v4844_v17 = vpop.f32.mrb[168].mxu0  ;;  %v5868_v18 = vpop.f32.mrb[168].mxu1 }
 0x484   : > { %v4845_v19 = vadd.f32 %v13456_v12, %v4844_v17  ;;  %v5869_v20 = vadd.f32 %v13456_v12, %v5868_v18  ;;  %v4846_v21 = vpop.f32.mrb[169].mxu0  ;;  %v5870_v22 = vpop.f32.mrb[169].mxu1 }
 0x485   : > { %v4847_v24 = vpop.f32.mrb[170].mxu0  ;;  %v5871_v28 = vpop.f32.mrb[170].mxu1 }
 0x486   : > { %v10258_v25 = vpack.c.bf16 %v4845_v19, %v4845_v19  ;;  %v10514_v26 = vpack.c.bf16 %v5869_v20, %v5869_v20  ;;  %v4848_v39 = vadd.f32 %v13456_v12, %v4847_v24  ;;  %v5872_v27 = vadd.f32 %v13456_v12, %v5871_v28  ;;  %v4849_v29 = vpop.f32.mrb[171].mxu0  ;;  %v5873_v30 = vpop.f32.mrb[171].mxu1 }
 0x488   : > { %8304 = vst.msk [vmem:[%s11794_s20 + $0x350] sm:$0xf] %vm8091_vm2, %v10258_v25  ;;  %8560 = vst.msk [vmem:[%s11794_s20 + $0x750] sm:$0xf] %vm8091_vm2, %v10514_v26  ;;  %v10259_v31 = vpack.c.bf16 %v4848_v39, %v4848_v39  ;;  %v10515_v32 = vpack.c.bf16 %v5872_v27, %v5872_v27 }
 0x48a   : > { %8305 = vst.msk [vmem:[%s11794_s20 + $0x354] sm:$0xf] %vm8091_vm2, %v10259_v31  ;;  %8561 = vst.msk [vmem:[%s11794_s20 + $0x754] sm:$0xf] %vm8091_vm2, %v10515_v32 }
 0x48b   : > { %v4852_v33 = vpop.f32.mrb[172].mxu0  ;;  %v5876_v34 = vpop.f32.mrb[172].mxu1 }
 0x48c   : > { %v4853_v35 = vadd.f32 %v13456_v12, %v4852_v33  ;;  %v5877_v36 = vadd.f32 %v13456_v12, %v5876_v34  ;;  %v4854_v37 = vpop.f32.mrb[173].mxu0  ;;  %v5878_v38 = vpop.f32.mrb[173].mxu1 }
 0x48d   : > { %v4855_v40 = vpop.f32.mrb[174].mxu0  ;;  %v5879_v44 = vpop.f32.mrb[174].mxu1 }
 0x48e   : > { %v10260_v41 = vpack.c.bf16 %v4853_v35, %v4853_v35  ;;  %v10516_v42 = vpack.c.bf16 %v5877_v36, %v5877_v36  ;;  %v4856_v61 = vadd.f32 %v13456_v12, %v4855_v40  ;;  %v5880_v43 = vadd.f32 %v13456_v12, %v5879_v44  ;;  %v4857_v45 = vpop.f32.mrb[175].mxu0  ;;  %v5881_v46 = vpop.f32.mrb[175].mxu1 }
 0x490   : > { %8306 = vst.msk [vmem:[%s11794_s20 + $0x358] sm:$0xf] %vm8091_vm2, %v10260_v41  ;;  %8562 = vst.msk [vmem:[%s11794_s20 + $0x758] sm:$0xf] %vm8091_vm2, %v10516_v42  ;;  %v10261_v47 = vpack.c.bf16 %v4856_v61, %v4856_v61  ;;  %v10517_v48 = vpack.c.bf16 %v5880_v43, %v5880_v43 }
 0x492   : > { %8307 = vst.msk [vmem:[%s11794_s20 + $0x35c] sm:$0xf] %vm8091_vm2, %v10261_v47  ;;  %8563 = vst.msk [vmem:[%s11794_s20 + $0x75c] sm:$0xf] %vm8091_vm2, %v10517_v48 }
 0x493   : > { %v4860_v49 = vpop.f32.mrb[176].mxu0  ;;  %v5884_v50 = vpop.f32.mrb[176].mxu1 }
 0x494   : > { %v4861_v51 = vadd.f32 %v13456_v12, %v4860_v49  ;;  %v5885_v52 = vadd.f32 %v13456_v12, %v5884_v50  ;;  %v4862_v53 = vpop.f32.mrb[177].mxu0  ;;  %v5886_v54 = vpop.f32.mrb[177].mxu1 }
 0x495   : > { %v4863_v55 = vpop.f32.mrb[178].mxu0  ;;  %v5887_v56 = vpop.f32.mrb[178].mxu1 }
 0x496   : > { %v10262_v57 = vpack.c.bf16 %v4861_v51, %v4861_v51  ;;  %v10518_v58 = vpack.c.bf16 %v5885_v52, %v5885_v52  ;;  %v4864_v59 = vadd.f32 %v13456_v12, %v4863_v55  ;;  %v5888_v60 = vadd.f32 %v13456_v12, %v5887_v56  ;;  %v4865_v62 = vpop.f32.mrb[179].mxu0  ;;  %v5889_v63 = vpop.f32.mrb[179].mxu1 }
 0x498   : > { %8308 = vst.msk [vmem:[%s11794_s20 + $0x360] sm:$0xf] %vm8091_vm2, %v10262_v57  ;;  %8564 = vst.msk [vmem:[%s11794_s20 + $0x760] sm:$0xf] %vm8091_vm2, %v10518_v58  ;;  %v10263_v0 = vpack.c.bf16 %v4864_v59, %v4864_v59  ;;  %v10519_v1 = vpack.c.bf16 %v5888_v60, %v5888_v60 }
 0x49a   : > { %8309 = vst.msk [vmem:[%s11794_s20 + $0x364] sm:$0xf] %vm8091_vm2, %v10263_v0  ;;  %8565 = vst.msk [vmem:[%s11794_s20 + $0x764] sm:$0xf] %vm8091_vm2, %v10519_v1 }
 0x49b   : > { %v4868_v2 = vpop.f32.mrb[180].mxu0  ;;  %v5892_v3 = vpop.f32.mrb[180].mxu1 }
 0x49c   : > { %v4869_v4 = vadd.f32 %v13456_v12, %v4868_v2  ;;  %v5893_v5 = vadd.f32 %v13456_v12, %v5892_v3  ;;  %v4870_v6 = vpop.f32.mrb[181].mxu0  ;;  %v5894_v7 = vpop.f32.mrb[181].mxu1 }
 0x49d   : > { %v4871_v8 = vpop.f32.mrb[182].mxu0  ;;  %v5895_v9 = vpop.f32.mrb[182].mxu1 }
 0x49e   : > { %v10264_v10 = vpack.c.bf16 %v4869_v4, %v4869_v4  ;;  %v10520_v23 = vpack.c.bf16 %v5893_v5, %v5893_v5  ;;  %v4872_v11 = vadd.f32 %v13456_v12, %v4871_v8  ;;  %v5896_v13 = vadd.f32 %v13456_v12, %v5895_v9  ;;  %v4873_v14 = vpop.f32.mrb[183].mxu0  ;;  %v5897_v15 = vpop.f32.mrb[183].mxu1 }
 0x4a0   : > { %8310 = vst.msk [vmem:[%s11794_s20 + $0x368] sm:$0xf] %vm8091_vm2, %v10264_v10  ;;  %8566 = vst.msk [vmem:[%s11794_s20 + $0x768] sm:$0xf] %vm8091_vm2, %v10520_v23  ;;  %v10265_v16 = vpack.c.bf16 %v4872_v11, %v4872_v11  ;;  %v10521_v17 = vpack.c.bf16 %v5896_v13, %v5896_v13 }
 0x4a2   : > { %8311 = vst.msk [vmem:[%s11794_s20 + $0x36c] sm:$0xf] %vm8091_vm2, %v10265_v16  ;;  %8567 = vst.msk [vmem:[%s11794_s20 + $0x76c] sm:$0xf] %vm8091_vm2, %v10521_v17 }
 0x4a3   : > { %v4876_v18 = vpop.f32.mrb[184].mxu0  ;;  %v5900_v19 = vpop.f32.mrb[184].mxu1 }
 0x4a4   : > { %v4877_v20 = vadd.f32 %v13456_v12, %v4876_v18  ;;  %v5901_v21 = vadd.f32 %v13456_v12, %v5900_v19  ;;  %v4878_v22 = vpop.f32.mrb[185].mxu0  ;;  %v5902_v24 = vpop.f32.mrb[185].mxu1 }
 0x4a5   : > { %v4879_v28 = vpop.f32.mrb[186].mxu0  ;;  %v5903_v25 = vpop.f32.mrb[186].mxu1 }
 0x4a6   : > { %v10266_v26 = vpack.c.bf16 %v4877_v20, %v4877_v20  ;;  %v10522_v39 = vpack.c.bf16 %v5901_v21, %v5901_v21  ;;  %v4880_v27 = vadd.f32 %v13456_v12, %v4879_v28  ;;  %v5904_v29 = vadd.f32 %v13456_v12, %v5903_v25  ;;  %v4881_v30 = vpop.f32.mrb[187].mxu0  ;;  %v5905_v31 = vpop.f32.mrb[187].mxu1 }
 0x4a8   : > { %8312 = vst.msk [vmem:[%s11794_s20 + $0x370] sm:$0xf] %vm8091_vm2, %v10266_v26  ;;  %8568 = vst.msk [vmem:[%s11794_s20 + $0x770] sm:$0xf] %vm8091_vm2, %v10522_v39  ;;  %v10267_v32 = vpack.c.bf16 %v4880_v27, %v4880_v27  ;;  %v10523_v33 = vpack.c.bf16 %v5904_v29, %v5904_v29  ;;  %v13774_v29 = vld [vmem:[#allocation2] ss:$0 sm:$0xff] }
 0x4aa   : > { %8313 = vst.msk [vmem:[%s11794_s20 + $0x374] sm:$0xf] %vm8091_vm2, %v10267_v32  ;;  %8569 = vst.msk [vmem:[%s11794_s20 + $0x774] sm:$0xf] %vm8091_vm2, %v10523_v33 }
 0x4ab   : > { %v4884_v34 = vpop.f32.mrb[188].mxu0  ;;  %v5908_v35 = vpop.f32.mrb[188].mxu1 }
 0x4ac   : > { %v4885_v36 = vadd.f32 %v13456_v12, %v4884_v34  ;;  %v5909_v37 = vadd.f32 %v13456_v12, %v5908_v35  ;;  %v4886_v38 = vpop.f32.mrb[189].mxu0  ;;  %v5910_v40 = vpop.f32.mrb[189].mxu1 }
 0x4ad   : > { %v4887_v44 = vpop.f32.mrb[190].mxu0  ;;  %v5911_v41 = vpop.f32.mrb[190].mxu1 }
 0x4ae   : > { %v10268_v42 = vpack.c.bf16 %v4885_v36, %v4885_v36  ;;  %v10524_v61 = vpack.c.bf16 %v5909_v37, %v5909_v37  ;;  %v4888_v43 = vadd.f32 %v13456_v12, %v4887_v44  ;;  %v5912_v45 = vadd.f32 %v13456_v12, %v5911_v41  ;;  %v4889_v46 = vpop.f32.mrb[191].mxu0  ;;  %v5913_v47 = vpop.f32.mrb[191].mxu1 }
 0x4b0   : > { %8314 = vst.msk [vmem:[%s11794_s20 + $0x378] sm:$0xf] %vm8091_vm2, %v10268_v42  ;;  %8570 = vst.msk [vmem:[%s11794_s20 + $0x778] sm:$0xf] %vm8091_vm2, %v10524_v61  ;;  %v10269_v48 = vpack.c.bf16 %v4888_v43, %v4888_v43  ;;  %v10525_v49 = vpack.c.bf16 %v5912_v45, %v5912_v45 }
 0x4b2   : > { %8315 = vst.msk [vmem:[%s11794_s20 + $0x37c] sm:$0xf] %vm8091_vm2, %v10269_v48  ;;  %8571 = vst.msk [vmem:[%s11794_s20 + $0x77c] sm:$0xf] %vm8091_vm2, %v10525_v49 }
 0x4b3   : > { %v4892_v50 = vpop.f32.mrb[192].mxu0  ;;  %v5916_v51 = vpop.f32.mrb[192].mxu1 }
 0x4b4   : > { %v4893_v52 = vadd.f32 %v13456_v12, %v4892_v50  ;;  %v5917_v53 = vadd.f32 %v13456_v12, %v5916_v51  ;;  %v4894_v54 = vpop.f32.mrb[193].mxu0  ;;  %v5918_v55 = vpop.f32.mrb[193].mxu1 }
 0x4b5   : > { %v4895_v56 = vpop.f32.mrb[194].mxu0  ;;  %v5919_v57 = vpop.f32.mrb[194].mxu1 }
 0x4b6   : > { %v10270_v58 = vpack.c.bf16 %v4893_v52, %v4893_v52  ;;  %v10526_v59 = vpack.c.bf16 %v5917_v53, %v5917_v53  ;;  %v4896_v60 = vadd.f32 %v13456_v12, %v4895_v56  ;;  %v5920_v62 = vadd.f32 %v13456_v12, %v5919_v57  ;;  %v4897_v63 = vpop.f32.mrb[195].mxu0  ;;  %v5921_v0 = vpop.f32.mrb[195].mxu1 }
 0x4b8   : > { %8316 = vst.msk [vmem:[%s11794_s20 + $0x380] sm:$0xf] %vm8091_vm2, %v10270_v58  ;;  %8572 = vst.msk [vmem:[%s11794_s20 + $0x780] sm:$0xf] %vm8091_vm2, %v10526_v59  ;;  %v10271_v1 = vpack.c.bf16 %v4896_v60, %v4896_v60  ;;  %v10527_v2 = vpack.c.bf16 %v5920_v62, %v5920_v62 }
 0x4ba   : > { %8317 = vst.msk [vmem:[%s11794_s20 + $0x384] sm:$0xf] %vm8091_vm2, %v10271_v1  ;;  %8573 = vst.msk [vmem:[%s11794_s20 + $0x784] sm:$0xf] %vm8091_vm2, %v10527_v2 }
 0x4bb   : > { %v4900_v3 = vpop.f32.mrb[196].mxu0  ;;  %v5924_v4 = vpop.f32.mrb[196].mxu1 }
 0x4bc   : > { %v4901_v5 = vadd.f32 %v13456_v12, %v4900_v3  ;;  %v5925_v6 = vadd.f32 %v13456_v12, %v5924_v4  ;;  %v4902_v7 = vpop.f32.mrb[197].mxu0  ;;  %v5926_v8 = vpop.f32.mrb[197].mxu1 }
 0x4bd   : > { %v4903_v9 = vpop.f32.mrb[198].mxu0  ;;  %v5927_v10 = vpop.f32.mrb[198].mxu1 }
 0x4be   : > { %v10272_v23 = vpack.c.bf16 %v4901_v5, %v4901_v5  ;;  %v10528_v11 = vpack.c.bf16 %v5925_v6, %v5925_v6  ;;  %v4904_v13 = vadd.f32 %v13456_v12, %v4903_v9  ;;  %v5928_v14 = vadd.f32 %v13456_v12, %v5927_v10  ;;  %v4905_v15 = vpop.f32.mrb[199].mxu0  ;;  %v5929_v16 = vpop.f32.mrb[199].mxu1 }
 0x4c0   : > { %8318 = vst.msk [vmem:[%s11794_s20 + $0x388] sm:$0xf] %vm8091_vm2, %v10272_v23  ;;  %8574 = vst.msk [vmem:[%s11794_s20 + $0x788] sm:$0xf] %vm8091_vm2, %v10528_v11  ;;  %v10273_v17 = vpack.c.bf16 %v4904_v13, %v4904_v13  ;;  %v10529_v18 = vpack.c.bf16 %v5928_v14, %v5928_v14 }
 0x4c2   : > { %8319 = vst.msk [vmem:[%s11794_s20 + $0x38c] sm:$0xf] %vm8091_vm2, %v10273_v17  ;;  %8575 = vst.msk [vmem:[%s11794_s20 + $0x78c] sm:$0xf] %vm8091_vm2, %v10529_v18 }
 0x4c3   : > { %v4908_v19 = vpop.f32.mrb[200].mxu0  ;;  %v5932_v20 = vpop.f32.mrb[200].mxu1 }
 0x4c4   : > { %v4909_v21 = vadd.f32 %v13456_v12, %v4908_v19  ;;  %v5933_v22 = vadd.f32 %v13456_v12, %v5932_v20  ;;  %v4910_v24 = vpop.f32.mrb[201].mxu0  ;;  %v5934_v28 = vpop.f32.mrb[201].mxu1 }
 0x4c5   : > { %v4911_v25 = vpop.f32.mrb[202].mxu0  ;;  %v5935_v26 = vpop.f32.mrb[202].mxu1 }
 0x4c6   : > { %v10274_v39 = vpack.c.bf16 %v4909_v21, %v4909_v21  ;;  %v10530_v27 = vpack.c.bf16 %v5933_v22, %v5933_v22  ;;  %v4912_v30 = vadd.f32 %v13774_v29, %v4911_v25  ;;  %v5936_v31 = vadd.f32 %v13774_v29, %v5935_v26  ;;  %v4913_v32 = vpop.f32.mrb[203].mxu0  ;;  %v5937_v33 = vpop.f32.mrb[203].mxu1 }
 0x4c8   : > { %8320 = vst.msk [vmem:[%s11794_s20 + $0x390] sm:$0xf] %vm8091_vm2, %v10274_v39  ;;  %8576 = vst.msk [vmem:[%s11794_s20 + $0x790] sm:$0xf] %vm8091_vm2, %v10530_v27  ;;  %v10275_v12 = vpack.c.bf16 %v4912_v30, %v4912_v30  ;;  %v10531_v34 = vpack.c.bf16 %v5936_v31, %v5936_v31 }
 0x4ca   : > { %8321 = vst.msk [vmem:[%s11794_s20 + $0x394] sm:$0xf] %vm8091_vm2, %v10275_v12  ;;  %8577 = vst.msk [vmem:[%s11794_s20 + $0x794] sm:$0xf] %vm8091_vm2, %v10531_v34 }
 0x4cb   : > { %v4916_v35 = vpop.f32.mrb[204].mxu0  ;;  %v5940_v36 = vpop.f32.mrb[204].mxu1 }
 0x4cc   : > { %v4917_v37 = vadd.f32 %v13774_v29, %v4916_v35  ;;  %v5941_v38 = vadd.f32 %v13774_v29, %v5940_v36  ;;  %v4918_v40 = vpop.f32.mrb[205].mxu0  ;;  %v5942_v44 = vpop.f32.mrb[205].mxu1 }
 0x4cd   : > { %v4919_v41 = vpop.f32.mrb[206].mxu0  ;;  %v5943_v42 = vpop.f32.mrb[206].mxu1 }
 0x4ce   : > { %v10276_v61 = vpack.c.bf16 %v4917_v37, %v4917_v37  ;;  %v10532_v43 = vpack.c.bf16 %v5941_v38, %v5941_v38  ;;  %v4920_v45 = vadd.f32 %v13774_v29, %v4919_v41  ;;  %v5944_v46 = vadd.f32 %v13774_v29, %v5943_v42  ;;  %v4921_v47 = vpop.f32.mrb[207].mxu0  ;;  %v5945_v48 = vpop.f32.mrb[207].mxu1 }
 0x4d0   : > { %8322 = vst.msk [vmem:[%s11794_s20 + $0x398] sm:$0xf] %vm8091_vm2, %v10276_v61  ;;  %8578 = vst.msk [vmem:[%s11794_s20 + $0x798] sm:$0xf] %vm8091_vm2, %v10532_v43  ;;  %v10277_v49 = vpack.c.bf16 %v4920_v45, %v4920_v45  ;;  %v10533_v50 = vpack.c.bf16 %v5944_v46, %v5944_v46 }
 0x4d2   : > { %8323 = vst.msk [vmem:[%s11794_s20 + $0x39c] sm:$0xf] %vm8091_vm2, %v10277_v49  ;;  %8579 = vst.msk [vmem:[%s11794_s20 + $0x79c] sm:$0xf] %vm8091_vm2, %v10533_v50 }
 0x4d3   : > { %v4924_v51 = vpop.f32.mrb[208].mxu0  ;;  %v5948_v52 = vpop.f32.mrb[208].mxu1 }
 0x4d4   : > { %v4925_v53 = vadd.f32 %v13774_v29, %v4924_v51  ;;  %v5949_v54 = vadd.f32 %v13774_v29, %v5948_v52  ;;  %v4926_v55 = vpop.f32.mrb[209].mxu0  ;;  %v5950_v56 = vpop.f32.mrb[209].mxu1 }
 0x4d5   : > { %v4927_v57 = vpop.f32.mrb[210].mxu0  ;;  %v5951_v58 = vpop.f32.mrb[210].mxu1 }
 0x4d6   : > { %v10278_v59 = vpack.c.bf16 %v4925_v53, %v4925_v53  ;;  %v10534_v60 = vpack.c.bf16 %v5949_v54, %v5949_v54  ;;  %v4928_v62 = vadd.f32 %v13774_v29, %v4927_v57  ;;  %v5952_v63 = vadd.f32 %v13774_v29, %v5951_v58  ;;  %v4929_v0 = vpop.f32.mrb[211].mxu0  ;;  %v5953_v1 = vpop.f32.mrb[211].mxu1 }
 0x4d8   : > { %8324 = vst.msk [vmem:[%s11794_s20 + $0x3a0] sm:$0xf] %vm8091_vm2, %v10278_v59  ;;  %8580 = vst.msk [vmem:[%s11794_s20 + $0x7a0] sm:$0xf] %vm8091_vm2, %v10534_v60  ;;  %v10279_v2 = vpack.c.bf16 %v4928_v62, %v4928_v62  ;;  %v10535_v3 = vpack.c.bf16 %v5952_v63, %v5952_v63 }
 0x4da   : > { %8325 = vst.msk [vmem:[%s11794_s20 + $0x3a4] sm:$0xf] %vm8091_vm2, %v10279_v2  ;;  %8581 = vst.msk [vmem:[%s11794_s20 + $0x7a4] sm:$0xf] %vm8091_vm2, %v10535_v3 }
 0x4db   : > { %v4932_v4 = vpop.f32.mrb[212].mxu0  ;;  %v5956_v5 = vpop.f32.mrb[212].mxu1 }
 0x4dc   : > { %v4933_v6 = vadd.f32 %v13774_v29, %v4932_v4  ;;  %v5957_v7 = vadd.f32 %v13774_v29, %v5956_v5  ;;  %v4934_v8 = vpop.f32.mrb[213].mxu0  ;;  %v5958_v9 = vpop.f32.mrb[213].mxu1 }
 0x4dd   : > { %v4935_v10 = vpop.f32.mrb[214].mxu0  ;;  %v5959_v23 = vpop.f32.mrb[214].mxu1 }
 0x4de   : > { %v10280_v11 = vpack.c.bf16 %v4933_v6, %v4933_v6  ;;  %v10536_v13 = vpack.c.bf16 %v5957_v7, %v5957_v7  ;;  %v4936_v14 = vadd.f32 %v13774_v29, %v4935_v10  ;;  %v5960_v15 = vadd.f32 %v13774_v29, %v5959_v23  ;;  %v4937_v16 = vpop.f32.mrb[215].mxu0  ;;  %v5961_v17 = vpop.f32.mrb[215].mxu1 }
 0x4e0   : > { %8326 = vst.msk [vmem:[%s11794_s20 + $0x3a8] sm:$0xf] %vm8091_vm2, %v10280_v11  ;;  %8582 = vst.msk [vmem:[%s11794_s20 + $0x7a8] sm:$0xf] %vm8091_vm2, %v10536_v13  ;;  %v10281_v18 = vpack.c.bf16 %v4936_v14, %v4936_v14  ;;  %v10537_v19 = vpack.c.bf16 %v5960_v15, %v5960_v15 }
 0x4e2   : > { %8327 = vst.msk [vmem:[%s11794_s20 + $0x3ac] sm:$0xf] %vm8091_vm2, %v10281_v18  ;;  %8583 = vst.msk [vmem:[%s11794_s20 + $0x7ac] sm:$0xf] %vm8091_vm2, %v10537_v19 }
 0x4e3   : > { %v4940_v20 = vpop.f32.mrb[216].mxu0  ;;  %v5964_v21 = vpop.f32.mrb[216].mxu1 }
 0x4e4   : > { %v4941_v22 = vadd.f32 %v13774_v29, %v4940_v20  ;;  %v5965_v24 = vadd.f32 %v13774_v29, %v5964_v21  ;;  %v4942_v28 = vpop.f32.mrb[217].mxu0  ;;  %v5966_v25 = vpop.f32.mrb[217].mxu1 }
 0x4e5   : > { %v4943_v26 = vpop.f32.mrb[218].mxu0  ;;  %v5967_v39 = vpop.f32.mrb[218].mxu1 }
 0x4e6   : > { %v10282_v27 = vpack.c.bf16 %v4941_v22, %v4941_v22  ;;  %v10538_v30 = vpack.c.bf16 %v5965_v24, %v5965_v24  ;;  %v4944_v31 = vadd.f32 %v13774_v29, %v4943_v26  ;;  %v5968_v32 = vadd.f32 %v13774_v29, %v5967_v39  ;;  %v4945_v33 = vpop.f32.mrb[219].mxu0  ;;  %v5969_v12 = vpop.f32.mrb[219].mxu1 }
 0x4e8   : > { %8328 = vst.msk [vmem:[%s11794_s20 + $0x3b0] sm:$0xf] %vm8091_vm2, %v10282_v27  ;;  %8584 = vst.msk [vmem:[%s11794_s20 + $0x7b0] sm:$0xf] %vm8091_vm2, %v10538_v30  ;;  %v10283_v34 = vpack.c.bf16 %v4944_v31, %v4944_v31  ;;  %v10539_v35 = vpack.c.bf16 %v5968_v32, %v5968_v32 }
 0x4ea   : > { %8329 = vst.msk [vmem:[%s11794_s20 + $0x3b4] sm:$0xf] %vm8091_vm2, %v10283_v34  ;;  %8585 = vst.msk [vmem:[%s11794_s20 + $0x7b4] sm:$0xf] %vm8091_vm2, %v10539_v35 }
 0x4eb   : > { %v4948_v36 = vpop.f32.mrb[220].mxu0  ;;  %v5972_v37 = vpop.f32.mrb[220].mxu1 }
 0x4ec   : > { %v4949_v38 = vadd.f32 %v13774_v29, %v4948_v36  ;;  %v5973_v40 = vadd.f32 %v13774_v29, %v5972_v37  ;;  %v4950_v44 = vpop.f32.mrb[221].mxu0  ;;  %v5974_v41 = vpop.f32.mrb[221].mxu1 }
 0x4ed   : > { %v4951_v42 = vpop.f32.mrb[222].mxu0  ;;  %v5975_v61 = vpop.f32.mrb[222].mxu1 }
 0x4ee   : > { %v10284_v43 = vpack.c.bf16 %v4949_v38, %v4949_v38  ;;  %v10540_v45 = vpack.c.bf16 %v5973_v40, %v5973_v40  ;;  %v4952_v46 = vadd.f32 %v13774_v29, %v4951_v42  ;;  %v5976_v47 = vadd.f32 %v13774_v29, %v5975_v61  ;;  %v4953_v48 = vpop.f32.mrb[223].mxu0  ;;  %v5977_v49 = vpop.f32.mrb[223].mxu1 }
 0x4f0   : > { %8330 = vst.msk [vmem:[%s11794_s20 + $0x3b8] sm:$0xf] %vm8091_vm2, %v10284_v43  ;;  %8586 = vst.msk [vmem:[%s11794_s20 + $0x7b8] sm:$0xf] %vm8091_vm2, %v10540_v45  ;;  %v10285_v50 = vpack.c.bf16 %v4952_v46, %v4952_v46  ;;  %v10541_v51 = vpack.c.bf16 %v5976_v47, %v5976_v47 }
 0x4f2   : > { %8331 = vst.msk [vmem:[%s11794_s20 + $0x3bc] sm:$0xf] %vm8091_vm2, %v10285_v50  ;;  %8587 = vst.msk [vmem:[%s11794_s20 + $0x7bc] sm:$0xf] %vm8091_vm2, %v10541_v51 }
 0x4f3   : > { %v4956_v52 = vpop.f32.mrb[224].mxu0  ;;  %v5980_v53 = vpop.f32.mrb[224].mxu1 }
 0x4f4   : > { %v4957_v54 = vadd.f32 %v13774_v29, %v4956_v52  ;;  %v5981_v55 = vadd.f32 %v13774_v29, %v5980_v53  ;;  %v4958_v56 = vpop.f32.mrb[225].mxu0  ;;  %v5982_v57 = vpop.f32.mrb[225].mxu1 }
 0x4f5   : > { %v4959_v58 = vpop.f32.mrb[226].mxu0  ;;  %v5983_v59 = vpop.f32.mrb[226].mxu1 }
 0x4f6   : > { %v10286_v60 = vpack.c.bf16 %v4957_v54, %v4957_v54  ;;  %v10542_v62 = vpack.c.bf16 %v5981_v55, %v5981_v55  ;;  %v4960_v63 = vadd.f32 %v13774_v29, %v4959_v58  ;;  %v5984_v0 = vadd.f32 %v13774_v29, %v5983_v59  ;;  %v4961_v1 = vpop.f32.mrb[227].mxu0  ;;  %v5985_v2 = vpop.f32.mrb[227].mxu1 }
 0x4f8   : > { %8332 = vst.msk [vmem:[%s11794_s20 + $0x3c0] sm:$0xf] %vm8091_vm2, %v10286_v60  ;;  %8588 = vst.msk [vmem:[%s11794_s20 + $0x7c0] sm:$0xf] %vm8091_vm2, %v10542_v62  ;;  %v10287_v3 = vpack.c.bf16 %v4960_v63, %v4960_v63  ;;  %v10543_v4 = vpack.c.bf16 %v5984_v0, %v5984_v0 }
 0x4fa   : > { %8333 = vst.msk [vmem:[%s11794_s20 + $0x3c4] sm:$0xf] %vm8091_vm2, %v10287_v3  ;;  %8589 = vst.msk [vmem:[%s11794_s20 + $0x7c4] sm:$0xf] %vm8091_vm2, %v10543_v4 }
 0x4fb   : > { %v4964_v5 = vpop.f32.mrb[228].mxu0  ;;  %v5988_v6 = vpop.f32.mrb[228].mxu1 }
 0x4fc   : > { %v4965_v7 = vadd.f32 %v13774_v29, %v4964_v5  ;;  %v5989_v8 = vadd.f32 %v13774_v29, %v5988_v6  ;;  %v4966_v9 = vpop.f32.mrb[229].mxu0  ;;  %v5990_v10 = vpop.f32.mrb[229].mxu1 }
 0x4fd   : > { %v4967_v23 = vpop.f32.mrb[230].mxu0  ;;  %v5991_v11 = vpop.f32.mrb[230].mxu1 }
 0x4fe   : > { %v10288_v13 = vpack.c.bf16 %v4965_v7, %v4965_v7  ;;  %v10544_v14 = vpack.c.bf16 %v5989_v8, %v5989_v8  ;;  %v4968_v15 = vadd.f32 %v13774_v29, %v4967_v23  ;;  %v5992_v16 = vadd.f32 %v13774_v29, %v5991_v11  ;;  %v4969_v17 = vpop.f32.mrb[231].mxu0  ;;  %v5993_v18 = vpop.f32.mrb[231].mxu1 }
 0x500   : > { %8334 = vst.msk [vmem:[%s11794_s20 + $0x3c8] sm:$0xf] %vm8091_vm2, %v10288_v13  ;;  %8590 = vst.msk [vmem:[%s11794_s20 + $0x7c8] sm:$0xf] %vm8091_vm2, %v10544_v14  ;;  %v10289_v19 = vpack.c.bf16 %v4968_v15, %v4968_v15  ;;  %v10545_v20 = vpack.c.bf16 %v5992_v16, %v5992_v16 }
 0x502   : > { %8335 = vst.msk [vmem:[%s11794_s20 + $0x3cc] sm:$0xf] %vm8091_vm2, %v10289_v19  ;;  %8591 = vst.msk [vmem:[%s11794_s20 + $0x7cc] sm:$0xf] %vm8091_vm2, %v10545_v20 }
 0x503   : > { %v4972_v21 = vpop.f32.mrb[232].mxu0  ;;  %v5996_v22 = vpop.f32.mrb[232].mxu1 }
 0x504   : > { %v4973_v24 = vadd.f32 %v13774_v29, %v4972_v21  ;;  %v5997_v28 = vadd.f32 %v13774_v29, %v5996_v22  ;;  %v4974_v25 = vpop.f32.mrb[233].mxu0  ;;  %v5998_v26 = vpop.f32.mrb[233].mxu1 }
 0x505   : > { %v4975_v39 = vpop.f32.mrb[234].mxu0  ;;  %v5999_v27 = vpop.f32.mrb[234].mxu1 }
 0x506   : > { %v10290_v30 = vpack.c.bf16 %v4973_v24, %v4973_v24  ;;  %v10546_v31 = vpack.c.bf16 %v5997_v28, %v5997_v28  ;;  %v4976_v32 = vadd.f32 %v13774_v29, %v4975_v39  ;;  %v6000_v33 = vadd.f32 %v13774_v29, %v5999_v27  ;;  %v4977_v12 = vpop.f32.mrb[235].mxu0  ;;  %v6001_v34 = vpop.f32.mrb[235].mxu1 }
 0x508   : > { %8336 = vst.msk [vmem:[%s11794_s20 + $0x3d0] sm:$0xf] %vm8091_vm2, %v10290_v30  ;;  %8592 = vst.msk [vmem:[%s11794_s20 + $0x7d0] sm:$0xf] %vm8091_vm2, %v10546_v31  ;;  %v10291_v35 = vpack.c.bf16 %v4976_v32, %v4976_v32  ;;  %v10547_v36 = vpack.c.bf16 %v6000_v33, %v6000_v33 }
 0x50a   : > { %8337 = vst.msk [vmem:[%s11794_s20 + $0x3d4] sm:$0xf] %vm8091_vm2, %v10291_v35  ;;  %8593 = vst.msk [vmem:[%s11794_s20 + $0x7d4] sm:$0xf] %vm8091_vm2, %v10547_v36 }
 0x50b   : > { %v4980_v37 = vpop.f32.mrb[236].mxu0  ;;  %v6004_v38 = vpop.f32.mrb[236].mxu1 }
 0x50c   : > { %v4981_v40 = vadd.f32 %v13774_v29, %v4980_v37  ;;  %v6005_v44 = vadd.f32 %v13774_v29, %v6004_v38  ;;  %v4982_v41 = vpop.f32.mrb[237].mxu0  ;;  %v6006_v42 = vpop.f32.mrb[237].mxu1 }
 0x50d   : > { %v4983_v61 = vpop.f32.mrb[238].mxu0  ;;  %v6007_v43 = vpop.f32.mrb[238].mxu1 }
 0x50e   : > { %v10292_v45 = vpack.c.bf16 %v4981_v40, %v4981_v40  ;;  %v10548_v46 = vpack.c.bf16 %v6005_v44, %v6005_v44  ;;  %v4984_v47 = vadd.f32 %v13774_v29, %v4983_v61  ;;  %v6008_v48 = vadd.f32 %v13774_v29, %v6007_v43  ;;  %v4985_v49 = vpop.f32.mrb[239].mxu0  ;;  %v6009_v50 = vpop.f32.mrb[239].mxu1 }
 0x510   : > { %8338 = vst.msk [vmem:[%s11794_s20 + $0x3d8] sm:$0xf] %vm8091_vm2, %v10292_v45  ;;  %8594 = vst.msk [vmem:[%s11794_s20 + $0x7d8] sm:$0xf] %vm8091_vm2, %v10548_v46  ;;  %v10293_v51 = vpack.c.bf16 %v4984_v47, %v4984_v47  ;;  %v10549_v52 = vpack.c.bf16 %v6008_v48, %v6008_v48 }
 0x512   : > { %8339 = vst.msk [vmem:[%s11794_s20 + $0x3dc] sm:$0xf] %vm8091_vm2, %v10293_v51  ;;  %8595 = vst.msk [vmem:[%s11794_s20 + $0x7dc] sm:$0xf] %vm8091_vm2, %v10549_v52 }
 0x513   : > { %v4988_v53 = vpop.f32.mrb[240].mxu0  ;;  %v6012_v54 = vpop.f32.mrb[240].mxu1 }
 0x514   : > { %v4989_v55 = vadd.f32 %v13774_v29, %v4988_v53  ;;  %v6013_v56 = vadd.f32 %v13774_v29, %v6012_v54  ;;  %v4990_v57 = vpop.f32.mrb[241].mxu0  ;;  %v6014_v58 = vpop.f32.mrb[241].mxu1 }
 0x515   : > { %v4991_v59 = vpop.f32.mrb[242].mxu0  ;;  %v6015_v60 = vpop.f32.mrb[242].mxu1 }
 0x516   : > { %v10294_v62 = vpack.c.bf16 %v4989_v55, %v4989_v55  ;;  %v10550_v63 = vpack.c.bf16 %v6013_v56, %v6013_v56  ;;  %v4992_v0 = vadd.f32 %v13774_v29, %v4991_v59  ;;  %v6016_v1 = vadd.f32 %v13774_v29, %v6015_v60  ;;  %v4993_v2 = vpop.f32.mrb[243].mxu0  ;;  %v6017_v3 = vpop.f32.mrb[243].mxu1 }
 0x518   : > { %8340 = vst.msk [vmem:[%s11794_s20 + $0x3e0] sm:$0xf] %vm8091_vm2, %v10294_v62  ;;  %8596 = vst.msk [vmem:[%s11794_s20 + $0x7e0] sm:$0xf] %vm8091_vm2, %v10550_v63  ;;  %v10295_v4 = vpack.c.bf16 %v4992_v0, %v4992_v0  ;;  %v10551_v5 = vpack.c.bf16 %v6016_v1, %v6016_v1 }
 0x51a   : > { %8341 = vst.msk [vmem:[%s11794_s20 + $0x3e4] sm:$0xf] %vm8091_vm2, %v10295_v4  ;;  %8597 = vst.msk [vmem:[%s11794_s20 + $0x7e4] sm:$0xf] %vm8091_vm2, %v10551_v5 }
 0x51b   : > { %v4996_v6 = vpop.f32.mrb[244].mxu0  ;;  %v6020_v7 = vpop.f32.mrb[244].mxu1 }
 0x51c   : > { %v4997_v8 = vadd.f32 %v13774_v29, %v4996_v6  ;;  %v6021_v9 = vadd.f32 %v13774_v29, %v6020_v7  ;;  %v4998_v10 = vpop.f32.mrb[245].mxu0  ;;  %v6022_v23 = vpop.f32.mrb[245].mxu1 }
 0x51d   : > { %v4999_v11 = vpop.f32.mrb[246].mxu0  ;;  %v6023_v13 = vpop.f32.mrb[246].mxu1 }
 0x51e   : > { %v10296_v14 = vpack.c.bf16 %v4997_v8, %v4997_v8  ;;  %v10552_v15 = vpack.c.bf16 %v6021_v9, %v6021_v9  ;;  %v5000_v16 = vadd.f32 %v13774_v29, %v4999_v11  ;;  %v6024_v17 = vadd.f32 %v13774_v29, %v6023_v13  ;;  %v5001_v18 = vpop.f32.mrb[247].mxu0  ;;  %v6025_v19 = vpop.f32.mrb[247].mxu1 }
 0x520   : > { %8342 = vst.msk [vmem:[%s11794_s20 + $0x3e8] sm:$0xf] %vm8091_vm2, %v10296_v14  ;;  %8598 = vst.msk [vmem:[%s11794_s20 + $0x7e8] sm:$0xf] %vm8091_vm2, %v10552_v15  ;;  %v10297_v20 = vpack.c.bf16 %v5000_v16, %v5000_v16  ;;  %v10553_v21 = vpack.c.bf16 %v6024_v17, %v6024_v17 }
 0x522   : > { %8343 = vst.msk [vmem:[%s11794_s20 + $0x3ec] sm:$0xf] %vm8091_vm2, %v10297_v20  ;;  %8599 = vst.msk [vmem:[%s11794_s20 + $0x7ec] sm:$0xf] %vm8091_vm2, %v10553_v21 }
 0x523   : > { %v5004_v22 = vpop.f32.mrb[248].mxu0  ;;  %v6028_v24 = vpop.f32.mrb[248].mxu1 }
 0x524   : > { %v5005_v28 = vadd.f32 %v13774_v29, %v5004_v22  ;;  %v6029_v25 = vadd.f32 %v13774_v29, %v6028_v24  ;;  %v5006_v26 = vpop.f32.mrb[249].mxu0  ;;  %v6030_v39 = vpop.f32.mrb[249].mxu1 }
 0x525   : > { %v5007_v27 = vpop.f32.mrb[250].mxu0  ;;  %v6031_v30 = vpop.f32.mrb[250].mxu1 }
 0x526   : > { %v10298_v31 = vpack.c.bf16 %v5005_v28, %v5005_v28  ;;  %v10554_v32 = vpack.c.bf16 %v6029_v25, %v6029_v25  ;;  %v5008_v33 = vadd.f32 %v13774_v29, %v5007_v27  ;;  %v6032_v12 = vadd.f32 %v13774_v29, %v6031_v30  ;;  %v5009_v34 = vpop.f32.mrb[251].mxu0  ;;  %v6033_v35 = vpop.f32.mrb[251].mxu1 }
 0x528   : > { %8344 = vst.msk [vmem:[%s11794_s20 + $0x3f0] sm:$0xf] %vm8091_vm2, %v10298_v31  ;;  %8600 = vst.msk [vmem:[%s11794_s20 + $0x7f0] sm:$0xf] %vm8091_vm2, %v10554_v32  ;;  %v10299_v36 = vpack.c.bf16 %v5008_v33, %v5008_v33  ;;  %v10555_v37 = vpack.c.bf16 %v6032_v12, %v6032_v12 }
 0x52a   : > { %8345 = vst.msk [vmem:[%s11794_s20 + $0x3f4] sm:$0xf] %vm8091_vm2, %v10299_v36  ;;  %8601 = vst.msk [vmem:[%s11794_s20 + $0x7f4] sm:$0xf] %vm8091_vm2, %v10555_v37 }
 0x52b   : > { %v5012_v38 = vpop.f32.mrb[252].mxu0  ;;  %v6036_v40 = vpop.f32.mrb[252].mxu1 }
 0x52c   : > { %v5013_v44 = vadd.f32 %v13774_v29, %v5012_v38  ;;  %v6037_v41 = vadd.f32 %v13774_v29, %v6036_v40  ;;  %v5014_v42 = vpop.f32.mrb[253].mxu0  ;;  %v6038_v61 = vpop.f32.mrb[253].mxu1 }
 0x52d   : > { %v5015_v43 = vpop.f32.mrb[254].mxu0  ;;  %v6039_v45 = vpop.f32.mrb[254].mxu1 }
 0x52e   : > { %v10300_v46 = vpack.c.bf16 %v5013_v44, %v5013_v44  ;;  %v10556_v47 = vpack.c.bf16 %v6037_v41, %v6037_v41  ;;  %v5016_v48 = vadd.f32 %v13774_v29, %v5015_v43  ;;  %v6040_v49 = vadd.f32 %v13774_v29, %v6039_v45  ;;  %v5017_v50 = vpop.f32.mrb[255].mxu0  ;;  %v6041_v51 = vpop.f32.mrb[255].mxu1 }
 0x530   : > { %8346 = vst.msk [vmem:[%s11794_s20 + $0x3f8] sm:$0xf] %vm8091_vm2, %v10300_v46  ;;  %8602 = vst.msk [vmem:[%s11794_s20 + $0x7f8] sm:$0xf] %vm8091_vm2, %v10556_v47  ;;  %v10301_v52 = vpack.c.bf16 %v5016_v48, %v5016_v48  ;;  %v10557_v53 = vpack.c.bf16 %v6040_v49, %v6040_v49 }
 0x532   : > { %8347 = vst.msk [vmem:[%s11794_s20 + $0x3fc] sm:$0xf] %vm8091_vm2, %v10301_v52  ;;  %8603 = vst.msk [vmem:[%s11794_s20 + $0x7fc] sm:$0xf] %vm8091_vm2, %v10557_v53 }
 0x533 PF: > { %s14_s14 = sadd.s32 1, %s11461_s14   ;;  %s13963_s12 = smov %s11457_s13 }
 0x534   : > { %p11_p4 = scmp.ge.s32.totalorder %s14_s14, 10   ;;  %s13964_s13 = smov %s13966_s16 }
 0x536   :  { %13 = sbr.rel (!%p11_p4) target bundleno = 2 (0x2), region = 71 }
 0x53d   :  { %8640 = vsyncpa [#allocation3], 1 }
 0x53e   :  { %8642 = vsyncpa [#allocation3 + $0x1], 1 }

</bundles_post_ra>
